<compile_context>
chip_gen: v5e
topology: v5e:2x2
jax: 0.10.0
libtpu: 0.0.40
codegen_flags: <defaults>
</compile_context>

<pallas_src>
import jax
import jax.numpy as jnp
from jax.experimental import pallas as pl
from jax.experimental.pallas import tpu as pltpu

# ----------------------------- static config --------------------------------
GRID = 16                 # BEV grid is GRID x GRID
HALF = GRID // 2          # 8  (parity-plane extent)
QUAD = HALF * HALF        # 64 (cells per parity plane)
MAX_PTS = 8               # max points per pillar
HW = GRID * GRID          # dense pillar count == number of BEV cells (256)
VFE_OUT = 64              # pillar feature dim / num_bev_features
FEAT_IN = 16              # padded VFE input feature width (10 real + kill + pad)
BN_EPS = 1e-3


# ============================ fused Pallas kernel ============================

def teacher_kernel(feat_ref, wv_ref, bv_ref, w1_ref, b1_ref, w2_ref, b2_ref,
                   wd1_ref, bd1_ref, wd2_ref, bd2_ref, out_ref, pp_ref):
    """One batch element per program: PillarVFE -> BEV -> BaseBEVBackbone.

    All spatial maps use PARITY-GROUPED row order:
        row(i, j) = ((i%2)*2 + (j%2)) * 64 + (i//2)*8 + (j//2)
    pp_ref is a (4, 9, 9, 64) scratch holding the four zero-PADDED parity planes
    PP[q=(2qi+qj), r, s, :] = x_pad[2r+qi, 2s+qj, :] of the current 16x16 map.
    """
    # ---------------- PillarVFE: Linear(+folded BN) + ReLU + masked max -------
    feat = feat_ref[0]                                        # (2048, 16)
    y = jnp.dot(feat, wv_ref[...], preferred_element_type=jnp.float32) + bv_ref[...]
    y = jnp.maximum(y, 0.0)                                   # kill row => 0 for pads
    bev = jnp.max(y.reshape(HW, MAX_PTS, VFE_OUT), axis=1)    # (256, 64) parity-grouped
    # map_to_bev: pillar row order == chosen BEV row order -> it's a no-op.

    # -------- helpers: padded parity planes + unit-stride window reads --------
    def fill_pp(x_pg):
        """x_pg: (256, 64) parity-grouped map -> pp_ref padded parity planes."""
        zr = jnp.zeros((1, HALF + 1, VFE_OUT), jnp.float32)
        zc = jnp.zeros((HALF + 1, 1, VFE_OUT), jnp.float32)
        for qi in range(2):
            for qj in range(2):
                q = 2 * qi + qj
                # zero only the 1-wide padding row / column of this plane
                pp_ref[q, qi * HALF:qi * HALF + 1, :, :] = zr
                pp_ref[q, :, qj * HALF:qj * HALF + 1, :] = zc
                # interior: PP[qi,qj, r, s] = x[2r+qi-1, 2s+qj-1]
                #         = plane(1-qi, 1-qj)[r-1+qi, s-1+qj]
                blk = x_pg[(3 - q) * QUAD:(4 - q) * QUAD, :].reshape(
                    HALF, HALF, VFE_OUT)
                pp_ref[q, 1 - qi:1 - qi + HALF, 1 - qj:1 - qj + HALF, :] = blk

    def win(qi, qj, r0, c0):
        q = 2 * qi + qj
        return pp_ref[q, r0:r0 + HALF, c0:c0 + HALF, :].reshape(QUAD, VFE_OUT)

    # ---------- backbone block1: 3x3 conv, stride 1 (+folded BN, ReLU) --------
    # shift-and-accumulate matmuls (no im2col slab, all unit-stride windows)
    fill_pp(bev)
    x1_blocks = []
    for pi in range(2):                   # output parity rows
        for pj in range(2):               # output parity cols
            acc = jnp.zeros((QUAD, VFE_OUT), jnp.float32)
            for kh in range(3):
                for kw in range(3):
                    w = win((pi + kh) % 2, (pj + kw) % 2,
                            (pi + kh) // 2, (pj + kw) // 2)
                    acc = acc + jnp.dot(w, w1_ref[kh * 3 + kw],
                                        preferred_element_type=jnp.float32)
            x1_blocks.append(acc)
    x1 = jnp.maximum(jnp.concatenate(x1_blocks, axis=0) + b1_ref[...], 0.0)  # (256,64)

    # ---------------- deblock1: 1x1 conv (+folded BN, ReLU) -------------------
    up1 = jnp.maximum(
        jnp.dot(x1, wd1_ref[...], preferred_element_type=jnp.float32) + bd1_ref[...],
        0.0)                                                                  # (256,64)

    # ------- backbone block2: 3x3 conv, stride 2 -> computed at 8x8 only ------
    fill_pp(x1)
    acc2 = jnp.zeros((QUAD, 2 * VFE_OUT), jnp.float32)
    for kh in range(3):
        for kw in range(3):
            acc2 = acc2 + jnp.dot(win(kh % 2, kw % 2, kh // 2, kw // 2),
                                  w2_ref[kh * 3 + kw],
                                  preferred_element_type=jnp.float32)
    x2 = jnp.maximum(acc2 + b2_ref[...], 0.0)                                 # (64,128)

    # -------- deblock2: ConvTranspose2d(k=2, s=2) (+BN, ReLU), fused phases ---
    # one (64,128)@(128,256) matmul; phase p = 2*dh+dw is exactly the output
    # parity block p in parity-grouped order -> a simple row concat, no interleave.
    y2 = jnp.dot(x2, wd2_ref[...], preferred_element_type=jnp.float32) + bd2_ref[...]
    y2 = jnp.maximum(y2, 0.0)                                                 # (64,256)
    up2 = jnp.concatenate(
        [y2[:, p * VFE_OUT:(p + 1) * VFE_OUT] for p in range(4)], axis=0)     # (256,64)

    # ---------------- output: concat([up1, up2], channel) ---------------------
    out_ref[0, :, 0:VFE_OUT] = up1
    out_ref[0, :, VFE_OUT:2 * VFE_OUT] = up2


def _make_teacher_call(B):
    return pl.pallas_call(
        teacher_kernel,
        out_shape=jax.ShapeDtypeStruct((B, HW, 2 * VFE_OUT), jnp.float32),
        grid=(B,),
        in_specs=[
            pl.BlockSpec((1, HW * MAX_PTS, FEAT_IN), lambda b: (b, 0, 0)),
            pl.BlockSpec((FEAT_IN, VFE_OUT), lambda b: (0, 0)),
            pl.BlockSpec((1, VFE_OUT), lambda b: (0, 0)),
            pl.BlockSpec((9, 64, 64), lambda b: (0, 0, 0)),
            pl.BlockSpec((1, 64), lambda b: (0, 0)),
            pl.BlockSpec((9, 64, 128), lambda b: (0, 0, 0)),
            pl.BlockSpec((1, 128), lambda b: (0, 0)),
            pl.BlockSpec((64, 64), lambda b: (0, 0)),
            pl.BlockSpec((1, 64), lambda b: (0, 0)),
            pl.BlockSpec((128, 256), lambda b: (0, 0)),
            pl.BlockSpec((1, 256), lambda b: (0, 0)),
        ],
        out_specs=pl.BlockSpec((1, HW, 2 * VFE_OUT), lambda b: (b, 0, 0)),
        scratch_shapes=[
            pltpu.VMEM((4, HALF + 1, HALF + 1, VFE_OUT), jnp.float32),
        ],
        compiler_params=pltpu.CompilerParams(
            dimension_semantics=("parallel",)),
    )


# ============ on-device pillarization + point augmentation (plain JAX) =======

def pillarize_features(points):
    """(B, N, 4) points -> (B, HW*MAX_PTS, 16) dense VFE input slab.

    Pillar row order is parity-grouped ((cy%2)*2+(cx%2), cy//2, cx//2) so the
    Pallas kernel's map_to_bev is a no-op and all stride-2 accesses are
    unit-stride.  Channels: 0..9 = [x,y,z,r, f_cluster(3), f_center_x, f_center_y, z],
    channel 10 = (1 - valid) "kill" flag, channels 11..15 = 0.
    TODO(synk): O(N^2) slot assignment + one-hot scatter is fine for demo-sized
                clouds; replace with a sort/segment or DMA-gather voxelizer for
                realistic point counts.
    """
    B, N, _ = points.shape
    px, py, pz, pr = (points[..., 0], points[..., 1],
                      points[..., 2], points[..., 3])
    cx = jnp.clip(jnp.floor(px), 0, GRID - 1).astype(jnp.int32)
    cy = jnp.clip(jnp.floor(py), 0, GRID - 1).astype(jnp.int32)
    cell = ((cy % 2) * 2 + (cx % 2)) * QUAD + (cy // 2) * HALF + (cx // 2)  # (B,N)
    # slot = number of earlier points in the same cell (keep first MAX_PTS)
    same = cell[:, :, None] == cell[:, None, :]
    earlier = jnp.arange(N)[None, :, None] > jnp.arange(N)[None, None, :]
    slot = jnp.sum(same & earlier, axis=-1).astype(jnp.int32)
    valid = slot < MAX_PTS
    flat = cell * MAX_PTS + jnp.minimum(slot, MAX_PTS - 1)
    onehot = (flat[:, :, None] == jnp.arange(HW * MAX_PTS)[None, None, :])
    onehot = (onehot & valid[:, :, None]).astype(points.dtype)              # (B,N,2048)
    fcx = px - (cx.astype(points.dtype) + 0.5)      # f_center (voxel size 1.0)
    fcy = py - (cy.astype(points.dtype) + 0.5)
    src = jnp.stack([px, py, pz, pr, fcx, fcy, jnp.ones_like(px)], axis=-1)  # (B,N,7)
    dense = jnp.einsum('bnk,bnc->bkc', onehot, src).reshape(B, HW, MAX_PTS, 7)
    mask = dense[..., 6:7]
    xyz = dense[..., 0:3]
    cnt = jnp.maximum(jnp.sum(mask, axis=2, keepdims=True), 1.0)
    mean = jnp.sum(xyz * mask, axis=2, keepdims=True) / cnt
    f_cluster = xyz - mean
    feat10 = jnp.concatenate(
        [dense[..., 0:4], f_cluster, dense[..., 4:6], dense[..., 2:3]],
        axis=-1) * mask                                                      # (B,HW,M,10)
    kill = 1.0 - mask
    feat16 = jnp.concatenate(
        [feat10, kill, jnp.zeros(feat10.shape[:-1] + (5,), feat10.dtype)], axis=-1)
    return feat16.reshape(B, HW * MAX_PTS, FEAT_IN)


# =========================== end-to-end jitted forward ======================

@jax.jit
def teacher_pipeline(points, params):
    B = points.shape[0]
    feat = pillarize_features(points)
    out = _make_teacher_call(B)(
        feat,
        params['w_vfe'], params['b_vfe'],
        params['w1'], params['b1'],
        params['w2'], params['b2'],
        params['wd1'], params['bd1'],
        params['wd2'], params['bd2'])                      # (B, 256, 128) parity rows
    # un-parity: rows = ((i%2)*2+(j%2))*64 + (i//2)*8 + (j//2)  ->  NCHW
    o = out.reshape(B, 2, 2, HALF, HALF, 2 * VFE_OUT)      # [pi, pj, u, v, c]
    o = o.transpose(0, 3, 1, 4, 2, 5).reshape(B, GRID, GRID, 2 * VFE_OUT)
    return o.transpose(0, 3, 1, 2)                         # (B, 128, 16, 16)


def teacher_forward(batch_dict, params):
    """Mirror of Teacher.forward: clones points, runs VFE -> map_to_bev ->
    backbone_2d, writes 'teacher_spatial_features_2d' into batch_dict."""
    points = batch_dict['points']            # (B, N, 4) -- (x, y, z, intensity)
    _ = batch_dict['instances_tf']           # TODO(synk): OracleCorrector not modeled
    batch_dict['teacher_spatial_features_2d'] = teacher_pipeline(points, params)
    return batch_dict


# ============================== synthetic params =============================

def fold_bn(w, gamma, beta, mean, var, eps=BN_EPS):
    scale = gamma / jnp.sqrt(var + eps)
    return w * scale, (beta - mean * scale)[None, :]


def init_params(seed=42):
    key = jax.random.PRNGKey(seed)
    ks = jax.random.split(key, 24)

    def bn(i, c):
        return (1.0 + 0.1 * jax.random.normal(ks[i], (c,)),
                0.1 * jax.random.normal(ks[i + 1], (c,)),
                0.1 * jax.random.normal(ks[i + 2], (c,)),
                1.0 + 0.1 * jnp.abs(jax.random.normal(ks[i + 3], (c,))))

    p = {}
    # VFE: Linear(10 -> 64, bias=False) + BN1d folded; appended rows: "kill"
    # channel (-1e9 => ReLU zeroes padding slots) + zero padding rows.
    w_vfe = jax.random.normal(ks[0], (10, VFE_OUT)) * (0.1 / jnp.sqrt(10.0))
    w_vfe, p['b_vfe'] = fold_bn(w_vfe, *bn(1, VFE_OUT))
    p['w_vfe'] = jnp.concatenate(
        [w_vfe, jnp.full((1, VFE_OUT), -1e9, w_vfe.dtype),
         jnp.zeros((5, VFE_OUT), w_vfe.dtype)], axis=0)                      # (16,64)
    # backbone block 1: Conv3x3(64->64, s=1) + BN folded  (per-tap weight layout)
    w1 = jax.random.normal(ks[5], (3, 3, 64, 64)) * (0.1 / jnp.sqrt(9.0 * 64))
    w1, p['b1'] = fold_bn(w1, *bn(6, 64))
    p['w1'] = w1.reshape(9, 64, 64)
    # backbone block 2: Conv3x3(64->128, s=2) + BN folded
    w2 = jax.random.normal(ks[10], (3, 3, 64, 128)) * (0.1 / jnp.sqrt(9.0 * 64))
    w2, p['b2'] = fold_bn(w2, *bn(11, 128))
    p['w2'] = w2.reshape(9, 64, 128)
    # deblock 1: Conv1x1(64->64) + BN folded
    wd1 = jax.random.normal(ks[15], (64, 64)) * (0.1 / jnp.sqrt(64.0))
    p['wd1'], p['bd1'] = fold_bn(wd1, *bn(16, 64))
    # deblock 2: ConvTranspose2d(128->64, k=2, s=2) + BN folded, 4 phase weights
    # concatenated along the output dim (col block p = 2*dh + dw).
    # TODO(synk): PyTorch stores ConvTranspose2d weight as (in,out,kH,kW) -- permute
    #             accordingly when real checkpoint loading is added.
    wd2 = jax.random.normal(ks[20], (2, 2, 128, 64)) * (0.1 / jnp.sqrt(128.0))
    wd2, bd2 = fold_bn(wd2, *bn(1, 64))   # reuse BN stat keys deterministically
    p['wd2'] = wd2.reshape(4, 128, 64).transpose(1, 0, 2).reshape(128, 4 * 64)
    p['bd2'] = jnp.tile(bd2, (1, 4))
    return p


# ================================== main =====================================

if __name__ == "__main__":
    key = jax.random.PRNGKey(0)
    B, N = 2, 256
    kxy, kz, kr = jax.random.split(key, 3)
    xy = jax.random.uniform(kxy, (B, N, 2), minval=0.0, maxval=16.0)
    z = jax.random.uniform(kz, (B, N, 1), minval=-1.0, maxval=1.0)
    r = jax.random.uniform(kr, (B, N, 1), minval=0.0, maxval=1.0)
    points = jnp.concatenate([xy, z, r], axis=-1).astype(jnp.float32)
    instances_tf = jnp.tile(jnp.eye(4, dtype=jnp.float32)[None, None], (B, 2, 1, 1))

    params = init_params()
    batch_dict = {"points": points, "instances_tf": instances_tf}
    out = teacher_forward(batch_dict, params)
    sf = jax.block_until_ready(out["teacher_spatial_features_2d"])
    assert sf.shape == (B, 2 * VFE_OUT, GRID, GRID) and sf.dtype == jnp.float32
    assert bool(jnp.all(jnp.isfinite(sf)))
    print("KERNEL_OK")
</pallas_src>

<mosaic_0001>
module attributes {stable_mosaic.version = 11 : i64} {
  func.func @teacher_kernel(%arg0: i32, %arg1: memref<1x2048x16xf32, #tpu.memory_space<vmem>>, %arg2: memref<16x64xf32, #tpu.memory_space<vmem>>, %arg3: memref<1x64xf32, #tpu.memory_space<vmem>>, %arg4: memref<9x64x64xf32, #tpu.memory_space<vmem>>, %arg5: memref<1x64xf32, #tpu.memory_space<vmem>>, %arg6: memref<9x64x128xf32, #tpu.memory_space<vmem>>, %arg7: memref<1x128xf32, #tpu.memory_space<vmem>>, %arg8: memref<64x64xf32, #tpu.memory_space<vmem>>, %arg9: memref<1x64xf32, #tpu.memory_space<vmem>>, %arg10: memref<128x256xf32, #tpu.memory_space<vmem>>, %arg11: memref<1x256xf32, #tpu.memory_space<vmem>>, %arg12: memref<1x256x128xf32, #tpu.memory_space<vmem>>, %arg13: memref<4x9x9x64xf32, #tpu.memory_space<vmem>>) attributes {dimension_semantics = [#tpu.dimension_semantics<parallel>], iteration_bounds = array<i64: 2>, scalar_prefetch = 0 : i64, scratch_operands = 1 : i64, tpu.core_type = #tpu.core_type<tc>, window_params = [{transform_indices = @transform_0, window_bounds = array<i64: 1, 2048, 16>}, {pipeline_mode = #tpu.pipeline_mode<synchronous>, transform_indices = @transform_1, window_bounds = array<i64: 16, 64>}, {pipeline_mode = #tpu.pipeline_mode<synchronous>, transform_indices = @transform_2, window_bounds = array<i64: 1, 64>}, {pipeline_mode = #tpu.pipeline_mode<synchronous>, transform_indices = @transform_3, window_bounds = array<i64: 9, 64, 64>}, {pipeline_mode = #tpu.pipeline_mode<synchronous>, transform_indices = @transform_4, window_bounds = array<i64: 1, 64>}, {pipeline_mode = #tpu.pipeline_mode<synchronous>, transform_indices = @transform_5, window_bounds = array<i64: 9, 64, 128>}, {pipeline_mode = #tpu.pipeline_mode<synchronous>, transform_indices = @transform_6, window_bounds = array<i64: 1, 128>}, {pipeline_mode = #tpu.pipeline_mode<synchronous>, transform_indices = @transform_7, window_bounds = array<i64: 64, 64>}, {pipeline_mode = #tpu.pipeline_mode<synchronous>, transform_indices = @transform_8, window_bounds = array<i64: 1, 64>}, {pipeline_mode = #tpu.pipeline_mode<synchronous>, transform_indices = @transform_9, window_bounds = array<i64: 128, 256>}, {pipeline_mode = #tpu.pipeline_mode<synchronous>, transform_indices = @transform_10, window_bounds = array<i64: 1, 256>}, {transform_indices = @transform_11, window_bounds = array<i64: 1, 256, 128>}]} {
    %c0 = arith.constant 0 : index
    %c0_0 = arith.constant 0 : index
    %c0_1 = arith.constant 0 : index
    %0 = vector.load %arg1[%c0, %c0_0, %c0_1] : memref<1x2048x16xf32, #tpu.memory_space<vmem>>, vector<1x2048x16xf32>
    %1 = vector.shape_cast %0 : vector<1x2048x16xf32> to vector<2048x16xf32>
    %c0_2 = arith.constant 0 : index
    %c0_3 = arith.constant 0 : index
    %2 = vector.load %arg2[%c0_2, %c0_3] : memref<16x64xf32, #tpu.memory_space<vmem>>, vector<16x64xf32>
    %cst = arith.constant dense<0.000000e+00> : vector<2048x64xf32>
    %3 = tpu.matmul %1, %2, %cst {dimension_numbers = #tpu.dot_dimension_numbers<[1], [0], [0], [1], [0, 0, 1, 1], [], []>} : vector<2048x16xf32>, vector<16x64xf32>, vector<2048x64xf32> -> vector<2048x64xf32>
    %c0_4 = arith.constant 0 : index
    %c0_5 = arith.constant 0 : index
    %4 = vector.load %arg3[%c0_4, %c0_5] : memref<1x64xf32, #tpu.memory_space<vmem>>, vector<1x64xf32>
    %5 = vector.broadcast %4 : vector<1x64xf32> to vector<2048x64xf32>
    %6 = arith.addf %3, %5 : vector<2048x64xf32>
    %cst_6 = arith.constant 0.000000e+00 : f32
    %7 = vector.broadcast %cst_6 : f32 to vector<2048x64xf32>
    %8 = arith.maximumf %6, %7 : vector<2048x64xf32>
    %9 = vector.shape_cast %8 : vector<2048x64xf32> to vector<256x8x64xf32>
    %cst_7 = arith.constant dense<0xFF800000> : vector<256x64xf32>
    %10 = vector.multi_reduction <maximumf>, %9, %cst_7 [1] : vector<256x8x64xf32> to vector<256x64xf32>
    %cst_8 = arith.constant 0.000000e+00 : f32
    %11 = vector.broadcast %cst_8 : f32 to vector<1x9x64xf32>
    %cst_9 = arith.constant 0.000000e+00 : f32
    %12 = vector.broadcast %cst_9 : f32 to vector<9x1x64xf32>
    %c0_10 = arith.constant 0 : index
    %c0_11 = arith.constant 0 : index
    %c0_12 = arith.constant 0 : index
    %c0_13 = arith.constant 0 : index
    %13 = vector.load %arg13[%c0_10, %c0_11, %c0_12, %c0_13] : memref<4x9x9x64xf32, #tpu.memory_space<vmem>>, vector<1x1x9x64xf32>
    %14 = vector.shape_cast %13 : vector<1x1x9x64xf32> to vector<1x9x64xf32>
    %15 = vector.shape_cast %11 : vector<1x9x64xf32> to vector<1x1x9x64xf32>
    tpu.vector_store %arg13[%c0_10, %c0_11, %c0_12, %c0_13], %15 {strides = array<i32>} : memref<4x9x9x64xf32, #tpu.memory_space<vmem>>, vector<1x1x9x64xf32>,
    %c0_14 = arith.constant 0 : index
    %c0_15 = arith.constant 0 : index
    %c0_16 = arith.constant 0 : index
    %c0_17 = arith.constant 0 : index
    %16 = vector.load %arg13[%c0_14, %c0_15, %c0_16, %c0_17] : memref<4x9x9x64xf32, #tpu.memory_space<vmem>>, vector<1x9x1x64xf32>
    %17 = vector.shape_cast %16 : vector<1x9x1x64xf32> to vector<9x1x64xf32>
    %18 = vector.shape_cast %12 : vector<9x1x64xf32> to vector<1x9x1x64xf32>
    tpu.vector_store %arg13[%c0_14, %c0_15, %c0_16, %c0_17], %18 {strides = array<i32>} : memref<4x9x9x64xf32, #tpu.memory_space<vmem>>, vector<1x9x1x64xf32>,
    %19 = vector.extract_strided_slice %10 {offsets = [192, 0], sizes = [64, 64], strides = [1, 1]} : vector<256x64xf32> to vector<64x64xf32>
    %20 = vector.shape_cast %19 : vector<64x64xf32> to vector<8x8x64xf32>
    %c0_18 = arith.constant 0 : index
    %c1 = arith.constant 1 : index
    %c1_19 = arith.constant 1 : index
    %c0_20 = arith.constant 0 : index
    %21 = vector.load %arg13[%c0_18, %c1, %c1_19, %c0_20] : memref<4x9x9x64xf32, #tpu.memory_space<vmem>>, vector<1x8x8x64xf32>
    %22 = vector.shape_cast %21 : vector<1x8x8x64xf32> to vector<8x8x64xf32>
    %23 = vector.shape_cast %20 : vector<8x8x64xf32> to vector<1x8x8x64xf32>
    tpu.vector_store %arg13[%c0_18, %c1, %c1_19, %c0_20], %23 {strides = array<i32>} : memref<4x9x9x64xf32, #tpu.memory_space<vmem>>, vector<1x8x8x64xf32>,
    %c1_21 = arith.constant 1 : index
    %c0_22 = arith.constant 0 : index
    %c0_23 = arith.constant 0 : index
    %c0_24 = arith.constant 0 : index
    %24 = vector.load %arg13[%c1_21, %c0_22, %c0_23, %c0_24] : memref<4x9x9x64xf32, #tpu.memory_space<vmem>>, vector<1x1x9x64xf32>
    %25 = vector.shape_cast %24 : vector<1x1x9x64xf32> to vector<1x9x64xf32>
    %26 = vector.shape_cast %11 : vector<1x9x64xf32> to vector<1x1x9x64xf32>
    tpu.vector_store %arg13[%c1_21, %c0_22, %c0_23, %c0_24], %26 {strides = array<i32>} : memref<4x9x9x64xf32, #tpu.memory_space<vmem>>, vector<1x1x9x64xf32>,
    %c1_25 = arith.constant 1 : index
    %c0_26 = arith.constant 0 : index
    %c8 = arith.constant 8 : index
    %c0_27 = arith.constant 0 : index
    %27 = vector.load %arg13[%c1_25, %c0_26, %c8, %c0_27] : memref<4x9x9x64xf32, #tpu.memory_space<vmem>>, vector<1x9x1x64xf32>
    %28 = vector.shape_cast %27 : vector<1x9x1x64xf32> to vector<9x1x64xf32>
    %29 = vector.shape_cast %12 : vector<9x1x64xf32> to vector<1x9x1x64xf32>
    tpu.vector_store %arg13[%c1_25, %c0_26, %c8, %c0_27], %29 {strides = array<i32>} : memref<4x9x9x64xf32, #tpu.memory_space<vmem>>, vector<1x9x1x64xf32>,
    %30 = vector.extract_strided_slice %10 {offsets = [128, 0], sizes = [64, 64], strides = [1, 1]} : vector<256x64xf32> to vector<64x64xf32>
    %31 = vector.shape_cast %30 : vector<64x64xf32> to vector<8x8x64xf32>
    %c1_28 = arith.constant 1 : index
    %c1_29 = arith.constant 1 : index
    %c0_30 = arith.constant 0 : index
    %c0_31 = arith.constant 0 : index
    %32 = vector.load %arg13[%c1_28, %c1_29, %c0_30, %c0_31] : memref<4x9x9x64xf32, #tpu.memory_space<vmem>>, vector<1x8x8x64xf32>
    %33 = vector.shape_cast %32 : vector<1x8x8x64xf32> to vector<8x8x64xf32>
    %34 = vector.shape_cast %31 : vector<8x8x64xf32> to vector<1x8x8x64xf32>
    tpu.vector_store %arg13[%c1_28, %c1_29, %c0_30, %c0_31], %34 {strides = array<i32>} : memref<4x9x9x64xf32, #tpu.memory_space<vmem>>, vector<1x8x8x64xf32>,
    %c2 = arith.constant 2 : index
    %c8_32 = arith.constant 8 : index
    %c0_33 = arith.constant 0 : index
    %c0_34 = arith.constant 0 : index
    %35 = vector.load %arg13[%c2, %c8_32, %c0_33, %c0_34] : memref<4x9x9x64xf32, #tpu.memory_space<vmem>>, vector<1x1x9x64xf32>
    %36 = vector.shape_cast %35 : vector<1x1x9x64xf32> to vector<1x9x64xf32>
    %37 = vector.shape_cast %11 : vector<1x9x64xf32> to vector<1x1x9x64xf32>
    tpu.vector_store %arg13[%c2, %c8_32, %c0_33, %c0_34], %37 {strides = array<i32>} : memref<4x9x9x64xf32, #tpu.memory_space<vmem>>, vector<1x1x9x64xf32>,
    %c2_35 = arith.constant 2 : index
    %c0_36 = arith.constant 0 : index
    %c0_37 = arith.constant 0 : index
    %c0_38 = arith.constant 0 : index
    %38 = vector.load %arg13[%c2_35, %c0_36, %c0_37, %c0_38] : memref<4x9x9x64xf32, #tpu.memory_space<vmem>>, vector<1x9x1x64xf32>
    %39 = vector.shape_cast %38 : vector<1x9x1x64xf32> to vector<9x1x64xf32>
    %40 = vector.shape_cast %12 : vector<9x1x64xf32> to vector<1x9x1x64xf32>
    tpu.vector_store %arg13[%c2_35, %c0_36, %c0_37, %c0_38], %40 {strides = array<i32>} : memref<4x9x9x64xf32, #tpu.memory_space<vmem>>, vector<1x9x1x64xf32>,
    %41 = vector.extract_strided_slice %10 {offsets = [64, 0], sizes = [64, 64], strides = [1, 1]} : vector<256x64xf32> to vector<64x64xf32>
    %42 = vector.shape_cast %41 : vector<64x64xf32> to vector<8x8x64xf32>
    %c2_39 = arith.constant 2 : index
    %c0_40 = arith.constant 0 : index
    %c1_41 = arith.constant 1 : index
    %c0_42 = arith.constant 0 : index
    %43 = vector.load %arg13[%c2_39, %c0_40, %c1_41, %c0_42] : memref<4x9x9x64xf32, #tpu.memory_space<vmem>>, vector<1x8x8x64xf32>
    %44 = vector.shape_cast %43 : vector<1x8x8x64xf32> to vector<8x8x64xf32>
    %45 = vector.shape_cast %42 : vector<8x8x64xf32> to vector<1x8x8x64xf32>
    tpu.vector_store %arg13[%c2_39, %c0_40, %c1_41, %c0_42], %45 {strides = array<i32>} : memref<4x9x9x64xf32, #tpu.memory_space<vmem>>, vector<1x8x8x64xf32>,
    %c3 = arith.constant 3 : index
    %c8_43 = arith.constant 8 : index
    %c0_44 = arith.constant 0 : index
    %c0_45 = arith.constant 0 : index
    %46 = vector.load %arg13[%c3, %c8_43, %c0_44, %c0_45] : memref<4x9x9x64xf32, #tpu.memory_space<vmem>>, vector<1x1x9x64xf32>
    %47 = vector.shape_cast %46 : vector<1x1x9x64xf32> to vector<1x9x64xf32>
    %48 = vector.shape_cast %11 : vector<1x9x64xf32> to vector<1x1x9x64xf32>
    tpu.vector_store %arg13[%c3, %c8_43, %c0_44, %c0_45], %48 {strides = array<i32>} : memref<4x9x9x64xf32, #tpu.memory_space<vmem>>, vector<1x1x9x64xf32>,
    %c3_46 = arith.constant 3 : index
    %c0_47 = arith.constant 0 : index
    %c8_48 = arith.constant 8 : index
    %c0_49 = arith.constant 0 : index
    %49 = vector.load %arg13[%c3_46, %c0_47, %c8_48, %c0_49] : memref<4x9x9x64xf32, #tpu.memory_space<vmem>>, vector<1x9x1x64xf32>
    %50 = vector.shape_cast %49 : vector<1x9x1x64xf32> to vector<9x1x64xf32>
    %51 = vector.shape_cast %12 : vector<9x1x64xf32> to vector<1x9x1x64xf32>
    tpu.vector_store %arg13[%c3_46, %c0_47, %c8_48, %c0_49], %51 {strides = array<i32>} : memref<4x9x9x64xf32, #tpu.memory_space<vmem>>, vector<1x9x1x64xf32>,
    %52 = vector.extract_strided_slice %10 {offsets = [0, 0], sizes = [64, 64], strides = [1, 1]} : vector<256x64xf32> to vector<64x64xf32>
    %53 = vector.shape_cast %52 : vector<64x64xf32> to vector<8x8x64xf32>
    %c3_50 = arith.constant 3 : index
    %c0_51 = arith.constant 0 : index
    %c0_52 = arith.constant 0 : index
    %c0_53 = arith.constant 0 : index
    %54 = vector.load %arg13[%c3_50, %c0_51, %c0_52, %c0_53] : memref<4x9x9x64xf32, #tpu.memory_space<vmem>>, vector<1x8x8x64xf32>
    %55 = vector.shape_cast %54 : vector<1x8x8x64xf32> to vector<8x8x64xf32>
    %56 = vector.shape_cast %53 : vector<8x8x64xf32> to vector<1x8x8x64xf32>
    tpu.vector_store %arg13[%c3_50, %c0_51, %c0_52, %c0_53], %56 {strides = array<i32>} : memref<4x9x9x64xf32, #tpu.memory_space<vmem>>, vector<1x8x8x64xf32>,
    %cst_54 = arith.constant 0.000000e+00 : f32
    %57 = vector.broadcast %cst_54 : f32 to vector<64x64xf32>
    %c0_55 = arith.constant 0 : index
    %c0_56 = arith.constant 0 : index
    %c0_57 = arith.constant 0 : index
    %c0_58 = arith.constant 0 : index
    %58 = vector.load %arg13[%c0_55, %c0_56, %c0_57, %c0_58] : memref<4x9x9x64xf32, #tpu.memory_space<vmem>>, vector<1x8x8x64xf32>
    %59 = vector.shape_cast %58 : vector<1x8x8x64xf32> to vector<8x8x64xf32>
    %60 = vector.shape_cast %59 : vector<8x8x64xf32> to vector<64x64xf32>
    %c0_59 = arith.constant 0 : index
    %c0_60 = arith.constant 0 : index
    %c0_61 = arith.constant 0 : index
    %61 = vector.load %arg4[%c0_59, %c0_60, %c0_61] : memref<9x64x64xf32, #tpu.memory_space<vmem>>, vector<1x64x64xf32>
    %62 = vector.shape_cast %61 : vector<1x64x64xf32> to vector<64x64xf32>
    %cst_62 = arith.constant dense<0.000000e+00> : vector<64x64xf32>
    %63 = tpu.matmul %60, %62, %cst_62 {dimension_numbers = #tpu.dot_dimension_numbers<[1], [0], [0], [1], [0, 0, 1, 1], [], []>} : vector<64x64xf32>, vector<64x64xf32>, vector<64x64xf32> -> vector<64x64xf32>
    %64 = arith.addf %57, %63 : vector<64x64xf32>
    %c1_63 = arith.constant 1 : index
    %c0_64 = arith.constant 0 : index
    %c0_65 = arith.constant 0 : index
    %c0_66 = arith.constant 0 : index
    %65 = vector.load %arg13[%c1_63, %c0_64, %c0_65, %c0_66] : memref<4x9x9x64xf32, #tpu.memory_space<vmem>>, vector<1x8x8x64xf32>
    %66 = vector.shape_cast %65 : vector<1x8x8x64xf32> to vector<8x8x64xf32>
    %67 = vector.shape_cast %66 : vector<8x8x64xf32> to vector<64x64xf32>
    %c1_67 = arith.constant 1 : index
    %c0_68 = arith.constant 0 : index
    %c0_69 = arith.constant 0 : index
    %68 = vector.load %arg4[%c1_67, %c0_68, %c0_69] : memref<9x64x64xf32, #tpu.memory_space<vmem>>, vector<1x64x64xf32>
    %69 = vector.shape_cast %68 : vector<1x64x64xf32> to vector<64x64xf32>
    %cst_70 = arith.constant dense<0.000000e+00> : vector<64x64xf32>
    %70 = tpu.matmul %67, %69, %cst_70 {dimension_numbers = #tpu.dot_dimension_numbers<[1], [0], [0], [1], [0, 0, 1, 1], [], []>} : vector<64x64xf32>, vector<64x64xf32>, vector<64x64xf32> -> vector<64x64xf32>
    %71 = arith.addf %64, %70 : vector<64x64xf32>
    %c0_71 = arith.constant 0 : index
    %c0_72 = arith.constant 0 : index
    %c1_73 = arith.constant 1 : index
    %c0_74 = arith.constant 0 : index
    %72 = vector.load %arg13[%c0_71, %c0_72, %c1_73, %c0_74] : memref<4x9x9x64xf32, #tpu.memory_space<vmem>>, vector<1x8x8x64xf32>
    %73 = vector.shape_cast %72 : vector<1x8x8x64xf32> to vector<8x8x64xf32>
    %74 = vector.shape_cast %73 : vector<8x8x64xf32> to vector<64x64xf32>
    %c2_75 = arith.constant 2 : index
    %c0_76 = arith.constant 0 : index
    %c0_77 = arith.constant 0 : index
    %75 = vector.load %arg4[%c2_75, %c0_76, %c0_77] : memref<9x64x64xf32, #tpu.memory_space<vmem>>, vector<1x64x64xf32>
    %76 = vector.shape_cast %75 : vector<1x64x64xf32> to vector<64x64xf32>
    %cst_78 = arith.constant dense<0.000000e+00> : vector<64x64xf32>
    %77 = tpu.matmul %74, %76, %cst_78 {dimension_numbers = #tpu.dot_dimension_numbers<[1], [0], [0], [1], [0, 0, 1, 1], [], []>} : vector<64x64xf32>, vector<64x64xf32>, vector<64x64xf32> -> vector<64x64xf32>
    %78 = arith.addf %71, %77 : vector<64x64xf32>
    %c2_79 = arith.constant 2 : index
    %c0_80 = arith.constant 0 : index
    %c0_81 = arith.constant 0 : index
    %c0_82 = arith.constant 0 : index
    %79 = vector.load %arg13[%c2_79, %c0_80, %c0_81, %c0_82] : memref<4x9x9x64xf32, #tpu.memory_space<vmem>>, vector<1x8x8x64xf32>
    %80 = vector.shape_cast %79 : vector<1x8x8x64xf32> to vector<8x8x64xf32>
    %81 = vector.shape_cast %80 : vector<8x8x64xf32> to vector<64x64xf32>
    %c3_83 = arith.constant 3 : index
    %c0_84 = arith.constant 0 : index
    %c0_85 = arith.constant 0 : index
    %82 = vector.load %arg4[%c3_83, %c0_84, %c0_85] : memref<9x64x64xf32, #tpu.memory_space<vmem>>, vector<1x64x64xf32>
    %83 = vector.shape_cast %82 : vector<1x64x64xf32> to vector<64x64xf32>
    %cst_86 = arith.constant dense<0.000000e+00> : vector<64x64xf32>
    %84 = tpu.matmul %81, %83, %cst_86 {dimension_numbers = #tpu.dot_dimension_numbers<[1], [0], [0], [1], [0, 0, 1, 1], [], []>} : vector<64x64xf32>, vector<64x64xf32>, vector<64x64xf32> -> vector<64x64xf32>
    %85 = arith.addf %78, %84 : vector<64x64xf32>
    %c3_87 = arith.constant 3 : index
    %c0_88 = arith.constant 0 : index
    %c0_89 = arith.constant 0 : index
    %c0_90 = arith.constant 0 : index
    %86 = vector.load %arg13[%c3_87, %c0_88, %c0_89, %c0_90] : memref<4x9x9x64xf32, #tpu.memory_space<vmem>>, vector<1x8x8x64xf32>
    %87 = vector.shape_cast %86 : vector<1x8x8x64xf32> to vector<8x8x64xf32>
    %88 = vector.shape_cast %87 : vector<8x8x64xf32> to vector<64x64xf32>
    %c4 = arith.constant 4 : index
    %c0_91 = arith.constant 0 : index
    %c0_92 = arith.constant 0 : index
    %89 = vector.load %arg4[%c4, %c0_91, %c0_92] : memref<9x64x64xf32, #tpu.memory_space<vmem>>, vector<1x64x64xf32>
    %90 = vector.shape_cast %89 : vector<1x64x64xf32> to vector<64x64xf32>
    %cst_93 = arith.constant dense<0.000000e+00> : vector<64x64xf32>
    %91 = tpu.matmul %88, %90, %cst_93 {dimension_numbers = #tpu.dot_dimension_numbers<[1], [0], [0], [1], [0, 0, 1, 1], [], []>} : vector<64x64xf32>, vector<64x64xf32>, vector<64x64xf32> -> vector<64x64xf32>
    %92 = arith.addf %85, %91 : vector<64x64xf32>
    %c2_94 = arith.constant 2 : index
    %c0_95 = arith.constant 0 : index
    %c1_96 = arith.constant 1 : index
    %c0_97 = arith.constant 0 : index
    %93 = vector.load %arg13[%c2_94, %c0_95, %c1_96, %c0_97] : memref<4x9x9x64xf32, #tpu.memory_space<vmem>>, vector<1x8x8x64xf32>
    %94 = vector.shape_cast %93 : vector<1x8x8x64xf32> to vector<8x8x64xf32>
    %95 = vector.shape_cast %94 : vector<8x8x64xf32> to vector<64x64xf32>
    %c5 = arith.constant 5 : index
    %c0_98 = arith.constant 0 : index
    %c0_99 = arith.constant 0 : index
    %96 = vector.load %arg4[%c5, %c0_98, %c0_99] : memref<9x64x64xf32, #tpu.memory_space<vmem>>, vector<1x64x64xf32>
    %97 = vector.shape_cast %96 : vector<1x64x64xf32> to vector<64x64xf32>
    %cst_100 = arith.constant dense<0.000000e+00> : vector<64x64xf32>
    %98 = tpu.matmul %95, %97, %cst_100 {dimension_numbers = #tpu.dot_dimension_numbers<[1], [0], [0], [1], [0, 0, 1, 1], [], []>} : vector<64x64xf32>, vector<64x64xf32>, vector<64x64xf32> -> vector<64x64xf32>
    %99 = arith.addf %92, %98 : vector<64x64xf32>
    %c0_101 = arith.constant 0 : index
    %c1_102 = arith.constant 1 : index
    %c0_103 = arith.constant 0 : index
    %c0_104 = arith.constant 0 : index
    %100 = vector.load %arg13[%c0_101, %c1_102, %c0_103, %c0_104] : memref<4x9x9x64xf32, #tpu.memory_space<vmem>>, vector<1x8x8x64xf32>
    %101 = vector.shape_cast %100 : vector<1x8x8x64xf32> to vector<8x8x64xf32>
    %102 = vector.shape_cast %101 : vector<8x8x64xf32> to vector<64x64xf32>
    %c6 = arith.constant 6 : index
    %c0_105 = arith.constant 0 : index
    %c0_106 = arith.constant 0 : index
    %103 = vector.load %arg4[%c6, %c0_105, %c0_106] : memref<9x64x64xf32, #tpu.memory_space<vmem>>, vector<1x64x64xf32>
    %104 = vector.shape_cast %103 : vector<1x64x64xf32> to vector<64x64xf32>
    %cst_107 = arith.constant dense<0.000000e+00> : vector<64x64xf32>
    %105 = tpu.matmul %102, %104, %cst_107 {dimension_numbers = #tpu.dot_dimension_numbers<[1], [0], [0], [1], [0, 0, 1, 1], [], []>} : vector<64x64xf32>, vector<64x64xf32>, vector<64x64xf32> -> vector<64x64xf32>
    %106 = arith.addf %99, %105 : vector<64x64xf32>
    %c1_108 = arith.constant 1 : index
    %c1_109 = arith.constant 1 : index
    %c0_110 = arith.constant 0 : index
    %c0_111 = arith.constant 0 : index
    %107 = vector.load %arg13[%c1_108, %c1_109, %c0_110, %c0_111] : memref<4x9x9x64xf32, #tpu.memory_space<vmem>>, vector<1x8x8x64xf32>
    %108 = vector.shape_cast %107 : vector<1x8x8x64xf32> to vector<8x8x64xf32>
    %109 = vector.shape_cast %108 : vector<8x8x64xf32> to vector<64x64xf32>
    %c7 = arith.constant 7 : index
    %c0_112 = arith.constant 0 : index
    %c0_113 = arith.constant 0 : index
    %110 = vector.load %arg4[%c7, %c0_112, %c0_113] : memref<9x64x64xf32, #tpu.memory_space<vmem>>, vector<1x64x64xf32>
    %111 = vector.shape_cast %110 : vector<1x64x64xf32> to vector<64x64xf32>
    %cst_114 = arith.constant dense<0.000000e+00> : vector<64x64xf32>
    %112 = tpu.matmul %109, %111, %cst_114 {dimension_numbers = #tpu.dot_dimension_numbers<[1], [0], [0], [1], [0, 0, 1, 1], [], []>} : vector<64x64xf32>, vector<64x64xf32>, vector<64x64xf32> -> vector<64x64xf32>
    %113 = arith.addf %106, %112 : vector<64x64xf32>
    %c0_115 = arith.constant 0 : index
    %c1_116 = arith.constant 1 : index
    %c1_117 = arith.constant 1 : index
    %c0_118 = arith.constant 0 : index
    %114 = vector.load %arg13[%c0_115, %c1_116, %c1_117, %c0_118] : memref<4x9x9x64xf32, #tpu.memory_space<vmem>>, vector<1x8x8x64xf32>
    %115 = vector.shape_cast %114 : vector<1x8x8x64xf32> to vector<8x8x64xf32>
    %116 = vector.shape_cast %115 : vector<8x8x64xf32> to vector<64x64xf32>
    %c8_119 = arith.constant 8 : index
    %c0_120 = arith.constant 0 : index
    %c0_121 = arith.constant 0 : index
    %117 = vector.load %arg4[%c8_119, %c0_120, %c0_121] : memref<9x64x64xf32, #tpu.memory_space<vmem>>, vector<1x64x64xf32>
    %118 = vector.shape_cast %117 : vector<1x64x64xf32> to vector<64x64xf32>
    %cst_122 = arith.constant dense<0.000000e+00> : vector<64x64xf32>
    %119 = tpu.matmul %116, %118, %cst_122 {dimension_numbers = #tpu.dot_dimension_numbers<[1], [0], [0], [1], [0, 0, 1, 1], [], []>} : vector<64x64xf32>, vector<64x64xf32>, vector<64x64xf32> -> vector<64x64xf32>
    %120 = arith.addf %113, %119 : vector<64x64xf32>
    %cst_123 = arith.constant 0.000000e+00 : f32
    %121 = vector.broadcast %cst_123 : f32 to vector<64x64xf32>
    %c1_124 = arith.constant 1 : index
    %c0_125 = arith.constant 0 : index
    %c0_126 = arith.constant 0 : index
    %c0_127 = arith.constant 0 : index
    %122 = vector.load %arg13[%c1_124, %c0_125, %c0_126, %c0_127] : memref<4x9x9x64xf32, #tpu.memory_space<vmem>>, vector<1x8x8x64xf32>
    %123 = vector.shape_cast %122 : vector<1x8x8x64xf32> to vector<8x8x64xf32>
    %124 = vector.shape_cast %123 : vector<8x8x64xf32> to vector<64x64xf32>
    %c0_128 = arith.constant 0 : index
    %c0_129 = arith.constant 0 : index
    %c0_130 = arith.constant 0 : index
    %125 = vector.load %arg4[%c0_128, %c0_129, %c0_130] : memref<9x64x64xf32, #tpu.memory_space<vmem>>, vector<1x64x64xf32>
    %126 = vector.shape_cast %125 : vector<1x64x64xf32> to vector<64x64xf32>
    %cst_131 = arith.constant dense<0.000000e+00> : vector<64x64xf32>
    %127 = tpu.matmul %124, %126, %cst_131 {dimension_numbers = #tpu.dot_dimension_numbers<[1], [0], [0], [1], [0, 0, 1, 1], [], []>} : vector<64x64xf32>, vector<64x64xf32>, vector<64x64xf32> -> vector<64x64xf32>
    %128 = arith.addf %121, %127 : vector<64x64xf32>
    %c0_132 = arith.constant 0 : index
    %c0_133 = arith.constant 0 : index
    %c1_134 = arith.constant 1 : index
    %c0_135 = arith.constant 0 : index
    %129 = vector.load %arg13[%c0_132, %c0_133, %c1_134, %c0_135] : memref<4x9x9x64xf32, #tpu.memory_space<vmem>>, vector<1x8x8x64xf32>
    %130 = vector.shape_cast %129 : vector<1x8x8x64xf32> to vector<8x8x64xf32>
    %131 = vector.shape_cast %130 : vector<8x8x64xf32> to vector<64x64xf32>
    %c1_136 = arith.constant 1 : index
    %c0_137 = arith.constant 0 : index
    %c0_138 = arith.constant 0 : index
    %132 = vector.load %arg4[%c1_136, %c0_137, %c0_138] : memref<9x64x64xf32, #tpu.memory_space<vmem>>, vector<1x64x64xf32>
    %133 = vector.shape_cast %132 : vector<1x64x64xf32> to vector<64x64xf32>
    %cst_139 = arith.constant dense<0.000000e+00> : vector<64x64xf32>
    %134 = tpu.matmul %131, %133, %cst_139 {dimension_numbers = #tpu.dot_dimension_numbers<[1], [0], [0], [1], [0, 0, 1, 1], [], []>} : vector<64x64xf32>, vector<64x64xf32>, vector<64x64xf32> -> vector<64x64xf32>
    %135 = arith.addf %128, %134 : vector<64x64xf32>
    %c1_140 = arith.constant 1 : index
    %c0_141 = arith.constant 0 : index
    %c1_142 = arith.constant 1 : index
    %c0_143 = arith.constant 0 : index
    %136 = vector.load %arg13[%c1_140, %c0_141, %c1_142, %c0_143] : memref<4x9x9x64xf32, #tpu.memory_space<vmem>>, vector<1x8x8x64xf32>
    %137 = vector.shape_cast %136 : vector<1x8x8x64xf32> to vector<8x8x64xf32>
    %138 = vector.shape_cast %137 : vector<8x8x64xf32> to vector<64x64xf32>
    %c2_144 = arith.constant 2 : index
    %c0_145 = arith.constant 0 : index
    %c0_146 = arith.constant 0 : index
    %139 = vector.load %arg4[%c2_144, %c0_145, %c0_146] : memref<9x64x64xf32, #tpu.memory_space<vmem>>, vector<1x64x64xf32>
    %140 = vector.shape_cast %139 : vector<1x64x64xf32> to vector<64x64xf32>
    %cst_147 = arith.constant dense<0.000000e+00> : vector<64x64xf32>
    %141 = tpu.matmul %138, %140, %cst_147 {dimension_numbers = #tpu.dot_dimension_numbers<[1], [0], [0], [1], [0, 0, 1, 1], [], []>} : vector<64x64xf32>, vector<64x64xf32>, vector<64x64xf32> -> vector<64x64xf32>
    %142 = arith.addf %135, %141 : vector<64x64xf32>
    %c3_148 = arith.constant 3 : index
    %c0_149 = arith.constant 0 : index
    %c0_150 = arith.constant 0 : index
    %c0_151 = arith.constant 0 : index
    %143 = vector.load %arg13[%c3_148, %c0_149, %c0_150, %c0_151] : memref<4x9x9x64xf32, #tpu.memory_space<vmem>>, vector<1x8x8x64xf32>
    %144 = vector.shape_cast %143 : vector<1x8x8x64xf32> to vector<8x8x64xf32>
    %145 = vector.shape_cast %144 : vector<8x8x64xf32> to vector<64x64xf32>
    %c3_152 = arith.constant 3 : index
    %c0_153 = arith.constant 0 : index
    %c0_154 = arith.constant 0 : index
    %146 = vector.load %arg4[%c3_152, %c0_153, %c0_154] : memref<9x64x64xf32, #tpu.memory_space<vmem>>, vector<1x64x64xf32>
    %147 = vector.shape_cast %146 : vector<1x64x64xf32> to vector<64x64xf32>
    %cst_155 = arith.constant dense<0.000000e+00> : vector<64x64xf32>
    %148 = tpu.matmul %145, %147, %cst_155 {dimension_numbers = #tpu.dot_dimension_numbers<[1], [0], [0], [1], [0, 0, 1, 1], [], []>} : vector<64x64xf32>, vector<64x64xf32>, vector<64x64xf32> -> vector<64x64xf32>
    %149 = arith.addf %142, %148 : vector<64x64xf32>
    %c2_156 = arith.constant 2 : index
    %c0_157 = arith.constant 0 : index
    %c1_158 = arith.constant 1 : index
    %c0_159 = arith.constant 0 : index
    %150 = vector.load %arg13[%c2_156, %c0_157, %c1_158, %c0_159] : memref<4x9x9x64xf32, #tpu.memory_space<vmem>>, vector<1x8x8x64xf32>
    %151 = vector.shape_cast %150 : vector<1x8x8x64xf32> to vector<8x8x64xf32>
    %152 = vector.shape_cast %151 : vector<8x8x64xf32> to vector<64x64xf32>
    %c4_160 = arith.constant 4 : index
    %c0_161 = arith.constant 0 : index
    %c0_162 = arith.constant 0 : index
    %153 = vector.load %arg4[%c4_160, %c0_161, %c0_162] : memref<9x64x64xf32, #tpu.memory_space<vmem>>, vector<1x64x64xf32>
    %154 = vector.shape_cast %153 : vector<1x64x64xf32> to vector<64x64xf32>
    %cst_163 = arith.constant dense<0.000000e+00> : vector<64x64xf32>
    %155 = tpu.matmul %152, %154, %cst_163 {dimension_numbers = #tpu.dot_dimension_numbers<[1], [0], [0], [1], [0, 0, 1, 1], [], []>} : vector<64x64xf32>, vector<64x64xf32>, vector<64x64xf32> -> vector<64x64xf32>
    %156 = arith.addf %149, %155 : vector<64x64xf32>
    %c3_164 = arith.constant 3 : index
    %c0_165 = arith.constant 0 : index
    %c1_166 = arith.constant 1 : index
    %c0_167 = arith.constant 0 : index
    %157 = vector.load %arg13[%c3_164, %c0_165, %c1_166, %c0_167] : memref<4x9x9x64xf32, #tpu.memory_space<vmem>>, vector<1x8x8x64xf32>
    %158 = vector.shape_cast %157 : vector<1x8x8x64xf32> to vector<8x8x64xf32>
    %159 = vector.shape_cast %158 : vector<8x8x64xf32> to vector<64x64xf32>
    %c5_168 = arith.constant 5 : index
    %c0_169 = arith.constant 0 : index
    %c0_170 = arith.constant 0 : index
    %160 = vector.load %arg4[%c5_168, %c0_169, %c0_170] : memref<9x64x64xf32, #tpu.memory_space<vmem>>, vector<1x64x64xf32>
    %161 = vector.shape_cast %160 : vector<1x64x64xf32> to vector<64x64xf32>
    %cst_171 = arith.constant dense<0.000000e+00> : vector<64x64xf32>
    %162 = tpu.matmul %159, %161, %cst_171 {dimension_numbers = #tpu.dot_dimension_numbers<[1], [0], [0], [1], [0, 0, 1, 1], [], []>} : vector<64x64xf32>, vector<64x64xf32>, vector<64x64xf32> -> vector<64x64xf32>
    %163 = arith.addf %156, %162 : vector<64x64xf32>
    %c1_172 = arith.constant 1 : index
    %c1_173 = arith.constant 1 : index
    %c0_174 = arith.constant 0 : index
    %c0_175 = arith.constant 0 : index
    %164 = vector.load %arg13[%c1_172, %c1_173, %c0_174, %c0_175] : memref<4x9x9x64xf32, #tpu.memory_space<vmem>>, vector<1x8x8x64xf32>
    %165 = vector.shape_cast %164 : vector<1x8x8x64xf32> to vector<8x8x64xf32>
    %166 = vector.shape_cast %165 : vector<8x8x64xf32> to vector<64x64xf32>
    %c6_176 = arith.constant 6 : index
    %c0_177 = arith.constant 0 : index
    %c0_178 = arith.constant 0 : index
    %167 = vector.load %arg4[%c6_176, %c0_177, %c0_178] : memref<9x64x64xf32, #tpu.memory_space<vmem>>, vector<1x64x64xf32>
    %168 = vector.shape_cast %167 : vector<1x64x64xf32> to vector<64x64xf32>
    %cst_179 = arith.constant dense<0.000000e+00> : vector<64x64xf32>
    %169 = tpu.matmul %166, %168, %cst_179 {dimension_numbers = #tpu.dot_dimension_numbers<[1], [0], [0], [1], [0, 0, 1, 1], [], []>} : vector<64x64xf32>, vector<64x64xf32>, vector<64x64xf32> -> vector<64x64xf32>
    %170 = arith.addf %163, %169 : vector<64x64xf32>
    %c0_180 = arith.constant 0 : index
    %c1_181 = arith.constant 1 : index
    %c1_182 = arith.constant 1 : index
    %c0_183 = arith.constant 0 : index
    %171 = vector.load %arg13[%c0_180, %c1_181, %c1_182, %c0_183] : memref<4x9x9x64xf32, #tpu.memory_space<vmem>>, vector<1x8x8x64xf32>
    %172 = vector.shape_cast %171 : vector<1x8x8x64xf32> to vector<8x8x64xf32>
    %173 = vector.shape_cast %172 : vector<8x8x64xf32> to vector<64x64xf32>
    %c7_184 = arith.constant 7 : index
    %c0_185 = arith.constant 0 : index
    %c0_186 = arith.constant 0 : index
    %174 = vector.load %arg4[%c7_184, %c0_185, %c0_186] : memref<9x64x64xf32, #tpu.memory_space<vmem>>, vector<1x64x64xf32>
    %175 = vector.shape_cast %174 : vector<1x64x64xf32> to vector<64x64xf32>
    %cst_187 = arith.constant dense<0.000000e+00> : vector<64x64xf32>
    %176 = tpu.matmul %173, %175, %cst_187 {dimension_numbers = #tpu.dot_dimension_numbers<[1], [0], [0], [1], [0, 0, 1, 1], [], []>} : vector<64x64xf32>, vector<64x64xf32>, vector<64x64xf32> -> vector<64x64xf32>
    %177 = arith.addf %170, %176 : vector<64x64xf32>
    %c1_188 = arith.constant 1 : index
    %c1_189 = arith.constant 1 : index
    %c1_190 = arith.constant 1 : index
    %c0_191 = arith.constant 0 : index
    %178 = vector.load %arg13[%c1_188, %c1_189, %c1_190, %c0_191] : memref<4x9x9x64xf32, #tpu.memory_space<vmem>>, vector<1x8x8x64xf32>
    %179 = vector.shape_cast %178 : vector<1x8x8x64xf32> to vector<8x8x64xf32>
    %180 = vector.shape_cast %179 : vector<8x8x64xf32> to vector<64x64xf32>
    %c8_192 = arith.constant 8 : index
    %c0_193 = arith.constant 0 : index
    %c0_194 = arith.constant 0 : index
    %181 = vector.load %arg4[%c8_192, %c0_193, %c0_194] : memref<9x64x64xf32, #tpu.memory_space<vmem>>, vector<1x64x64xf32>
    %182 = vector.shape_cast %181 : vector<1x64x64xf32> to vector<64x64xf32>
    %cst_195 = arith.constant dense<0.000000e+00> : vector<64x64xf32>
    %183 = tpu.matmul %180, %182, %cst_195 {dimension_numbers = #tpu.dot_dimension_numbers<[1], [0], [0], [1], [0, 0, 1, 1], [], []>} : vector<64x64xf32>, vector<64x64xf32>, vector<64x64xf32> -> vector<64x64xf32>
    %184 = arith.addf %177, %183 : vector<64x64xf32>
    %cst_196 = arith.constant 0.000000e+00 : f32
    %185 = vector.broadcast %cst_196 : f32 to vector<64x64xf32>
    %c2_197 = arith.constant 2 : index
    %c0_198 = arith.constant 0 : index
    %c0_199 = arith.constant 0 : index
    %c0_200 = arith.constant 0 : index
    %186 = vector.load %arg13[%c2_197, %c0_198, %c0_199, %c0_200] : memref<4x9x9x64xf32, #tpu.memory_space<vmem>>, vector<1x8x8x64xf32>
    %187 = vector.shape_cast %186 : vector<1x8x8x64xf32> to vector<8x8x64xf32>
    %188 = vector.shape_cast %187 : vector<8x8x64xf32> to vector<64x64xf32>
    %c0_201 = arith.constant 0 : index
    %c0_202 = arith.constant 0 : index
    %c0_203 = arith.constant 0 : index
    %189 = vector.load %arg4[%c0_201, %c0_202, %c0_203] : memref<9x64x64xf32, #tpu.memory_space<vmem>>, vector<1x64x64xf32>
    %190 = vector.shape_cast %189 : vector<1x64x64xf32> to vector<64x64xf32>
    %cst_204 = arith.constant dense<0.000000e+00> : vector<64x64xf32>
    %191 = tpu.matmul %188, %190, %cst_204 {dimension_numbers = #tpu.dot_dimension_numbers<[1], [0], [0], [1], [0, 0, 1, 1], [], []>} : vector<64x64xf32>, vector<64x64xf32>, vector<64x64xf32> -> vector<64x64xf32>
    %192 = arith.addf %185, %191 : vector<64x64xf32>
    %c3_205 = arith.constant 3 : index
    %c0_206 = arith.constant 0 : index
    %c0_207 = arith.constant 0 : index
    %c0_208 = arith.constant 0 : index
    %193 = vector.load %arg13[%c3_205, %c0_206, %c0_207, %c0_208] : memref<4x9x9x64xf32, #tpu.memory_space<vmem>>, vector<1x8x8x64xf32>
    %194 = vector.shape_cast %193 : vector<1x8x8x64xf32> to vector<8x8x64xf32>
    %195 = vector.shape_cast %194 : vector<8x8x64xf32> to vector<64x64xf32>
    %c1_209 = arith.constant 1 : index
    %c0_210 = arith.constant 0 : index
    %c0_211 = arith.constant 0 : index
    %196 = vector.load %arg4[%c1_209, %c0_210, %c0_211] : memref<9x64x64xf32, #tpu.memory_space<vmem>>, vector<1x64x64xf32>
    %197 = vector.shape_cast %196 : vector<1x64x64xf32> to vector<64x64xf32>
    %cst_212 = arith.constant dense<0.000000e+00> : vector<64x64xf32>
    %198 = tpu.matmul %195, %197, %cst_212 {dimension_numbers = #tpu.dot_dimension_numbers<[1], [0], [0], [1], [0, 0, 1, 1], [], []>} : vector<64x64xf32>, vector<64x64xf32>, vector<64x64xf32> -> vector<64x64xf32>
    %199 = arith.addf %192, %198 : vector<64x64xf32>
    %c2_213 = arith.constant 2 : index
    %c0_214 = arith.constant 0 : index
    %c1_215 = arith.constant 1 : index
    %c0_216 = arith.constant 0 : index
    %200 = vector.load %arg13[%c2_213, %c0_214, %c1_215, %c0_216] : memref<4x9x9x64xf32, #tpu.memory_space<vmem>>, vector<1x8x8x64xf32>
    %201 = vector.shape_cast %200 : vector<1x8x8x64xf32> to vector<8x8x64xf32>
    %202 = vector.shape_cast %201 : vector<8x8x64xf32> to vector<64x64xf32>
    %c2_217 = arith.constant 2 : index
    %c0_218 = arith.constant 0 : index
    %c0_219 = arith.constant 0 : index
    %203 = vector.load %arg4[%c2_217, %c0_218, %c0_219] : memref<9x64x64xf32, #tpu.memory_space<vmem>>, vector<1x64x64xf32>
    %204 = vector.shape_cast %203 : vector<1x64x64xf32> to vector<64x64xf32>
    %cst_220 = arith.constant dense<0.000000e+00> : vector<64x64xf32>
    %205 = tpu.matmul %202, %204, %cst_220 {dimension_numbers = #tpu.dot_dimension_numbers<[1], [0], [0], [1], [0, 0, 1, 1], [], []>} : vector<64x64xf32>, vector<64x64xf32>, vector<64x64xf32> -> vector<64x64xf32>
    %206 = arith.addf %199, %205 : vector<64x64xf32>
    %c0_221 = arith.constant 0 : index
    %c1_222 = arith.constant 1 : index
    %c0_223 = arith.constant 0 : index
    %c0_224 = arith.constant 0 : index
    %207 = vector.load %arg13[%c0_221, %c1_222, %c0_223, %c0_224] : memref<4x9x9x64xf32, #tpu.memory_space<vmem>>, vector<1x8x8x64xf32>
    %208 = vector.shape_cast %207 : vector<1x8x8x64xf32> to vector<8x8x64xf32>
    %209 = vector.shape_cast %208 : vector<8x8x64xf32> to vector<64x64xf32>
    %c3_225 = arith.constant 3 : index
    %c0_226 = arith.constant 0 : index
    %c0_227 = arith.constant 0 : index
    %210 = vector.load %arg4[%c3_225, %c0_226, %c0_227] : memref<9x64x64xf32, #tpu.memory_space<vmem>>, vector<1x64x64xf32>
    %211 = vector.shape_cast %210 : vector<1x64x64xf32> to vector<64x64xf32>
    %cst_228 = arith.constant dense<0.000000e+00> : vector<64x64xf32>
    %212 = tpu.matmul %209, %211, %cst_228 {dimension_numbers = #tpu.dot_dimension_numbers<[1], [0], [0], [1], [0, 0, 1, 1], [], []>} : vector<64x64xf32>, vector<64x64xf32>, vector<64x64xf32> -> vector<64x64xf32>
    %213 = arith.addf %206, %212 : vector<64x64xf32>
    %c1_229 = arith.constant 1 : index
    %c1_230 = arith.constant 1 : index
    %c0_231 = arith.constant 0 : index
    %c0_232 = arith.constant 0 : index
    %214 = vector.load %arg13[%c1_229, %c1_230, %c0_231, %c0_232] : memref<4x9x9x64xf32, #tpu.memory_space<vmem>>, vector<1x8x8x64xf32>
    %215 = vector.shape_cast %214 : vector<1x8x8x64xf32> to vector<8x8x64xf32>
    %216 = vector.shape_cast %215 : vector<8x8x64xf32> to vector<64x64xf32>
    %c4_233 = arith.constant 4 : index
    %c0_234 = arith.constant 0 : index
    %c0_235 = arith.constant 0 : index
    %217 = vector.load %arg4[%c4_233, %c0_234, %c0_235] : memref<9x64x64xf32, #tpu.memory_space<vmem>>, vector<1x64x64xf32>
    %218 = vector.shape_cast %217 : vector<1x64x64xf32> to vector<64x64xf32>
    %cst_236 = arith.constant dense<0.000000e+00> : vector<64x64xf32>
    %219 = tpu.matmul %216, %218, %cst_236 {dimension_numbers = #tpu.dot_dimension_numbers<[1], [0], [0], [1], [0, 0, 1, 1], [], []>} : vector<64x64xf32>, vector<64x64xf32>, vector<64x64xf32> -> vector<64x64xf32>
    %220 = arith.addf %213, %219 : vector<64x64xf32>
    %c0_237 = arith.constant 0 : index
    %c1_238 = arith.constant 1 : index
    %c1_239 = arith.constant 1 : index
    %c0_240 = arith.constant 0 : index
    %221 = vector.load %arg13[%c0_237, %c1_238, %c1_239, %c0_240] : memref<4x9x9x64xf32, #tpu.memory_space<vmem>>, vector<1x8x8x64xf32>
    %222 = vector.shape_cast %221 : vector<1x8x8x64xf32> to vector<8x8x64xf32>
    %223 = vector.shape_cast %222 : vector<8x8x64xf32> to vector<64x64xf32>
    %c5_241 = arith.constant 5 : index
    %c0_242 = arith.constant 0 : index
    %c0_243 = arith.constant 0 : index
    %224 = vector.load %arg4[%c5_241, %c0_242, %c0_243] : memref<9x64x64xf32, #tpu.memory_space<vmem>>, vector<1x64x64xf32>
    %225 = vector.shape_cast %224 : vector<1x64x64xf32> to vector<64x64xf32>
    %cst_244 = arith.constant dense<0.000000e+00> : vector<64x64xf32>
    %226 = tpu.matmul %223, %225, %cst_244 {dimension_numbers = #tpu.dot_dimension_numbers<[1], [0], [0], [1], [0, 0, 1, 1], [], []>} : vector<64x64xf32>, vector<64x64xf32>, vector<64x64xf32> -> vector<64x64xf32>
    %227 = arith.addf %220, %226 : vector<64x64xf32>
    %c2_245 = arith.constant 2 : index
    %c1_246 = arith.constant 1 : index
    %c0_247 = arith.constant 0 : index
    %c0_248 = arith.constant 0 : index
    %228 = vector.load %arg13[%c2_245, %c1_246, %c0_247, %c0_248] : memref<4x9x9x64xf32, #tpu.memory_space<vmem>>, vector<1x8x8x64xf32>
    %229 = vector.shape_cast %228 : vector<1x8x8x64xf32> to vector<8x8x64xf32>
    %230 = vector.shape_cast %229 : vector<8x8x64xf32> to vector<64x64xf32>
    %c6_249 = arith.constant 6 : index
    %c0_250 = arith.constant 0 : index
    %c0_251 = arith.constant 0 : index
    %231 = vector.load %arg4[%c6_249, %c0_250, %c0_251] : memref<9x64x64xf32, #tpu.memory_space<vmem>>, vector<1x64x64xf32>
    %232 = vector.shape_cast %231 : vector<1x64x64xf32> to vector<64x64xf32>
    %cst_252 = arith.constant dense<0.000000e+00> : vector<64x64xf32>
    %233 = tpu.matmul %230, %232, %cst_252 {dimension_numbers = #tpu.dot_dimension_numbers<[1], [0], [0], [1], [0, 0, 1, 1], [], []>} : vector<64x64xf32>, vector<64x64xf32>, vector<64x64xf32> -> vector<64x64xf32>
    %234 = arith.addf %227, %233 : vector<64x64xf32>
    %c3_253 = arith.constant 3 : index
    %c1_254 = arith.constant 1 : index
    %c0_255 = arith.constant 0 : index
    %c0_256 = arith.constant 0 : index
    %235 = vector.load %arg13[%c3_253, %c1_254, %c0_255, %c0_256] : memref<4x9x9x64xf32, #tpu.memory_space<vmem>>, vector<1x8x8x64xf32>
    %236 = vector.shape_cast %235 : vector<1x8x8x64xf32> to vector<8x8x64xf32>
    %237 = vector.shape_cast %236 : vector<8x8x64xf32> to vector<64x64xf32>
    %c7_257 = arith.constant 7 : index
    %c0_258 = arith.constant 0 : index
    %c0_259 = arith.constant 0 : index
    %238 = vector.load %arg4[%c7_257, %c0_258, %c0_259] : memref<9x64x64xf32, #tpu.memory_space<vmem>>, vector<1x64x64xf32>
    %239 = vector.shape_cast %238 : vector<1x64x64xf32> to vector<64x64xf32>
    %cst_260 = arith.constant dense<0.000000e+00> : vector<64x64xf32>
    %240 = tpu.matmul %237, %239, %cst_260 {dimension_numbers = #tpu.dot_dimension_numbers<[1], [0], [0], [1], [0, 0, 1, 1], [], []>} : vector<64x64xf32>, vector<64x64xf32>, vector<64x64xf32> -> vector<64x64xf32>
    %241 = arith.addf %234, %240 : vector<64x64xf32>
    %c2_261 = arith.constant 2 : index
    %c1_262 = arith.constant 1 : index
    %c1_263 = arith.constant 1 : index
    %c0_264 = arith.constant 0 : index
    %242 = vector.load %arg13[%c2_261, %c1_262, %c1_263, %c0_264] : memref<4x9x9x64xf32, #tpu.memory_space<vmem>>, vector<1x8x8x64xf32>
    %243 = vector.shape_cast %242 : vector<1x8x8x64xf32> to vector<8x8x64xf32>
    %244 = vector.shape_cast %243 : vector<8x8x64xf32> to vector<64x64xf32>
    %c8_265 = arith.constant 8 : index
    %c0_266 = arith.constant 0 : index
    %c0_267 = arith.constant 0 : index
    %245 = vector.load %arg4[%c8_265, %c0_266, %c0_267] : memref<9x64x64xf32, #tpu.memory_space<vmem>>, vector<1x64x64xf32>
    %246 = vector.shape_cast %245 : vector<1x64x64xf32> to vector<64x64xf32>
    %cst_268 = arith.constant dense<0.000000e+00> : vector<64x64xf32>
    %247 = tpu.matmul %244, %246, %cst_268 {dimension_numbers = #tpu.dot_dimension_numbers<[1], [0], [0], [1], [0, 0, 1, 1], [], []>} : vector<64x64xf32>, vector<64x64xf32>, vector<64x64xf32> -> vector<64x64xf32>
    %248 = arith.addf %241, %247 : vector<64x64xf32>
    %cst_269 = arith.constant 0.000000e+00 : f32
    %249 = vector.broadcast %cst_269 : f32 to vector<64x64xf32>
    %c3_270 = arith.constant 3 : index
    %c0_271 = arith.constant 0 : index
    %c0_272 = arith.constant 0 : index
    %c0_273 = arith.constant 0 : index
    %250 = vector.load %arg13[%c3_270, %c0_271, %c0_272, %c0_273] : memref<4x9x9x64xf32, #tpu.memory_space<vmem>>, vector<1x8x8x64xf32>
    %251 = vector.shape_cast %250 : vector<1x8x8x64xf32> to vector<8x8x64xf32>
    %252 = vector.shape_cast %251 : vector<8x8x64xf32> to vector<64x64xf32>
    %c0_274 = arith.constant 0 : index
    %c0_275 = arith.constant 0 : index
    %c0_276 = arith.constant 0 : index
    %253 = vector.load %arg4[%c0_274, %c0_275, %c0_276] : memref<9x64x64xf32, #tpu.memory_space<vmem>>, vector<1x64x64xf32>
    %254 = vector.shape_cast %253 : vector<1x64x64xf32> to vector<64x64xf32>
    %cst_277 = arith.constant dense<0.000000e+00> : vector<64x64xf32>
    %255 = tpu.matmul %252, %254, %cst_277 {dimension_numbers = #tpu.dot_dimension_numbers<[1], [0], [0], [1], [0, 0, 1, 1], [], []>} : vector<64x64xf32>, vector<64x64xf32>, vector<64x64xf32> -> vector<64x64xf32>
    %256 = arith.addf %249, %255 : vector<64x64xf32>
    %c2_278 = arith.constant 2 : index
    %c0_279 = arith.constant 0 : index
    %c1_280 = arith.constant 1 : index
    %c0_281 = arith.constant 0 : index
    %257 = vector.load %arg13[%c2_278, %c0_279, %c1_280, %c0_281] : memref<4x9x9x64xf32, #tpu.memory_space<vmem>>, vector<1x8x8x64xf32>
    %258 = vector.shape_cast %257 : vector<1x8x8x64xf32> to vector<8x8x64xf32>
    %259 = vector.shape_cast %258 : vector<8x8x64xf32> to vector<64x64xf32>
    %c1_282 = arith.constant 1 : index
    %c0_283 = arith.constant 0 : index
    %c0_284 = arith.constant 0 : index
    %260 = vector.load %arg4[%c1_282, %c0_283, %c0_284] : memref<9x64x64xf32, #tpu.memory_space<vmem>>, vector<1x64x64xf32>
    %261 = vector.shape_cast %260 : vector<1x64x64xf32> to vector<64x64xf32>
    %cst_285 = arith.constant dense<0.000000e+00> : vector<64x64xf32>
    %262 = tpu.matmul %259, %261, %cst_285 {dimension_numbers = #tpu.dot_dimension_numbers<[1], [0], [0], [1], [0, 0, 1, 1], [], []>} : vector<64x64xf32>, vector<64x64xf32>, vector<64x64xf32> -> vector<64x64xf32>
    %263 = arith.addf %256, %262 : vector<64x64xf32>
    %c3_286 = arith.constant 3 : index
    %c0_287 = arith.constant 0 : index
    %c1_288 = arith.constant 1 : index
    %c0_289 = arith.constant 0 : index
    %264 = vector.load %arg13[%c3_286, %c0_287, %c1_288, %c0_289] : memref<4x9x9x64xf32, #tpu.memory_space<vmem>>, vector<1x8x8x64xf32>
    %265 = vector.shape_cast %264 : vector<1x8x8x64xf32> to vector<8x8x64xf32>
    %266 = vector.shape_cast %265 : vector<8x8x64xf32> to vector<64x64xf32>
    %c2_290 = arith.constant 2 : index
    %c0_291 = arith.constant 0 : index
    %c0_292 = arith.constant 0 : index
    %267 = vector.load %arg4[%c2_290, %c0_291, %c0_292] : memref<9x64x64xf32, #tpu.memory_space<vmem>>, vector<1x64x64xf32>
    %268 = vector.shape_cast %267 : vector<1x64x64xf32> to vector<64x64xf32>
    %cst_293 = arith.constant dense<0.000000e+00> : vector<64x64xf32>
    %269 = tpu.matmul %266, %268, %cst_293 {dimension_numbers = #tpu.dot_dimension_numbers<[1], [0], [0], [1], [0, 0, 1, 1], [], []>} : vector<64x64xf32>, vector<64x64xf32>, vector<64x64xf32> -> vector<64x64xf32>
    %270 = arith.addf %263, %269 : vector<64x64xf32>
    %c1_294 = arith.constant 1 : index
    %c1_295 = arith.constant 1 : index
    %c0_296 = arith.constant 0 : index
    %c0_297 = arith.constant 0 : index
    %271 = vector.load %arg13[%c1_294, %c1_295, %c0_296, %c0_297] : memref<4x9x9x64xf32, #tpu.memory_space<vmem>>, vector<1x8x8x64xf32>
    %272 = vector.shape_cast %271 : vector<1x8x8x64xf32> to vector<8x8x64xf32>
    %273 = vector.shape_cast %272 : vector<8x8x64xf32> to vector<64x64xf32>
    %c3_298 = arith.constant 3 : index
    %c0_299 = arith.constant 0 : index
    %c0_300 = arith.constant 0 : index
    %274 = vector.load %arg4[%c3_298, %c0_299, %c0_300] : memref<9x64x64xf32, #tpu.memory_space<vmem>>, vector<1x64x64xf32>
    %275 = vector.shape_cast %274 : vector<1x64x64xf32> to vector<64x64xf32>
    %cst_301 = arith.constant dense<0.000000e+00> : vector<64x64xf32>
    %276 = tpu.matmul %273, %275, %cst_301 {dimension_numbers = #tpu.dot_dimension_numbers<[1], [0], [0], [1], [0, 0, 1, 1], [], []>} : vector<64x64xf32>, vector<64x64xf32>, vector<64x64xf32> -> vector<64x64xf32>
    %277 = arith.addf %270, %276 : vector<64x64xf32>
    %c0_302 = arith.constant 0 : index
    %c1_303 = arith.constant 1 : index
    %c1_304 = arith.constant 1 : index
    %c0_305 = arith.constant 0 : index
    %278 = vector.load %arg13[%c0_302, %c1_303, %c1_304, %c0_305] : memref<4x9x9x64xf32, #tpu.memory_space<vmem>>, vector<1x8x8x64xf32>
    %279 = vector.shape_cast %278 : vector<1x8x8x64xf32> to vector<8x8x64xf32>
    %280 = vector.shape_cast %279 : vector<8x8x64xf32> to vector<64x64xf32>
    %c4_306 = arith.constant 4 : index
    %c0_307 = arith.constant 0 : index
    %c0_308 = arith.constant 0 : index
    %281 = vector.load %arg4[%c4_306, %c0_307, %c0_308] : memref<9x64x64xf32, #tpu.memory_space<vmem>>, vector<1x64x64xf32>
    %282 = vector.shape_cast %281 : vector<1x64x64xf32> to vector<64x64xf32>
    %cst_309 = arith.constant dense<0.000000e+00> : vector<64x64xf32>
    %283 = tpu.matmul %280, %282, %cst_309 {dimension_numbers = #tpu.dot_dimension_numbers<[1], [0], [0], [1], [0, 0, 1, 1], [], []>} : vector<64x64xf32>, vector<64x64xf32>, vector<64x64xf32> -> vector<64x64xf32>
    %284 = arith.addf %277, %283 : vector<64x64xf32>
    %c1_310 = arith.constant 1 : index
    %c1_311 = arith.constant 1 : index
    %c1_312 = arith.constant 1 : index
    %c0_313 = arith.constant 0 : index
    %285 = vector.load %arg13[%c1_310, %c1_311, %c1_312, %c0_313] : memref<4x9x9x64xf32, #tpu.memory_space<vmem>>, vector<1x8x8x64xf32>
    %286 = vector.shape_cast %285 : vector<1x8x8x64xf32> to vector<8x8x64xf32>
    %287 = vector.shape_cast %286 : vector<8x8x64xf32> to vector<64x64xf32>
    %c5_314 = arith.constant 5 : index
    %c0_315 = arith.constant 0 : index
    %c0_316 = arith.constant 0 : index
    %288 = vector.load %arg4[%c5_314, %c0_315, %c0_316] : memref<9x64x64xf32, #tpu.memory_space<vmem>>, vector<1x64x64xf32>
    %289 = vector.shape_cast %288 : vector<1x64x64xf32> to vector<64x64xf32>
    %cst_317 = arith.constant dense<0.000000e+00> : vector<64x64xf32>
    %290 = tpu.matmul %287, %289, %cst_317 {dimension_numbers = #tpu.dot_dimension_numbers<[1], [0], [0], [1], [0, 0, 1, 1], [], []>} : vector<64x64xf32>, vector<64x64xf32>, vector<64x64xf32> -> vector<64x64xf32>
    %291 = arith.addf %284, %290 : vector<64x64xf32>
    %c3_318 = arith.constant 3 : index
    %c1_319 = arith.constant 1 : index
    %c0_320 = arith.constant 0 : index
    %c0_321 = arith.constant 0 : index
    %292 = vector.load %arg13[%c3_318, %c1_319, %c0_320, %c0_321] : memref<4x9x9x64xf32, #tpu.memory_space<vmem>>, vector<1x8x8x64xf32>
    %293 = vector.shape_cast %292 : vector<1x8x8x64xf32> to vector<8x8x64xf32>
    %294 = vector.shape_cast %293 : vector<8x8x64xf32> to vector<64x64xf32>
    %c6_322 = arith.constant 6 : index
    %c0_323 = arith.constant 0 : index
    %c0_324 = arith.constant 0 : index
    %295 = vector.load %arg4[%c6_322, %c0_323, %c0_324] : memref<9x64x64xf32, #tpu.memory_space<vmem>>, vector<1x64x64xf32>
    %296 = vector.shape_cast %295 : vector<1x64x64xf32> to vector<64x64xf32>
    %cst_325 = arith.constant dense<0.000000e+00> : vector<64x64xf32>
    %297 = tpu.matmul %294, %296, %cst_325 {dimension_numbers = #tpu.dot_dimension_numbers<[1], [0], [0], [1], [0, 0, 1, 1], [], []>} : vector<64x64xf32>, vector<64x64xf32>, vector<64x64xf32> -> vector<64x64xf32>
    %298 = arith.addf %291, %297 : vector<64x64xf32>
    %c2_326 = arith.constant 2 : index
    %c1_327 = arith.constant 1 : index
    %c1_328 = arith.constant 1 : index
    %c0_329 = arith.constant 0 : index
    %299 = vector.load %arg13[%c2_326, %c1_327, %c1_328, %c0_329] : memref<4x9x9x64xf32, #tpu.memory_space<vmem>>, vector<1x8x8x64xf32>
    %300 = vector.shape_cast %299 : vector<1x8x8x64xf32> to vector<8x8x64xf32>
    %301 = vector.shape_cast %300 : vector<8x8x64xf32> to vector<64x64xf32>
    %c7_330 = arith.constant 7 : index
    %c0_331 = arith.constant 0 : index
    %c0_332 = arith.constant 0 : index
    %302 = vector.load %arg4[%c7_330, %c0_331, %c0_332] : memref<9x64x64xf32, #tpu.memory_space<vmem>>, vector<1x64x64xf32>
    %303 = vector.shape_cast %302 : vector<1x64x64xf32> to vector<64x64xf32>
    %cst_333 = arith.constant dense<0.000000e+00> : vector<64x64xf32>
    %304 = tpu.matmul %301, %303, %cst_333 {dimension_numbers = #tpu.dot_dimension_numbers<[1], [0], [0], [1], [0, 0, 1, 1], [], []>} : vector<64x64xf32>, vector<64x64xf32>, vector<64x64xf32> -> vector<64x64xf32>
    %305 = arith.addf %298, %304 : vector<64x64xf32>
    %c3_334 = arith.constant 3 : index
    %c1_335 = arith.constant 1 : index
    %c1_336 = arith.constant 1 : index
    %c0_337 = arith.constant 0 : index
    %306 = vector.load %arg13[%c3_334, %c1_335, %c1_336, %c0_337] : memref<4x9x9x64xf32, #tpu.memory_space<vmem>>, vector<1x8x8x64xf32>
    %307 = vector.shape_cast %306 : vector<1x8x8x64xf32> to vector<8x8x64xf32>
    %308 = vector.shape_cast %307 : vector<8x8x64xf32> to vector<64x64xf32>
    %c8_338 = arith.constant 8 : index
    %c0_339 = arith.constant 0 : index
    %c0_340 = arith.constant 0 : index
    %309 = vector.load %arg4[%c8_338, %c0_339, %c0_340] : memref<9x64x64xf32, #tpu.memory_space<vmem>>, vector<1x64x64xf32>
    %310 = vector.shape_cast %309 : vector<1x64x64xf32> to vector<64x64xf32>
    %cst_341 = arith.constant dense<0.000000e+00> : vector<64x64xf32>
    %311 = tpu.matmul %308, %310, %cst_341 {dimension_numbers = #tpu.dot_dimension_numbers<[1], [0], [0], [1], [0, 0, 1, 1], [], []>} : vector<64x64xf32>, vector<64x64xf32>, vector<64x64xf32> -> vector<64x64xf32>
    %312 = arith.addf %305, %311 : vector<64x64xf32>
    %313 = tpu.concatenate %120, %184, %248, %312 in 0 : vector<64x64xf32>, vector<64x64xf32>, vector<64x64xf32>, vector<64x64xf32> -> vector<256x64xf32>
    %c0_342 = arith.constant 0 : index
    %c0_343 = arith.constant 0 : index
    %314 = vector.load %arg5[%c0_342, %c0_343] : memref<1x64xf32, #tpu.memory_space<vmem>>, vector<1x64xf32>
    %315 = vector.broadcast %314 : vector<1x64xf32> to vector<256x64xf32>
    %316 = arith.addf %313, %315 : vector<256x64xf32>
    %cst_344 = arith.constant 0.000000e+00 : f32
    %317 = vector.broadcast %cst_344 : f32 to vector<256x64xf32>
    %318 = arith.maximumf %316, %317 : vector<256x64xf32>
    %c0_345 = arith.constant 0 : index
    %c0_346 = arith.constant 0 : index
    %319 = vector.load %arg8[%c0_345, %c0_346] : memref<64x64xf32, #tpu.memory_space<vmem>>, vector<64x64xf32>
    %cst_347 = arith.constant dense<0.000000e+00> : vector<256x64xf32>
    %320 = tpu.matmul %318, %319, %cst_347 {dimension_numbers = #tpu.dot_dimension_numbers<[1], [0], [0], [1], [0, 0, 1, 1], [], []>} : vector<256x64xf32>, vector<64x64xf32>, vector<256x64xf32> -> vector<256x64xf32>
    %c0_348 = arith.constant 0 : index
    %c0_349 = arith.constant 0 : index
    %321 = vector.load %arg9[%c0_348, %c0_349] : memref<1x64xf32, #tpu.memory_space<vmem>>, vector<1x64xf32>
    %322 = vector.broadcast %321 : vector<1x64xf32> to vector<256x64xf32>
    %323 = arith.addf %320, %322 : vector<256x64xf32>
    %cst_350 = arith.constant 0.000000e+00 : f32
    %324 = vector.broadcast %cst_350 : f32 to vector<256x64xf32>
    %325 = arith.maximumf %323, %324 : vector<256x64xf32>
    %cst_351 = arith.constant 0.000000e+00 : f32
    %326 = vector.broadcast %cst_351 : f32 to vector<1x9x64xf32>
    %cst_352 = arith.constant 0.000000e+00 : f32
    %327 = vector.broadcast %cst_352 : f32 to vector<9x1x64xf32>
    %c0_353 = arith.constant 0 : index
    %c0_354 = arith.constant 0 : index
    %c0_355 = arith.constant 0 : index
    %c0_356 = arith.constant 0 : index
    %328 = vector.load %arg13[%c0_353, %c0_354, %c0_355, %c0_356] : memref<4x9x9x64xf32, #tpu.memory_space<vmem>>, vector<1x1x9x64xf32>
    %329 = vector.shape_cast %328 : vector<1x1x9x64xf32> to vector<1x9x64xf32>
    %330 = vector.shape_cast %326 : vector<1x9x64xf32> to vector<1x1x9x64xf32>
    tpu.vector_store %arg13[%c0_353, %c0_354, %c0_355, %c0_356], %330 {strides = array<i32>} : memref<4x9x9x64xf32, #tpu.memory_space<vmem>>, vector<1x1x9x64xf32>,
    %c0_357 = arith.constant 0 : index
    %c0_358 = arith.constant 0 : index
    %c0_359 = arith.constant 0 : index
    %c0_360 = arith.constant 0 : index
    %331 = vector.load %arg13[%c0_357, %c0_358, %c0_359, %c0_360] : memref<4x9x9x64xf32, #tpu.memory_space<vmem>>, vector<1x9x1x64xf32>
    %332 = vector.shape_cast %331 : vector<1x9x1x64xf32> to vector<9x1x64xf32>
    %333 = vector.shape_cast %327 : vector<9x1x64xf32> to vector<1x9x1x64xf32>
    tpu.vector_store %arg13[%c0_357, %c0_358, %c0_359, %c0_360], %333 {strides = array<i32>} : memref<4x9x9x64xf32, #tpu.memory_space<vmem>>, vector<1x9x1x64xf32>,
    %334 = vector.extract_strided_slice %318 {offsets = [192, 0], sizes = [64, 64], strides = [1, 1]} : vector<256x64xf32> to vector<64x64xf32>
    %335 = vector.shape_cast %334 : vector<64x64xf32> to vector<8x8x64xf32>
    %c0_361 = arith.constant 0 : index
    %c1_362 = arith.constant 1 : index
    %c1_363 = arith.constant 1 : index
    %c0_364 = arith.constant 0 : index
    %336 = vector.load %arg13[%c0_361, %c1_362, %c1_363, %c0_364] : memref<4x9x9x64xf32, #tpu.memory_space<vmem>>, vector<1x8x8x64xf32>
    %337 = vector.shape_cast %336 : vector<1x8x8x64xf32> to vector<8x8x64xf32>
    %338 = vector.shape_cast %335 : vector<8x8x64xf32> to vector<1x8x8x64xf32>
    tpu.vector_store %arg13[%c0_361, %c1_362, %c1_363, %c0_364], %338 {strides = array<i32>} : memref<4x9x9x64xf32, #tpu.memory_space<vmem>>, vector<1x8x8x64xf32>,
    %c1_365 = arith.constant 1 : index
    %c0_366 = arith.constant 0 : index
    %c0_367 = arith.constant 0 : index
    %c0_368 = arith.constant 0 : index
    %339 = vector.load %arg13[%c1_365, %c0_366, %c0_367, %c0_368] : memref<4x9x9x64xf32, #tpu.memory_space<vmem>>, vector<1x1x9x64xf32>
    %340 = vector.shape_cast %339 : vector<1x1x9x64xf32> to vector<1x9x64xf32>
    %341 = vector.shape_cast %326 : vector<1x9x64xf32> to vector<1x1x9x64xf32>
    tpu.vector_store %arg13[%c1_365, %c0_366, %c0_367, %c0_368], %341 {strides = array<i32>} : memref<4x9x9x64xf32, #tpu.memory_space<vmem>>, vector<1x1x9x64xf32>,
    %c1_369 = arith.constant 1 : index
    %c0_370 = arith.constant 0 : index
    %c8_371 = arith.constant 8 : index
    %c0_372 = arith.constant 0 : index
    %342 = vector.load %arg13[%c1_369, %c0_370, %c8_371, %c0_372] : memref<4x9x9x64xf32, #tpu.memory_space<vmem>>, vector<1x9x1x64xf32>
    %343 = vector.shape_cast %342 : vector<1x9x1x64xf32> to vector<9x1x64xf32>
    %344 = vector.shape_cast %327 : vector<9x1x64xf32> to vector<1x9x1x64xf32>
    tpu.vector_store %arg13[%c1_369, %c0_370, %c8_371, %c0_372], %344 {strides = array<i32>} : memref<4x9x9x64xf32, #tpu.memory_space<vmem>>, vector<1x9x1x64xf32>,
    %345 = vector.extract_strided_slice %318 {offsets = [128, 0], sizes = [64, 64], strides = [1, 1]} : vector<256x64xf32> to vector<64x64xf32>
    %346 = vector.shape_cast %345 : vector<64x64xf32> to vector<8x8x64xf32>
    %c1_373 = arith.constant 1 : index
    %c1_374 = arith.constant 1 : index
    %c0_375 = arith.constant 0 : index
    %c0_376 = arith.constant 0 : index
    %347 = vector.load %arg13[%c1_373, %c1_374, %c0_375, %c0_376] : memref<4x9x9x64xf32, #tpu.memory_space<vmem>>, vector<1x8x8x64xf32>
    %348 = vector.shape_cast %347 : vector<1x8x8x64xf32> to vector<8x8x64xf32>
    %349 = vector.shape_cast %346 : vector<8x8x64xf32> to vector<1x8x8x64xf32>
    tpu.vector_store %arg13[%c1_373, %c1_374, %c0_375, %c0_376], %349 {strides = array<i32>} : memref<4x9x9x64xf32, #tpu.memory_space<vmem>>, vector<1x8x8x64xf32>,
    %c2_377 = arith.constant 2 : index
    %c8_378 = arith.constant 8 : index
    %c0_379 = arith.constant 0 : index
    %c0_380 = arith.constant 0 : index
    %350 = vector.load %arg13[%c2_377, %c8_378, %c0_379, %c0_380] : memref<4x9x9x64xf32, #tpu.memory_space<vmem>>, vector<1x1x9x64xf32>
    %351 = vector.shape_cast %350 : vector<1x1x9x64xf32> to vector<1x9x64xf32>
    %352 = vector.shape_cast %326 : vector<1x9x64xf32> to vector<1x1x9x64xf32>
    tpu.vector_store %arg13[%c2_377, %c8_378, %c0_379, %c0_380], %352 {strides = array<i32>} : memref<4x9x9x64xf32, #tpu.memory_space<vmem>>, vector<1x1x9x64xf32>,
    %c2_381 = arith.constant 2 : index
    %c0_382 = arith.constant 0 : index
    %c0_383 = arith.constant 0 : index
    %c0_384 = arith.constant 0 : index
    %353 = vector.load %arg13[%c2_381, %c0_382, %c0_383, %c0_384] : memref<4x9x9x64xf32, #tpu.memory_space<vmem>>, vector<1x9x1x64xf32>
    %354 = vector.shape_cast %353 : vector<1x9x1x64xf32> to vector<9x1x64xf32>
    %355 = vector.shape_cast %327 : vector<9x1x64xf32> to vector<1x9x1x64xf32>
    tpu.vector_store %arg13[%c2_381, %c0_382, %c0_383, %c0_384], %355 {strides = array<i32>} : memref<4x9x9x64xf32, #tpu.memory_space<vmem>>, vector<1x9x1x64xf32>,
    %356 = vector.extract_strided_slice %318 {offsets = [64, 0], sizes = [64, 64], strides = [1, 1]} : vector<256x64xf32> to vector<64x64xf32>
    %357 = vector.shape_cast %356 : vector<64x64xf32> to vector<8x8x64xf32>
    %c2_385 = arith.constant 2 : index
    %c0_386 = arith.constant 0 : index
    %c1_387 = arith.constant 1 : index
    %c0_388 = arith.constant 0 : index
    %358 = vector.load %arg13[%c2_385, %c0_386, %c1_387, %c0_388] : memref<4x9x9x64xf32, #tpu.memory_space<vmem>>, vector<1x8x8x64xf32>
    %359 = vector.shape_cast %358 : vector<1x8x8x64xf32> to vector<8x8x64xf32>
    %360 = vector.shape_cast %357 : vector<8x8x64xf32> to vector<1x8x8x64xf32>
    tpu.vector_store %arg13[%c2_385, %c0_386, %c1_387, %c0_388], %360 {strides = array<i32>} : memref<4x9x9x64xf32, #tpu.memory_space<vmem>>, vector<1x8x8x64xf32>,
    %c3_389 = arith.constant 3 : index
    %c8_390 = arith.constant 8 : index
    %c0_391 = arith.constant 0 : index
    %c0_392 = arith.constant 0 : index
    %361 = vector.load %arg13[%c3_389, %c8_390, %c0_391, %c0_392] : memref<4x9x9x64xf32, #tpu.memory_space<vmem>>, vector<1x1x9x64xf32>
    %362 = vector.shape_cast %361 : vector<1x1x9x64xf32> to vector<1x9x64xf32>
    %363 = vector.shape_cast %326 : vector<1x9x64xf32> to vector<1x1x9x64xf32>
    tpu.vector_store %arg13[%c3_389, %c8_390, %c0_391, %c0_392], %363 {strides = array<i32>} : memref<4x9x9x64xf32, #tpu.memory_space<vmem>>, vector<1x1x9x64xf32>,
    %c3_393 = arith.constant 3 : index
    %c0_394 = arith.constant 0 : index
    %c8_395 = arith.constant 8 : index
    %c0_396 = arith.constant 0 : index
    %364 = vector.load %arg13[%c3_393, %c0_394, %c8_395, %c0_396] : memref<4x9x9x64xf32, #tpu.memory_space<vmem>>, vector<1x9x1x64xf32>
    %365 = vector.shape_cast %364 : vector<1x9x1x64xf32> to vector<9x1x64xf32>
    %366 = vector.shape_cast %327 : vector<9x1x64xf32> to vector<1x9x1x64xf32>
    tpu.vector_store %arg13[%c3_393, %c0_394, %c8_395, %c0_396], %366 {strides = array<i32>} : memref<4x9x9x64xf32, #tpu.memory_space<vmem>>, vector<1x9x1x64xf32>,
    %367 = vector.extract_strided_slice %318 {offsets = [0, 0], sizes = [64, 64], strides = [1, 1]} : vector<256x64xf32> to vector<64x64xf32>
    %368 = vector.shape_cast %367 : vector<64x64xf32> to vector<8x8x64xf32>
    %c3_397 = arith.constant 3 : index
    %c0_398 = arith.constant 0 : index
    %c0_399 = arith.constant 0 : index
    %c0_400 = arith.constant 0 : index
    %369 = vector.load %arg13[%c3_397, %c0_398, %c0_399, %c0_400] : memref<4x9x9x64xf32, #tpu.memory_space<vmem>>, vector<1x8x8x64xf32>
    %370 = vector.shape_cast %369 : vector<1x8x8x64xf32> to vector<8x8x64xf32>
    %371 = vector.shape_cast %368 : vector<8x8x64xf32> to vector<1x8x8x64xf32>
    tpu.vector_store %arg13[%c3_397, %c0_398, %c0_399, %c0_400], %371 {strides = array<i32>} : memref<4x9x9x64xf32, #tpu.memory_space<vmem>>, vector<1x8x8x64xf32>,
    %cst_401 = arith.constant 0.000000e+00 : f32
    %372 = vector.broadcast %cst_401 : f32 to vector<64x128xf32>
    %c0_402 = arith.constant 0 : index
    %c0_403 = arith.constant 0 : index
    %c0_404 = arith.constant 0 : index
    %c0_405 = arith.constant 0 : index
    %373 = vector.load %arg13[%c0_402, %c0_403, %c0_404, %c0_405] : memref<4x9x9x64xf32, #tpu.memory_space<vmem>>, vector<1x8x8x64xf32>
    %374 = vector.shape_cast %373 : vector<1x8x8x64xf32> to vector<8x8x64xf32>
    %375 = vector.shape_cast %374 : vector<8x8x64xf32> to vector<64x64xf32>
    %c0_406 = arith.constant 0 : index
    %c0_407 = arith.constant 0 : index
    %c0_408 = arith.constant 0 : index
    %376 = vector.load %arg6[%c0_406, %c0_407, %c0_408] : memref<9x64x128xf32, #tpu.memory_space<vmem>>, vector<1x64x128xf32>
    %377 = vector.shape_cast %376 : vector<1x64x128xf32> to vector<64x128xf32>
    %cst_409 = arith.constant dense<0.000000e+00> : vector<64x128xf32>
    %378 = tpu.matmul %375, %377, %cst_409 {dimension_numbers = #tpu.dot_dimension_numbers<[1], [0], [0], [1], [0, 0, 1, 1], [], []>} : vector<64x64xf32>, vector<64x128xf32>, vector<64x128xf32> -> vector<64x128xf32>
    %379 = arith.addf %372, %378 : vector<64x128xf32>
    %c1_410 = arith.constant 1 : index
    %c0_411 = arith.constant 0 : index
    %c0_412 = arith.constant 0 : index
    %c0_413 = arith.constant 0 : index
    %380 = vector.load %arg13[%c1_410, %c0_411, %c0_412, %c0_413] : memref<4x9x9x64xf32, #tpu.memory_space<vmem>>, vector<1x8x8x64xf32>
    %381 = vector.shape_cast %380 : vector<1x8x8x64xf32> to vector<8x8x64xf32>
    %382 = vector.shape_cast %381 : vector<8x8x64xf32> to vector<64x64xf32>
    %c1_414 = arith.constant 1 : index
    %c0_415 = arith.constant 0 : index
    %c0_416 = arith.constant 0 : index
    %383 = vector.load %arg6[%c1_414, %c0_415, %c0_416] : memref<9x64x128xf32, #tpu.memory_space<vmem>>, vector<1x64x128xf32>
    %384 = vector.shape_cast %383 : vector<1x64x128xf32> to vector<64x128xf32>
    %cst_417 = arith.constant dense<0.000000e+00> : vector<64x128xf32>
    %385 = tpu.matmul %382, %384, %cst_417 {dimension_numbers = #tpu.dot_dimension_numbers<[1], [0], [0], [1], [0, 0, 1, 1], [], []>} : vector<64x64xf32>, vector<64x128xf32>, vector<64x128xf32> -> vector<64x128xf32>
    %386 = arith.addf %379, %385 : vector<64x128xf32>
    %c0_418 = arith.constant 0 : index
    %c0_419 = arith.constant 0 : index
    %c1_420 = arith.constant 1 : index
    %c0_421 = arith.constant 0 : index
    %387 = vector.load %arg13[%c0_418, %c0_419, %c1_420, %c0_421] : memref<4x9x9x64xf32, #tpu.memory_space<vmem>>, vector<1x8x8x64xf32>
    %388 = vector.shape_cast %387 : vector<1x8x8x64xf32> to vector<8x8x64xf32>
    %389 = vector.shape_cast %388 : vector<8x8x64xf32> to vector<64x64xf32>
    %c2_422 = arith.constant 2 : index
    %c0_423 = arith.constant 0 : index
    %c0_424 = arith.constant 0 : index
    %390 = vector.load %arg6[%c2_422, %c0_423, %c0_424] : memref<9x64x128xf32, #tpu.memory_space<vmem>>, vector<1x64x128xf32>
    %391 = vector.shape_cast %390 : vector<1x64x128xf32> to vector<64x128xf32>
    %cst_425 = arith.constant dense<0.000000e+00> : vector<64x128xf32>
    %392 = tpu.matmul %389, %391, %cst_425 {dimension_numbers = #tpu.dot_dimension_numbers<[1], [0], [0], [1], [0, 0, 1, 1], [], []>} : vector<64x64xf32>, vector<64x128xf32>, vector<64x128xf32> -> vector<64x128xf32>
    %393 = arith.addf %386, %392 : vector<64x128xf32>
    %c2_426 = arith.constant 2 : index
    %c0_427 = arith.constant 0 : index
    %c0_428 = arith.constant 0 : index
    %c0_429 = arith.constant 0 : index
    %394 = vector.load %arg13[%c2_426, %c0_427, %c0_428, %c0_429] : memref<4x9x9x64xf32, #tpu.memory_space<vmem>>, vector<1x8x8x64xf32>
    %395 = vector.shape_cast %394 : vector<1x8x8x64xf32> to vector<8x8x64xf32>
    %396 = vector.shape_cast %395 : vector<8x8x64xf32> to vector<64x64xf32>
    %c3_430 = arith.constant 3 : index
    %c0_431 = arith.constant 0 : index
    %c0_432 = arith.constant 0 : index
    %397 = vector.load %arg6[%c3_430, %c0_431, %c0_432] : memref<9x64x128xf32, #tpu.memory_space<vmem>>, vector<1x64x128xf32>
    %398 = vector.shape_cast %397 : vector<1x64x128xf32> to vector<64x128xf32>
    %cst_433 = arith.constant dense<0.000000e+00> : vector<64x128xf32>
    %399 = tpu.matmul %396, %398, %cst_433 {dimension_numbers = #tpu.dot_dimension_numbers<[1], [0], [0], [1], [0, 0, 1, 1], [], []>} : vector<64x64xf32>, vector<64x128xf32>, vector<64x128xf32> -> vector<64x128xf32>
    %400 = arith.addf %393, %399 : vector<64x128xf32>
    %c3_434 = arith.constant 3 : index
    %c0_435 = arith.constant 0 : index
    %c0_436 = arith.constant 0 : index
    %c0_437 = arith.constant 0 : index
    %401 = vector.load %arg13[%c3_434, %c0_435, %c0_436, %c0_437] : memref<4x9x9x64xf32, #tpu.memory_space<vmem>>, vector<1x8x8x64xf32>
    %402 = vector.shape_cast %401 : vector<1x8x8x64xf32> to vector<8x8x64xf32>
    %403 = vector.shape_cast %402 : vector<8x8x64xf32> to vector<64x64xf32>
    %c4_438 = arith.constant 4 : index
    %c0_439 = arith.constant 0 : index
    %c0_440 = arith.constant 0 : index
    %404 = vector.load %arg6[%c4_438, %c0_439, %c0_440] : memref<9x64x128xf32, #tpu.memory_space<vmem>>, vector<1x64x128xf32>
    %405 = vector.shape_cast %404 : vector<1x64x128xf32> to vector<64x128xf32>
    %cst_441 = arith.constant dense<0.000000e+00> : vector<64x128xf32>
    %406 = tpu.matmul %403, %405, %cst_441 {dimension_numbers = #tpu.dot_dimension_numbers<[1], [0], [0], [1], [0, 0, 1, 1], [], []>} : vector<64x64xf32>, vector<64x128xf32>, vector<64x128xf32> -> vector<64x128xf32>
    %407 = arith.addf %400, %406 : vector<64x128xf32>
    %c2_442 = arith.constant 2 : index
    %c0_443 = arith.constant 0 : index
    %c1_444 = arith.constant 1 : index
    %c0_445 = arith.constant 0 : index
    %408 = vector.load %arg13[%c2_442, %c0_443, %c1_444, %c0_445] : memref<4x9x9x64xf32, #tpu.memory_space<vmem>>, vector<1x8x8x64xf32>
    %409 = vector.shape_cast %408 : vector<1x8x8x64xf32> to vector<8x8x64xf32>
    %410 = vector.shape_cast %409 : vector<8x8x64xf32> to vector<64x64xf32>
    %c5_446 = arith.constant 5 : index
    %c0_447 = arith.constant 0 : index
    %c0_448 = arith.constant 0 : index
    %411 = vector.load %arg6[%c5_446, %c0_447, %c0_448] : memref<9x64x128xf32, #tpu.memory_space<vmem>>, vector<1x64x128xf32>
    %412 = vector.shape_cast %411 : vector<1x64x128xf32> to vector<64x128xf32>
    %cst_449 = arith.constant dense<0.000000e+00> : vector<64x128xf32>
    %413 = tpu.matmul %410, %412, %cst_449 {dimension_numbers = #tpu.dot_dimension_numbers<[1], [0], [0], [1], [0, 0, 1, 1], [], []>} : vector<64x64xf32>, vector<64x128xf32>, vector<64x128xf32> -> vector<64x128xf32>
    %414 = arith.addf %407, %413 : vector<64x128xf32>
    %c0_450 = arith.constant 0 : index
    %c1_451 = arith.constant 1 : index
    %c0_452 = arith.constant 0 : index
    %c0_453 = arith.constant 0 : index
    %415 = vector.load %arg13[%c0_450, %c1_451, %c0_452, %c0_453] : memref<4x9x9x64xf32, #tpu.memory_space<vmem>>, vector<1x8x8x64xf32>
    %416 = vector.shape_cast %415 : vector<1x8x8x64xf32> to vector<8x8x64xf32>
    %417 = vector.shape_cast %416 : vector<8x8x64xf32> to vector<64x64xf32>
    %c6_454 = arith.constant 6 : index
    %c0_455 = arith.constant 0 : index
    %c0_456 = arith.constant 0 : index
    %418 = vector.load %arg6[%c6_454, %c0_455, %c0_456] : memref<9x64x128xf32, #tpu.memory_space<vmem>>, vector<1x64x128xf32>
    %419 = vector.shape_cast %418 : vector<1x64x128xf32> to vector<64x128xf32>
    %cst_457 = arith.constant dense<0.000000e+00> : vector<64x128xf32>
    %420 = tpu.matmul %417, %419, %cst_457 {dimension_numbers = #tpu.dot_dimension_numbers<[1], [0], [0], [1], [0, 0, 1, 1], [], []>} : vector<64x64xf32>, vector<64x128xf32>, vector<64x128xf32> -> vector<64x128xf32>
    %421 = arith.addf %414, %420 : vector<64x128xf32>
    %c1_458 = arith.constant 1 : index
    %c1_459 = arith.constant 1 : index
    %c0_460 = arith.constant 0 : index
    %c0_461 = arith.constant 0 : index
    %422 = vector.load %arg13[%c1_458, %c1_459, %c0_460, %c0_461] : memref<4x9x9x64xf32, #tpu.memory_space<vmem>>, vector<1x8x8x64xf32>
    %423 = vector.shape_cast %422 : vector<1x8x8x64xf32> to vector<8x8x64xf32>
    %424 = vector.shape_cast %423 : vector<8x8x64xf32> to vector<64x64xf32>
    %c7_462 = arith.constant 7 : index
    %c0_463 = arith.constant 0 : index
    %c0_464 = arith.constant 0 : index
    %425 = vector.load %arg6[%c7_462, %c0_463, %c0_464] : memref<9x64x128xf32, #tpu.memory_space<vmem>>, vector<1x64x128xf32>
    %426 = vector.shape_cast %425 : vector<1x64x128xf32> to vector<64x128xf32>
    %cst_465 = arith.constant dense<0.000000e+00> : vector<64x128xf32>
    %427 = tpu.matmul %424, %426, %cst_465 {dimension_numbers = #tpu.dot_dimension_numbers<[1], [0], [0], [1], [0, 0, 1, 1], [], []>} : vector<64x64xf32>, vector<64x128xf32>, vector<64x128xf32> -> vector<64x128xf32>
    %428 = arith.addf %421, %427 : vector<64x128xf32>
    %c0_466 = arith.constant 0 : index
    %c1_467 = arith.constant 1 : index
    %c1_468 = arith.constant 1 : index
    %c0_469 = arith.constant 0 : index
    %429 = vector.load %arg13[%c0_466, %c1_467, %c1_468, %c0_469] : memref<4x9x9x64xf32, #tpu.memory_space<vmem>>, vector<1x8x8x64xf32>
    %430 = vector.shape_cast %429 : vector<1x8x8x64xf32> to vector<8x8x64xf32>
    %431 = vector.shape_cast %430 : vector<8x8x64xf32> to vector<64x64xf32>
    %c8_470 = arith.constant 8 : index
    %c0_471 = arith.constant 0 : index
    %c0_472 = arith.constant 0 : index
    %432 = vector.load %arg6[%c8_470, %c0_471, %c0_472] : memref<9x64x128xf32, #tpu.memory_space<vmem>>, vector<1x64x128xf32>
    %433 = vector.shape_cast %432 : vector<1x64x128xf32> to vector<64x128xf32>
    %cst_473 = arith.constant dense<0.000000e+00> : vector<64x128xf32>
    %434 = tpu.matmul %431, %433, %cst_473 {dimension_numbers = #tpu.dot_dimension_numbers<[1], [0], [0], [1], [0, 0, 1, 1], [], []>} : vector<64x64xf32>, vector<64x128xf32>, vector<64x128xf32> -> vector<64x128xf32>
    %435 = arith.addf %428, %434 : vector<64x128xf32>
    %c0_474 = arith.constant 0 : index
    %c0_475 = arith.constant 0 : index
    %436 = vector.load %arg7[%c0_474, %c0_475] : memref<1x128xf32, #tpu.memory_space<vmem>>, vector<1x128xf32>
    %437 = vector.broadcast %436 : vector<1x128xf32> to vector<64x128xf32>
    %438 = arith.addf %435, %437 : vector<64x128xf32>
    %cst_476 = arith.constant 0.000000e+00 : f32
    %439 = vector.broadcast %cst_476 : f32 to vector<64x128xf32>
    %440 = arith.maximumf %438, %439 : vector<64x128xf32>
    %c0_477 = arith.constant 0 : index
    %c0_478 = arith.constant 0 : index
    %441 = vector.load %arg10[%c0_477, %c0_478] : memref<128x256xf32, #tpu.memory_space<vmem>>, vector<128x256xf32>
    %cst_479 = arith.constant dense<0.000000e+00> : vector<64x256xf32>
    %442 = tpu.matmul %440, %441, %cst_479 {dimension_numbers = #tpu.dot_dimension_numbers<[1], [0], [0], [1], [0, 0, 1, 1], [], []>} : vector<64x128xf32>, vector<128x256xf32>, vector<64x256xf32> -> vector<64x256xf32>
    %c0_480 = arith.constant 0 : index
    %c0_481 = arith.constant 0 : index
    %443 = vector.load %arg11[%c0_480, %c0_481] : memref<1x256xf32, #tpu.memory_space<vmem>>, vector<1x256xf32>
    %444 = vector.broadcast %443 : vector<1x256xf32> to vector<64x256xf32>
    %445 = arith.addf %442, %444 : vector<64x256xf32>
    %cst_482 = arith.constant 0.000000e+00 : f32
    %446 = vector.broadcast %cst_482 : f32 to vector<64x256xf32>
    %447 = arith.maximumf %445, %446 : vector<64x256xf32>
    %448 = vector.extract_strided_slice %447 {offsets = [0, 0], sizes = [64, 64], strides = [1, 1]} : vector<64x256xf32> to vector<64x64xf32>
    %449 = vector.extract_strided_slice %447 {offsets = [0, 64], sizes = [64, 64], strides = [1, 1]} : vector<64x256xf32> to vector<64x64xf32>
    %450 = vector.extract_strided_slice %447 {offsets = [0, 128], sizes = [64, 64], strides = [1, 1]} : vector<64x256xf32> to vector<64x64xf32>
    %451 = vector.extract_strided_slice %447 {offsets = [0, 192], sizes = [64, 64], strides = [1, 1]} : vector<64x256xf32> to vector<64x64xf32>
    %452 = tpu.concatenate %448, %449, %450, %451 in 0 : vector<64x64xf32>, vector<64x64xf32>, vector<64x64xf32>, vector<64x64xf32> -> vector<256x64xf32>
    %c0_483 = arith.constant 0 : index
    %c0_484 = arith.constant 0 : index
    %c0_485 = arith.constant 0 : index
    %453 = vector.load %arg12[%c0_483, %c0_484, %c0_485] : memref<1x256x128xf32, #tpu.memory_space<vmem>>, vector<1x256x64xf32>
    %454 = vector.shape_cast %453 : vector<1x256x64xf32> to vector<256x64xf32>
    %455 = vector.shape_cast %325 : vector<256x64xf32> to vector<1x256x64xf32>
    tpu.vector_store %arg12[%c0_483, %c0_484, %c0_485], %455 {strides = array<i32>} : memref<1x256x128xf32, #tpu.memory_space<vmem>>, vector<1x256x64xf32>,
    %c0_486 = arith.constant 0 : index
    %c0_487 = arith.constant 0 : index
    %c64 = arith.constant 64 : index
    %456 = vector.load %arg12[%c0_486, %c0_487, %c64] : memref<1x256x128xf32, #tpu.memory_space<vmem>>, vector<1x256x64xf32>
    %457 = vector.shape_cast %456 : vector<1x256x64xf32> to vector<256x64xf32>
    %458 = vector.shape_cast %452 : vector<256x64xf32> to vector<1x256x64xf32>
    tpu.vector_store %arg12[%c0_486, %c0_487, %c64], %458 {strides = array<i32>} : memref<1x256x128xf32, #tpu.memory_space<vmem>>, vector<1x256x64xf32>,
    return
  }
  func.func @transform_0(%arg0: i32) -> (i32, i32, i32) {
    %c0_i32 = arith.constant 0 : i32
    %c0_i32_0 = arith.constant 0 : i32
    %c0_i32_1 = arith.constant 0 : i32
    return %arg0, %c0_i32, %c0_i32_0 : i32, i32, i32
  }
  func.func @transform_1(%arg0: i32) -> (i32, i32) {
    %c0_i32 = arith.constant 0 : i32
    %c0_i32_0 = arith.constant 0 : i32
    %c0_i32_1 = arith.constant 0 : i32
    return %c0_i32, %c0_i32_0 : i32, i32
  }
  func.func @transform_2(%arg0: i32) -> (i32, i32) {
    %c0_i32 = arith.constant 0 : i32
    %c0_i32_0 = arith.constant 0 : i32
    %c0_i32_1 = arith.constant 0 : i32
    return %c0_i32, %c0_i32_0 : i32, i32
  }
  func.func @transform_3(%arg0: i32) -> (i32, i32, i32) {
    %c0_i32 = arith.constant 0 : i32
    %c0_i32_0 = arith.constant 0 : i32
    %c0_i32_1 = arith.constant 0 : i32
    %c0_i32_2 = arith.constant 0 : i32
    return %c0_i32, %c0_i32_0, %c0_i32_1 : i32, i32, i32
  }
  func.func @transform_4(%arg0: i32) -> (i32, i32) {
    %c0_i32 = arith.constant 0 : i32
    %c0_i32_0 = arith.constant 0 : i32
    %c0_i32_1 = arith.constant 0 : i32
    return %c0_i32, %c0_i32_0 : i32, i32
  }
  func.func @transform_5(%arg0: i32) -> (i32, i32, i32) {
    %c0_i32 = arith.constant 0 : i32
    %c0_i32_0 = arith.constant 0 : i32
    %c0_i32_1 = arith.constant 0 : i32
    %c0_i32_2 = arith.constant 0 : i32
    return %c0_i32, %c0_i32_0, %c0_i32_1 : i32, i32, i32
  }
  func.func @transform_6(%arg0: i32) -> (i32, i32) {
    %c0_i32 = arith.constant 0 : i32
    %c0_i32_0 = arith.constant 0 : i32
    %c0_i32_1 = arith.constant 0 : i32
    return %c0_i32, %c0_i32_0 : i32, i32
  }
  func.func @transform_7(%arg0: i32) -> (i32, i32) {
    %c0_i32 = arith.constant 0 : i32
    %c0_i32_0 = arith.constant 0 : i32
    %c0_i32_1 = arith.constant 0 : i32
    return %c0_i32, %c0_i32_0 : i32, i32
  }
  func.func @transform_8(%arg0: i32) -> (i32, i32) {
    %c0_i32 = arith.constant 0 : i32
    %c0_i32_0 = arith.constant 0 : i32
    %c0_i32_1 = arith.constant 0 : i32
    return %c0_i32, %c0_i32_0 : i32, i32
  }
  func.func @transform_9(%arg0: i32) -> (i32, i32) {
    %c0_i32 = arith.constant 0 : i32
    %c0_i32_0 = arith.constant 0 : i32
    %c0_i32_1 = arith.constant 0 : i32
    return %c0_i32, %c0_i32_0 : i32, i32
  }
  func.func @transform_10(%arg0: i32) -> (i32, i32) {
    %c0_i32 = arith.constant 0 : i32
    %c0_i32_0 = arith.constant 0 : i32
    %c0_i32_1 = arith.constant 0 : i32
    return %c0_i32, %c0_i32_0 : i32, i32
  }
  func.func @transform_11(%arg0: i32) -> (i32, i32, i32) {
    %c0_i32 = arith.constant 0 : i32
    %c0_i32_0 = arith.constant 0 : i32
    %c0_i32_1 = arith.constant 0 : i32
    return %arg0, %c0_i32, %c0_i32_0 : i32, i32, i32
  }
}

</mosaic_0001>

<bundles_post_ra>
// kernel: teacher_pipeline.1
= control target key start
LH: loop header
LB: loop body
LE: loop exit
PB: predicated region body
PF: predicated region fallthrough
CT: control target
= control target key end

     0   :  { %s9782_s17 = smov 0   ;;  %s14890_s0 = inlined_call_operand.vmem [shape: f32[2,2048,16], index: 0, kind: input, shape index: {}]   ;;  %s14891_s1 = inlined_call_operand.vmem [shape: f32[16,64], index: 1, kind: input, shape index: {}]   ;;  %s14892_s2 = inlined_call_operand.vmem [shape: f32[1,64], index: 2, kind: input, shape index: {}]   ;;  %s14893_s3 = inlined_call_operand.vmem [shape: f32[9,64,64], index: 3, kind: input, shape index: {}]   ;;  %s14894_s4 = inlined_call_operand.vmem [shape: f32[1,64], index: 4, kind: input, shape index: {}]   ;;  %s14895_s5 = inlined_call_operand.vmem [shape: f32[9,64,128], index: 5, kind: input, shape index: {}]   ;;  %s14896_s6 = inlined_call_operand.vmem [shape: f32[1,128], index: 6, kind: input, shape index: {}]   ;;  %s14897_s7 = inlined_call_operand.vmem [shape: f32[64,64], index: 7, kind: input, shape index: {}]   ;;  %s14898_s8 = inlined_call_operand.vmem [shape: f32[1,64], index: 8, kind: input, shape index: {}]   ;;  %s14899_s9 = inlined_call_operand.vmem [shape: f32[128,256], index: 9, kind: input, shape index: {}]   ;;  %s14900_s10 = inlined_call_operand.vmem [shape: f32[1,256], index: 10, kind: input, shape index: {}]   ;;  %s14901_s11 = inlined_call_operand.vmem [shape: f32[2,256,128], index: 11, kind: output, shape index: {}]  }
   0x1 LB: > { %s8727_s18 = sadd.s32 4294967295, %s9718_s17   ;;  %p8731_p0 = scmp.ge.s32.totalorder %s9718_s17, 1  ;;  %s9718_s17 = sphi %s9782_s17, %s21_s17  }
   0x2   : > { %p337_p1 = scmp.lt.s32.totalorder %s9718_s17, 3 }
   0x4   : > { %p338_p2 = pnand %p8731_p0, %p337_p1 }
   0x6   : > { %341 = sbr.rel (%p338_p2) target bundleno = 3120 (0xc30), region = 64 }
   0xb   : > { %v644_v0 = vld [vmem:[%s14891_s1 + $0x8] sm:$0xff]  ;;  %v643_v1 = vld [vmem:[%s14891_s1] sm:$0xff]  ;;  %p377_p3 = scmp.lt.s32.totalorder %s8727_s18, 1  ;;  %vm649_vm0 = vcmask 130048   ;;  %vm2459_vm1 = vcmask 523264   ;;  %vm4253_vm2 = vcmask 516096  }
   0xc   : > { %1432 = vmatpush.msra.mxu0 %v644_v0  ;;  %9516 = vmatpush.msra.mxu1 %v644_v0  ;;  %v9883_v46 = vld [vmem:[%s14892_s2] ss:$0 sm:$0xff]  ;;  %vm4328_vm3 = vcmask 1041409   ;;  %vm4330_vm4 = vcmask 1042434   ;;  %vm4332_vm5 = vcmask 1043459   ;;  %vm4334_vm6 = vcmask 1044484  }
   0xd   : > { %s15551_s18 = smov (!%p377_p3, %s8727_s18), 1  ;;  %9517 = vmatpush.msra.mxu3 %v644_v0  ;;  %vm4336_vm7 = vcmask 1045509   ;;  %vm4338_vm8 = vcmask 1046534   ;;  %vm4340_vm9 = vcmask 1047559   ;;  %s9721_s19 = smov 64   ;;  %vm8639_vm10 = vcmask 1048064  }
   0xe   : > { %1433 = vmatpush.msra.mxu0 %v643_v1  ;;  %9518 = vmatpush.msra.mxu1 %v643_v1  ;;  %s9514_s23 = sshll.u32 %s15551_s18, 11  ;;  %s9515_s22 = sshll.u32 %s15551_s18, 8 }
   0xf   : > { %9519 = vmatpush.msra.mxu3 %v643_v1  ;;  %s9802_s26 = scalar_lea.vmem %s14890_s0, %s9514_s23  ;;  %s13992_s24 = scalar_lea.vmem %s14901_s11, %s9515_s22 }
  0x10   : > { %v387_v2 = vld [vmem:[%s9802_s26] sm:$0xff]  ;;  %v554_v3 = vld [vmem:[%s9802_s26 + $0x538] sm:$0xff]  ;;  %v388_v4 = vld [vmem:[%s9802_s26 + $0x8] sm:$0xff] }
  0x11   : > { %8736 = vmatmul.msk.f32.vlgmr.msra.gmra.mxu0 %vm649_vm0, %v387_v2  ;;  %8903 = vmatmul.msk.f32.vlgmr.msra.gmra.mxu1 %vm649_vm0, %v554_v3  ;;  %v555_v5 = vld [vmem:[%s9802_s26 + $0x540] sm:$0xff]  ;;  %v389_v6 = vld [vmem:[%s9802_s26 + $0x10] sm:$0xff]  ;;  %v556_v7 = vld [vmem:[%s9802_s26 + $0x548] sm:$0xff] }
  0x12   : > { %v390_v8 = vld [vmem:[%s9802_s26 + $0x18] sm:$0xff]  ;;  %v557_v9 = vld [vmem:[%s9802_s26 + $0x550] sm:$0xff]  ;;  %v391_v10 = vld [vmem:[%s9802_s26 + $0x20] sm:$0xff] }
  0x13   : > { %v558_v11 = vld [vmem:[%s9802_s26 + $0x558] sm:$0xff]  ;;  %v392_v12 = vld [vmem:[%s9802_s26 + $0x28] sm:$0xff]  ;;  %v559_v13 = vld [vmem:[%s9802_s26 + $0x560] sm:$0xff] }
  0x14   : > { %v393_v14 = vld [vmem:[%s9802_s26 + $0x30] sm:$0xff]  ;;  %v560_v15 = vld [vmem:[%s9802_s26 + $0x568] sm:$0xff]  ;;  %v394_v16 = vld [vmem:[%s9802_s26 + $0x38] sm:$0xff] }
  0x15   : > { %v561_v17 = vld [vmem:[%s9802_s26 + $0x570] sm:$0xff]  ;;  %v395_v18 = vld [vmem:[%s9802_s26 + $0x40] sm:$0xff]  ;;  %v562_v19 = vld [vmem:[%s9802_s26 + $0x578] sm:$0xff] }
  0x16   : > { %v396_v20 = vld [vmem:[%s9802_s26 + $0x48] sm:$0xff]  ;;  %v563_v21 = vld [vmem:[%s9802_s26 + $0x580] sm:$0xff]  ;;  %v397_v22 = vld [vmem:[%s9802_s26 + $0x50] sm:$0xff] }
  0x17   : > { %v564_v23 = vld [vmem:[%s9802_s26 + $0x588] sm:$0xff]  ;;  %v398_v24 = vld [vmem:[%s9802_s26 + $0x58] sm:$0xff]  ;;  %v565_v25 = vld [vmem:[%s9802_s26 + $0x590] sm:$0xff] }
  0x18   : > { %v399_v26 = vld [vmem:[%s9802_s26 + $0x60] sm:$0xff]  ;;  %v566_v27 = vld [vmem:[%s9802_s26 + $0x598] sm:$0xff]  ;;  %v400_v28 = vld [vmem:[%s9802_s26 + $0x68] sm:$0xff] }
  0x19   : > { %8737 = vmatmul.msk.f32.gmra.mxu0 %vm649_vm0, %v388_v4  ;;  %8904 = vmatmul.msk.f32.gmra.mxu1 %vm649_vm0, %v555_v5  ;;  %v567_v29 = vld [vmem:[%s9802_s26 + $0x5a0] sm:$0xff]  ;;  %v401_v30 = vld [vmem:[%s9802_s26 + $0x70] sm:$0xff]  ;;  %v568_v31 = vld [vmem:[%s9802_s26 + $0x5a8] sm:$0xff] }
  0x1a   : > { %v402_v32 = vld [vmem:[%s9802_s26 + $0x78] sm:$0xff]  ;;  %v569_v33 = vld [vmem:[%s9802_s26 + $0x5b0] sm:$0xff]  ;;  %v403_v36 = vld [vmem:[%s9802_s26 + $0x80] sm:$0xff] }
  0x1b   : > { %v570_v37 = vld [vmem:[%s9802_s26 + $0x5b8] sm:$0xff]  ;;  %v404_v40 = vld [vmem:[%s9802_s26 + $0x88] sm:$0xff]  ;;  %v571_v41 = vld [vmem:[%s9802_s26 + $0x5c0] sm:$0xff] }
  0x1c   : > { %v405_v44 = vld [vmem:[%s9802_s26 + $0x90] sm:$0xff]  ;;  %v572_v45 = vld [vmem:[%s9802_s26 + $0x5c8] sm:$0xff]  ;;  %v406_v51 = vld [vmem:[%s9802_s26 + $0x98] sm:$0xff] }
  0x1d   : > { %v573_v52 = vld [vmem:[%s9802_s26 + $0x5d0] sm:$0xff]  ;;  %v407_v1 = vld [vmem:[%s9802_s26 + $0xa0] sm:$0xff]  ;;  %v574_v2 = vld [vmem:[%s9802_s26 + $0x5d8] sm:$0xff] }
  0x21   : > { %8738 = vmatmul.msk.f32.gmra.mxu0 %vm649_vm0, %v389_v6  ;;  %8905 = vmatmul.msk.f32.gmra.mxu1 %vm649_vm0, %v556_v7 }
  0x29   : > { %8739 = vmatmul.msk.f32.gmra.mxu0 %vm649_vm0, %v390_v8  ;;  %8906 = vmatmul.msk.f32.gmra.mxu1 %vm649_vm0, %v557_v9 }
  0x31   : > { %8740 = vmatmul.msk.f32.gmra.mxu0 %vm649_vm0, %v391_v10  ;;  %8907 = vmatmul.msk.f32.gmra.mxu1 %vm649_vm0, %v558_v11 }
  0x39   : > { %8741 = vmatmul.msk.f32.gmra.mxu0 %vm649_vm0, %v392_v12  ;;  %8908 = vmatmul.msk.f32.gmra.mxu1 %vm649_vm0, %v559_v13 }
  0x41   : > { %8742 = vmatmul.msk.f32.gmra.mxu0 %vm649_vm0, %v393_v14  ;;  %8909 = vmatmul.msk.f32.gmra.mxu1 %vm649_vm0, %v560_v15 }
  0x49   : > { %8743 = vmatmul.msk.f32.gmra.mxu0 %vm649_vm0, %v394_v16  ;;  %8910 = vmatmul.msk.f32.gmra.mxu1 %vm649_vm0, %v561_v17 }
  0x51   : > { %8744 = vmatmul.msk.f32.gmra.mxu0 %vm649_vm0, %v395_v18  ;;  %8911 = vmatmul.msk.f32.gmra.mxu1 %vm649_vm0, %v562_v19 }
  0x59   : > { %8745 = vmatmul.msk.f32.gmra.mxu0 %vm649_vm0, %v396_v20  ;;  %8912 = vmatmul.msk.f32.gmra.mxu1 %vm649_vm0, %v563_v21 }
  0x61   : > { %8746 = vmatmul.msk.f32.gmra.mxu0 %vm649_vm0, %v397_v22  ;;  %8913 = vmatmul.msk.f32.gmra.mxu1 %vm649_vm0, %v564_v23 }
  0x69   : > { %8747 = vmatmul.msk.f32.gmra.mxu0 %vm649_vm0, %v398_v24  ;;  %8914 = vmatmul.msk.f32.gmra.mxu1 %vm649_vm0, %v565_v25  ;;  %v408_v24 = vld [vmem:[%s9802_s26 + $0xa8] sm:$0xff]  ;;  %v575_v25 = vld [vmem:[%s9802_s26 + $0x5e0] sm:$0xff] }
  0x71   : > { %8748 = vmatmul.msk.f32.gmra.mxu0 %vm649_vm0, %v399_v26  ;;  %8915 = vmatmul.msk.f32.gmra.mxu1 %vm649_vm0, %v566_v27 }
  0x79   : > { %8749 = vmatmul.msk.f32.gmra.mxu0 %vm649_vm0, %v400_v28  ;;  %8916 = vmatmul.msk.f32.gmra.mxu1 %vm649_vm0, %v567_v29 }
  0x81   : > { %8750 = vmatmul.msk.f32.gmra.mxu0 %vm649_vm0, %v401_v30  ;;  %8917 = vmatmul.msk.f32.gmra.mxu1 %vm649_vm0, %v568_v31 }
  0x89   : > { %8751 = vmatmul.msk.f32.gmra.mxu0 %vm649_vm0, %v402_v32  ;;  %8918 = vmatmul.msk.f32.gmra.mxu1 %vm649_vm0, %v569_v33 }
  0x8e   : > { %v1435_v34 = vpop.f32.mrf.mxu0  ;;  %v9868_v35 = vpop.f32.mrf.mxu1 }
  0x8f   : > { %v1436_v47 = vadd.f32 %v9883_v46, %v1435_v34 }
  0x91   : > { %8752 = vmatmul.msk.f32.gmra.mxu0 %vm649_vm0, %v403_v36  ;;  %8919 = vmatmul.msk.f32.gmra.mxu1 %vm649_vm0, %v570_v37  ;;  %v2203_v53 = vmax.f32 %v1436_v47, 0.0 }
  0x93   : > { %v2460_v57 = vsel %vm2459_vm1, %v2203_v53, -inf }
  0x94   : > { %v2461_v62 = vrot.slane %v2460_v57, 4 }
  0x96   : > { %v1438_v38 = vpop.f32.mrf.mxu0  ;;  %v1939_v39 = vpop.f32.mrf.mxu1  ;;  %v2462_v10 = vmax.f32 %v2460_v57, %v2461_v62  ;;  %v576_v57 = vld [vmem:[%s9802_s26 + $0x5e8] sm:$0xff] }
  0x97   : > { %v1439_v48 = vadd.f32 %v9883_v46, %v1438_v38  ;;  %v1940_v54 = vadd.f32 %v9883_v46, %v1939_v39 }
  0x98   : > { %v2463_v19 = vrot.slane %v2462_v10, 2 }
  0x99   : > { %8753 = vmatmul.msk.f32.gmra.mxu0 %vm649_vm0, %v404_v40  ;;  %8920 = vmatmul.msk.f32.gmra.mxu1 %vm649_vm0, %v571_v41  ;;  %v2204_v56 = vmax.f32 %v1439_v48, 0.0  ;;  %v2371_v58 = vmax.f32 %v1940_v54, 0.0  ;;  %v14902_v40 = vmov 0.0  }
  0x9a   : > { %4252 = vst.msk [vmem:[#allocation2] sm:$0xff] %vm2459_vm1, %v14902_v40  ;;  %v2464_v41 = vmax.f32 %v2462_v10, %v2463_v19 }
  0x9b   : > { %v2467_v60 = vsel %vm2459_vm1, %v2204_v56, -inf  ;;  %v3636_v3 = vsel %vm2459_vm1, %v2371_v58, -inf  ;;  %4255 = vst.msk [vmem:[#allocation2] sm:$0x1] %vm4253_vm2, %v14902_v40  ;;  %v409_v56 = vld [vmem:[%s9802_s26 + $0xb0] sm:$0xff] }
  0x9c   : > { %v2468_v5 = vrot.slane %v2467_v60, 4  ;;  %v3637_v11 = vrot.slane %v3636_v3, 4  ;;  %4254 = vst.msk [vmem:[#allocation2 + $0x8] sm:$0x1] %vm4253_vm2, %v14902_v40  ;;  %v2465_v62 = vrot.slane %v2464_v41, 1 }
  0x9d   : > { %4256 = vst.msk [vmem:[#allocation2 + $0x10] sm:$0x1] %vm4253_vm2, %v14902_v40 }
  0x9e   : > { %v1441_v42 = vpop.f32.mrf.mxu0  ;;  %v1942_v43 = vpop.f32.mrf.mxu1  ;;  %v2469_v15 = vmax.f32 %v2467_v60, %v2468_v5  ;;  %v3638_v20 = vmax.f32 %v3636_v3, %v3637_v11  ;;  %4257 = vst.msk [vmem:[#allocation2 + $0x20] sm:$0x1] %vm4253_vm2, %v14902_v40 }
  0x9f   : > { %v1943_v55 = vadd.f32 %v9883_v46, %v1942_v43  ;;  %v1442_v4 = vadd.f32 %v9883_v46, %v1441_v42  ;;  %4258 = vst.msk [vmem:[#allocation2 + $0x30] sm:$0x1] %vm4253_vm2, %v14902_v40 }
  0xa0   : > { %v2470_v30 = vrot.slane %v2469_v15, 2  ;;  %v3639_v37 = vrot.slane %v3638_v20, 2  ;;  %4259 = vst.msk [vmem:[#allocation2 + $0x40] sm:$0x1] %vm4253_vm2, %v14902_v40 }
  0xa1   : > { %8754 = vmatmul.msk.f32.gmra.mxu0 %vm649_vm0, %v405_v44  ;;  %8921 = vmatmul.msk.f32.gmra.mxu1 %vm649_vm0, %v572_v45  ;;  %v2372_v59 = vmax.f32 %v1943_v55, 0.0  ;;  %v2205_v13 = vmax.f32 %v1442_v4, 0.0  ;;  %4260 = vst.msk [vmem:[#allocation2 + $0x50] sm:$0x1] %vm4253_vm2, %v14902_v40 }
  0xa2   : > { %v2471_v44 = vmax.f32 %v2469_v15, %v2470_v30  ;;  %4261 = vst.msk [vmem:[#allocation2 + $0x60] sm:$0x1] %vm4253_vm2, %v14902_v40 }
  0xa3   : > { %v3643_v6 = vsel %vm2459_vm1, %v2372_v59, -inf  ;;  %v2474_v26 = vsel %vm2459_vm1, %v2205_v13, -inf  ;;  %4262 = vst.msk [vmem:[#allocation2 + $0x70] sm:$0x1] %vm4253_vm2, %v14902_v40 }
  0xa4   : > { %v3644_v14 = vrot.slane %v3643_v6, 4  ;;  %v2475_v38 = vrot.slane %v2474_v26, 4  ;;  %4263 = vst.msk [vmem:[#allocation2 + $0x80] sm:$0x1] %vm4253_vm2, %v14902_v40 }
  0xa5   : > { %4409 = vst.msk [vmem:[#allocation2 + $0x90] sm:$0xff] %vm2459_vm1, %v14902_v40 }
  0xa6   : > { %v1444_v49 = vpop.f32.mrf.mxu0  ;;  %v1945_v50 = vpop.f32.mrf.mxu1  ;;  %v3645_v27 = vmax.f32 %v3643_v6, %v3644_v14  ;;  %4410 = vst.msk [vmem:[#allocation2 + $0x98] sm:$0x1] %vm4253_vm2, %v14902_v40 }
  0xa7   : > { %v1946_v61 = vadd.f32 %v9883_v46, %v1945_v50  ;;  %v1445_v7 = vadd.f32 %v9883_v46, %v1444_v49  ;;  %4412 = vst.msk [vmem:[#allocation2 + $0xa8] sm:$0x1] %vm4253_vm2, %v14902_v40 }
  0xa8   : > { %v3646_v42 = vrot.slane %v3645_v27, 2  ;;  %4413 = vst.msk [vmem:[#allocation2 + $0xb8] sm:$0x1] %vm4253_vm2, %v14902_v40 }
  0xa9   : > { %8755 = vmatmul.msk.f32.gmra.mxu0 %vm649_vm0, %v406_v51  ;;  %8922 = vmatmul.msk.f32.gmra.mxu1 %vm649_vm0, %v573_v52  ;;  %v2373_v8 = vmax.f32 %v1946_v61, 0.0  ;;  %v2206_v16 = vmax.f32 %v1445_v7, 0.0  ;;  %v3640_v51 = vmax.f32 %v3638_v20, %v3639_v37  ;;  %v2476_v52 = vmax.f32 %v2474_v26, %v2475_v38  ;;  %4414 = vst.msk [vmem:[#allocation2 + $0xc8] sm:$0x1] %vm4253_vm2, %v14902_v40 }
  0xaa   : > { %v3647_v58 = vmax.f32 %v3645_v27, %v3646_v42  ;;  %v410_v27 = vld [vmem:[%s9802_s26 + $0xb8] sm:$0xff]  ;;  %4415 = vst.msk [vmem:[#allocation2 + $0xd8] sm:$0x1] %vm4253_vm2, %v14902_v40 }
  0xab   : > { %v3650_v17 = vsel %vm2459_vm1, %v2373_v8, -inf  ;;  %v2481_v31 = vsel %vm2459_vm1, %v2206_v16, -inf  ;;  %v3641_v6 = vrot.slane %v3640_v51, 1  ;;  %v2477_v7 = vrot.slane %v2476_v52, 2  ;;  %4416 = vst.msk [vmem:[#allocation2 + $0xe8] sm:$0x1] %vm4253_vm2, %v14902_v40 }
  0xac   : > { %v3651_v32 = vrot.slane %v3650_v17, 4  ;;  %v2482_v45 = vrot.slane %v2481_v31, 4  ;;  %4417 = vst.msk [vmem:[#allocation2 + $0xf8] sm:$0x1] %vm4253_vm2, %v14902_v40 }
  0xad   : > { %4418 = vst.msk [vmem:[#allocation2 + $0x108] sm:$0x1] %vm4253_vm2, %v14902_v40 }
  0xae   : > { %v1447_v63 = vpop.f32.mrf.mxu0  ;;  %v1948_v0 = vpop.f32.mrf.mxu1  ;;  %v3652_v49 = vmax.f32 %v3650_v17, %v3651_v32  ;;  %v2466_v17 = vmax.f32 %v2464_v41, %v2465_v62  ;;  %4419 = vst.msk [vmem:[#allocation2 + $0x118] sm:$0x1] %vm4253_vm2, %v14902_v40 }
  0xaf   : > { %v1949_v9 = vadd.f32 %v9883_v46, %v1948_v0  ;;  %v1448_v12 = vadd.f32 %v9883_v46, %v1447_v63  ;;  %v2472_v63 = vrot.slane %v2471_v44, 1  ;;  %v2483_v0 = vmax.f32 %v2481_v31, %v2482_v45  ;;  %4558 = vst.msk [vmem:[#allocation2 + $0x1a0] sm:$0xff] %vm2459_vm1, %v14902_v40 }
  0xb0   : > { %4559 = vst.msk [vmem:[#allocation2 + $0x1a8] sm:$0x1] %vm4253_vm2, %v14902_v40 }
  0xb1   : > { %8756 = vmatmul.msk.f32.gmra.mxu0 %vm649_vm0, %v407_v1  ;;  %8923 = vmatmul.msk.f32.gmra.mxu1 %vm649_vm0, %v574_v2  ;;  %v2374_v18 = vmax.f32 %v1949_v9, 0.0  ;;  %v2207_v21 = vmax.f32 %v1448_v12, 0.0  ;;  %v3653_v2 = vrot.slane %v3652_v49, 2  ;;  %v3648_v9 = vrot.slane %v3647_v58, 1  ;;  %4561 = vst.msk [vmem:[#allocation2 + $0x120] sm:$0x1] %vm4253_vm2, %v14902_v40 }
  0xb2   : > { %v2484_v13 = vrot.slane %v2483_v0, 2  ;;  %4562 = vst.msk [vmem:[#allocation2 + $0x130] sm:$0x1] %vm4253_vm2, %v14902_v40 }
  0xb3   : > { %v3657_v33 = vsel %vm2459_vm1, %v2374_v18, -inf  ;;  %v2488_v39 = vsel %vm2459_vm1, %v2207_v21, -inf  ;;  %v2473_v18 = vmax.f32 %v2471_v44, %v2472_v63  ;;  %v3654_v19 = vmax.f32 %v3652_v49, %v3653_v2  ;;  %v578_v2 = vld [vmem:[%s9802_s26 + $0x5f8] sm:$0xff]  ;;  %4563 = vst.msk [vmem:[#allocation2 + $0x140] sm:$0x1] %vm4253_vm2, %v14902_v40 }
  0xb4   : > { %v3658_v47 = vrot.slane %v3657_v33, 4  ;;  %v2489_v50 = vrot.slane %v2488_v39, 4  ;;  %v2478_v21 = vmax.f32 %v2476_v52, %v2477_v7  ;;  %4564 = vst.msk [vmem:[#allocation2 + $0x150] sm:$0x1] %vm4253_vm2, %v14902_v40 }
  0xb5   : > { %v3655_v38 = vrot.slane %v3654_v19, 1  ;;  %4565 = vst.msk [vmem:[#allocation2 + $0x160] sm:$0x1] %vm4253_vm2, %v14902_v40 }
  0xb6   : > { %v1450_v22 = vpop.f32.mrf.mxu0  ;;  %v1951_v23 = vpop.f32.mrf.mxu1  ;;  %v3659_v1 = vmax.f32 %v3657_v33, %v3658_v47  ;;  %v2490_v3 = vmax.f32 %v2488_v39, %v2489_v50  ;;  %v3649_v33 = vmax.f32 %v3647_v58, %v3648_v9  ;;  %4566 = vst.msk [vmem:[#allocation2 + $0x170] sm:$0x1] %vm4253_vm2, %v14902_v40 }
  0xb7   : > { %v1451_v28 = vadd.f32 %v9883_v46, %v1450_v22  ;;  %v1952_v29 = vadd.f32 %v9883_v46, %v1951_v23  ;;  %4567 = vst.msk [vmem:[#allocation2 + $0x180] sm:$0x1] %vm4253_vm2, %v14902_v40 }
  0xb8   : > { %v3660_v14 = vrot.slane %v3659_v1, 2  ;;  %v2491_v20 = vrot.slane %v2490_v3, 2  ;;  %4568 = vst.msk [vmem:[#allocation2 + $0x190] sm:$0x1] %vm4253_vm2, %v14902_v40 }
  0xb9   : > { %v2208_v34 = vmax.f32 %v1451_v28, 0.0  ;;  %v2375_v36 = vmax.f32 %v1952_v29, 0.0  ;;  %8757 = vmatmul.msk.f32.gmra.mxu0 %vm649_vm0, %v408_v24  ;;  %8924 = vmatmul.msk.f32.gmra.mxu1 %vm649_vm0, %v575_v25  ;;  %v577_v28 = vld [vmem:[%s9802_s26 + $0x5f0] sm:$0xff]  ;;  %v3642_v29 = vmax.f32 %v3640_v51, %v3641_v6  ;;  %4707 = vst.msk [vmem:[#allocation2 + $0x230] sm:$0xff] %vm2459_vm1, %v14902_v40 }
  0xba   : > { %v2492_v39 = vmax.f32 %v2490_v3, %v2491_v20  ;;  %4708 = vst.msk [vmem:[#allocation2 + $0x238] sm:$0x1] %vm4253_vm2, %v14902_v40 }
  0xbb   : > { %v2495_v43 = vsel %vm2459_vm1, %v2208_v34, -inf  ;;  %v3664_v48 = vsel %vm2459_vm1, %v2375_v36, -inf  ;;  %v2485_v34 = vmax.f32 %v2483_v0, %v2484_v13  ;;  %v3661_v36 = vmax.f32 %v3659_v1, %v3660_v14  ;;  %v411_v1 = vld [vmem:[%s9802_s26 + $0xc0] sm:$0xff]  ;;  %4710 = vst.msk [vmem:[#allocation2 + $0x1b8] sm:$0x1] %vm4253_vm2, %v14902_v40 }
  0xbc   : > { %v2496_v53 = vrot.slane %v2495_v43, 4  ;;  %v3665_v59 = vrot.slane %v3664_v48, 4  ;;  %v2493_v58 = vrot.slane %v2492_v39, 1  ;;  %4711 = vst.msk [vmem:[#allocation2 + $0x1c8] sm:$0x1] %vm4253_vm2, %v14902_v40 }
  0xbd   : > { %v2486_v51 = vrot.slane %v2485_v34, 1  ;;  %v3662_v52 = vrot.slane %v3661_v36, 1  ;;  %4712 = vst.msk [vmem:[#allocation2 + $0x1d8] sm:$0x1] %vm4253_vm2, %v14902_v40 }
  0xbe   : > { %v1453_v54 = vpop.f32.mrf.mxu0  ;;  %v1954_v55 = vpop.f32.mrf.mxu1  ;;  %v2497_v8 = vmax.f32 %v2495_v43, %v2496_v53  ;;  %v3666_v10 = vmax.f32 %v3664_v48, %v3665_v59  ;;  %v2479_v43 = vrot.slane %v2478_v21, 1  ;;  %4713 = vst.msk [vmem:[#allocation2 + $0x1e8] sm:$0x1] %vm4253_vm2, %v14902_v40 }
  0xbf   : > { %v1454_v60 = vadd.f32 %v9883_v46, %v1453_v54  ;;  %v1955_v61 = vadd.f32 %v9883_v46, %v1954_v55  ;;  %v4783_v55 = vsel %vm4328_vm3, %v2473_v18, %v2466_v17  ;;  %v2487_v7 = vmax.f32 %v2485_v34, %v2486_v51  ;;  %v412_v34 = vld [vmem:[%s9802_s26 + $0xc8] sm:$0xff]  ;;  %v413_v51 = vld [vmem:[%s9802_s26 + $0xd0] sm:$0xff]  ;;  %4714 = vst.msk [vmem:[#allocation2 + $0x1f8] sm:$0x1] %vm4253_vm2, %v14902_v40 }
  0xc0   : > { %v2498_v22 = vrot.slane %v2497_v8, 2  ;;  %v3667_v30 = vrot.slane %v3666_v10, 2  ;;  %v2480_v3 = vmax.f32 %v2478_v21, %v2479_v43  ;;  %4715 = vst.msk [vmem:[#allocation2 + $0x208] sm:$0x1] %vm4253_vm2, %v14902_v40 }
  0xc1   : > { %v2209_v4 = vmax.f32 %v1454_v60, 0.0  ;;  %v2376_v5 = vmax.f32 %v1955_v61, 0.0  ;;  %8758 = vmatmul.msk.f32.gmra.mxu0 %vm649_vm0, %v409_v56  ;;  %8925 = vmatmul.msk.f32.gmra.mxu1 %vm649_vm0, %v576_v57  ;;  %v4519_v56 = vsel %vm4328_vm3, %v3649_v33, %v3642_v29  ;;  %v3656_v57 = vmax.f32 %v3654_v19, %v3655_v38  ;;  %4716 = vst.msk [vmem:[#allocation2 + $0x218] sm:$0x1] %vm4253_vm2, %v14902_v40 }
  0xc2   : > { %v2499_v44 = vmax.f32 %v2497_v8, %v2498_v22  ;;  %v3668_v47 = vmax.f32 %v3666_v10, %v3667_v30  ;;  %v3663_v8 = vmax.f32 %v3661_v36, %v3662_v52  ;;  %v4784_v18 = vsel %vm4330_vm4, %v2480_v3, %v4783_v55  ;;  %v579_v36 = vld [vmem:[%s9802_s26 + $0x600] sm:$0xff]  ;;  %v580_v52 = vld [vmem:[%s9802_s26 + $0x608] sm:$0xff]  ;;  %4717 = vst.msk [vmem:[#allocation2 + $0x228] sm:$0x1] %vm4253_vm2, %v14902_v40 }
  0xc3   : > { %v2502_v11 = vsel %vm2459_vm1, %v2209_v4, -inf  ;;  %v3671_v12 = vsel %vm2459_vm1, %v2376_v5, -inf  ;;  %v4785_v22 = vsel %vm4332_vm5, %v2487_v7, %v4784_v18  ;;  %4411 = vst.msk [vmem:[#allocation2 + $0x98] sm:$0x1] %vm4253_vm2, %v14902_v40  ;;  %v582_v7 = vld [vmem:[%s9802_s26 + $0x618] sm:$0xff] }
  0xc4   : > { %v2503_v15 = vrot.slane %v2502_v11, 4  ;;  %v3672_v16 = vrot.slane %v3671_v12, 4  ;;  %v2500_v59 = vrot.slane %v2499_v44, 1  ;;  %v3669_v4 = vrot.slane %v3668_v47, 1  ;;  %4569 = vst.msk [vmem:[#allocation2 + $0x1a0] sm:$0x1] %vm4253_vm2, %v14902_v40 }
  0xc5   : > { %4718 = vst.msk [vmem:[#allocation2 + $0x238] sm:$0x1] %vm4253_vm2, %v14902_v40 }
  0xc6   : > { %v2504_v23 = vmax.f32 %v2502_v11, %v2503_v15  ;;  %v3673_v24 = vmax.f32 %v3671_v12, %v3672_v16  ;;  %v1456_v25 = vpop.f32.mrf.mxu0  ;;  %v1957_v26 = vpop.f32.mrf.mxu1  ;;  %v4520_v11 = vsel %vm4330_vm4, %v3656_v57, %v4519_v56  ;;  %v2494_v12 = vmax.f32 %v2492_v39, %v2493_v58  ;;  %v414_v56 = vld [vmem:[%s9802_s26 + $0xd8] sm:$0xff]  ;;  %v581_v57 = vld [vmem:[%s9802_s26 + $0x610] sm:$0xff] }
  0xc7   : > { %v1457_v31 = vadd.f32 %v9883_v46, %v1456_v25  ;;  %v1958_v32 = vadd.f32 %v9883_v46, %v1957_v26  ;;  %v2501_v14 = vmax.f32 %v2499_v44, %v2500_v59  ;;  %v3670_v19 = vmax.f32 %v3668_v47, %v3669_v4 }
  0xc8   : > { %v2505_v37 = vrot.slane %v2504_v23, 2  ;;  %v3674_v45 = vrot.slane %v3673_v24, 2  ;;  %v4786_v26 = vsel %vm4334_vm6, %v2494_v12, %v4785_v22 }
  0xc9   : > { %v2210_v41 = vmax.f32 %v1457_v31, 0.0  ;;  %v2377_v42 = vmax.f32 %v1958_v32, 0.0  ;;  %8759 = vmatmul.msk.f32.gmra.mxu0 %vm649_vm0, %v410_v27  ;;  %8926 = vmatmul.msk.f32.gmra.mxu1 %vm649_vm0, %v577_v28  ;;  %v4787_v28 = vsel %vm4336_vm7, %v2501_v14, %v4786_v26 }
  0xca   : > { %v2506_v48 = vmax.f32 %v2504_v23, %v2505_v37  ;;  %v3675_v60 = vmax.f32 %v3673_v24, %v3674_v45  ;;  %v4521_v23 = vsel %vm4332_vm5, %v3663_v8, %v4520_v11 }
  0xcb   : > { %v2509_v49 = vsel %vm2459_vm1, %v2210_v41, -inf  ;;  %v3678_v50 = vsel %vm2459_vm1, %v2377_v42, -inf  ;;  %v4522_v37 = vsel %vm4334_vm6, %v3670_v19, %v4521_v23 }
  0xcc   : > { %v2510_v53 = vrot.slane %v2509_v49, 4  ;;  %v3679_v54 = vrot.slane %v3678_v50, 4  ;;  %v2507_v5 = vrot.slane %v2506_v48, 1  ;;  %v3676_v15 = vrot.slane %v3675_v60, 1 }
  0xce   : > { %v2511_v61 = vmax.f32 %v2509_v49, %v2510_v53  ;;  %v3680_v62 = vmax.f32 %v3678_v50, %v3679_v54  ;;  %v9979_v63 = vpop.f32.mrf.mxu0  ;;  %v1960_v0 = vpop.f32.mrf.mxu1  ;;  %v2508_v20 = vmax.f32 %v2506_v48, %v2507_v5  ;;  %v3677_v29 = vmax.f32 %v3675_v60, %v3676_v15 }
  0xcf   : > { %v1961_v6 = vadd.f32 %v9883_v46, %v1960_v0  ;;  %v1460_v58 = vadd.f32 %v9883_v46, %v9979_v63 }
  0xd0   : > { %v2512_v9 = vrot.slane %v2511_v61, 2  ;;  %v3681_v10 = vrot.slane %v3680_v62, 2  ;;  %v4788_v38 = vsel %vm4338_vm8, %v2508_v20, %v4787_v28  ;;  %v4523_v43 = vsel %vm4336_vm7, %v3677_v29, %v4522_v37 }
  0xd1   : > { %v2378_v13 = vmax.f32 %v1961_v6, 0.0  ;;  %8760 = vmatmul.msk.f32.gmra.mxu0 %vm649_vm0, %v411_v1  ;;  %8927 = vmatmul.msk.f32.gmra.mxu1 %vm649_vm0, %v578_v2  ;;  %v2211_v63 = vmax.f32 %v1460_v58, 0.0  ;;  %v415_v6 = vld [vmem:[%s9802_s26 + $0xe0] sm:$0xff] }
  0xd2   : > { %v2513_v16 = vmax.f32 %v2511_v61, %v2512_v9  ;;  %v3682_v17 = vmax.f32 %v3680_v62, %v3681_v10 }
  0xd3   : > { %v3685_v21 = vsel %vm2459_vm1, %v2378_v13, -inf  ;;  %v2516_v8 = vsel %vm2459_vm1, %v2211_v63, -inf  ;;  %v417_v63 = vld [vmem:[%s9802_s26 + $0xf0] sm:$0xff] }
  0xd4   : > { %v2514_v24 = vrot.slane %v2513_v16, 1  ;;  %v3686_v25 = vrot.slane %v3685_v21, 4  ;;  %v3683_v27 = vrot.slane %v3682_v17, 1  ;;  %v2517_v15 = vrot.slane %v2516_v8, 4 }
  0xd6   : > { %v2515_v30 = vmax.f32 %v2513_v16, %v2514_v24  ;;  %v3687_v31 = vmax.f32 %v3685_v21, %v3686_v25  ;;  %v1462_v32 = vpop.f32.mrf.mxu0  ;;  %v1963_v33 = vpop.f32.mrf.mxu1  ;;  %v3684_v42 = vmax.f32 %v3682_v17, %v3683_v27  ;;  %v2518_v24 = vmax.f32 %v2516_v8, %v2517_v15 }
  0xd7   : > { %v1964_v59 = vadd.f32 %v9883_v46, %v1963_v33  ;;  %v1463_v62 = vadd.f32 %v9883_v46, %v1462_v32 }
  0xd8   : > { %v4789_v39 = vsel %vm4340_vm9, %v2515_v30, %v4788_v38  ;;  %v3688_v41 = vrot.slane %v3687_v31, 2  ;;  %v4524_v47 = vsel %vm4338_vm8, %v3684_v42, %v4523_v43  ;;  %v416_v30 = vld [vmem:[%s9802_s26 + $0xe8] sm:$0xff] }
  0xd9   : > { %4847 = vst.msk [vmem:[#allocation2 + $0x1b0] sm:$0xff] %vm2459_vm1, %v4789_v39  ;;  %8761 = vmatmul.msk.f32.gmra.mxu0 %vm649_vm0, %v412_v34  ;;  %8928 = vmatmul.msk.f32.gmra.mxu1 %vm649_vm0, %v579_v36  ;;  %v2379_v0 = vmax.f32 %v1964_v59, 0.0  ;;  %v2212_v2 = vmax.f32 %v1463_v62, 0.0 }
  0xda   : > { %v3689_v44 = vmax.f32 %v3687_v31, %v3688_v41  ;;  %v583_v31 = vld [vmem:[%s9802_s26 + $0x620] sm:$0xff] }
  0xdb   : > { %v3692_v9 = vsel %vm2459_vm1, %v2379_v0, -inf  ;;  %v2523_v13 = vsel %vm2459_vm1, %v2212_v2, -inf  ;;  %v584_v0 = vld [vmem:[%s9802_s26 + $0x628] sm:$0xff] }
  0xdc   : > { %v3690_v45 = vrot.slane %v3689_v44, 1  ;;  %v3693_v16 = vrot.slane %v3692_v9, 4  ;;  %v2524_v21 = vrot.slane %v2523_v13, 4 }
  0xde   : > { %v3691_v48 = vmax.f32 %v3689_v44, %v3690_v45  ;;  %v1465_v49 = vpop.f32.mrf.mxu0  ;;  %v1966_v50 = vpop.f32.mrf.mxu1  ;;  %v3694_v25 = vmax.f32 %v3692_v9, %v3693_v16  ;;  %v2525_v37 = vmax.f32 %v2523_v13, %v2524_v21 }
  0xdf   : > { %v1967_v61 = vadd.f32 %v9883_v46, %v1966_v50  ;;  %v1466_v10 = vadd.f32 %v9883_v46, %v1465_v49 }
  0xe0   : > { %v4525_v53 = vsel %vm4340_vm9, %v3691_v48, %v4524_v47  ;;  %v10062_v60 = vld [vmem:[#allocation2 + $0x1b1] sm:$0xff]  ;;  %v3695_v44 = vrot.slane %v3694_v25, 2  ;;  %v2519_v48 = vrot.slane %v2518_v24, 2 }
  0xe1   : > { %4554 = vst.msk [vmem:[#allocation2 + $0xf0] sm:$0xff] %vm2459_vm1, %v4525_v53  ;;  %8762 = vmatmul.msk.f32.gmra.mxu0 %vm649_vm0, %v413_v51  ;;  %8929 = vmatmul.msk.f32.gmra.mxu1 %vm649_vm0, %v580_v52  ;;  %v2380_v1 = vmax.f32 %v1967_v61, 0.0  ;;  %v2213_v19 = vmax.f32 %v1466_v10, 0.0  ;;  %v2526_v51 = vrot.slane %v2525_v37, 2 }
  0xe2   : > { %15061 = vst [vmem:[#allocation3_spill] sm:$0xff] %v10062_v60 }
  0xe3   : > { %7529 = vst.msk [vmem:[#allocation2 + $0x1b8] sm:$0x1] %vm4253_vm2, %v14902_v40  ;;  %v3699_v11 = vsel %vm2459_vm1, %v2380_v1, -inf  ;;  %v2530_v32 = vsel %vm2459_vm1, %v2213_v19, -inf }
  0xe4   : > { %v3700_v20 = vrot.slane %v3699_v11, 4  ;;  %v2531_v45 = vrot.slane %v2530_v32, 4 }
  0xe6   : > { %v1468_v54 = vpop.f32.mrf.mxu0  ;;  %v1969_v55 = vpop.f32.mrf.mxu1  ;;  %v3701_v33 = vmax.f32 %v3699_v11, %v3700_v20  ;;  %v2532_v58 = vmax.f32 %v2530_v32, %v2531_v45 }
  0xe7   : > { %v1970_v3 = vadd.f32 %v9883_v46, %v1969_v55  ;;  %v1469_v12 = vadd.f32 %v9883_v46, %v1468_v54 }
  0xe8   : > { %v3702_v49 = vrot.slane %v3701_v33, 2 }
  0xe9   : > { %8763 = vmatmul.msk.f32.gmra.mxu0 %vm649_vm0, %v414_v56  ;;  %8930 = vmatmul.msk.f32.gmra.mxu1 %vm649_vm0, %v581_v57  ;;  %v2381_v17 = vmax.f32 %v1970_v3, 0.0  ;;  %v2214_v22 = vmax.f32 %v1469_v12, 0.0  ;;  %v3696_v57 = vmax.f32 %v3694_v25, %v3695_v44 }
  0xea   : > { %v3703_v1 = vmax.f32 %v3701_v33, %v3702_v49 }
  0xeb   : > { %v3706_v26 = vsel %vm2459_vm1, %v2381_v17, -inf  ;;  %v2537_v38 = vsel %vm2459_vm1, %v2214_v22, -inf  ;;  %v3697_v13 = vrot.slane %v3696_v57, 1 }
  0xec   : > { %v3707_v39 = vrot.slane %v3706_v26, 4  ;;  %v2538_v52 = vrot.slane %v2537_v38, 4  ;;  %v3704_v16 = vrot.slane %v3703_v1, 1 }
  0xee   : > { %v1471_v4 = vpop.f32.mrf.mxu0  ;;  %v1972_v5 = vpop.f32.mrf.mxu1  ;;  %v3708_v55 = vmax.f32 %v3706_v26, %v3707_v39 }
  0xef   : > { %v1973_v14 = vadd.f32 %v9883_v46, %v1972_v5  ;;  %v1472_v18 = vadd.f32 %v9883_v46, %v1471_v4  ;;  %v2520_v5 = vmax.f32 %v2518_v24, %v2519_v48 }
  0xf0   : > { %v3709_v9 = vrot.slane %v3708_v55, 2 }
  0xf1   : > { %8764 = vmatmul.msk.f32.gmra.mxu0 %vm649_vm0, %v415_v6  ;;  %8931 = vmatmul.msk.f32.gmra.mxu1 %vm649_vm0, %v582_v7  ;;  %v2382_v23 = vmax.f32 %v1973_v14, 0.0  ;;  %v2215_v27 = vmax.f32 %v1472_v18, 0.0  ;;  %v2527_v6 = vmax.f32 %v2525_v37, %v2526_v51  ;;  %v2539_v7 = vmax.f32 %v2537_v38, %v2538_v52 }
  0xf2   : > { %v2533_v14 = vrot.slane %v2532_v58, 2  ;;  %v2521_v24 = vrot.slane %v2520_v5, 1  ;;  %v3710_v26 = vmax.f32 %v3708_v55, %v3709_v9  ;;  %v3698_v37 = vmax.f32 %v3696_v57, %v3697_v13 }
  0xf3   : > { %v3713_v41 = vsel %vm2459_vm1, %v2382_v23, -inf  ;;  %v2544_v47 = vsel %vm2459_vm1, %v2215_v27, -inf  ;;  %v2540_v20 = vrot.slane %v2539_v7, 2  ;;  %v2528_v25 = vrot.slane %v2527_v6, 1 }
  0xf4   : > { %v3714_v53 = vrot.slane %v3713_v41, 4  ;;  %v2545_v56 = vrot.slane %v2544_v47, 4  ;;  %v2522_v51 = vmax.f32 %v2520_v5, %v2521_v24 }
  0xf6   : > { %v1474_v28 = vpop.f32.mrf.mxu0  ;;  %v1975_v29 = vpop.f32.mrf.mxu1  ;;  %v3715_v8 = vmax.f32 %v3713_v41, %v3714_v53  ;;  %v2546_v10 = vmax.f32 %v2544_v47, %v2545_v56  ;;  %v3711_v47 = vrot.slane %v3710_v26, 1 }
  0xf7   : > { %v1475_v34 = vadd.f32 %v9883_v46, %v1474_v28  ;;  %v1976_v36 = vadd.f32 %v9883_v46, %v1975_v29  ;;  %v2534_v28 = vmax.f32 %v2532_v58, %v2533_v14 }
  0xf8   : > { %v3716_v21 = vrot.slane %v3715_v8, 2  ;;  %v2547_v27 = vrot.slane %v2546_v10, 2 }
  0xf9   : > { %v2216_v42 = vmax.f32 %v1475_v34, 0.0  ;;  %v2383_v43 = vmax.f32 %v1976_v36, 0.0  ;;  %8765 = vmatmul.msk.f32.gmra.mxu0 %vm649_vm0, %v416_v30  ;;  %8932 = vmatmul.msk.f32.gmra.mxu1 %vm649_vm0, %v583_v31  ;;  %v418_v34 = vld [vmem:[%s9802_s26 + $0xf8] sm:$0xff]  ;;  %v585_v36 = vld [vmem:[%s9802_s26 + $0x630] sm:$0xff]  ;;  %v2535_v52 = vrot.slane %v2534_v28, 1 }
  0xfa   : > { %v3717_v44 = vmax.f32 %v3715_v8, %v3716_v21  ;;  %v2548_v48 = vmax.f32 %v2546_v10, %v2547_v27 }
  0xfb   : > { %v2551_v50 = vsel %vm2459_vm1, %v2216_v42, -inf  ;;  %v3720_v54 = vsel %vm2459_vm1, %v2383_v43, -inf  ;;  %v3705_v42 = vmax.f32 %v3703_v1, %v3704_v16  ;;  %v2541_v43 = vmax.f32 %v2539_v7, %v2540_v20 }
  0xfc   : > { %v2552_v59 = vrot.slane %v2551_v50, 4  ;;  %v3721_v2 = vrot.slane %v3720_v54, 4  ;;  %v2536_v13 = vmax.f32 %v2534_v28, %v2535_v52 }
  0xfd   : > { %v4526_v1 = vsel %vm4328_vm3, %v3705_v42, %v3698_v37 }
  0xfe   : > { %v1477_v61 = vpop.f32.mrf.mxu0  ;;  %v1978_v62 = vpop.f32.mrf.mxu1  ;;  %v2553_v15 = vmax.f32 %v2551_v50, %v2552_v59  ;;  %v3722_v17 = vmax.f32 %v3720_v54, %v3721_v2  ;;  %v2542_v59 = vrot.slane %v2541_v43, 1  ;;  %v3712_v2 = vmax.f32 %v3710_v26, %v3711_v47  ;;  %v420_v47 = vld [vmem:[%s9802_s26 + $0x108] sm:$0xff] }
  0xff   : > { %v1478_v3 = vadd.f32 %v9883_v46, %v1477_v61  ;;  %v1979_v4 = vadd.f32 %v9883_v46, %v1978_v62  ;;  %v3718_v61 = vrot.slane %v3717_v44, 1 }
 0x100   : > { %v2554_v29 = vrot.slane %v2553_v15, 2  ;;  %v3723_v38 = vrot.slane %v3722_v17, 2  ;;  %v4527_v21 = vsel %vm4330_vm4, %v3712_v2, %v4526_v1 }
 0x101   : > { %v2217_v11 = vmax.f32 %v1478_v3, 0.0  ;;  %v2384_v12 = vmax.f32 %v1979_v4, 0.0  ;;  %8766 = vmatmul.msk.f32.gmra.mxu0 %vm649_vm0, %v417_v63  ;;  %8933 = vmatmul.msk.f32.gmra.mxu1 %vm649_vm0, %v584_v0  ;;  %v2529_v0 = vmax.f32 %v2527_v6, %v2528_v25  ;;  %v2549_v3 = vrot.slane %v2548_v48, 1 }
 0x102   : > { %v2555_v53 = vmax.f32 %v2553_v15, %v2554_v29  ;;  %v3724_v55 = vmax.f32 %v3722_v17, %v3723_v38  ;;  %v2543_v17 = vmax.f32 %v2541_v43, %v2542_v59  ;;  %v3719_v6 = vmax.f32 %v3717_v44, %v3718_v61 }
 0x103   : > { %v2558_v18 = vsel %vm2459_vm1, %v2217_v11, -inf  ;;  %v3727_v19 = vsel %vm2459_vm1, %v2384_v12, -inf  ;;  %v419_v11 = vld [vmem:[%s9802_s26 + $0x100] sm:$0xff]  ;;  %v586_v12 = vld [vmem:[%s9802_s26 + $0x638] sm:$0xff]  ;;  %v4790_v20 = vsel %vm4328_vm3, %v2529_v0, %v2522_v51 }
 0x104   : > { %v2559_v22 = vrot.slane %v2558_v18, 4  ;;  %v3728_v23 = vrot.slane %v3727_v19, 4  ;;  %v2556_v4 = vrot.slane %v2555_v53, 1  ;;  %v3725_v14 = vrot.slane %v3724_v55, 1 }
 0x105   : > { %v4791_v28 = vsel %vm4330_vm4, %v2536_v13, %v4790_v20 }
 0x106   : > { %v2560_v30 = vmax.f32 %v2558_v18, %v2559_v22  ;;  %v3729_v31 = vmax.f32 %v3727_v19, %v3728_v23  ;;  %v1480_v32 = vpop.f32.mrf.mxu0  ;;  %v1981_v33 = vpop.f32.mrf.mxu1  ;;  %v2550_v22 = vmax.f32 %v2548_v48, %v2549_v3  ;;  %v2557_v24 = vmax.f32 %v2555_v53, %v2556_v4  ;;  %v587_v48 = vld [vmem:[%s9802_s26 + $0x640] sm:$0xff] }
 0x107   : > { %v1481_v39 = vadd.f32 %v9883_v46, %v1480_v32  ;;  %v1982_v41 = vadd.f32 %v9883_v46, %v1981_v33  ;;  %v3726_v29 = vmax.f32 %v3724_v55, %v3725_v14  ;;  %v4792_v32 = vsel %vm4332_vm5, %v2543_v17, %v4791_v28 }
 0x108   : > { %v2561_v45 = vrot.slane %v2560_v30, 2  ;;  %v3730_v54 = vrot.slane %v3729_v31, 2  ;;  %v4528_v33 = vsel %vm4332_vm5, %v3719_v6, %v4527_v21  ;;  %v4793_v37 = vsel %vm4334_vm6, %v2550_v22, %v4792_v32 }
 0x109   : > { %v2218_v49 = vmax.f32 %v1481_v39, 0.0  ;;  %v2385_v50 = vmax.f32 %v1982_v41, 0.0  ;;  %8767 = vmatmul.msk.f32.gmra.mxu0 %vm649_vm0, %v418_v34  ;;  %8934 = vmatmul.msk.f32.gmra.mxu1 %vm649_vm0, %v585_v36  ;;  %v4794_v39 = vsel %vm4336_vm7, %v2557_v24, %v4793_v37 }
 0x10a   : > { %v2562_v56 = vmax.f32 %v2560_v30, %v2561_v45  ;;  %v3731_v5 = vmax.f32 %v3729_v31, %v3730_v54 }
 0x10b   : > { %v2565_v57 = vsel %vm2459_vm1, %v2218_v49, -inf  ;;  %v3734_v58 = vsel %vm2459_vm1, %v2385_v50, -inf  ;;  %v4529_v49 = vsel %vm4334_vm6, %v3726_v29, %v4528_v33 }
 0x10c   : > { %v2566_v62 = vrot.slane %v2565_v57, 4  ;;  %v3735_v63 = vrot.slane %v3734_v58, 4  ;;  %v2563_v15 = vrot.slane %v2562_v56, 1  ;;  %v3732_v25 = vrot.slane %v3731_v5, 1 }
 0x10e   : > { %v2567_v7 = vmax.f32 %v2565_v57, %v2566_v62  ;;  %v3736_v8 = vmax.f32 %v3734_v58, %v3735_v63  ;;  %v10113_v9 = vpop.f32.mrf.mxu0  ;;  %v1984_v10 = vpop.f32.mrf.mxu1  ;;  %v2564_v30 = vmax.f32 %v2562_v56, %v2563_v15  ;;  %v3733_v41 = vmax.f32 %v3731_v5, %v3732_v25  ;;  %v421_v62 = vld [vmem:[%s9802_s26 + $0x110] sm:$0xff]  ;;  %v588_v63 = vld [vmem:[%s9802_s26 + $0x648] sm:$0xff]  ;;  %v422_v5 = vld [vmem:[%s9802_s26 + $0x118] sm:$0xff] }
 0x10f   : > { %v1985_v16 = vadd.f32 %v9883_v46, %v1984_v10 }
 0x110   : > { %v2568_v18 = vrot.slane %v2567_v7, 2  ;;  %v3737_v19 = vrot.slane %v3736_v8, 2  ;;  %v4795_v50 = vsel %vm4338_vm8, %v2564_v30, %v4794_v39  ;;  %v4530_v54 = vsel %vm4336_vm7, %v3733_v41, %v4529_v49 }
 0x111   : > { %v2386_v23 = vmax.f32 %v1985_v16, 0.0  ;;  %8768 = vmatmul.msk.f32.gmra.mxu0 %vm649_vm0, %v419_v11  ;;  %8935 = vmatmul.msk.f32.gmra.mxu1 %vm649_vm0, %v586_v12 }
 0x112   : > { %v2569_v26 = vmax.f32 %v2567_v7, %v2568_v18  ;;  %v3738_v27 = vmax.f32 %v3736_v8, %v3737_v19  ;;  %v589_v7 = vld [vmem:[%s9802_s26 + $0x650] sm:$0xff]  ;;  %v1484_v8 = vadd.f32 %v9883_v46, %v10113_v9  ;;  %v423_v19 = vld [vmem:[%s9802_s26 + $0x120] sm:$0xff]  ;;  %v590_v9 = vld [vmem:[%s9802_s26 + $0x658] sm:$0xff] }
 0x113   : > { %v3741_v31 = vsel %vm2459_vm1, %v2386_v23, -inf }
 0x114   : > { %v2570_v34 = vrot.slane %v2569_v26, 1  ;;  %v3742_v36 = vrot.slane %v3741_v31, 4  ;;  %v3739_v38 = vrot.slane %v3738_v27, 1  ;;  %v2219_v13 = vmax.f32 %v1484_v8, 0.0 }
 0x116   : > { %v2571_v42 = vmax.f32 %v2569_v26, %v2570_v34  ;;  %v3743_v43 = vmax.f32 %v3741_v31, %v3742_v36  ;;  %v1486_v44 = vpop.f32.mrf.mxu0  ;;  %v1987_v45 = vpop.f32.mrf.mxu1  ;;  %v3740_v53 = vmax.f32 %v3738_v27, %v3739_v38  ;;  %v2572_v20 = vsel %vm2459_vm1, %v2219_v13, -inf }
 0x117   : > { %v1988_v10 = vadd.f32 %v9883_v46, %v1987_v45  ;;  %v1487_v12 = vadd.f32 %v9883_v46, %v1486_v44  ;;  %v2573_v27 = vrot.slane %v2572_v20, 4  ;;  %v424_v44 = vld [vmem:[%s9802_s26 + $0x128] sm:$0xff]  ;;  %v591_v45 = vld [vmem:[%s9802_s26 + $0x660] sm:$0xff] }
 0x118   : > { %v4796_v51 = vsel %vm4340_vm9, %v2571_v42, %v4795_v50  ;;  %v3744_v52 = vrot.slane %v3743_v43, 2  ;;  %v4531_v57 = vsel %vm4338_vm8, %v3740_v53, %v4530_v54 }
 0x119   : > { %4848 = vst.msk [vmem:[#allocation2 + $0x1c0] sm:$0xff] %vm2459_vm1, %v4796_v51  ;;  %8769 = vmatmul.msk.f32.gmra.mxu0 %vm649_vm0, %v420_v47  ;;  %8936 = vmatmul.msk.f32.gmra.mxu1 %vm649_vm0, %v587_v48  ;;  %v2387_v14 = vmax.f32 %v1988_v10, 0.0  ;;  %v2220_v16 = vmax.f32 %v1487_v12, 0.0  ;;  %v2574_v37 = vmax.f32 %v2572_v20, %v2573_v27 }
 0x11a   : > { %v3745_v55 = vmax.f32 %v3743_v43, %v3744_v52 }
 0x11b   : > { %v3748_v21 = vsel %vm2459_vm1, %v2387_v14, -inf  ;;  %v2579_v25 = vsel %vm2459_vm1, %v2220_v16, -inf  ;;  %v592_v16 = vld [vmem:[%s9802_s26 + $0x668] sm:$0xff] }
 0x11c   : > { %v3746_v56 = vrot.slane %v3745_v55, 1  ;;  %v3749_v28 = vrot.slane %v3748_v21, 4  ;;  %v2580_v33 = vrot.slane %v2579_v25, 4 }
 0x11e   : > { %v3747_v58 = vmax.f32 %v3745_v55, %v3746_v56  ;;  %v1489_v59 = vpop.f32.mrf.mxu0  ;;  %v1990_v61 = vpop.f32.mrf.mxu1  ;;  %v3750_v38 = vmax.f32 %v3748_v21, %v3749_v28  ;;  %v2581_v51 = vmax.f32 %v2579_v25, %v2580_v33 }
 0x11f   : > { %v1991_v11 = vadd.f32 %v9883_v46, %v1990_v61  ;;  %v1490_v22 = vadd.f32 %v9883_v46, %v1489_v59  ;;  %v2575_v61 = vrot.slane %v2574_v37, 2 }
 0x120   : > { %v4532_v0 = vsel %vm4340_vm9, %v3747_v58, %v4531_v57  ;;  %v10144_v1 = vld [vmem:[#allocation2 + $0x1c1] sm:$0xff]  ;;  %v3751_v57 = vrot.slane %v3750_v38, 2 }
 0x121   : > { %4555 = vst.msk [vmem:[#allocation2 + $0x100] sm:$0xff] %vm2459_vm1, %v4532_v0  ;;  %8770 = vmatmul.msk.f32.gmra.mxu0 %vm649_vm0, %v421_v62  ;;  %8937 = vmatmul.msk.f32.gmra.mxu1 %vm649_vm0, %v588_v63  ;;  %v10146_v2 = vld [vmem:[#allocation2 + $0x1c1] sm:$0xff]  ;;  %v2388_v15 = vmax.f32 %v1991_v11, 0.0  ;;  %v2221_v31 = vmax.f32 %v1490_v22, 0.0  ;;  %v2582_v0 = vrot.slane %v2581_v51, 2 }
 0x122   : > { %15062 = vst [vmem:[#allocation4_spill] sm:$0xff] %v10144_v1  ;;  %v3752_v10 = vmax.f32 %v3750_v38, %v3751_v57 }
 0x123   : > { %15063 = vst [vmem:[#allocation5_spill] sm:$0xff] %v10146_v2  ;;  %v3755_v23 = vsel %vm2459_vm1, %v2388_v15, -inf  ;;  %v2586_v47 = vsel %vm2459_vm1, %v2221_v31, -inf  ;;  %v425_v15 = vld [vmem:[%s9802_s26 + $0x130] sm:$0xff]  ;;  %v2583_v20 = vmax.f32 %v2581_v51, %v2582_v0  ;;  %v426_v51 = vld [vmem:[%s9802_s26 + $0x138] sm:$0xff] }
 0x124   : > { %7530 = vst.msk [vmem:[#allocation2 + $0x1c8] sm:$0x1] %vm4253_vm2, %v14902_v40  ;;  %v3756_v32 = vrot.slane %v3755_v23, 4  ;;  %v2587_v58 = vrot.slane %v2586_v47, 4  ;;  %v3753_v27 = vrot.slane %v3752_v10, 1 }
 0x126   : > { %v1492_v3 = vpop.f32.mrf.mxu0  ;;  %v1993_v4 = vpop.f32.mrf.mxu1  ;;  %v3757_v48 = vmax.f32 %v3755_v23, %v3756_v32  ;;  %v2588_v11 = vmax.f32 %v2586_v47, %v2587_v58 }
 0x127   : > { %v1994_v17 = vadd.f32 %v9883_v46, %v1993_v4  ;;  %v1493_v24 = vadd.f32 %v9883_v46, %v1492_v3 }
 0x128   : > { %v3758_v62 = vrot.slane %v3757_v48, 2  ;;  %v2589_v28 = vrot.slane %v2588_v11, 2 }
 0x129   : > { %8771 = vmatmul.msk.f32.gmra.mxu0 %vm649_vm0, %v422_v5  ;;  %8938 = vmatmul.msk.f32.gmra.mxu1 %vm649_vm0, %v589_v7  ;;  %v2389_v29 = vmax.f32 %v1994_v17, 0.0  ;;  %v2222_v34 = vmax.f32 %v1493_v24, 0.0 }
 0x12a   : > { %v3759_v17 = vmax.f32 %v3757_v48, %v3758_v62 }
 0x12b   : > { %v3762_v39 = vsel %vm2459_vm1, %v2389_v29, -inf  ;;  %v2593_v52 = vsel %vm2459_vm1, %v2222_v34, -inf }
 0x12c   : > { %v3763_v53 = vrot.slane %v3762_v39, 4  ;;  %v2594_v3 = vrot.slane %v2593_v52, 4 }
 0x12e   : > { %v1495_v6 = vpop.f32.mrf.mxu0  ;;  %v1996_v18 = vpop.f32.mrf.mxu1  ;;  %v3764_v7 = vmax.f32 %v3762_v39, %v3763_v53  ;;  %v2595_v21 = vmax.f32 %v2593_v52, %v2594_v3  ;;  %v593_v52 = vld [vmem:[%s9802_s26 + $0x670] sm:$0xff]  ;;  %v3754_v53 = vmax.f32 %v3752_v10, %v3753_v27  ;;  %v427_v27 = vld [vmem:[%s9802_s26 + $0x140] sm:$0xff] }
 0x12f   : > { %v1997_v26 = vadd.f32 %v9883_v46, %v1996_v18  ;;  %v1496_v30 = vadd.f32 %v9883_v46, %v1495_v6  ;;  %v10179_v46 = vld [vmem:[%s14892_s2] ss:$0 sm:$0xff] }
 0x130   : > { %v3765_v23 = vrot.slane %v3764_v7, 2  ;;  %v2596_v34 = vrot.slane %v2595_v21, 2 }
 0x131   : > { %8772 = vmatmul.msk.f32.gmra.mxu0 %vm649_vm0, %v423_v19  ;;  %8939 = vmatmul.msk.f32.gmra.mxu1 %vm649_vm0, %v590_v9  ;;  %v2390_v36 = vmax.f32 %v1997_v26, 0.0  ;;  %v2223_v41 = vmax.f32 %v1496_v30, 0.0  ;;  %v2576_v9 = vmax.f32 %v2574_v37, %v2575_v61  ;;  %v3760_v30 = vrot.slane %v3759_v17, 1 }
 0x132   : > { %v2597_v58 = vmax.f32 %v2595_v21, %v2596_v34 }
 0x133   : > { %v3769_v54 = vsel %vm2459_vm1, %v2390_v36, -inf  ;;  %v2600_v59 = vsel %vm2459_vm1, %v2223_v41, -inf  ;;  %v2577_v39 = vrot.slane %v2576_v9, 1  ;;  %v2584_v41 = vrot.slane %v2583_v20, 1 }
 0x134   : > { %v3770_v4 = vrot.slane %v3769_v54, 4  ;;  %v2601_v8 = vrot.slane %v2600_v59, 4  ;;  %v3761_v57 = vmax.f32 %v3759_v17, %v3760_v30 }
 0x136   : > { %v1498_v42 = vpop.f32.mrf.mxu0  ;;  %v1999_v43 = vpop.f32.mrf.mxu1  ;;  %v3771_v22 = vmax.f32 %v3769_v54, %v3770_v4  ;;  %v2602_v24 = vmax.f32 %v2600_v59, %v2601_v8  ;;  %v2578_v4 = vmax.f32 %v2576_v9, %v2577_v39 }
 0x137   : > { %v1499_v49 = vadd.f32 %v10179_v46, %v1498_v42  ;;  %v2000_v50 = vadd.f32 %v10179_v46, %v1999_v43  ;;  %v3766_v42 = vmax.f32 %v3764_v7, %v3765_v23 }
 0x138   : > { %v3772_v36 = vrot.slane %v3771_v22, 2  ;;  %v2603_v43 = vrot.slane %v2602_v24, 2 }
 0x139   : > { %v2224_v55 = vmax.f32 %v1499_v49, 0.0  ;;  %v2391_v56 = vmax.f32 %v2000_v50, 0.0  ;;  %8773 = vmatmul.msk.f32.gmra.mxu0 %vm649_vm0, %v424_v44  ;;  %8940 = vmatmul.msk.f32.gmra.mxu1 %vm649_vm0, %v591_v45  ;;  %v2590_v44 = vmax.f32 %v2588_v11, %v2589_v28  ;;  %v3767_v62 = vrot.slane %v3766_v42, 1  ;;  %v594_v28 = vld [vmem:[%s9802_s26 + $0x678] sm:$0xff] }
 0x13a   : > { %v3773_v59 = vmax.f32 %v3771_v22, %v3772_v36 }
 0x13b   : > { %v2607_v63 = vsel %vm2459_vm1, %v2224_v55, -inf  ;;  %v3776_v5 = vsel %vm2459_vm1, %v2391_v56, -inf }
 0x13c   : > { %v2608_v12 = vrot.slane %v2607_v63, 4  ;;  %v3777_v6 = vrot.slane %v3776_v5, 4 }
 0x13e   : > { %v1501_v13 = vpop.f32.mrf.mxu0  ;;  %v2002_v14 = vpop.f32.mrf.mxu1  ;;  %v2609_v29 = vmax.f32 %v2607_v63, %v2608_v12  ;;  %v3778_v31 = vmax.f32 %v3776_v5, %v3777_v6  ;;  %v2604_v63 = vmax.f32 %v2602_v24, %v2603_v43  ;;  %v2591_v5 = vrot.slane %v2590_v44, 1 }
 0x13f   : > { %v1502_v18 = vadd.f32 %v10179_v46, %v1501_v13  ;;  %v2003_v19 = vadd.f32 %v10179_v46, %v2002_v14  ;;  %v2598_v14 = vrot.slane %v2597_v58, 1  ;;  %v2585_v6 = vmax.f32 %v2583_v20, %v2584_v41 }
 0x140   : > { %v2610_v45 = vrot.slane %v2609_v29, 2  ;;  %v3779_v54 = vrot.slane %v3778_v31, 2  ;;  %v2605_v9 = vrot.slane %v2604_v63, 1 }
 0x141   : > { %v2225_v25 = vmax.f32 %v1502_v18, 0.0  ;;  %v2392_v26 = vmax.f32 %v2003_v19, 0.0  ;;  %8774 = vmatmul.msk.f32.gmra.mxu0 %vm649_vm0, %v425_v15  ;;  %8941 = vmatmul.msk.f32.gmra.mxu1 %vm649_vm0, %v592_v16  ;;  %v3774_v15 = vrot.slane %v3773_v59, 1  ;;  %v4533_v18 = vsel %vm4328_vm3, %v3761_v57, %v3754_v53 }
 0x142   : > { %v2611_v7 = vmax.f32 %v2609_v29, %v2610_v45  ;;  %v3780_v10 = vmax.f32 %v3778_v31, %v3779_v54  ;;  %v3768_v19 = vmax.f32 %v3766_v42, %v3767_v62  ;;  %v2592_v29 = vmax.f32 %v2590_v44, %v2591_v5 }
 0x143   : > { %v2614_v32 = vsel %vm2459_vm1, %v2225_v25, -inf  ;;  %v3783_v33 = vsel %vm2459_vm1, %v2392_v26, -inf  ;;  %v3775_v20 = vmax.f32 %v3773_v59, %v3774_v15  ;;  %v2606_v39 = vmax.f32 %v2604_v63, %v2605_v9 }
 0x144   : > { %v2615_v37 = vrot.slane %v2614_v32, 4  ;;  %v3784_v38 = vrot.slane %v3783_v33, 4  ;;  %v2612_v21 = vrot.slane %v2611_v7, 1  ;;  %v3781_v30 = vrot.slane %v3780_v10, 1 }
 0x146   : > { %v2616_v47 = vmax.f32 %v2614_v32, %v2615_v37  ;;  %v3785_v48 = vmax.f32 %v3783_v33, %v3784_v38  ;;  %v1504_v49 = vpop.f32.mrf.mxu0  ;;  %v2005_v50 = vpop.f32.mrf.mxu1  ;;  %v2599_v33 = vmax.f32 %v2597_v58, %v2598_v14  ;;  %v4797_v37 = vsel %vm4328_vm3, %v2585_v6, %v2578_v4  ;;  %v429_v6 = vld [vmem:[%s9802_s26 + $0x150] sm:$0xff] }
 0x147   : > { %v1505_v55 = vadd.f32 %v10179_v46, %v1504_v49  ;;  %v2006_v56 = vadd.f32 %v10179_v46, %v2005_v50  ;;  %v4534_v38 = vsel %vm4330_vm4, %v3768_v19, %v4533_v18  ;;  %v2613_v42 = vmax.f32 %v2611_v7, %v2612_v21  ;;  %v596_v18 = vld [vmem:[%s9802_s26 + $0x688] sm:$0xff] }
 0x148   : > { %v2617_v61 = vrot.slane %v2616_v47, 2  ;;  %v3786_v8 = vrot.slane %v3785_v48, 2 }
 0x149   : > { %v2226_v0 = vmax.f32 %v1505_v55, 0.0  ;;  %v2393_v3 = vmax.f32 %v2006_v56, 0.0  ;;  %8775 = vmatmul.msk.f32.gmra.mxu0 %vm649_vm0, %v426_v51  ;;  %8942 = vmatmul.msk.f32.gmra.mxu1 %vm649_vm0, %v593_v52  ;;  %v4535_v52 = vsel %vm4332_vm5, %v3775_v20, %v4534_v38 }
 0x14a   : > { %v2618_v11 = vmax.f32 %v2616_v47, %v2617_v61  ;;  %v3787_v22 = vmax.f32 %v3785_v48, %v3786_v8  ;;  %v4798_v47 = vsel %vm4330_vm4, %v2592_v29, %v4797_v37  ;;  %v3782_v48 = vmax.f32 %v3780_v10, %v3781_v30 }
 0x14b   : > { %v2621_v12 = vsel %vm2459_vm1, %v2226_v0, -inf  ;;  %v3790_v13 = vsel %vm2459_vm1, %v2393_v3, -inf  ;;  %v4799_v51 = vsel %vm4332_vm5, %v2599_v33, %v4798_v47  ;;  %v428_v0 = vld [vmem:[%s9802_s26 + $0x148] sm:$0xff]  ;;  %v595_v3 = vld [vmem:[%s9802_s26 + $0x680] sm:$0xff] }
 0x14c   : > { %v2622_v16 = vrot.slane %v2621_v12, 4  ;;  %v3791_v17 = vrot.slane %v3790_v13, 4  ;;  %v2619_v31 = vrot.slane %v2618_v11, 1  ;;  %v3788_v43 = vrot.slane %v3787_v22, 1 }
 0x14d   : > { %v4800_v55 = vsel %vm4334_vm6, %v2606_v39, %v4799_v51  ;;  %v4536_v4 = vsel %vm4334_vm6, %v3782_v48, %v4535_v52  ;;  %v431_v39 = vld [vmem:[%s9802_s26 + $0x160] sm:$0xff] }
 0x14e   : > { %v2623_v23 = vmax.f32 %v2621_v12, %v2622_v16  ;;  %v3792_v24 = vmax.f32 %v3790_v13, %v3791_v17  ;;  %v10207_v25 = vpop.f32.mrf.mxu0  ;;  %v2008_v26 = vpop.f32.mrf.mxu1  ;;  %v2620_v49 = vmax.f32 %v2618_v11, %v2619_v31  ;;  %v4801_v57 = vsel %vm4336_vm7, %v2613_v42, %v4800_v55 }
 0x14f   : > { %v2009_v32 = vadd.f32 %v10179_v46, %v2008_v26  ;;  %v3789_v58 = vmax.f32 %v3787_v22, %v3788_v43  ;;  %v617_v22 = vld [vmem:[%s9802_s26 + $0x730] sm:$0xff]  ;;  %v430_v26 = vld [vmem:[%s9802_s26 + $0x158] sm:$0xff] }
 0x150   : > { %v2624_v34 = vrot.slane %v2623_v23, 2  ;;  %v3793_v36 = vrot.slane %v3792_v24, 2  ;;  %v4802_v5 = vsel %vm4338_vm8, %v2620_v49, %v4801_v57  ;;  %8966 = vmatmul.msk.f32.vlgmr.msra.gmra.mxu3 %vm649_vm0, %v617_v22 }
 0x151   : > { %v2394_v41 = vmax.f32 %v2009_v32, 0.0  ;;  %8776 = vmatmul.msk.f32.gmra.mxu0 %vm649_vm0, %v427_v27  ;;  %8943 = vmatmul.msk.f32.gmra.mxu1 %vm649_vm0, %v594_v28  ;;  %v4537_v11 = vsel %vm4336_vm7, %v3789_v58, %v4536_v4  ;;  %v597_v27 = vld [vmem:[%s9802_s26 + $0x690] sm:$0xff]  ;;  %v1508_v28 = vadd.f32 %v10179_v46, %v10207_v25  ;;  %v619_v58 = vld [vmem:[%s9802_s26 + $0x740] sm:$0xff] }
 0x152   : > { %v2625_v44 = vmax.f32 %v2623_v23, %v2624_v34  ;;  %v3794_v45 = vmax.f32 %v3792_v24, %v3793_v36  ;;  %v618_v34 = vld [vmem:[%s9802_s26 + $0x738] sm:$0xff] }
 0x153   : > { %v3797_v50 = vsel %vm2459_vm1, %v2394_v41, -inf  ;;  %v2227_v32 = vmax.f32 %v1508_v28, 0.0  ;;  %v598_v41 = vld [vmem:[%s9802_s26 + $0x698] sm:$0xff] }
 0x154   : > { %v2626_v53 = vrot.slane %v2625_v44, 1  ;;  %v3798_v54 = vrot.slane %v3797_v50, 4  ;;  %v3795_v56 = vrot.slane %v3794_v45, 1 }
 0x155   : > { %v2628_v42 = vsel %vm2459_vm1, %v2227_v32, -inf }
 0x156   : > { %v2627_v59 = vmax.f32 %v2625_v44, %v2626_v53  ;;  %v3799_v61 = vmax.f32 %v3797_v50, %v3798_v54  ;;  %v1510_v62 = vpop.f32.mrf.mxu0  ;;  %v2011_v63 = vpop.f32.mrf.mxu1  ;;  %v3796_v10 = vmax.f32 %v3794_v45, %v3795_v56  ;;  %v2629_v50 = vrot.slane %v2628_v42, 4 }
 0x157   : > { %v2012_v29 = vadd.f32 %v10179_v46, %v2011_v63  ;;  %v1511_v31 = vadd.f32 %v10179_v46, %v1510_v62 }
 0x158   : > { %v4803_v7 = vsel %vm4340_vm9, %v2627_v59, %v4802_v5  ;;  %v3800_v8 = vrot.slane %v3799_v61, 2  ;;  %v4538_v14 = vsel %vm4338_vm8, %v3796_v10, %v4537_v11  ;;  %8967 = vmatmul.msk.f32.gmra.mxu3 %vm649_vm0, %v618_v34  ;;  %v432_v5 = vld [vmem:[%s9802_s26 + $0x168] sm:$0xff] }
 0x159   : > { %4849 = vst.msk [vmem:[#allocation2 + $0x1d0] sm:$0xff] %vm2459_vm1, %v4803_v7  ;;  %8777 = vmatmul.msk.f32.gmra.mxu0 %vm649_vm0, %v428_v0  ;;  %8944 = vmatmul.msk.f32.gmra.mxu1 %vm649_vm0, %v595_v3  ;;  %v2395_v33 = vmax.f32 %v2012_v29, 0.0  ;;  %v2228_v36 = vmax.f32 %v1511_v31, 0.0  ;;  %v599_v7 = vld [vmem:[%s9802_s26 + $0x6a0] sm:$0xff]  ;;  %v620_v31 = vld [vmem:[%s9802_s26 + $0x748] sm:$0xff] }
 0x15a   : > { %v3801_v12 = vmax.f32 %v3799_v61, %v3800_v8  ;;  %v2630_v61 = vmax.f32 %v2628_v42, %v2629_v50 }
 0x15b   : > { %v3804_v43 = vsel %vm2459_vm1, %v2395_v33, -inf  ;;  %v2635_v48 = vsel %vm2459_vm1, %v2228_v36, -inf }
 0x15c   : > { %v3802_v13 = vrot.slane %v3801_v12, 1  ;;  %v3805_v51 = vrot.slane %v3804_v43, 4  ;;  %v2636_v56 = vrot.slane %v2635_v48, 4 }
 0x15e   : > { %v3803_v15 = vmax.f32 %v3801_v12, %v3802_v13  ;;  %v1513_v16 = vpop.f32.mrf.mxu0  ;;  %v2014_v17 = vpop.f32.mrf.mxu1  ;;  %v3806_v62 = vmax.f32 %v3804_v43, %v3805_v51  ;;  %v2637_v13 = vmax.f32 %v2635_v48, %v2636_v56 }
 0x15f   : > { %v2015_v30 = vadd.f32 %v10179_v46, %v2014_v17  ;;  %v1514_v44 = vadd.f32 %v10179_v46, %v1513_v16 }
 0x160   : > { %v4539_v19 = vsel %vm4340_vm9, %v3803_v15, %v4538_v14  ;;  %v10238_v9 = vld [vmem:[#allocation2 + $0x1d1] sm:$0xff]  ;;  %8968 = vmatmul.msk.f32.gmra.mxu3 %vm649_vm0, %v619_v58 }
 0x161   : > { %4556 = vst.msk [vmem:[#allocation2 + $0x110] sm:$0xff] %vm2459_vm1, %v4539_v19  ;;  %8778 = vmatmul.msk.f32.gmra.mxu0 %vm649_vm0, %v429_v6  ;;  %8945 = vmatmul.msk.f32.gmra.mxu1 %vm649_vm0, %v596_v18  ;;  %v10240_v21 = vld [vmem:[#allocation2 + $0x1d1] sm:$0xff]  ;;  %v2396_v20 = vmax.f32 %v2015_v30, 0.0  ;;  %v2229_v54 = vmax.f32 %v1514_v44, 0.0  ;;  %v3807_v18 = vrot.slane %v3806_v62, 2 }
 0x162   : > { %15064 = vst [vmem:[#allocation6_spill] sm:$0xff] %v10238_v9 }
 0x163   : > { %15065 = vst [vmem:[#allocation7_spill] sm:$0xff] %v10240_v21  ;;  %v3811_v45 = vsel %vm2459_vm1, %v2396_v20, -inf  ;;  %v2642_v8 = vsel %vm2459_vm1, %v2229_v54, -inf  ;;  %v3808_v20 = vmax.f32 %v3806_v62, %v3807_v18 }
 0x164   : > { %7531 = vst.msk [vmem:[#allocation2 + $0x1d8] sm:$0x1] %vm4253_vm2, %v14902_v40  ;;  %v3812_v55 = vrot.slane %v3811_v45, 4  ;;  %v2643_v19 = vrot.slane %v2642_v8, 4 }
 0x165   : > { %v3809_v54 = vrot.slane %v3808_v20, 1 }
 0x166   : > { %v1516_v23 = vpop.f32.mrf.mxu0  ;;  %v2017_v24 = vpop.f32.mrf.mxu1  ;;  %v3813_v10 = vmax.f32 %v3811_v45, %v3812_v55  ;;  %v2644_v34 = vmax.f32 %v2642_v8, %v2643_v19 }
 0x167   : > { %v2018_v25 = vadd.f32 %v10179_v46, %v2017_v24  ;;  %v1517_v47 = vadd.f32 %v10179_v46, %v1516_v23  ;;  %v2631_v23 = vrot.slane %v2630_v61, 2  ;;  %v3810_v18 = vmax.f32 %v3808_v20, %v3809_v54 }
 0x168   : > { %v3814_v24 = vrot.slane %v3813_v10, 2  ;;  %8969 = vmatmul.msk.f32.gmra.mxu3 %vm649_vm0, %v620_v31  ;;  %v2645_v55 = vrot.slane %v2644_v34, 2 }
 0x169   : > { %8779 = vmatmul.msk.f32.gmra.mxu0 %vm649_vm0, %v430_v26  ;;  %8946 = vmatmul.msk.f32.gmra.mxu1 %vm649_vm0, %v597_v27  ;;  %v2397_v52 = vmax.f32 %v2018_v25, 0.0  ;;  %v2230_v57 = vmax.f32 %v1517_v47, 0.0  ;;  %v2638_v27 = vrot.slane %v2637_v13, 2  ;;  %v2632_v45 = vmax.f32 %v2630_v61, %v2631_v23 }
 0x16b   : > { %v3818_v63 = vsel %vm2459_vm1, %v2397_v52, -inf  ;;  %v2649_v14 = vsel %vm2459_vm1, %v2230_v57, -inf  ;;  %v2639_v47 = vmax.f32 %v2637_v13, %v2638_v27 }
 0x16c   : > { %v3819_v15 = vrot.slane %v3818_v63, 4  ;;  %v2650_v28 = vrot.slane %v2649_v14, 4 }
 0x16e   : > { %v1519_v37 = vpop.f32.mrf.mxu0  ;;  %v2020_v38 = vpop.f32.mrf.mxu1  ;;  %v3820_v32 = vmax.f32 %v3818_v63, %v3819_v15  ;;  %v2651_v48 = vmax.f32 %v2649_v14, %v2650_v28 }
 0x16f   : > { %v2021_v49 = vadd.f32 %v10179_v46, %v2020_v38  ;;  %v1520_v53 = vadd.f32 %v10179_v46, %v1519_v37  ;;  %v433_v38 = vld [vmem:[%s9802_s26 + $0x170] sm:$0xff] }
 0x170   : > { %v3821_v50 = vrot.slane %v3820_v32, 2  ;;  %v2652_v62 = vrot.slane %v2651_v48, 2 }
 0x171   : > { %8780 = vmatmul.msk.f32.gmra.mxu0 %vm649_vm0, %v431_v39  ;;  %8947 = vmatmul.msk.f32.gmra.mxu1 %vm649_vm0, %v598_v41  ;;  %v2398_v59 = vmax.f32 %v2021_v49, 0.0  ;;  %v2231_v0 = vmax.f32 %v1520_v53, 0.0  ;;  %v600_v39 = vld [vmem:[%s9802_s26 + $0x6a8] sm:$0xff]  ;;  %v3815_v41 = vmax.f32 %v3813_v10, %v3814_v24 }
 0x172   : > { %v3822_v8 = vmax.f32 %v3820_v32, %v3821_v50 }
 0x173   : > { %v3825_v16 = vsel %vm2459_vm1, %v2398_v59, -inf  ;;  %v2656_v22 = vsel %vm2459_vm1, %v2231_v0, -inf  ;;  %v3816_v57 = vrot.slane %v3815_v41, 1 }
 0x174   : > { %v3826_v29 = vrot.slane %v3825_v16, 4  ;;  %v2657_v33 = vrot.slane %v2656_v22, 4 }
 0x175   : > { %v3817_v24 = vmax.f32 %v3815_v41, %v3816_v57 }
 0x176   : > { %v1522_v3 = vpop.f32.mrf.mxu0  ;;  %v2023_v4 = vpop.f32.mrf.mxu1  ;;  %v3827_v49 = vmax.f32 %v3825_v16, %v3826_v29  ;;  %v2658_v51 = vmax.f32 %v2656_v22, %v2657_v33  ;;  %v3823_v29 = vrot.slane %v3822_v8, 1 }
 0x177   : > { %v1523_v11 = vadd.f32 %v10179_v46, %v1522_v3  ;;  %v2024_v12 = vadd.f32 %v10179_v46, %v2023_v4  ;;  %v621_v4 = vld [vmem:[%s9802_s26 + $0x750] sm:$0xff]  ;;  %v4329_v50 = vsel %vm4328_vm3, %v3817_v24, %v3810_v18 }
 0x178   : > { %v3828_v63 = vrot.slane %v3827_v49, 2  ;;  %v2659_v10 = vrot.slane %v2658_v51, 2  ;;  %8970 = vmatmul.msk.f32.gmra.mxu3 %vm649_vm0, %v621_v4 }
 0x179   : > { %v2232_v17 = vmax.f32 %v1523_v11, 0.0  ;;  %v2399_v6 = vmax.f32 %v2024_v12, 0.0  ;;  %8781 = vmatmul.msk.f32.gmra.mxu0 %vm649_vm0, %v432_v5  ;;  %8948 = vmatmul.msk.f32.gmra.mxu1 %vm649_vm0, %v599_v7  ;;  %v2633_v5 = vrot.slane %v2632_v45, 1  ;;  %v2640_v7 = vrot.slane %v2639_v47, 1 }
 0x17a   : > { %v2646_v11 = vmax.f32 %v2644_v34, %v2645_v55  ;;  %v3829_v27 = vmax.f32 %v3827_v49, %v3828_v63 }
 0x17b   : > { %v2663_v26 = vsel %vm2459_vm1, %v2232_v17, -inf  ;;  %v3832_v30 = vsel %vm2459_vm1, %v2399_v6, -inf  ;;  %v434_v17 = vld [vmem:[%s9802_s26 + $0x178] sm:$0xff]  ;;  %v601_v6 = vld [vmem:[%s9802_s26 + $0x6b0] sm:$0xff]  ;;  %v2634_v33 = vmax.f32 %v2632_v45, %v2633_v5  ;;  %v2641_v49 = vmax.f32 %v2639_v47, %v2640_v7 }
 0x17c   : > { %v2664_v36 = vrot.slane %v2663_v26, 4  ;;  %v3833_v42 = vrot.slane %v3832_v30, 4  ;;  %v2647_v20 = vrot.slane %v2646_v11, 1  ;;  %v3824_v45 = vmax.f32 %v3822_v8, %v3823_v29 }
 0x17d   : > { %v4804_v7 = vsel %vm4328_vm3, %v2641_v49, %v2634_v33 }
 0x17e   : > { %v1525_v25 = vpop.f32.mrf.mxu0  ;;  %v2026_v37 = vpop.f32.mrf.mxu1  ;;  %v2665_v56 = vmax.f32 %v2663_v26, %v2664_v36  ;;  %v3834_v58 = vmax.f32 %v3832_v30, %v3833_v42  ;;  %v2653_v26 = vmax.f32 %v2651_v48, %v2652_v62  ;;  %v2660_v30 = vmax.f32 %v2658_v51, %v2659_v10  ;;  %v622_v48 = vld [vmem:[%s9802_s26 + $0x758] sm:$0xff] }
 0x17f   : > { %v1526_v43 = vadd.f32 %v10179_v46, %v1525_v25  ;;  %v2027_v44 = vadd.f32 %v10179_v46, %v2026_v37  ;;  %v3830_v42 = vrot.slane %v3829_v27, 1  ;;  %v4331_v8 = vsel %vm4330_vm4, %v3824_v45, %v4329_v50 }
 0x180   : > { %v2666_v12 = vrot.slane %v2665_v56, 2  ;;  %v3835_v19 = vrot.slane %v3834_v58, 2  ;;  %v2654_v41 = vrot.slane %v2653_v26, 1  ;;  %v2661_v51 = vrot.slane %v2660_v30, 1  ;;  %8971 = vmatmul.msk.f32.gmra.mxu3 %vm649_vm0, %v622_v48  ;;  %v624_v48 = vld [vmem:[%s9802_s26 + $0x768] sm:$0xff] }
 0x181   : > { %v2233_v52 = vmax.f32 %v1526_v43, 0.0  ;;  %v2400_v53 = vmax.f32 %v2027_v44, 0.0  ;;  %8782 = vmatmul.msk.f32.gmra.mxu0 %vm649_vm0, %v433_v38  ;;  %8949 = vmatmul.msk.f32.gmra.mxu1 %vm649_vm0, %v600_v39 }
 0x182   : > { %v2667_v34 = vmax.f32 %v2665_v56, %v2666_v12  ;;  %v3836_v25 = vmax.f32 %v3834_v58, %v3835_v19  ;;  %v435_v58 = vld [vmem:[%s9802_s26 + $0x180] sm:$0xff]  ;;  %v2662_v10 = vmax.f32 %v2660_v30, %v2661_v51 }
 0x183   : > { %v2670_v59 = vsel %vm2459_vm1, %v2233_v52, -inf  ;;  %v3839_v61 = vsel %vm2459_vm1, %v2400_v53, -inf }
 0x184   : > { %v2671_v0 = vrot.slane %v2670_v59, 4  ;;  %v3840_v3 = vrot.slane %v3839_v61, 4  ;;  %v2668_v52 = vrot.slane %v2667_v34, 1  ;;  %v3837_v62 = vrot.slane %v3836_v25, 1 }
 0x186   : > { %v2672_v13 = vmax.f32 %v2670_v59, %v2671_v0  ;;  %v3841_v14 = vmax.f32 %v3839_v61, %v3840_v3  ;;  %v1528_v15 = vpop.f32.mrf.mxu0  ;;  %v2029_v16 = vpop.f32.mrf.mxu1  ;;  %v602_v59 = vld [vmem:[%s9802_s26 + $0x6b8] sm:$0xff]  ;;  %v2648_v61 = vmax.f32 %v2646_v11, %v2647_v20  ;;  %v2655_v0 = vmax.f32 %v2653_v26, %v2654_v41  ;;  %v623_v26 = vld [vmem:[%s9802_s26 + $0x760] sm:$0xff] }
 0x187   : > { %v1529_v22 = vadd.f32 %v10179_v46, %v1528_v15  ;;  %v2030_v23 = vadd.f32 %v10179_v46, %v2029_v16  ;;  %v3831_v3 = vmax.f32 %v3829_v27, %v3830_v42  ;;  %v2669_v11 = vmax.f32 %v2667_v34, %v2668_v52  ;;  %v436_v34 = vld [vmem:[%s9802_s26 + $0x188] sm:$0xff]  ;;  %v437_v52 = vld [vmem:[%s9802_s26 + $0x190] sm:$0xff] }
 0x188   : > { %v2673_v28 = vrot.slane %v2672_v13, 2  ;;  %v3842_v36 = vrot.slane %v3841_v14, 2  ;;  %v4805_v16 = vsel %vm4330_vm4, %v2648_v61, %v4804_v7  ;;  %8972 = vmatmul.msk.f32.gmra.mxu3 %vm649_vm0, %v623_v26 }
 0x189   : > { %v2234_v31 = vmax.f32 %v1529_v22, 0.0  ;;  %v2401_v32 = vmax.f32 %v2030_v23, 0.0  ;;  %8783 = vmatmul.msk.f32.gmra.mxu0 %vm649_vm0, %v434_v17  ;;  %8950 = vmatmul.msk.f32.gmra.mxu1 %vm649_vm0, %v601_v6  ;;  %v3838_v17 = vmax.f32 %v3836_v25, %v3837_v62  ;;  %v4806_v19 = vsel %vm4332_vm5, %v2655_v0, %v4805_v16  ;;  %v438_v62 = vld [vmem:[%s9802_s26 + $0x198] sm:$0xff] }
 0x18a   : > { %v2674_v37 = vmax.f32 %v2672_v13, %v2673_v28  ;;  %v3843_v53 = vmax.f32 %v3841_v14, %v3842_v36  ;;  %v4333_v22 = vsel %vm4332_vm5, %v3831_v3, %v4331_v8  ;;  %v4807_v27 = vsel %vm4334_vm6, %v2662_v10, %v4806_v19  ;;  %v603_v36 = vld [vmem:[%s9802_s26 + $0x6c0] sm:$0xff]  ;;  %v626_v10 = vld [vmem:[%s9802_s26 + $0x778] sm:$0xff] }
 0x18b   : > { %v2677_v38 = vsel %vm2459_vm1, %v2234_v31, -inf  ;;  %v3846_v39 = vsel %vm2459_vm1, %v2401_v32, -inf  ;;  %v4808_v29 = vsel %vm4336_vm7, %v2669_v11, %v4807_v27  ;;  %v4335_v25 = vsel %vm4334_vm6, %v3838_v17, %v4333_v22 }
 0x18c   : > { %v2678_v43 = vrot.slane %v2677_v38, 4  ;;  %v3847_v44 = vrot.slane %v3846_v39, 4  ;;  %v2675_v63 = vrot.slane %v2674_v37, 1  ;;  %v3844_v13 = vrot.slane %v3843_v53, 1 }
 0x18e   : > { %v2679_v54 = vmax.f32 %v2677_v38, %v2678_v43  ;;  %v3848_v55 = vmax.f32 %v3846_v39, %v3847_v44  ;;  %v10308_v56 = vpop.f32.mrf.mxu0  ;;  %v2032_v57 = vpop.f32.mrf.mxu1  ;;  %v2676_v6 = vmax.f32 %v2674_v37, %v2675_v63  ;;  %v3845_v30 = vmax.f32 %v3843_v53, %v3844_v13  ;;  %v604_v53 = vld [vmem:[%s9802_s26 + $0x6c8] sm:$0xff]  ;;  %v605_v63 = vld [vmem:[%s9802_s26 + $0x6d0] sm:$0xff] }
 0x18f   : > { %v2033_v47 = vadd.f32 %v10179_v46, %v2032_v57 }
 0x190   : > { %v2680_v4 = vrot.slane %v2679_v54, 2  ;;  %v3849_v5 = vrot.slane %v3848_v55, 2  ;;  %v4809_v37 = vsel %vm4338_vm8, %v2676_v6, %v4808_v29  ;;  %v4337_v42 = vsel %vm4336_vm7, %v3845_v30, %v4335_v25  ;;  %8973 = vmatmul.msk.f32.gmra.mxu3 %vm649_vm0, %v624_v48 }
 0x191   : > { %v2402_v12 = vmax.f32 %v2033_v47, 0.0  ;;  %8784 = vmatmul.msk.f32.gmra.mxu0 %vm649_vm0, %v435_v58  ;;  %8951 = vmatmul.msk.f32.gmra.mxu1 %vm649_vm0, %v602_v59  ;;  %v625_v58 = vld [vmem:[%s9802_s26 + $0x770] sm:$0xff]  ;;  %v1532_v47 = vadd.f32 %v10179_v46, %v10308_v56 }
 0x192   : > { %v2681_v14 = vmax.f32 %v2679_v54, %v2680_v4  ;;  %v3850_v15 = vmax.f32 %v3848_v55, %v3849_v5 }
 0x193   : > { %v3853_v18 = vsel %vm2459_vm1, %v2402_v12, -inf  ;;  %v2235_v5 = vmax.f32 %v1532_v47, 0.0 }
 0x194   : > { %v2682_v23 = vrot.slane %v2681_v14, 1  ;;  %v3854_v24 = vrot.slane %v3853_v18, 4  ;;  %v3851_v28 = vrot.slane %v3850_v15, 1 }
 0x195   : > { %v2684_v16 = vsel %vm2459_vm1, %v2235_v5, -inf }
 0x196   : > { %v2683_v31 = vmax.f32 %v2681_v14, %v2682_v23  ;;  %v3855_v32 = vmax.f32 %v3853_v18, %v3854_v24  ;;  %v1534_v33 = vpop.f32.mrf.mxu0  ;;  %v2035_v20 = vpop.f32.mrf.mxu1  ;;  %v3852_v41 = vmax.f32 %v3850_v15, %v3851_v28  ;;  %v439_v14 = vld [vmem:[%s9802_s26 + $0x1a0] sm:$0xff]  ;;  %v606_v15 = vld [vmem:[%s9802_s26 + $0x6d8] sm:$0xff]  ;;  %v2685_v24 = vrot.slane %v2684_v16, 4 }
 0x197   : > { %v2036_v0 = vadd.f32 %v10179_v46, %v2035_v20  ;;  %v1535_v4 = vadd.f32 %v10179_v46, %v1534_v33  ;;  %v627_v33 = vld [vmem:[%s9802_s26 + $0x780] sm:$0xff] }
 0x198   : > { %v4810_v38 = vsel %vm4340_vm9, %v2683_v31, %v4809_v37  ;;  %v3856_v39 = vrot.slane %v3855_v32, 2  ;;  %v4339_v49 = vsel %vm4338_vm8, %v3852_v41, %v4337_v42  ;;  %8974 = vmatmul.msk.f32.gmra.mxu3 %vm649_vm0, %v625_v58  ;;  %v440_v41 = vld [vmem:[%s9802_s26 + $0x1a8] sm:$0xff]  ;;  %v607_v42 = vld [vmem:[%s9802_s26 + $0x6e0] sm:$0xff] }
 0x199   : > { %4850 = vst.msk [vmem:[#allocation2 + $0x1e0] sm:$0xff] %vm2459_vm1, %v4810_v38  ;;  %8785 = vmatmul.msk.f32.gmra.mxu0 %vm649_vm0, %v436_v34  ;;  %8952 = vmatmul.msk.f32.gmra.mxu1 %vm649_vm0, %v603_v36  ;;  %v2403_v7 = vmax.f32 %v2036_v0, 0.0  ;;  %v2236_v12 = vmax.f32 %v1535_v4, 0.0  ;;  %v2686_v34 = vmax.f32 %v2684_v16, %v2685_v24  ;;  %v608_v16 = vld [vmem:[%s9802_s26 + $0x6e8] sm:$0xff] }
 0x19a   : > { %v3857_v43 = vmax.f32 %v3855_v32, %v3856_v39 }
 0x19b   : > { %v3860_v17 = vsel %vm2459_vm1, %v2403_v7, -inf  ;;  %v2691_v22 = vsel %vm2459_vm1, %v2236_v12, -inf  ;;  %v628_v7 = vld [vmem:[%s9802_s26 + $0x788] sm:$0xff] }
 0x19c   : > { %v3858_v44 = vrot.slane %v3857_v43, 1  ;;  %v3861_v26 = vrot.slane %v3860_v17, 4  ;;  %v2692_v31 = vrot.slane %v2691_v22, 4 }
 0x19e   : > { %v3859_v50 = vmax.f32 %v3857_v43, %v3858_v44  ;;  %v1537_v45 = vpop.f32.mrf.mxu0  ;;  %v2038_v51 = vpop.f32.mrf.mxu1  ;;  %v3862_v36 = vmax.f32 %v3860_v17, %v3861_v26 }
 0x19f   : > { %v2039_v3 = vadd.f32 %v10179_v46, %v2038_v51  ;;  %v1538_v6 = vadd.f32 %v10179_v46, %v1537_v45 }
 0x1a0   : > { %v4341_v54 = vsel %vm4340_vm9, %v3859_v50, %v4339_v49  ;;  %v10343_v55 = vld [vmem:[#allocation2 + $0x1e1] sm:$0xff]  ;;  %8975 = vmatmul.msk.f32.gmra.mxu3 %vm649_vm0, %v626_v10  ;;  %v2693_v50 = vmax.f32 %v2691_v22, %v2692_v31  ;;  %v3863_v58 = vrot.slane %v3862_v36, 2 }
 0x1a1   : > { %4400 = vst.msk [vmem:[#allocation2 + $0x11] sm:$0xff] %vm2459_vm1, %v4341_v54  ;;  %8786 = vmatmul.msk.f32.gmra.mxu0 %vm649_vm0, %v437_v52  ;;  %8953 = vmatmul.msk.f32.gmra.mxu1 %vm649_vm0, %v604_v53  ;;  %v10345_v57 = vld [vmem:[#allocation2 + $0x1e1] sm:$0xff]  ;;  %v2404_v8 = vmax.f32 %v2039_v3, 0.0  ;;  %v2237_v29 = vmax.f32 %v1538_v6, 0.0 }
 0x1a2   : > { %15066 = vst [vmem:[#allocation8_spill] sm:$0xff] %v10343_v55  ;;  %v2694_v0 = vrot.slane %v2693_v50, 2  ;;  %v3864_v12 = vmax.f32 %v3862_v36, %v3863_v58  ;;  %v609_v58 = vld [vmem:[%s9802_s26 + $0x6f0] sm:$0xff] }
 0x1a3   : > { %15067 = vst [vmem:[#allocation9_spill] sm:$0xff] %v10345_v57  ;;  %v3867_v18 = vsel %vm2459_vm1, %v2404_v8, -inf  ;;  %v2698_v43 = vsel %vm2459_vm1, %v2237_v29, -inf }
 0x1a4   : > { %7532 = vst.msk [vmem:[#allocation2 + $0x1e8] sm:$0x1] %vm4253_vm2, %v14902_v40  ;;  %v3868_v30 = vrot.slane %v3867_v18, 4  ;;  %v3865_v31 = vrot.slane %v3864_v12, 1 }
 0x1a6   : > { %v1540_v59 = vpop.f32.mrf.mxu0  ;;  %v2041_v61 = vpop.f32.mrf.mxu1  ;;  %v3869_v44 = vmax.f32 %v3867_v18, %v3868_v30 }
 0x1a7   : > { %v2042_v56 = vadd.f32 %v10179_v46, %v2041_v61  ;;  %v1541_v19 = vadd.f32 %v10179_v46, %v1540_v59  ;;  %v2699_v59 = vrot.slane %v2698_v43, 4 }
 0x1a8   : > { %8976 = vmatmul.msk.f32.gmra.mxu3 %vm649_vm0, %v627_v33 }
 0x1a9   : > { %8787 = vmatmul.msk.f32.gmra.mxu0 %vm649_vm0, %v438_v62  ;;  %8954 = vmatmul.msk.f32.gmra.mxu1 %vm649_vm0, %v605_v63  ;;  %v2405_v27 = vmax.f32 %v2042_v56, 0.0  ;;  %v2238_v32 = vmax.f32 %v1541_v19, 0.0  ;;  %v2687_v62 = vrot.slane %v2686_v34, 2  ;;  %v3870_v63 = vrot.slane %v3869_v44, 2 }
 0x1aa   : > { %v2700_v56 = vmax.f32 %v2698_v43, %v2699_v59  ;;  %v3866_v59 = vmax.f32 %v3864_v12, %v3865_v31 }
 0x1ab   : > { %v3874_v25 = vsel %vm2459_vm1, %v2405_v27, -inf  ;;  %v2705_v45 = vsel %vm2459_vm1, %v2238_v32, -inf  ;;  %v3871_v17 = vmax.f32 %v3869_v44, %v3870_v63  ;;  %v2688_v22 = vmax.f32 %v2686_v34, %v2687_v62  ;;  %v10407_v62 = vld [vmem:[%s14892_s2] ss:$0 sm:$0xff] }
 0x1ac   : > { %v3875_v51 = vrot.slane %v3874_v25, 4  ;;  %v2706_v3 = vrot.slane %v2705_v45, 4  ;;  %v2701_v32 = vrot.slane %v2700_v56, 2 }
 0x1ae   : > { %v1543_v11 = vpop.f32.mrf.mxu0  ;;  %v2044_v13 = vpop.f32.mrf.mxu1  ;;  %v3876_v8 = vmax.f32 %v3874_v25, %v3875_v51  ;;  %v2707_v24 = vmax.f32 %v2705_v45, %v2706_v3 }
 0x1af   : > { %v2045_v23 = vadd.f32 %v10179_v46, %v2044_v13  ;;  %v1544_v28 = vadd.f32 %v10179_v46, %v1543_v11 }
 0x1b0   : > { %8977 = vmatmul.msk.f32.gmra.mxu3 %vm649_vm0, %v628_v7  ;;  %v3877_v27 = vrot.slane %v3876_v8, 2  ;;  %v2708_v25 = vrot.slane %v2707_v24, 2 }
 0x1b1   : > { %8788 = vmatmul.msk.f32.gmra.mxu0 %vm649_vm0, %v439_v14  ;;  %8955 = vmatmul.msk.f32.gmra.mxu1 %vm649_vm0, %v606_v15  ;;  %v2406_v20 = vmax.f32 %v2045_v23, 0.0  ;;  %v2239_v37 = vmax.f32 %v1544_v28, 0.0  ;;  %v441_v15 = vld [vmem:[%s9802_s26 + $0x1b0] sm:$0xff]  ;;  %v2695_v23 = vmax.f32 %v2693_v50, %v2694_v0 }
 0x1b2   : > { %v3878_v44 = vmax.f32 %v3876_v8, %v3877_v27  ;;  %v2709_v3 = vmax.f32 %v2707_v24, %v2708_v25  ;;  %v630_v27 = vld [vmem:[%s9802_s26 + $0x798] sm:$0xff] }
 0x1b3   : > { %v3881_v52 = vsel %vm2459_vm1, %v2406_v20, -inf  ;;  %v2712_v61 = vsel %vm2459_vm1, %v2239_v37, -inf  ;;  %v3872_v20 = vrot.slane %v3871_v17, 1  ;;  %v2696_v43 = vrot.slane %v2695_v23, 1  ;;  %v610_v25 = vld [vmem:[%s9802_s26 + $0x6f8] sm:$0xff] }
 0x1b4   : > { %v3882_v4 = vrot.slane %v3881_v52, 4  ;;  %v2713_v10 = vrot.slane %v2712_v61, 4  ;;  %v3879_v7 = vrot.slane %v3878_v44, 1 }
 0x1b5   : > { %v3873_v0 = vmax.f32 %v3871_v17, %v3872_v20 }
 0x1b6   : > { %v1546_v38 = vpop.f32.mrf.mxu0  ;;  %v2047_v39 = vpop.f32.mrf.mxu1  ;;  %v3883_v26 = vmax.f32 %v3881_v52, %v3882_v4  ;;  %v2714_v28 = vmax.f32 %v2712_v61, %v2713_v10 }
 0x1b7   : > { %v1547_v48 = vadd.f32 %v10179_v46, %v1546_v38  ;;  %v2048_v49 = vadd.f32 %v10179_v46, %v2047_v39 }
 0x1b8   : > { %v3884_v37 = vrot.slane %v3883_v26, 2 }
 0x1b9   : > { %v2240_v53 = vmax.f32 %v1547_v48, 0.0  ;;  %v2407_v54 = vmax.f32 %v2048_v49, 0.0  ;;  %8789 = vmatmul.msk.f32.gmra.mxu0 %vm649_vm0, %v440_v41  ;;  %8956 = vmatmul.msk.f32.gmra.mxu1 %vm649_vm0, %v607_v42  ;;  %v629_v41 = vld [vmem:[%s9802_s26 + $0x790] sm:$0xff]  ;;  %v2689_v42 = vrot.slane %v2688_v22, 1  ;;  %v2715_v48 = vrot.slane %v2714_v28, 2 }
 0x1ba   : > { %8978 = vmatmul.msk.f32.gmra.mxu3 %vm649_vm0, %v629_v41  ;;  %v2702_v49 = vmax.f32 %v2700_v56, %v2701_v32  ;;  %v3885_v4 = vmax.f32 %v3883_v26, %v3884_v37 }
 0x1bb   : > { %v2719_v47 = vsel %vm2459_vm1, %v2240_v53, -inf  ;;  %v3888_v5 = vsel %vm2459_vm1, %v2407_v54, -inf  ;;  %v442_v54 = vld [vmem:[%s9802_s26 + $0x1b8] sm:$0xff]  ;;  %v2716_v8 = vmax.f32 %v2714_v28, %v2715_v48  ;;  %v2690_v12 = vmax.f32 %v2688_v22, %v2689_v42 }
 0x1bc   : > { %v2720_v11 = vrot.slane %v2719_v47, 4  ;;  %v3889_v6 = vrot.slane %v3888_v5, 4  ;;  %v2697_v28 = vmax.f32 %v2695_v23, %v2696_v43  ;;  %v3880_v22 = vmax.f32 %v3878_v44, %v3879_v7 }
 0x1be   : > { %v1549_v13 = vpop.f32.mrf.mxu0  ;;  %v2050_v14 = vpop.f32.mrf.mxu1  ;;  %v2721_v33 = vmax.f32 %v2719_v47, %v2720_v11  ;;  %v3890_v36 = vmax.f32 %v3888_v5, %v3889_v6  ;;  %v2703_v11 = vrot.slane %v2702_v49, 1  ;;  %v4811_v48 = vsel %vm4328_vm3, %v2697_v28, %v2690_v12 }
 0x1bf   : > { %v1550_v18 = vadd.f32 %v10179_v46, %v1549_v13  ;;  %v2051_v19 = vadd.f32 %v10179_v46, %v2050_v14 }
 0x1c0   : > { %v2722_v50 = vrot.slane %v2721_v33, 2  ;;  %v3891_v61 = vrot.slane %v3890_v36, 2  ;;  %v2704_v37 = vmax.f32 %v2702_v49, %v2703_v11 }
 0x1c1   : > { %v2241_v29 = vmax.f32 %v1550_v18, 0.0  ;;  %v2408_v30 = vmax.f32 %v2051_v19, 0.0  ;;  %8790 = vmatmul.msk.f32.gmra.mxu0 %vm649_vm0, %v441_v15  ;;  %8957 = vmatmul.msk.f32.gmra.mxu1 %vm649_vm0, %v608_v16  ;;  %v2710_v18 = vrot.slane %v2709_v3, 1  ;;  %v3886_v19 = vrot.slane %v3885_v4, 1 }
 0x1c2   : > { %v2723_v13 = vmax.f32 %v2721_v33, %v2722_v50  ;;  %v3892_v15 = vmax.f32 %v3890_v36, %v3891_v61  ;;  %8979 = vmatmul.msk.f32.gmra.mxu3 %vm649_vm0, %v630_v27 }
 0x1c3   : > { %v2726_v46 = vsel %vm2459_vm1, %v2241_v29, -inf  ;;  %v3895_v34 = vsel %vm2459_vm1, %v2408_v30, -inf  ;;  %v4342_v29 = vsel %vm4328_vm3, %v3873_v0, %v3866_v59  ;;  %v2717_v30 = vrot.slane %v2716_v8, 1 }
 0x1c4   : > { %v2727_v38 = vrot.slane %v2726_v46, 4  ;;  %v3896_v39 = vrot.slane %v3895_v34, 4  ;;  %v2724_v31 = vrot.slane %v2723_v13, 1  ;;  %v2711_v41 = vmax.f32 %v2709_v3, %v2710_v18 }
 0x1c5   : > { %v3887_v42 = vmax.f32 %v3885_v4, %v3886_v19  ;;  %v4343_v50 = vsel %vm4330_vm4, %v3880_v22, %v4342_v29  ;;  %v632_v29 = vld [vmem:[%s9802_s26 + $0x7a8] sm:$0xff] }
 0x1c6   : > { %v2728_v45 = vmax.f32 %v2726_v46, %v2727_v38  ;;  %v3897_v51 = vmax.f32 %v3895_v34, %v3896_v39  ;;  %v1552_v52 = vpop.f32.mrf.mxu0  ;;  %v2053_v53 = vpop.f32.mrf.mxu1  ;;  %v443_v34 = vld [vmem:[%s9802_s26 + $0x1c0] sm:$0xff]  ;;  %v3893_v38 = vrot.slane %v3892_v15, 1  ;;  %v2725_v49 = vmax.f32 %v2723_v13, %v2724_v31 }
 0x1c7   : > { %v1553_v63 = vadd.f32 %v10407_v62, %v1552_v52  ;;  %v2054_v47 = vadd.f32 %v10407_v62, %v2053_v53  ;;  %v4344_v0 = vsel %vm4332_vm5, %v3887_v42, %v4343_v50 }
 0x1c8   : > { %v2729_v5 = vrot.slane %v2728_v45, 2  ;;  %v3898_v14 = vrot.slane %v3897_v51, 2  ;;  %v3894_v59 = vmax.f32 %v3892_v15, %v3893_v38  ;;  %v444_v15 = vld [vmem:[%s9802_s26 + $0x1c8] sm:$0xff]  ;;  %v633_v38 = vld [vmem:[%s9802_s26 + $0x7b0] sm:$0xff] }
 0x1c9   : > { %v2242_v10 = vmax.f32 %v1553_v63, 0.0  ;;  %v2409_v56 = vmax.f32 %v2054_v47, 0.0  ;;  %8791 = vmatmul.msk.f32.gmra.mxu0 %vm649_vm0, %v442_v54  ;;  %8958 = vmatmul.msk.f32.gmra.mxu1 %vm649_vm0, %v609_v58  ;;  %v4812_v58 = vsel %vm4330_vm4, %v2704_v37, %v4811_v48 }
 0x1ca   : > { %v2730_v16 = vmax.f32 %v2728_v45, %v2729_v5  ;;  %v3899_v32 = vmax.f32 %v3897_v51, %v3898_v14  ;;  %v2718_v45 = vmax.f32 %v2716_v8, %v2717_v30  ;;  %v4813_v47 = vsel %vm4332_vm5, %v2711_v41, %v4812_v58  ;;  %v631_v5 = vld [vmem:[%s9802_s26 + $0x7a0] sm:$0xff] }
 0x1cb   : > { %v2733_v17 = vsel %vm2459_vm1, %v2242_v10, -inf  ;;  %v3902_v6 = vsel %vm2459_vm1, %v2409_v56, -inf  ;;  %8980 = vmatmul.msk.f32.gmra.mxu3 %vm649_vm0, %v631_v5 }
 0x1cc   : > { %v2734_v24 = vrot.slane %v2733_v17, 4  ;;  %v3903_v26 = vrot.slane %v3902_v6, 4  ;;  %v2731_v39 = vrot.slane %v2730_v16, 1  ;;  %v3900_v52 = vrot.slane %v3899_v32, 1 }
 0x1cd   : > { %v4814_v7 = vsel %vm4334_vm6, %v2718_v45, %v4813_v47 }
 0x1ce   : > { %v2735_v33 = vmax.f32 %v2733_v17, %v2734_v24  ;;  %v3904_v20 = vmax.f32 %v3902_v6, %v3903_v26  ;;  %v10418_v36 = vpop.f32.mrf.mxu0  ;;  %v2056_v46 = vpop.f32.mrf.mxu1  ;;  %v2732_v61 = vmax.f32 %v2730_v16, %v2731_v39  ;;  %v4815_v10 = vsel %vm4336_vm7, %v2725_v49, %v4814_v7  ;;  %v611_v16 = vld [vmem:[%s9802_s26 + $0x700] sm:$0xff] }
 0x1cf   : > { %v2057_v23 = vadd.f32 %v10407_v62, %v2056_v46  ;;  %v3901_v56 = vmax.f32 %v3899_v32, %v3900_v52  ;;  %v4345_v17 = vsel %vm4334_vm6, %v3894_v59, %v4344_v0  ;;  %v1556_v37 = vadd.f32 %v10407_v62, %v10418_v36  ;;  %v447_v0 = vld [vmem:[%s9802_s26 + $0x1e0] sm:$0xff] }
 0x1d0   : > { %v2736_v43 = vrot.slane %v2735_v33, 2  ;;  %v3905_v44 = vrot.slane %v3904_v20, 2  ;;  %v4816_v6 = vsel %vm4338_vm8, %v2732_v61, %v4815_v10 }
 0x1d1   : > { %v2410_v51 = vmax.f32 %v2057_v23, 0.0  ;;  %8792 = vmatmul.msk.f32.gmra.mxu0 %vm649_vm0, %v443_v34  ;;  %8959 = vmatmul.msk.f32.gmra.mxu1 %vm649_vm0, %v610_v25  ;;  %v4346_v26 = vsel %vm4336_vm7, %v3901_v56, %v4345_v17  ;;  %v2243_v50 = vmax.f32 %v1556_v37, 0.0 }
 0x1d2   : > { %v2737_v53 = vmax.f32 %v2735_v33, %v2736_v43  ;;  %v3906_v54 = vmax.f32 %v3904_v20, %v3905_v44  ;;  %v445_v33 = vld [vmem:[%s9802_s26 + $0x1d0] sm:$0xff]  ;;  %v612_v20 = vld [vmem:[%s9802_s26 + $0x708] sm:$0xff]  ;;  %v446_v43 = vld [vmem:[%s9802_s26 + $0x1d8] sm:$0xff] }
 0x1d3   : > { %v3909_v63 = vsel %vm2459_vm1, %v2410_v51, -inf  ;;  %8981 = vmatmul.msk.f32.gmra.mxu3 %vm649_vm0, %v632_v29  ;;  %v613_v44 = vld [vmem:[%s9802_s26 + $0x710] sm:$0xff]  ;;  %v10468_v45 = vpop.f32.mrf.mxu3 }
 0x1d4   : > { %v2738_v3 = vrot.slane %v2737_v53, 1  ;;  %v3910_v4 = vrot.slane %v3909_v63, 4  ;;  %v3907_v8 = vrot.slane %v3906_v54, 1 }
 0x1d6   : > { %v2739_v12 = vmax.f32 %v2737_v53, %v2738_v3  ;;  %v3911_v11 = vmax.f32 %v3909_v63, %v3910_v4  ;;  %v1558_v13 = vpop.f32.mrf.mxu0  ;;  %v2059_v14 = vpop.f32.mrf.mxu1  ;;  %v3908_v24 = vmax.f32 %v3906_v54, %v3907_v8  ;;  %v2740_v53 = vsel %vm2459_vm1, %v2243_v50, -inf  ;;  %v634_v54 = vld [vmem:[%s9802_s26 + $0x7b8] sm:$0xff] }
 0x1d7   : > { %v1559_v39 = vadd.f32 %v10407_v62, %v1558_v13  ;;  %v2060_v23 = vadd.f32 %v10407_v62, %v2059_v14  ;;  %v614_v3 = vld [vmem:[%s9802_s26 + $0x718] sm:$0xff]  ;;  %v2741_v4 = vrot.slane %v2740_v53, 4 }
 0x1d8   : > { %v4817_v18 = vsel %vm4340_vm9, %v2739_v12, %v4816_v6  ;;  %v3912_v19 = vrot.slane %v3911_v11, 2  ;;  %v4347_v22 = vsel %vm4338_vm8, %v3908_v24, %v4346_v26 }
 0x1d9   : > { %4851 = vst.msk [vmem:[#allocation2 + $0x1f0] sm:$0xff] %vm2459_vm1, %v4817_v18  ;;  %8793 = vmatmul.msk.f32.gmra.mxu0 %vm649_vm0, %v444_v15  ;;  %8960 = vmatmul.msk.f32.gmra.mxu1 %vm649_vm0, %v611_v16  ;;  %v2244_v36 = vmax.f32 %v1559_v39, 0.0  ;;  %v2411_v51 = vmax.f32 %v2060_v23, 0.0  ;;  %v2742_v16 = vmax.f32 %v2740_v53, %v2741_v4 }
 0x1da   : > { %v3913_v27 = vmax.f32 %v3911_v11, %v3912_v19 }
 0x1db   : > { %8982 = vmatmul.msk.f32.gmra.mxu3 %vm649_vm0, %v633_v38  ;;  %v2747_v58 = vsel %vm2459_vm1, %v2244_v36, -inf  ;;  %v3916_v61 = vsel %vm2459_vm1, %v2411_v51, -inf  ;;  %v10484_v12 = vpop.f32.mrf.mxu3 }
 0x1dc   : > { %v3914_v28 = vrot.slane %v3913_v27, 1  ;;  %v2748_v8 = vrot.slane %v2747_v58, 4  ;;  %v3917_v11 = vrot.slane %v3916_v61, 4 }
 0x1de   : > { %v3915_v30 = vmax.f32 %v3913_v27, %v3914_v28  ;;  %v1561_v31 = vpop.f32.mrf.mxu0  ;;  %v2062_v32 = vpop.f32.mrf.mxu1  ;;  %v2749_v6 = vmax.f32 %v2747_v58, %v2748_v8  ;;  %v3918_v24 = vmax.f32 %v3916_v61, %v3917_v11  ;;  %v449_v8 = vld [vmem:[%s9802_s26 + $0x1f0] sm:$0xff] }
 0x1df   : > { %v2063_v48 = vadd.f32 %v10407_v62, %v2062_v32  ;;  %v1562_v49 = vadd.f32 %v10407_v62, %v1561_v31  ;;  %v448_v31 = vld [vmem:[%s9802_s26 + $0x1e8] sm:$0xff]  ;;  %v615_v32 = vld [vmem:[%s9802_s26 + $0x720] sm:$0xff] }
 0x1e0   : > { %v4348_v46 = vsel %vm4340_vm9, %v3915_v30, %v4347_v22  ;;  %v10453_v34 = vld [vmem:[#allocation2 + $0x1f1] sm:$0xff]  ;;  %v2750_v37 = vrot.slane %v2749_v6, 2 }
 0x1e1   : > { %4401 = vst.msk [vmem:[#allocation2 + $0x21] sm:$0xff] %vm2459_vm1, %v4348_v46  ;;  %8794 = vmatmul.msk.f32.gmra.mxu0 %vm649_vm0, %v445_v33  ;;  %8961 = vmatmul.msk.f32.gmra.mxu1 %vm649_vm0, %v612_v20  ;;  %v10455_v25 = vld [vmem:[#allocation2 + $0x1f1] sm:$0xff]  ;;  %v2412_v52 = vmax.f32 %v2063_v48, 0.0  ;;  %v2245_v5 = vmax.f32 %v1562_v49, 0.0  ;;  %v2743_v33 = vrot.slane %v2742_v16, 2 }
 0x1e2   : > { %15068 = vst [vmem:[#allocation10_spill] sm:$0xff] %v10453_v34  ;;  %v2751_v58 = vmax.f32 %v2749_v6, %v2750_v37 }
 0x1e3   : > { %15069 = vst [vmem:[#allocation11_spill] sm:$0xff] %v10455_v25  ;;  %8983 = vmatmul.msk.f32.gmra.mxu3 %vm649_vm0, %v634_v54  ;;  %v3923_v7 = vsel %vm2459_vm1, %v2412_v52, -inf  ;;  %v2754_v17 = vsel %vm2459_vm1, %v2245_v5, -inf  ;;  %v2744_v54 = vmax.f32 %v2742_v16, %v2743_v33 }
 0x1e4   : > { %7533 = vst.msk [vmem:[#allocation2 + $0x1f8] sm:$0x1] %vm4253_vm2, %v14902_v40  ;;  %v3924_v15 = vrot.slane %v3923_v7, 4  ;;  %v2755_v28 = vrot.slane %v2754_v17, 4  ;;  %v2752_v16 = vrot.slane %v2751_v58, 1 }
 0x1e6   : > { %v1564_v41 = vpop.f32.mrf.mxu0  ;;  %v2065_v42 = vpop.f32.mrf.mxu1  ;;  %v3925_v29 = vmax.f32 %v3923_v7, %v3924_v15  ;;  %v2756_v50 = vmax.f32 %v2754_v17, %v2755_v28  ;;  %v2745_v15 = vrot.slane %v2744_v54, 1 }
 0x1e7   : > { %v2066_v59 = vadd.f32 %v10407_v62, %v2065_v42  ;;  %v1565_v10 = vadd.f32 %v10407_v62, %v1564_v41  ;;  %v10497_v41 = vpop.f32.mrf.mxu3  ;;  %v3919_v42 = vrot.slane %v3918_v24, 2 }
 0x1e8   : > { %v3926_v36 = vrot.slane %v3925_v29, 2 }
 0x1e9   : > { %8795 = vmatmul.msk.f32.gmra.mxu0 %vm649_vm0, %v446_v43  ;;  %8962 = vmatmul.msk.f32.gmra.mxu1 %vm649_vm0, %v613_v44  ;;  %v2413_v13 = vmax.f32 %v2066_v59, 0.0  ;;  %v2246_v18 = vmax.f32 %v1565_v10, 0.0  ;;  %v616_v10 = vld [vmem:[%s9802_s26 + $0x728] sm:$0xff] }
 0x1eb   : > { %v3930_v26 = vsel %vm2459_vm1, %v2413_v13, -inf  ;;  %v2761_v38 = vsel %vm2459_vm1, %v2246_v18, -inf }
 0x1ec   : > { %v3931_v39 = vrot.slane %v3930_v26, 4  ;;  %v2762_v51 = vrot.slane %v2761_v38, 4 }
 0x1ee   : > { %v1567_v63 = vpop.f32.mrf.mxu0  ;;  %v2068_v47 = vpop.f32.mrf.mxu1  ;;  %v3932_v59 = vmax.f32 %v3930_v26, %v3931_v39  ;;  %v2746_v39 = vmax.f32 %v2744_v54, %v2745_v15 }
 0x1ef   : > { %v2069_v56 = vadd.f32 %v10407_v62, %v2068_v47  ;;  %v1568_v14 = vadd.f32 %v10407_v62, %v1567_v63  ;;  %v3920_v63 = vmax.f32 %v3918_v24, %v3919_v42  ;;  %v10508_v18 = vpop.f32.mrf.mxu3 }
 0x1f0   : > { %v3933_v17 = vrot.slane %v3932_v59, 2 }
 0x1f1   : > { %8796 = vmatmul.msk.f32.gmra.mxu0 %vm649_vm0, %v447_v0  ;;  %8963 = vmatmul.msk.f32.gmra.mxu1 %vm649_vm0, %v614_v3  ;;  %v2414_v19 = vmax.f32 %v2069_v56, 0.0  ;;  %v2247_v27 = vmax.f32 %v1568_v14, 0.0  ;;  %v2757_v0 = vrot.slane %v2756_v50, 2  ;;  %v3927_v3 = vmax.f32 %v3925_v29, %v3926_v36 }
 0x1f2   : > { %v2763_v56 = vmax.f32 %v2761_v38, %v2762_v51 }
 0x1f3   : > { %v3937_v23 = vsel %vm2459_vm1, %v2414_v19, -inf  ;;  %v2768_v43 = vsel %vm2459_vm1, %v2247_v27, -inf  ;;  %v3921_v19 = vrot.slane %v3920_v63, 1  ;;  %v2758_v28 = vmax.f32 %v2756_v50, %v2757_v0 }
 0x1f4   : > { %v3938_v49 = vrot.slane %v3937_v23, 4  ;;  %v2769_v61 = vrot.slane %v2768_v43, 4  ;;  %v3928_v29 = vrot.slane %v3927_v3, 1 }
 0x1f5   : > { %v3922_v42 = vmax.f32 %v3920_v63, %v3921_v19 }
 0x1f6   : > { %v1570_v22 = vpop.f32.mrf.mxu0  ;;  %v2071_v30 = vpop.f32.mrf.mxu1  ;;  %v3939_v11 = vmax.f32 %v3937_v23, %v3938_v49  ;;  %v2770_v6 = vmax.f32 %v2768_v43, %v2769_v61  ;;  %v2753_v23 = vmax.f32 %v2751_v58, %v2752_v16 }
 0x1f7   : > { %v1571_v20 = vadd.f32 %v10407_v62, %v1570_v22  ;;  %v2072_v46 = vadd.f32 %v10407_v62, %v2071_v30  ;;  %v2764_v30 = vrot.slane %v2763_v56, 2 }
 0x1f9   : > { %v2248_v44 = vmax.f32 %v1571_v20, 0.0  ;;  %v2415_v48 = vmax.f32 %v2072_v46, 0.0  ;;  %8797 = vmatmul.msk.f32.gmra.mxu0 %vm649_vm0, %v448_v31  ;;  %8964 = vmatmul.msk.f32.gmra.mxu1 %vm649_vm0, %v615_v32  ;;  %v3940_v31 = vrot.slane %v3939_v11, 2  ;;  %v3934_v20 = vmax.f32 %v3932_v59, %v3933_v17 }
 0x1fa   : > { %v2771_v46 = vrot.slane %v2770_v6, 2  ;;  %v2765_v0 = vmax.f32 %v2763_v56, %v2764_v30 }
 0x1fb   : > { %v2775_v52 = vsel %vm2459_vm1, %v2248_v44, -inf  ;;  %v3944_v53 = vsel %vm2459_vm1, %v2415_v48, -inf  ;;  %v2759_v44 = vrot.slane %v2758_v28, 1  ;;  %v3941_v61 = vmax.f32 %v3939_v11, %v3940_v31  ;;  %v10517_v58 = vpop.f32.mrf.mxu3 }
 0x1fc   : > { %v2776_v47 = vrot.slane %v2775_v52, 4  ;;  %v3945_v4 = vrot.slane %v3944_v53, 4  ;;  %v2766_v17 = vrot.slane %v2765_v0, 1 }
 0x1fe   : > { %v1573_v5 = vpop.f32.mrf.mxu0  ;;  %v2074_v7 = vpop.f32.mrf.mxu1  ;;  %v2777_v24 = vmax.f32 %v2775_v52, %v2776_v47  ;;  %v3946_v22 = vmax.f32 %v3944_v53, %v3945_v4  ;;  %v450_v52 = vld [vmem:[%s9802_s26 + $0x1f8] sm:$0xff]  ;;  %v3929_v53 = vmax.f32 %v3927_v3, %v3928_v29  ;;  %v3935_v4 = vrot.slane %v3934_v20, 1 }
 0x1ff   : > { %v1574_v13 = vadd.f32 %v10407_v62, %v1573_v5  ;;  %v2075_v14 = vadd.f32 %v10407_v62, %v2074_v7  ;;  %v2772_v5 = vmax.f32 %v2770_v6, %v2771_v46  ;;  %v2760_v3 = vmax.f32 %v2758_v28, %v2759_v44 }
 0x200   : > { %v2778_v43 = vrot.slane %v2777_v24, 2  ;;  %v3947_v48 = vrot.slane %v3946_v22, 2  ;;  %v3936_v6 = vmax.f32 %v3934_v20, %v3935_v4  ;;  %v2132_v20 = vadd.f32 %v10407_v62, %v10497_v41 }
 0x201   : > { %v2249_v26 = vmax.f32 %v1574_v13, 0.0  ;;  %v2416_v27 = vmax.f32 %v2075_v14, 0.0  ;;  %8798 = vmatmul.msk.f32.gmra.mxu0 %vm649_vm0, %v449_v8  ;;  %8965 = vmatmul.msk.f32.gmra.mxu1 %vm649_vm0, %v616_v10  ;;  %v4818_v13 = vsel %vm4328_vm3, %v2753_v23, %v2746_v39  ;;  %v3942_v14 = vrot.slane %v3941_v61, 1 }
 0x202   : > { %v2779_v63 = vmax.f32 %v2777_v24, %v2778_v43  ;;  %v3948_v11 = vmax.f32 %v3946_v22, %v3947_v48  ;;  %v4819_v31 = vsel %vm4330_vm4, %v2760_v3, %v4818_v13  ;;  %v2767_v43 = vmax.f32 %v2765_v0, %v2766_v17 }
 0x203   : > { %v2782_v32 = vsel %vm2459_vm1, %v2249_v26, -inf  ;;  %v3951_v33 = vsel %vm2459_vm1, %v2416_v27, -inf  ;;  %v4349_v26 = vsel %vm4328_vm3, %v3929_v53, %v3922_v42  ;;  %v2773_v27 = vrot.slane %v2772_v5, 1 }
 0x204   : > { %v2783_v37 = vrot.slane %v2782_v32, 4  ;;  %v3952_v38 = vrot.slane %v3951_v33, 4  ;;  %v2780_v29 = vrot.slane %v2779_v63, 1  ;;  %v3949_v28 = vrot.slane %v3948_v11, 1 }
 0x205   : > { %v4350_v42 = vsel %vm4330_vm4, %v3936_v6, %v4349_v26  ;;  %v452_v6 = vld [vmem:[%s9802_s26 + $0x208] sm:$0xff] }
 0x206   : > { %v2784_v50 = vmax.f32 %v2782_v32, %v2783_v37  ;;  %v3953_v36 = vmax.f32 %v3951_v33, %v3952_v38  ;;  %v1576_v51 = vpop.f32.mrf.mxu0  ;;  %v2077_v49 = vpop.f32.mrf.mxu1  ;;  %v451_v37 = vld [vmem:[%s9802_s26 + $0x200] sm:$0xff]  ;;  %v3943_v38 = vmax.f32 %v3941_v61, %v3942_v14  ;;  %v3950_v53 = vmax.f32 %v3948_v11, %v3949_v28 }
 0x207   : > { %v1577_v47 = vadd.f32 %v10407_v62, %v1576_v51  ;;  %v2078_v59 = vadd.f32 %v10407_v62, %v2077_v49  ;;  %v2781_v51 = vmax.f32 %v2779_v63, %v2780_v29 }
 0x208   : > { %v2785_v54 = vrot.slane %v2784_v50, 2  ;;  %v3954_v7 = vrot.slane %v3953_v36, 2  ;;  %v4351_v41 = vsel %vm4332_vm5, %v3943_v38, %v4350_v42 }
 0x209   : > { %v2250_v8 = vmax.f32 %v1577_v47, 0.0  ;;  %v2417_v10 = vmax.f32 %v2078_v59, 0.0  ;;  %8799 = vmatmul.msk.f32.gmra.mxu0 %vm649_vm0, %v450_v52  ;;  %v2135_v59 = vadd.f32 %v10407_v62, %v10508_v18  ;;  %v4352_v14 = vsel %vm4334_vm6, %v3950_v53, %v4351_v41 }
 0x20a   : > { %v2786_v15 = vmax.f32 %v2784_v50, %v2785_v54  ;;  %v3955_v30 = vmax.f32 %v3953_v36, %v3954_v7  ;;  %v10530_v50 = vpop.f32.mrf.mxu3  ;;  %v2774_v36 = vmax.f32 %v2772_v5, %v2773_v27  ;;  %v2435_v54 = vmax.f32 %v2132_v20, 0.0 }
 0x20b   : > { %v2789_v16 = vsel %vm2459_vm1, %v2250_v8, -inf  ;;  %v3958_v56 = vsel %vm2459_vm1, %v2417_v10, -inf  ;;  %v4820_v5 = vsel %vm4332_vm5, %v2767_v43, %v4819_v31  ;;  %v2436_v11 = vmax.f32 %v2135_v59, 0.0  ;;  %v453_v59 = vld [vmem:[%s9802_s26 + $0x210] sm:$0xff] }
 0x20c   : > { %v2790_v19 = vrot.slane %v2789_v16, 4  ;;  %v3959_v24 = vrot.slane %v3958_v56, 4  ;;  %v2787_v39 = vrot.slane %v2786_v15, 1  ;;  %v3956_v49 = vrot.slane %v3955_v30, 1 }
 0x20d   : > { %v4821_v10 = vsel %vm4334_vm6, %v2774_v36, %v4820_v5  ;;  %v4084_v27 = vsel %vm2459_vm1, %v2435_v54, -inf  ;;  %v2126_v20 = vadd.f32 %v10407_v62, %v10468_v45 }
 0x20e   : > { %v2791_v22 = vmax.f32 %v2789_v16, %v2790_v19  ;;  %v3960_v32 = vmax.f32 %v3958_v56, %v3959_v24  ;;  %v1579_v33 = vpop.f32.mrf.mxu0  ;;  %v2080_v46 = vpop.f32.mrf.mxu1  ;;  %v2788_v0 = vmax.f32 %v2786_v15, %v2787_v39  ;;  %v3957_v13 = vmax.f32 %v3955_v30, %v3956_v49 }
 0x20f   : > { %v2081_v23 = vadd.f32 %v10407_v62, %v2080_v46  ;;  %v1580_v7 = vadd.f32 %v10407_v62, %v1579_v33  ;;  %v4822_v18 = vsel %vm4336_vm7, %v2781_v51, %v4821_v10  ;;  %v4091_v46 = vsel %vm2459_vm1, %v2436_v11, -inf }
 0x210   : > { %v2792_v44 = vrot.slane %v2791_v22, 2  ;;  %v3961_v48 = vrot.slane %v3960_v32, 2  ;;  %v4823_v19 = vsel %vm4338_vm8, %v2788_v0, %v4822_v18  ;;  %v4085_v39 = vrot.slane %v4084_v27, 4 }
 0x211   : > { %v2418_v52 = vmax.f32 %v2081_v23, 0.0  ;;  %8800 = vmatmul.msk.f32.gmra.mxu0 %vm649_vm0, %v451_v37  ;;  %v2251_v30 = vmax.f32 %v1580_v7, 0.0  ;;  %v2138_v23 = vadd.f32 %v10407_v62, %v10517_v58 }
 0x212   : > { %v2793_v61 = vmax.f32 %v2791_v22, %v2792_v44  ;;  %v3962_v47 = vmax.f32 %v3960_v32, %v3961_v48  ;;  %v10548_v28 = vpop.f32.mrf.mxu3  ;;  %v4353_v22 = vsel %vm4336_vm7, %v3957_v13, %v4352_v14  ;;  %v4092_v44 = vrot.slane %v4091_v46, 4 }
 0x213   : > { %v3965_v4 = vsel %vm2459_vm1, %v2418_v52, -inf  ;;  %v2796_v43 = vsel %vm2459_vm1, %v2251_v30, -inf  ;;  %v2437_v51 = vmax.f32 %v2138_v23, 0.0  ;;  %v4086_v53 = vmax.f32 %v4084_v27, %v4085_v39 }
 0x214   : > { %v2794_v63 = vrot.slane %v2793_v61, 1  ;;  %v3966_v8 = vrot.slane %v3965_v4, 4  ;;  %v3963_v3 = vrot.slane %v3962_v47, 1  ;;  %v2797_v58 = vrot.slane %v2796_v43, 4 }
 0x215   : > { %v4098_v0 = vsel %vm2459_vm1, %v2437_v51, -inf  ;;  %v4087_v14 = vrot.slane %v4086_v53, 2 }
 0x216   : > { %v2795_v15 = vmax.f32 %v2793_v61, %v2794_v63  ;;  %v3967_v16 = vmax.f32 %v3965_v4, %v3966_v8  ;;  %v1582_v56 = vpop.f32.mrf.mxu0  ;;  %v2083_v17 = vpop.f32.mrf.mxu1  ;;  %v3964_v32 = vmax.f32 %v3962_v47, %v3963_v3  ;;  %v2433_v4 = vmax.f32 %v2126_v20, 0.0 }
 0x217   : > { %v1583_v24 = vadd.f32 %v10407_v62, %v1582_v56  ;;  %v2084_v26 = vadd.f32 %v10407_v62, %v2083_v17  ;;  %v4093_v63 = vmax.f32 %v4091_v46, %v4092_v44  ;;  %v2141_v3 = vadd.f32 %v10407_v62, %v10530_v50  ;;  %v454_v46 = vld [vmem:[%s9802_s26 + $0x218] sm:$0xff] }
 0x218   : > { %v4824_v29 = vsel %vm4340_vm9, %v2795_v15, %v4823_v19  ;;  %v3968_v31 = vrot.slane %v3967_v16, 2  ;;  %v4354_v48 = vsel %vm4338_vm8, %v3964_v32, %v4353_v22  ;;  %v4099_v15 = vrot.slane %v4098_v0, 4 }
 0x219   : > { %4852 = vst.msk [vmem:[#allocation2 + $0x200] sm:$0xff] %vm2459_vm1, %v4824_v29  ;;  %v2252_v33 = vmax.f32 %v1583_v24, 0.0  ;;  %8801 = vmatmul.msk.f32.gmra.mxu0 %vm649_vm0, %v452_v6  ;;  %v2419_v38 = vmax.f32 %v2084_v26, 0.0  ;;  %v2438_v6 = vmax.f32 %v2141_v3, 0.0  ;;  %v4070_v19 = vsel %vm2459_vm1, %v2433_v4, -inf }
 0x21a   : > { %v3969_v37 = vmax.f32 %v3967_v16, %v3968_v31  ;;  %v10567_v7 = vpop.f32.mrf.mxu3  ;;  %v2798_v16 = vmax.f32 %v2796_v43, %v2797_v58  ;;  %v4094_v50 = vrot.slane %v4093_v63, 2  ;;  %v4088_v30 = vmax.f32 %v4086_v53, %v4087_v14 }
 0x21b   : > { %v2803_v36 = vsel %vm2459_vm1, %v2252_v33, -inf  ;;  %v3972_v52 = vsel %vm2459_vm1, %v2419_v38, -inf  ;;  %v4105_v29 = vsel %vm2459_vm1, %v2438_v6, -inf  ;;  %v4100_v33 = vmax.f32 %v4098_v0, %v4099_v15 }
 0x21c   : > { %v3970_v42 = vrot.slane %v3969_v37, 1  ;;  %v2804_v5 = vrot.slane %v2803_v36, 4  ;;  %v3973_v8 = vrot.slane %v3972_v52, 4  ;;  %v2799_v38 = vrot.slane %v2798_v16, 2 }
 0x21d   : > { %v4095_v43 = vmax.f32 %v4093_v63, %v4094_v50  ;;  %v2144_v44 = vadd.f32 %v10407_v62, %v10548_v28  ;;  %v4089_v53 = vrot.slane %v4088_v30, 1 }
 0x21e   : > { %v3971_v49 = vmax.f32 %v3969_v37, %v3970_v42  ;;  %v1585_v61 = vpop.f32.mrf.mxu0  ;;  %v2086_v47 = vpop.f32.mrf.mxu1  ;;  %v2805_v26 = vmax.f32 %v2803_v36, %v2804_v5  ;;  %v3974_v27 = vmax.f32 %v3972_v52, %v3973_v8  ;;  %v4071_v37 = vrot.slane %v4070_v19, 4 }
 0x21f   : > { %v1586_v41 = vadd.f32 %v10407_v62, %v1585_v61  ;;  %v2087_v45 = vadd.f32 %v10407_v62, %v2086_v47  ;;  %v4106_v42 = vrot.slane %v4105_v29, 4  ;;  %v4101_v47 = vrot.slane %v4100_v33, 2 }
 0x220   : > { %v4355_v54 = vsel %vm4340_vm9, %v3971_v49, %v4354_v48  ;;  %v10573_v11 = vld [vmem:[#allocation2 + $0x201] sm:$0xff]  ;;  %v2806_v36 = vrot.slane %v2805_v26, 2  ;;  %v3975_v51 = vrot.slane %v3974_v27, 2  ;;  %v2800_v58 = vmax.f32 %v2798_v16, %v2799_v38 }
 0x221   : > { %4402 = vst.msk [vmem:[#allocation2 + $0x31] sm:$0xff] %vm2459_vm1, %v4355_v54  ;;  %v2253_v10 = vmax.f32 %v1586_v41, 0.0  ;;  %v2420_v13 = vmax.f32 %v2087_v45, 0.0  ;;  %8802 = vmatmul.msk.f32.gmra.mxu0 %vm649_vm0, %v453_v59  ;;  %v10575_v18 = vld [vmem:[#allocation2 + $0x201] sm:$0xff]  ;;  %v2439_v59 = vmax.f32 %v2144_v44, 0.0  ;;  %v4096_v28 = vrot.slane %v4095_v43, 1 }
 0x222   : > { %15070 = vst [vmem:[#allocation12_spill] sm:$0xff] %v10573_v11  ;;  %v10588_v48 = vpop.f32.mrf.mxu3  ;;  %v4107_v54 = vmax.f32 %v4105_v29, %v4106_v42  ;;  %v10593_v5 = vmax.f32 %v4070_v19, %v4071_v37  ;;  %v2807_v63 = vmax.f32 %v2805_v26, %v2806_v36  ;;  %v3976_v8 = vmax.f32 %v3974_v27, %v3975_v51 }
 0x223   : > { %15071 = vst [vmem:[#allocation13_spill] sm:$0xff] %v10575_v18  ;;  %v2810_v56 = vsel %vm2459_vm1, %v2253_v10, -inf  ;;  %v3979_v17 = vsel %vm2459_vm1, %v2420_v13, -inf  ;;  %v4112_v10 = vsel %vm2459_vm1, %v2439_v59, -inf  ;;  %v4090_v13 = vmax.f32 %v4088_v30, %v4089_v53 }
 0x224   : > { %7534 = vst.msk [vmem:[#allocation2 + $0x208] sm:$0x1] %vm4253_vm2, %v14902_v40  ;;  %v2811_v24 = vrot.slane %v2810_v56, 4  ;;  %v3980_v31 = vrot.slane %v3979_v17, 4  ;;  %v4102_v15 = vmax.f32 %v4100_v33, %v4101_v47  ;;  %v2801_v6 = vrot.slane %v2800_v58, 1 }
 0x225   : > { %v4097_v19 = vmax.f32 %v4095_v43, %v4096_v28  ;;  %v4113_v26 = vrot.slane %v4112_v10, 4  ;;  %v3977_v30 = vrot.slane %v3976_v8, 1  ;;  %v456_v28 = vld [vmem:[%s9802_s26 + $0x228] sm:$0xff] }
 0x226   : > { %v1588_v22 = vpop.f32.mrf.mxu0  ;;  %v2089_v32 = vpop.f32.mrf.mxu1  ;;  %v2812_v20 = vmax.f32 %v2810_v56, %v2811_v24  ;;  %v3981_v61 = vmax.f32 %v3979_v17, %v3980_v31  ;;  %v455_v17 = vld [vmem:[%s9802_s26 + $0x220] sm:$0xff]  ;;  %v2802_v42 = vmax.f32 %v2800_v58, %v2801_v6 }
 0x227   : > { %v1589_v39 = vadd.f32 %v10407_v62, %v1588_v22  ;;  %v2090_v23 = vadd.f32 %v10407_v62, %v2089_v32  ;;  %v4108_v22 = vrot.slane %v4107_v54, 2  ;;  %v2808_v32 = vrot.slane %v2807_v63, 1 }
 0x228   : > { %v2813_v0 = vrot.slane %v2812_v20, 2  ;;  %v3982_v3 = vrot.slane %v3981_v61, 2  ;;  %v4370_v51 = vsel %vm4328_vm3, %v4097_v19, %v4090_v13  ;;  %v2150_v19 = vadd.f32 %v10407_v62, %v10588_v48 }
 0x229   : > { %v2254_v49 = vmax.f32 %v1589_v39, 0.0  ;;  %v2421_v52 = vmax.f32 %v2090_v23, 0.0  ;;  %8803 = vmatmul.msk.f32.gmra.mxu0 %vm649_vm0, %v454_v46  ;;  %v4103_v39 = vrot.slane %v4102_v15, 1  ;;  %v2147_v23 = vadd.f32 %v10407_v62, %v10567_v7 }
 0x22a   : > { %v2814_v29 = vmax.f32 %v2812_v20, %v2813_v0  ;;  %v10599_v27 = vpop.f32.mrf.mxu3  ;;  %v3983_v33 = vmax.f32 %v3981_v61, %v3982_v3  ;;  %v10606_v20 = vadd.f32 %v10407_v62, %v10484_v12  ;;  %v2809_v53 = vmax.f32 %v2807_v63, %v2808_v32 }
 0x22b   : > { %v2817_v41 = vsel %vm2459_vm1, %v2254_v49, -inf  ;;  %v3986_v45 = vsel %vm2459_vm1, %v2421_v52, -inf  ;;  %v4109_v49 = vmax.f32 %v4107_v54, %v4108_v22  ;;  %v4114_v52 = vmax.f32 %v4112_v10, %v4113_v26 }
 0x22c   : > { %v2818_v4 = vrot.slane %v2817_v41, 4  ;;  %v3987_v14 = vrot.slane %v3986_v45, 4  ;;  %v2815_v36 = vrot.slane %v2814_v29, 1  ;;  %v2440_v59 = vmax.f32 %v2147_v23, 0.0 }
 0x22d   : > { %v3978_v7 = vmax.f32 %v3976_v8, %v3977_v30  ;;  %v3984_v58 = vrot.slane %v3983_v33, 1  ;;  %v4110_v13 = vrot.slane %v4109_v49, 1 }
 0x22e   : > { %v1591_v16 = vpop.f32.mrf.mxu0  ;;  %v2092_v56 = vpop.f32.mrf.mxu1  ;;  %v2819_v24 = vmax.f32 %v2817_v41, %v2818_v4  ;;  %v3988_v38 = vmax.f32 %v3986_v45, %v3987_v14  ;;  %v4104_v45 = vmax.f32 %v4102_v15, %v4103_v39  ;;  %v4119_v54 = vsel %vm2459_vm1, %v2440_v59, -inf  ;;  %v457_v59 = vld [vmem:[%s9802_s26 + $0x230] sm:$0xff] }
 0x22f   : > { %v1592_v50 = vadd.f32 %v10407_v62, %v1591_v16  ;;  %v2093_v31 = vadd.f32 %v10407_v62, %v2092_v56  ;;  %v2816_v10 = vmax.f32 %v2814_v29, %v2815_v36  ;;  %v4115_v16 = vrot.slane %v4114_v52, 2 }
 0x230   : > { %v2820_v43 = vrot.slane %v2819_v24, 2  ;;  %v3989_v41 = vrot.slane %v3988_v38, 2  ;;  %v4120_v15 = vrot.slane %v4119_v54, 4 }
 0x231   : > { %v2255_v46 = vmax.f32 %v1592_v50, 0.0  ;;  %v2422_v37 = vmax.f32 %v2093_v31, 0.0  ;;  %8804 = vmatmul.msk.f32.gmra.mxu0 %vm649_vm0, %v455_v17  ;;  %v3985_v50 = vmax.f32 %v3983_v33, %v3984_v58  ;;  %v4116_v39 = vmax.f32 %v4114_v52, %v4115_v16 }
 0x232   : > { %v2821_v4 = vmax.f32 %v2819_v24, %v2820_v43  ;;  %v10615_v56 = vpop.f32.mrf.mxu3  ;;  %v4825_v24 = vsel %vm4328_vm3, %v2809_v53, %v2802_v42  ;;  %v3990_v31 = vmax.f32 %v3988_v38, %v3989_v41  ;;  %v4121_v32 = vmax.f32 %v4119_v54, %v4120_v15  ;;  %v4870_v15 = vld [vmem:[%s14893_s3 + $0x38] sm:$0xff] }
 0x233   : > { %v2824_v44 = vsel %vm2459_vm1, %v2255_v46, -inf  ;;  %v3993_v47 = vsel %vm2459_vm1, %v2422_v37, -inf  ;;  %v4111_v46 = vmax.f32 %v4109_v49, %v4110_v13  ;;  %v4826_v23 = vsel %vm4330_vm4, %v2816_v10, %v4825_v24  ;;  %4985 = vmatpush.msra.mxu2 %v4870_v15 }
 0x234   : > { %v2825_v61 = vrot.slane %v2824_v44, 4  ;;  %v3994_v63 = vrot.slane %v3993_v47, 4  ;;  %v2822_v22 = vrot.slane %v2821_v4, 1  ;;  %v4371_v42 = vsel %vm4330_vm4, %v4104_v45, %v4370_v51 }
 0x235   : > { %v2441_v38 = vmax.f32 %v2150_v19, 0.0  ;;  %v10626_v43 = vsel %vm4328_vm3, %v3985_v50, %v3978_v7  ;;  %v3991_v48 = vrot.slane %v3990_v31, 1  ;;  %v4372_v41 = vsel %vm4332_vm5, %v4111_v46, %v4371_v42 }
 0x236   : > { %v1594_v12 = vpop.f32.mrf.mxu0  ;;  %v2095_v0 = vpop.f32.mrf.mxu1  ;;  %v2826_v8 = vmax.f32 %v2824_v44, %v2825_v61  ;;  %v3995_v30 = vmax.f32 %v3993_v47, %v3994_v63  ;;  %v4122_v61 = vrot.slane %v4121_v32, 2  ;;  %v2823_v47 = vmax.f32 %v2821_v4, %v2822_v22 }
 0x237   : > { %v1595_v3 = vadd.f32 %v10407_v62, %v1594_v12  ;;  %v2096_v14 = vadd.f32 %v10407_v62, %v2095_v0  ;;  %v4126_v58 = vsel %vm2459_vm1, %v2441_v38, -inf  ;;  %v4117_v7 = vrot.slane %v4116_v39, 1  ;;  %v635_v0 = vld [vmem:[%s9802_s26 + $0x7c0] sm:$0xff] }
 0x238   : > { %v2827_v33 = vrot.slane %v2826_v8, 2  ;;  %v3996_v51 = vrot.slane %v3995_v30, 2  ;;  %v4127_v4 = vrot.slane %v4126_v58, 4  ;;  %8984 = vmatmul.msk.f32.gmra.mxu3 %vm649_vm0, %v635_v0  ;;  %v3992_v54 = vmax.f32 %v3990_v31, %v3991_v48  ;;  %v10658_v38 = vld [vmem:[%s14892_s2] ss:$0 sm:$0xff] }
 0x239   : > { %v2256_v17 = vmax.f32 %v1595_v3, 0.0  ;;  %v2423_v6 = vmax.f32 %v2096_v14, 0.0  ;;  %8805 = vmatmul.msk.f32.gmra.mxu0 %vm649_vm0, %v456_v28  ;;  %v4123_v63 = vmax.f32 %v4121_v32, %v4122_v61  ;;  %v2153_v13 = vadd.f32 %v10407_v62, %v10599_v27 }
 0x23a   : > { %v10633_v12 = vpop.f32.mrf.mxu3  ;;  %v10636_v28 = vmax.f32 %v2826_v8, %v2827_v33  ;;  %v10643_v16 = vsel %vm4332_vm5, %v2823_v47, %v4826_v23  ;;  %v3997_v24 = vmax.f32 %v3995_v30, %v3996_v51  ;;  %v4118_v27 = vmax.f32 %v4116_v39, %v4117_v7  ;;  %v458_v33 = vld [vmem:[%s9802_s26 + $0x238] sm:$0xff] }
 0x23b   : > { %v2831_v29 = vsel %vm2459_vm1, %v2256_v17, -inf  ;;  %v4000_v26 = vsel %vm2459_vm1, %v2423_v6, -inf  ;;  %v4128_v6 = vmax.f32 %v4126_v58, %v4127_v4  ;;  %v4124_v23 = vrot.slane %v4123_v63, 1  ;;  %v636_v58 = vld [vmem:[%s9802_s26 + $0x7c8] sm:$0xff] }
 0x23c   : > { %v2832_v37 = vrot.slane %v2831_v29, 4  ;;  %v4001_v44 = vrot.slane %v4000_v26, 4  ;;  %v3998_v61 = vrot.slane %v3997_v24, 1 }
 0x23d   : > { %v4129_v22 = vrot.slane %v4128_v6, 2 }
 0x23e   : > { %v1597_v36 = vpop.f32.mrf.mxu0  ;;  %v2098_v53 = vpop.f32.mrf.mxu1  ;;  %v2833_v45 = vmax.f32 %v2831_v29, %v2832_v37  ;;  %v4002_v10 = vmax.f32 %v4000_v26, %v4001_v44  ;;  %v2442_v29 = vmax.f32 %v2153_v13, 0.0  ;;  %v4869_v26 = vld [vmem:[%s14893_s3 + $0x30] sm:$0xff]  ;;  %v4373_v13 = vsel %vm4334_vm6, %v4118_v27, %v4372_v41 }
 0x23f   : > { %v1598_v49 = vadd.f32 %v10407_v62, %v1597_v36  ;;  %v2099_v52 = vadd.f32 %v10407_v62, %v2098_v53  ;;  %v2829_v62 = vrot.slane %v10636_v28, 1  ;;  %4986 = vmatpush.msra.mxu2 %v4869_v26  ;;  %v4130_v44 = vmax.f32 %v4128_v6, %v4129_v22  ;;  %v4868_v53 = vld [vmem:[%s14893_s3 + $0x28] sm:$0xff] }
 0x240   : > { %v2834_v50 = vrot.slane %v2833_v45, 2  ;;  %v4003_v32 = vrot.slane %v4002_v10, 2  ;;  %v4133_v36 = vsel %vm2459_vm1, %v2442_v29, -inf  ;;  %8985 = vmatmul.msk.f32.gmra.mxu3 %vm649_vm0, %v636_v58  ;;  %v3999_v41 = vmax.f32 %v3997_v24, %v3998_v61  ;;  %v4865_v29 = vld [vmem:[%s14893_s3 + $0x10] sm:$0xff] }
 0x241   : > { %v2257_v3 = vmax.f32 %v1598_v49, 0.0  ;;  %v2424_v14 = vmax.f32 %v2099_v52, 0.0  ;;  %8806 = vmatmul.msk.f32.gmra.mxu0 %vm649_vm0, %v457_v59  ;;  %4987 = vmatpush.msra.mxu2 %v4868_v53  ;;  %v4131_v0 = vrot.slane %v4130_v44, 1  ;;  %v637_v61 = vld [vmem:[%s9802_s26 + $0x7d0] sm:$0xff] }
 0x242   : > { %v2835_v59 = vmax.f32 %v2833_v45, %v2834_v50  ;;  %v10666_v52 = vpop.f32.mrf.mxu3  ;;  %v4357_v45 = vsel %vm4330_vm4, %v3992_v54, %v10626_v43  ;;  %v4004_v4 = vmax.f32 %v4002_v10, %v4003_v32 }
 0x243   : > { %v2838_v17 = vsel %vm2459_vm1, %v2257_v3, -inf  ;;  %v4007_v8 = vsel %vm2459_vm1, %v2424_v14, -inf  ;;  %v4134_v3 = vrot.slane %v4133_v36, 4  ;;  %v4867_v14 = vld [vmem:[%s14893_s3 + $0x20] sm:$0xff] }
 0x244   : > { %v2839_v31 = vrot.slane %v2838_v17, 4  ;;  %v4008_v19 = vrot.slane %v4007_v8, 4  ;;  %4988 = vmatpush.msra.mxu2 %v4867_v14  ;;  %v2836_v22 = vrot.slane %v2835_v59, 1  ;;  %v4005_v24 = vrot.slane %v4004_v4, 1  ;;  %v4855_v14 = vld [vmem:[#allocation2] sm:$0xff] }
 0x245   : > { %v4135_v50 = vmax.f32 %v4133_v36, %v4134_v3  ;;  %v2159_v3 = vadd.f32 %v10658_v38, %v10633_v12 }
 0x246   : > { %v2840_v46 = vmax.f32 %v2838_v17, %v2839_v31  ;;  %v4009_v37 = vmax.f32 %v4007_v8, %v4008_v19  ;;  %v1600_v42 = vpop.f32.mrf.mxu0  ;;  %v2101_v30 = vpop.f32.mrf.mxu1  ;;  %v4125_v17 = vmax.f32 %v4123_v63, %v4124_v23  ;;  %v4866_v31 = vld [vmem:[%s14893_s3 + $0x18] sm:$0xff]  ;;  %v2830_v19 = vmax.f32 %v10636_v28, %v2829_v62  ;;  %v459_v28 = vld [vmem:[%s9802_s26 + $0x240] sm:$0xff] }
 0x247   : > { %v1601_v39 = vadd.f32 %v10658_v38, %v1600_v42  ;;  %v2102_v48 = vadd.f32 %v10658_v38, %v2101_v30  ;;  %4989 = vmatpush.msra.mxu2 %v4866_v31  ;;  %v4132_v63 = vmax.f32 %v4130_v44, %v4131_v0  ;;  %v4136_v27 = vrot.slane %v4135_v50, 2 }
 0x248   : > { %v2841_v47 = vrot.slane %v2840_v46, 2  ;;  %v4010_v49 = vrot.slane %v4009_v37, 2  ;;  %v4374_v26 = vsel %vm4336_vm7, %v4125_v17, %v4373_v13  ;;  %v2156_v62 = vadd.f32 %v10658_v38, %v10615_v56  ;;  %8986 = vmatmul.msk.f32.gmra.mxu3 %vm649_vm0, %v637_v61  ;;  %v638_v61 = vld [vmem:[%s9802_s26 + $0x7d8] sm:$0xff] }
 0x249   : > { %v2258_v51 = vmax.f32 %v1601_v39, 0.0  ;;  %v2425_v7 = vmax.f32 %v2102_v48, 0.0  ;;  %8807 = vmatmul.msk.f32.gmra.mxu0 %vm649_vm0, %v458_v33  ;;  %4990 = vmatpush.msra.mxu2 %v4865_v29  ;;  %v4137_v33 = vmax.f32 %v4135_v50, %v4136_v27  ;;  %v4864_v39 = vld [vmem:[%s14893_s3 + $0x8] sm:$0xff]  ;;  %v4828_v48 = vsel %vm4334_vm6, %v2830_v19, %v10643_v16  ;;  %v4863_v16 = vld [vmem:[%s14893_s3] sm:$0xff] }
 0x24a   : > { %v2842_v8 = vmax.f32 %v2840_v46, %v2841_v47  ;;  %v4011_v10 = vmax.f32 %v4009_v37, %v4010_v49  ;;  %v2837_v44 = vmax.f32 %v2835_v59, %v2836_v22  ;;  %v4375_v56 = vsel %vm4338_vm8, %v4132_v63, %v4374_v26 }
 0x24b   : > { %v2845_v6 = vsel %vm2459_vm1, %v2258_v51, -inf  ;;  %v4014_v15 = vsel %vm2459_vm1, %v2425_v7, -inf  ;;  %4991 = vmatpush.msra.mxu2 %v4864_v39  ;;  %v4138_v58 = vrot.slane %v4137_v33, 1  ;;  %v10699_v51 = vpop.f32.mrf.mxu3  ;;  %v2443_v0 = vmax.f32 %v2156_v62, 0.0 }
 0x24c   : > { %v2846_v43 = vrot.slane %v2845_v6, 4  ;;  %v4015_v54 = vrot.slane %v4014_v15, 4  ;;  %v2843_v37 = vrot.slane %v2842_v8, 1  ;;  %v4012_v47 = vrot.slane %v4011_v10, 1 }
 0x24d   : > { %4992 = vmatpush.msra.mxu2 %v4863_v16  ;;  %v4006_v13 = vmax.f32 %v4004_v4, %v4005_v24  ;;  %v4358_v50 = vsel %vm4332_vm5, %v3999_v41, %v4357_v45  ;;  %v2444_v63 = vmax.f32 %v2159_v3, 0.0  ;;  %v460_v45 = vld [vmem:[%s9802_s26 + $0x248] sm:$0xff] }
 0x24e   : > { %v2847_v32 = vmax.f32 %v2845_v6, %v2846_v43  ;;  %v4016_v46 = vmax.f32 %v4014_v15, %v4015_v54  ;;  %v1603_v23 = vpop.f32.mrf.mxu0  ;;  %v2104_v42 = vpop.f32.mrf.mxu1  ;;  %v2844_v17 = vmax.f32 %v2842_v8, %v2843_v37  ;;  %v4139_v15 = vmax.f32 %v4137_v33, %v4138_v58  ;;  %9008 = vmatmul.msk.f32.vlgmr.msra.gmra.mxu2 %vm2459_vm1, %v4855_v14 }
 0x24f   : > { %v2105_v30 = vadd.f32 %v10658_v38, %v2104_v42  ;;  %v1604_v19 = vadd.f32 %v10658_v38, %v1603_v23  ;;  %v4829_v43 = vsel %vm4336_vm7, %v2837_v44, %v4828_v48  ;;  %v4013_v4 = vmax.f32 %v4011_v10, %v4012_v47 }
 0x250   : > { %v2848_v36 = vrot.slane %v2847_v32, 2  ;;  %v4017_v53 = vrot.slane %v4016_v46, 2  ;;  %v4376_v12 = vsel %vm4340_vm9, %v4139_v15, %v4375_v56  ;;  %v4359_v41 = vsel %vm4334_vm6, %v4006_v13, %v4358_v50  ;;  %8987 = vmatmul.msk.f32.gmra.mxu3 %vm649_vm0, %v638_v61 }
 0x251   : > { %v2426_v49 = vmax.f32 %v2105_v30, 0.0  ;;  %8808 = vmatmul.msk.f32.gmra.mxu0 %vm649_vm0, %v459_v28  ;;  %4405 = vst.msk [vmem:[#allocation2 + $0x61] sm:$0xff] %vm2459_vm1, %v4376_v12  ;;  %v4147_v42 = vsel %vm2459_vm1, %v2444_v63, -inf  ;;  %v2434_v10 = vmax.f32 %v10606_v20, 0.0  ;;  %v2259_v62 = vmax.f32 %v1604_v19, 0.0 }
 0x252   : > { %v2849_v59 = vmax.f32 %v2847_v32, %v2848_v36  ;;  %v4018_v7 = vmax.f32 %v4016_v46, %v4017_v53  ;;  %v4140_v32 = vsel %vm2459_vm1, %v2443_v0, -inf  ;;  %v4830_v46 = vsel %vm4338_vm8, %v2844_v17, %v4829_v43  ;;  %v10737_v0 = vld [vmem:[#allocation2 + $0x10] sm:$0xff] }
 0x253   : > { %v4021_v6 = vsel %vm2459_vm1, %v2426_v49, -inf  ;;  %v4141_v33 = vrot.slane %v4140_v32, 4  ;;  %v4360_v39 = vsel %vm4336_vm7, %v4013_v4, %v4359_v41  ;;  %v4148_v44 = vrot.slane %v4147_v42, 4  ;;  %v10728_v53 = vpop.f32.mrf.mxu3  ;;  %15072 = vst [vmem:[#allocation14_spill] sm:$0xff] %v10737_v0 }
 0x254   : > { %v2850_v31 = vrot.slane %v2849_v59, 1  ;;  %v4022_v22 = vrot.slane %v4021_v6, 4  ;;  %v4019_v54 = vrot.slane %v4018_v7, 1  ;;  %v2162_v36 = vadd.f32 %v10658_v38, %v10666_v52  ;;  %7473 = vst.msk [vmem:[#allocation2 + $0x10] sm:$0x1] %vm4253_vm2, %v14902_v40 }
 0x255   : > { %v4073_v47 = vrot.slane %v10593_v5, 2  ;;  %v4077_v56 = vsel %vm2459_vm1, %v2434_v10, -inf  ;;  %v2852_v49 = vsel %vm2459_vm1, %v2259_v62, -inf  ;;  %v4142_v52 = vmax.f32 %v4140_v32, %v4141_v33  ;;  %v639_v10 = vld [vmem:[%s9802_s26 + $0x7e0] sm:$0xff] }
 0x256   : > { %v2851_v8 = vmax.f32 %v2849_v59, %v2850_v31  ;;  %v4023_v27 = vmax.f32 %v4021_v6, %v4022_v22  ;;  %v1606_v29 = vpop.f32.mrf.mxu0  ;;  %v2107_v26 = vpop.f32.mrf.mxu1  ;;  %v4020_v37 = vmax.f32 %v4018_v7, %v4019_v54  ;;  %v2445_v7 = vmax.f32 %v2162_v36, 0.0  ;;  %v461_v6 = vld [vmem:[%s9802_s26 + $0x250] sm:$0xff]  ;;  %9009 = vmatmul.msk.f32.gmra.mxu2 %vm2459_vm1, %v10737_v0 }
 0x257   : > { %v2108_v23 = vadd.f32 %v10658_v38, %v2107_v26  ;;  %v1607_v20 = vadd.f32 %v10658_v38, %v1606_v29  ;;  %v4149_v17 = vmax.f32 %v4147_v42, %v4148_v44  ;;  %v4078_v22 = vrot.slane %v4077_v56, 4 }
 0x258   : > { %v4831_v28 = vsel %vm4340_vm9, %v2851_v8, %v4830_v46  ;;  %v4024_v24 = vrot.slane %v4023_v27, 2  ;;  %v4361_v16 = vsel %vm4338_vm8, %v4020_v37, %v4360_v39  ;;  %v4154_v19 = vsel %vm2459_vm1, %v2445_v7, -inf  ;;  %8988 = vmatmul.msk.f32.gmra.mxu3 %vm649_vm0, %v639_v10  ;;  %v4857_v39 = vld [vmem:[#allocation2 + $0x20] sm:$0xff]  ;;  %v4858_v10 = vld [vmem:[#allocation2 + $0x30] sm:$0xff] }
 0x259   : > { %4853 = vst.msk [vmem:[#allocation2 + $0x210] sm:$0xff] %vm2459_vm1, %v4831_v28  ;;  %v2427_v30 = vmax.f32 %v2108_v23, 0.0  ;;  %8809 = vmatmul.msk.f32.gmra.mxu0 %vm649_vm0, %v460_v45  ;;  %v2260_v15 = vmax.f32 %v1607_v20, 0.0  ;;  %v2853_v43 = vrot.slane %v2852_v49, 4  ;;  %v4074_v63 = vmax.f32 %v10593_v5, %v4073_v47 }
 0x25a   : > { %v4025_v48 = vmax.f32 %v4023_v27, %v4024_v24  ;;  %v4143_v4 = vrot.slane %v4142_v52, 2  ;;  %v2165_v27 = vadd.f32 %v10658_v38, %v10699_v51  ;;  %v4150_v45 = vrot.slane %v4149_v17, 2 }
 0x25b   : > { %v4028_v59 = vsel %vm2459_vm1, %v2427_v30, -inf  ;;  %v4155_v41 = vrot.slane %v4154_v19, 4  ;;  %v2859_v5 = vsel %vm2459_vm1, %v2260_v15, -inf  ;;  %v10761_v42 = vpop.f32.mrf.mxu3  ;;  %v4079_v51 = vmax.f32 %v4077_v56, %v4078_v22 }
 0x25c   : > { %v4026_v58 = vrot.slane %v4025_v48, 1  ;;  %v4029_v12 = vrot.slane %v4028_v59, 4  ;;  %v2446_v23 = vmax.f32 %v2165_v27, 0.0  ;;  %v2854_v28 = vmax.f32 %v2852_v49, %v2853_v43 }
 0x25d   : > { %v4075_v37 = vrot.slane %v4074_v63, 1  ;;  %v4144_v30 = vmax.f32 %v4142_v52, %v4143_v4  ;;  %v4151_v36 = vmax.f32 %v4149_v17, %v4150_v45  ;;  %v4156_v47 = vmax.f32 %v4154_v19, %v4155_v41 }
 0x25e   : > { %v4027_v3 = vmax.f32 %v4025_v48, %v4026_v58  ;;  %v1609_v14 = vpop.f32.mrf.mxu0  ;;  %v2110_v13 = vpop.f32.mrf.mxu1  ;;  %v4030_v62 = vmax.f32 %v4028_v59, %v4029_v12  ;;  %v4161_v33 = vsel %vm2459_vm1, %v2446_v23, -inf  ;;  %v2860_v48 = vrot.slane %v2859_v5, 4  ;;  %v462_v58 = vld [vmem:[%s9802_s26 + $0x258] sm:$0xff]  ;;  %9010 = vmatmul.msk.f32.gmra.mxu2 %vm2459_vm1, %v4857_v39 }
 0x25f   : > { %v1610_v50 = vadd.f32 %v10658_v38, %v1609_v14  ;;  %v2111_v31 = vadd.f32 %v10658_v38, %v2110_v13  ;;  %v4162_v59 = vrot.slane %v4161_v33, 4  ;;  %v4080_v52 = vrot.slane %v4079_v51, 2 }
 0x260   : > { %v4362_v54 = vsel %vm4340_vm9, %v4027_v3, %v4361_v16  ;;  %v10753_v29 = vld [vmem:[#allocation2 + $0x211] sm:$0xff]  ;;  %v2855_v7 = vrot.slane %v2854_v28, 2  ;;  %v4031_v3 = vrot.slane %v4030_v62, 2  ;;  %v2168_v14 = vadd.f32 %v10658_v38, %v10728_v53 }
 0x261   : > { %4403 = vst.msk [vmem:[#allocation2 + $0x41] sm:$0xff] %vm2459_vm1, %v4362_v54  ;;  %v2428_v8 = vmax.f32 %v2111_v31, 0.0  ;;  %8810 = vmatmul.msk.f32.gmra.mxu0 %vm649_vm0, %v461_v6  ;;  %v10755_v26 = vld [vmem:[#allocation2 + $0x211] sm:$0xff]  ;;  %v2261_v32 = vmax.f32 %v1610_v50, 0.0  ;;  %v4145_v13 = vrot.slane %v4144_v30, 1  ;;  %v2861_v50 = vmax.f32 %v2859_v5, %v2860_v48 }
 0x262   : > { %15073 = vst [vmem:[#allocation15_spill] sm:$0xff] %v10753_v29  ;;  %v4152_v31 = vrot.slane %v4151_v36, 1  ;;  %v4157_v19 = vrot.slane %v4156_v47, 2  ;;  %v2447_v22 = vmax.f32 %v2168_v14, 0.0  ;;  %v4163_v12 = vmax.f32 %v4161_v33, %v4162_v59 }
 0x263   : > { %15074 = vst [vmem:[#allocation16_spill] sm:$0xff] %v10755_v26  ;;  %v4035_v46 = vsel %vm2459_vm1, %v2428_v8, -inf  ;;  %v2866_v44 = vsel %vm2459_vm1, %v2261_v32, -inf  ;;  %v2173_v4 = vpop.f32.mrf.mxu3  ;;  %v640_v8 = vld [vmem:[%s9802_s26 + $0x7e8] sm:$0xff]  ;;  %v10776_v27 = vmax.f32 %v4074_v63, %v4075_v37  ;;  %v10778_v53 = vmax.f32 %v4079_v51, %v4080_v52  ;;  %v463_v51 = vld [vmem:[%s9802_s26 + $0x260] sm:$0xff] }
 0x264   : > { %7535 = vst.msk [vmem:[#allocation2 + $0x218] sm:$0x1] %vm4253_vm2, %v14902_v40  ;;  %v4036_v24 = vrot.slane %v4035_v46, 4  ;;  %v2867_v17 = vrot.slane %v2866_v44, 4  ;;  %v4032_v32 = vmax.f32 %v4030_v62, %v4031_v3  ;;  %8989 = vmatmul.msk.f32.gmra.mxu3 %vm649_vm0, %v640_v8  ;;  %v10781_v41 = vmax.f32 %v2854_v28, %v2855_v7 }
 0x265   : > { %v4168_v23 = vsel %vm2459_vm1, %v2447_v22, -inf  ;;  %v4146_v33 = vmax.f32 %v4144_v30, %v4145_v13  ;;  %v4153_v39 = vmax.f32 %v4151_v36, %v4152_v31  ;;  %v4158_v63 = vmax.f32 %v4156_v47, %v4157_v19  ;;  %v641_v31 = vld [vmem:[%s9802_s26 + $0x7f0] sm:$0xff] }
 0x266   : > { %v1612_v20 = vpop.f32.mrf.mxu0  ;;  %v2113_v61 = vpop.f32.mrf.mxu1  ;;  %v4037_v56 = vmax.f32 %v4035_v46, %v4036_v24  ;;  %v2868_v5 = vmax.f32 %v2866_v44, %v2867_v17  ;;  %v2862_v24 = vrot.slane %v2861_v50, 2  ;;  %9011 = vmatmul.msk.f32.gmra.mxu2 %vm2459_vm1, %v4858_v10  ;;  %v4164_v28 = vrot.slane %v4163_v12, 2 }
 0x267   : > { %v1613_v49 = vadd.f32 %v10658_v38, %v1612_v20  ;;  %v2114_v16 = vadd.f32 %v10658_v38, %v2113_v61  ;;  %v4169_v61 = vrot.slane %v4168_v23, 4  ;;  %v4082_v44 = vrot.slane %v10778_v53, 1 }
 0x268   : > { %v4038_v43 = vrot.slane %v4037_v56, 2  ;;  %v2869_v59 = vrot.slane %v2868_v5, 2  ;;  %v2857_v52 = vrot.slane %v10781_v41, 1  ;;  %v4159_v7 = vrot.slane %v4158_v63, 1 }
 0x269   : > { %v2262_v6 = vmax.f32 %v1613_v49, 0.0  ;;  %v2429_v15 = vmax.f32 %v2114_v16, 0.0  ;;  %8811 = vmatmul.msk.f32.gmra.mxu0 %vm649_vm0, %v462_v58  ;;  %v4033_v58 = vrot.slane %v4032_v32, 1  ;;  %v4170_v47 = vmax.f32 %v4168_v23, %v4169_v61 }
 0x26a   : > { %v4039_v62 = vmax.f32 %v4037_v56, %v4038_v43  ;;  %v10792_v56 = vmax.f32 %v2861_v50, %v2862_v24  ;;  %v2171_v3 = vadd.f32 %v10658_v38, %v10761_v42  ;;  %v4377_v13 = vsel %vm4328_vm3, %v4153_v39, %v4146_v33  ;;  %v9023_v50 = vld [vmem:[%s14893_s3 + $0xb8] sm:$0xff]  ;;  %v464_v39 = vld [vmem:[%s9802_s26 + $0x268] sm:$0xff] }
 0x26b   : > { %v4042_v54 = vsel %vm2459_vm1, %v2429_v15, -inf  ;;  %v2873_v46 = vsel %vm2459_vm1, %v2262_v6, -inf  ;;  %v4165_v6 = vmax.f32 %v4163_v12, %v4164_v28  ;;  %v2176_v15 = vpop.f32.mrf.mxu3  ;;  %v4034_v42 = vmax.f32 %v4032_v32, %v4033_v58  ;;  %5067 = vmatpush.msrb.mxu3 %v9023_v50  ;;  %v4859_v12 = vld [vmem:[#allocation2 + $0x40] sm:$0xff]  ;;  %v9022_v32 = vld [vmem:[%s14893_s3 + $0xb0] sm:$0xff] }
 0x26c   : > { %v4043_v45 = vrot.slane %v4042_v54, 4  ;;  %v2874_v49 = vrot.slane %v2873_v46, 4  ;;  %v4040_v14 = vrot.slane %v4039_v62, 1  ;;  %8990 = vmatmul.msk.f32.gmra.mxu3 %vm649_vm0, %v641_v31  ;;  %v10803_v8 = vmax.f32 %v2868_v5, %v2869_v59 }
 0x26d   : > { %v2448_v23 = vmax.f32 %v2171_v3, 0.0  ;;  %v4160_v10 = vmax.f32 %v4158_v63, %v4159_v7  ;;  %5068 = vmatpush.msrb.mxu3 %v9022_v32  ;;  %v4166_v58 = vrot.slane %v4165_v6, 1  ;;  %v465_v32 = vld [vmem:[%s9802_s26 + $0x270] sm:$0xff] }
 0x26e   : > { %v1615_v37 = vpop.f32.mrf.mxu0  ;;  %v2116_v48 = vpop.f32.mrf.mxu1  ;;  %v4044_v16 = vmax.f32 %v4042_v54, %v4043_v45  ;;  %v2875_v19 = vmax.f32 %v2873_v46, %v2874_v49  ;;  %v4171_v54 = vrot.slane %v4170_v47, 2  ;;  %9012 = vmatmul.msk.f32.gmra.mxu2 %vm2459_vm1, %v4859_v12  ;;  %v4041_v5 = vmax.f32 %v4039_v62, %v4040_v14  ;;  %v9021_v49 = vld [vmem:[%s14893_s3 + $0xa8] sm:$0xff] }
 0x26f   : > { %v2117_v20 = vadd.f32 %v10658_v38, %v2116_v48  ;;  %v1616_v30 = vadd.f32 %v10658_v38, %v1615_v37  ;;  %v2174_v37 = vadd.f32 %v10658_v38, %v2173_v4  ;;  %v2177_v48 = vadd.f32 %v10658_v38, %v2176_v15  ;;  %5069 = vmatpush.msrb.mxu3 %v9021_v49 }
 0x270   : > { %v4045_v22 = vrot.slane %v4044_v16, 2  ;;  %v4175_v63 = vsel %vm2459_vm1, %v2448_v23, -inf  ;;  %v2876_v28 = vrot.slane %v2875_v19, 2  ;;  %v4172_v4 = vmax.f32 %v4170_v47, %v4171_v54  ;;  %v9020_v47 = vld [vmem:[%s14893_s3 + $0xa0] sm:$0xff]  ;;  %v9019_v23 = vld [vmem:[%s14893_s3 + $0x98] sm:$0xff] }
 0x271   : > { %v2430_v36 = vmax.f32 %v2117_v20, 0.0  ;;  %8812 = vmatmul.msk.f32.gmra.mxu0 %vm649_vm0, %v463_v51  ;;  %v2263_v45 = vmax.f32 %v1616_v30, 0.0  ;;  %v4378_v7 = vsel %vm4330_vm4, %v4160_v10, %v4377_v13  ;;  %v2449_v14 = vmax.f32 %v2174_v37, 0.0  ;;  %5070 = vmatpush.msrb.mxu3 %v9020_v47 }
 0x272   : > { %v4046_v61 = vmax.f32 %v4044_v16, %v4045_v22  ;;  %v2450_v16 = vmax.f32 %v2177_v48, 0.0  ;;  %v4167_v13 = vmax.f32 %v4165_v6, %v4166_v58 }
 0x273   : > { %v4049_v17 = vsel %vm2459_vm1, %v2430_v36, -inf  ;;  %v2880_v59 = vsel %vm2459_vm1, %v2263_v45, -inf  ;;  %v4176_v36 = vrot.slane %v4175_v63, 4  ;;  %v4173_v45 = vrot.slane %v4172_v4, 1  ;;  %5071 = vmatpush.msrb.mxu3 %v9019_v23 }
 0x274   : > { %v4050_v43 = vrot.slane %v4049_v17, 4  ;;  %v2881_v54 = vrot.slane %v2880_v59, 4  ;;  %v4047_v12 = vrot.slane %v4046_v61, 1 }
 0x275   : > { %v4177_v22 = vmax.f32 %v4175_v63, %v4176_v36 }
 0x276   : > { %v4051_v24 = vmax.f32 %v4049_v17, %v4050_v43  ;;  %v1618_v46 = vpop.f32.mrf.mxu0  ;;  %v2119_v33 = vpop.f32.mrf.mxu1  ;;  %v10825_v17 = vsel %vm4328_vm3, %v4041_v5, %v4034_v42  ;;  %v642_v43 = vld [vmem:[%s9802_s26 + $0x7f8] sm:$0xff]  ;;  %v10834_v42 = vmax.f32 %v2875_v19, %v2876_v28  ;;  %v4189_v5 = vsel %vm2459_vm1, %v2450_v16, -inf }
 0x277   : > { %v1619_v51 = vadd.f32 %v10658_v38, %v1618_v46  ;;  %v2120_v20 = vadd.f32 %v10658_v38, %v2119_v33  ;;  %8991 = vmatmul.msk.f32.gmra.mxu3 %vm649_vm0, %v642_v43  ;;  %v4178_v10 = vrot.slane %v4177_v22, 2  ;;  %v4182_v46 = vsel %vm2459_vm1, %v2449_v14, -inf }
 0x278   : > { %v4052_v3 = vrot.slane %v4051_v24, 2  ;;  %v4183_v28 = vrot.slane %v4182_v46, 4  ;;  %v2882_v58 = vmax.f32 %v2880_v59, %v2881_v54  ;;  %v4190_v43 = vrot.slane %v4189_v5, 4  ;;  %v9016_v59 = vld [vmem:[%s14893_s3 + $0x80] sm:$0xff] }
 0x279   : > { %v2264_v30 = vmax.f32 %v1619_v51, 0.0  ;;  %v2431_v62 = vmax.f32 %v2120_v20, 0.0  ;;  %8813 = vmatmul.msk.f32.gmra.mxu0 %vm649_vm0, %v464_v39  ;;  %v9018_v51 = vld [vmem:[%s14893_s3 + $0x90] sm:$0xff]  ;;  %v4179_v63 = vmax.f32 %v4177_v22, %v4178_v10 }
 0x27a   : > { %v4053_v33 = vmax.f32 %v4051_v24, %v4052_v3  ;;  %5072 = vmatpush.msrb.mxu3 %v9018_v51  ;;  %v4379_v24 = vsel %vm4332_vm5, %v4167_v13, %v4378_v7  ;;  %v4184_v16 = vmax.f32 %v4182_v46, %v4183_v28 }
 0x27b   : > { %v2887_v15 = vsel %vm2459_vm1, %v2264_v30, -inf  ;;  %v4056_v31 = vsel %vm2459_vm1, %v2431_v62, -inf  ;;  %v4174_v30 = vmax.f32 %v4172_v4, %v4173_v45  ;;  %v9017_v62 = vld [vmem:[%s14893_s3 + $0x88] sm:$0xff]  ;;  %v4180_v14 = vrot.slane %v4179_v63, 1 }
 0x27c   : > { %v4057_v50 = vrot.slane %v4056_v31, 4  ;;  %v2888_v39 = vrot.slane %v2887_v15, 4  ;;  %5073 = vmatpush.msrb.mxu3 %v9017_v62  ;;  %v4054_v47 = vrot.slane %v4053_v33, 1  ;;  %v4048_v4 = vmax.f32 %v4046_v61, %v4047_v12 }
 0x27d   : > { %v4185_v13 = vrot.slane %v4184_v16, 2  ;;  %v2883_v45 = vrot.slane %v2882_v58, 2  ;;  %v4380_v12 = vsel %vm4334_vm6, %v4174_v30, %v4379_v24 }
 0x27e   : > { %v4058_v37 = vmax.f32 %v4056_v31, %v4057_v50  ;;  %v1621_v48 = vpop.f32.mrf.mxu0  ;;  %v2122_v6 = vpop.f32.mrf.mxu1  ;;  %v2889_v31 = vmax.f32 %v2887_v15, %v2888_v39  ;;  %5074 = vmatpush.msrb.mxu3 %v9016_v59  ;;  %v10854_v50 = vld [vmem:[#allocation2 + $0x1] sm:$0xff]  ;;  %v4181_v15 = vmax.f32 %v4179_v63, %v4180_v14  ;;  %v4191_v39 = vmax.f32 %v4189_v5, %v4190_v43 }
 0x27f   : > { %v1622_v19 = vadd.f32 %v10658_v38, %v1621_v48  ;;  %v2123_v20 = vadd.f32 %v10658_v38, %v2122_v6  ;;  %15075 = vst [vmem:[#allocation17_spill] sm:$0xff] %v10854_v50  ;;  %9024 = vmatmul.msk.f32.vlgmr.msrb.gmra.mxu3 %vm2459_vm1, %v10854_v50  ;;  %v4186_v46 = vmax.f32 %v4184_v16, %v4185_v13 }
 0x280   : > { %v4059_v49 = vrot.slane %v4058_v37, 2  ;;  %7470 = vst.msk [vmem:[#allocation2] sm:$0xff] %vm2459_vm1, %v14902_v40  ;;  %v2890_v48 = vrot.slane %v2889_v31, 2  ;;  %v4364_v63 = vsel %vm4330_vm4, %v4048_v4, %v10825_v17  ;;  %v4192_v24 = vrot.slane %v4191_v39, 2  ;;  %v9053_v4 = vld [vmem:[%s14893_s3 + $0x128] sm:$0xff] }
 0x281   : > { %v2265_v36 = vmax.f32 %v1622_v19, 0.0  ;;  %v2432_v3 = vmax.f32 %v2123_v20, 0.0  ;;  %8814 = vmatmul.msk.f32.gmra.mxu0 %vm649_vm0, %v465_v32  ;;  %7471 = vst.msk [vmem:[#allocation2 + $0x8] sm:$0x1] %vm4253_vm2, %v14902_v40  ;;  %v466_v19 = vld [vmem:[%s9802_s26 + $0x278] sm:$0xff]  ;;  %v4187_v28 = vrot.slane %v4186_v46, 1  ;;  %v4381_v62 = vsel %vm4336_vm7, %v4181_v15, %v4380_v12 }
 0x282   : > { %v4060_v22 = vmax.f32 %v4058_v37, %v4059_v49  ;;  %v4055_v37 = vmax.f32 %v4053_v33, %v4054_v47  ;;  %7472 = vst.msk [vmem:[#allocation2] sm:$0x1] %vm4253_vm2, %v14902_v40  ;;  %v9055_v20 = vld [vmem:[%s14893_s3 + $0x138] sm:$0xff]  ;;  %v2884_v33 = vmax.f32 %v2882_v58, %v2883_v45  ;;  %v4193_v17 = vmax.f32 %v4191_v39, %v4192_v24 }
 0x283   : > { %v2894_v7 = vsel %vm2459_vm1, %v2265_v36, -inf  ;;  %v4063_v54 = vsel %vm2459_vm1, %v2432_v3, -inf  ;;  %5247 = vmatpush.msrb.mxu2 %v9055_v20  ;;  %v9054_v36 = vld [vmem:[%s14893_s3 + $0x130] sm:$0xff]  ;;  %v4188_v16 = vmax.f32 %v4186_v46, %v4187_v28  ;;  %v2864_v47 = vrot.slane %v10792_v56, 1  ;;  %v467_v20 = vld [vmem:[%s9802_s26 + $0x280] sm:$0xff] }
 0x284   : > { %v2895_v23 = vrot.slane %v2894_v7, 4  ;;  %v4064_v10 = vrot.slane %v4063_v54, 4  ;;  %v4061_v61 = vrot.slane %v4060_v22, 1  ;;  %v4365_v43 = vsel %vm4332_vm5, %v4055_v37, %v4364_v63  ;;  %v5019_v45 = vld [vmem:[#allocation2 + $0x11] sm:$0xff] }
 0x285   : > { %5248 = vmatpush.msrb.mxu2 %v9054_v36  ;;  %v2891_v58 = vmax.f32 %v2889_v31, %v2890_v48  ;;  %v4194_v13 = vrot.slane %v4193_v17, 1  ;;  %v4382_v31 = vsel %vm4338_vm8, %v4188_v16, %v4381_v62  ;;  %v4083_v12 = vmax.f32 %v10778_v53, %v4082_v44  ;;  %v9051_v63 = vld [vmem:[%s14893_s3 + $0x118] sm:$0xff] }
 0x286   : > { %v2896_v6 = vmax.f32 %v2894_v7, %v2895_v23  ;;  %v4065_v32 = vmax.f32 %v4063_v54, %v4064_v10  ;;  %v1624_v51 = vpop.f32.mrf.mxu0  ;;  %v4062_v3 = vmax.f32 %v4060_v22, %v4061_v61  ;;  %v2871_v7 = vrot.slane %v10803_v8, 1  ;;  %v9052_v61 = vld [vmem:[%s14893_s3 + $0x120] sm:$0xff] }
 0x287   : > { %v1625_v5 = vadd.f32 %v10658_v38, %v1624_v51  ;;  %5249 = vmatpush.msrb.mxu2 %v9053_v4  ;;  %v2878_v23 = vrot.slane %v10834_v42, 1  ;;  %9025 = vmatmul.msk.f32.gmra.mxu3 %vm2459_vm1, %v5019_v45  ;;  %v2885_v46 = vrot.slane %v2884_v33, 1  ;;  %v4195_v37 = vmax.f32 %v4193_v17, %v4194_v13  ;;  %v5021_v45 = vld [vmem:[#allocation2 + $0x31] sm:$0xff] }
 0x288   : > { %v2897_v49 = vrot.slane %v2896_v6, 2  ;;  %v4066_v30 = vrot.slane %v4065_v32, 2  ;;  %v4366_v39 = vsel %vm4334_vm6, %v4062_v3, %v4365_v43  ;;  %v2865_v48 = vmax.f32 %v10792_v56, %v2864_v47  ;;  %v9049_v3 = vld [vmem:[%s14893_s3 + $0x108] sm:$0xff]  ;;  %v9048_v47 = vld [vmem:[%s14893_s3 + $0x100] sm:$0xff] }
 0x289   : > { %v2266_v14 = vmax.f32 %v1625_v5, 0.0  ;;  %8815 = vmatmul.msk.f32.gmra.mxu0 %vm649_vm0, %v466_v19  ;;  %5250 = vmatpush.msrb.mxu2 %v9052_v61  ;;  %v2872_v5 = vmax.f32 %v10803_v8, %v2871_v7  ;;  %v4383_v44 = vsel %vm4340_vm9, %v4195_v37, %v4382_v31  ;;  %v2858_v56 = vmax.f32 %v10781_v41, %v2857_v52  ;;  %v468_v7 = vld [vmem:[%s9802_s26 + $0x288] sm:$0xff] }
 0x28a   : > { %v4067_v59 = vmax.f32 %v4065_v32, %v4066_v30  ;;  %v2898_v54 = vmax.f32 %v2896_v6, %v2897_v49  ;;  %v2892_v6 = vrot.slane %v2891_v58, 1  ;;  %v2879_v28 = vmax.f32 %v10834_v42, %v2878_v23  ;;  %4406 = vst.msk [vmem:[#allocation2 + $0x71] sm:$0xff] %vm2459_vm1, %v4383_v44  ;;  %v9050_v30 = vld [vmem:[%s14893_s3 + $0x110] sm:$0xff] }
 0x28b   : > { %v2901_v22 = vsel %vm2459_vm1, %v2266_v14, -inf  ;;  %5251 = vmatpush.msrb.mxu2 %v9051_v63  ;;  %v2886_v8 = vmax.f32 %v2884_v33, %v2885_v46  ;;  %v4832_v41 = vsel %vm4328_vm3, %v2865_v48, %v2858_v56  ;;  %v5198_v44 = vld [vmem:[#allocation2 + $0x1b0] sm:$0xff] }
 0x28c   : > { %v4068_v10 = vrot.slane %v4067_v59, 1  ;;  %v2902_v15 = vrot.slane %v2901_v22, 4  ;;  %v2899_v53 = vrot.slane %v2898_v54, 1  ;;  %v2893_v52 = vmax.f32 %v2891_v58, %v2892_v6 }
 0x28d   : > { %5252 = vmatpush.msrb.mxu2 %v9050_v30  ;;  %v4833_v14 = vsel %vm4330_vm4, %v2872_v5, %v4832_v41  ;;  %v472_v41 = vld [vmem:[%s9802_s26 + $0x2a8] sm:$0xff] }
 0x28e   : > { %v4069_v32 = vmax.f32 %v4067_v59, %v4068_v10  ;;  %v2903_v51 = vmax.f32 %v2901_v22, %v2902_v15  ;;  %v10895_v19 = vpop.f32.mrf.mxu0  ;;  %v2900_v33 = vmax.f32 %v2898_v54, %v2899_v53  ;;  %v4834_v16 = vsel %vm4332_vm5, %v2879_v28, %v4833_v14  ;;  %v469_v10 = vld [vmem:[%s9802_s26 + $0x290] sm:$0xff]  ;;  %v4861_v15 = vld [vmem:[#allocation2 + $0x60] sm:$0xff]  ;;  %v9069_v14 = vld [vmem:[%s14893_s3 + $0x168] sm:$0xff] }
 0x28f   : > { %5253 = vmatpush.msrb.mxu2 %v9049_v3  ;;  %v4835_v43 = vsel %vm4334_vm6, %v2886_v8, %v4834_v16  ;;  %v1628_v63 = vadd.f32 %v10658_v38, %v10895_v19  ;;  %v5024_v28 = vld [vmem:[#allocation2 + $0x61] sm:$0xff] }
 0x290   : > { %v4367_v24 = vsel %vm4336_vm7, %v4069_v32, %v4366_v39  ;;  %v2904_v49 = vrot.slane %v2903_v51, 2  ;;  %v4836_v58 = vsel %vm4336_vm7, %v2893_v52, %v4835_v43  ;;  %v470_v39 = vld [vmem:[%s9802_s26 + $0x298] sm:$0xff]  ;;  %v471_v32 = vld [vmem:[%s9802_s26 + $0x2a0] sm:$0xff]  ;;  %v9070_v52 = vld [vmem:[%s14893_s3 + $0x170] sm:$0xff] }
 0x291   : > { %v4368_v62 = vsel %vm4338_vm8, %v10776_v27, %v4367_v24  ;;  %8816 = vmatmul.msk.f32.gmra.mxu0 %vm649_vm0, %v467_v20  ;;  %v5020_v27 = vld [vmem:[#allocation2 + $0x21] sm:$0xff]  ;;  %5254 = vmatpush.msrb.mxu2 %v9048_v47  ;;  %v4837_v54 = vsel %vm4338_vm8, %v2900_v33, %v4836_v58  ;;  %v4862_v37 = vld [vmem:[#allocation2 + $0x70] sm:$0xff]  ;;  %v2267_v19 = vmax.f32 %v1628_v63, 0.0 }
 0x292   : > { %v4369_v42 = vsel %vm4340_vm9, %v4083_v12, %v4368_v62  ;;  %v2905_v36 = vmax.f32 %v2903_v51, %v2904_v49  ;;  %9026 = vmatmul.msk.f32.gmra.mxu3 %vm2459_vm1, %v5020_v27  ;;  %v5022_v12 = vld [vmem:[#allocation2 + $0x41] sm:$0xff]  ;;  %v9071_v49 = vld [vmem:[%s14893_s3 + $0x178] sm:$0xff] }
 0x293   : > { %4404 = vst.msk [vmem:[#allocation2 + $0x51] sm:$0xff] %vm2459_vm1, %v4369_v42  ;;  %5337 = vmatpush.msra.mxu3 %v9071_v49  ;;  %v2908_v33 = vsel %vm2459_vm1, %v2267_v19, -inf  ;;  %v5199_v43 = vld [vmem:[#allocation2 + $0x1c0] sm:$0xff] }
 0x294   : > { %v2906_v17 = vrot.slane %v2905_v36, 1  ;;  %v9068_v58 = vld [vmem:[%s14893_s3 + $0x160] sm:$0xff] }
 0x295   : > { %5338 = vmatpush.msra.mxu3 %v9070_v52  ;;  %v474_v52 = vld [vmem:[%s9802_s26 + $0x2b8] sm:$0xff] }
 0x296   : > { %v2907_v59 = vmax.f32 %v2905_v36, %v2906_v17  ;;  %v1630_v4 = vpop.f32.mrf.mxu0 }
 0x297   : > { %v1631_v51 = vadd.f32 %v10658_v38, %v1630_v4  ;;  %5339 = vmatpush.msra.mxu3 %v9069_v14 }
 0x298   : > { %v4838_v22 = vsel %vm4340_vm9, %v2907_v59, %v4837_v54  ;;  %v2909_v54 = vrot.slane %v2908_v33, 4 }
 0x299   : > { %4854 = vst.msk [vmem:[#allocation2 + $0x220] sm:$0xff] %vm2459_vm1, %v4838_v22  ;;  %8817 = vmatmul.msk.f32.gmra.mxu0 %vm649_vm0, %v468_v7  ;;  %v2268_v56 = vmax.f32 %v1631_v51, 0.0  ;;  %5340 = vmatpush.msra.mxu3 %v9068_v58  ;;  %v5025_v7 = vld [vmem:[#allocation2 + $0x71] sm:$0xff] }
 0x29a   : > { %v4860_v13 = vld [vmem:[#allocation2 + $0x50] sm:$0xff]  ;;  %9027 = vmatmul.msk.f32.gmra.mxu3 %vm2459_vm1, %v5021_v45 }
 0x29b   : > { %9013 = vmatmul.msk.f32.gmra.mxu2 %vm2459_vm1, %v4860_v13  ;;  %v5023_v48 = vld [vmem:[#allocation2 + $0x51] sm:$0xff]  ;;  %v2915_v42 = vsel %vm2459_vm1, %v2268_v56, -inf }
 0x29c   : > { %v2916_v17 = vrot.slane %v2915_v42, 4  ;;  %v9067_v13 = vld [vmem:[%s14893_s3 + $0x158] sm:$0xff] }
 0x29d   : > { %5341 = vmatpush.msra.mxu3 %v9067_v13 }
 0x29e   : > { %v1633_v23 = vpop.f32.mrf.mxu0 }
 0x29f   : > { %v1634_v20 = vadd.f32 %v10658_v38, %v1633_v23  ;;  %v2917_v23 = vmax.f32 %v2915_v42, %v2916_v17 }
 0x2a0   : > { %v10938_v31 = vld [vmem:[#allocation2 + $0x221] sm:$0xff] }
 0x2a1   : > { %8818 = vmatmul.msk.f32.gmra.mxu0 %vm649_vm0, %v469_v10  ;;  %15076 = vst [vmem:[#allocation18_spill] sm:$0xff] %v10938_v31  ;;  %v10940_v61 = vld [vmem:[#allocation2 + $0x221] sm:$0xff]  ;;  %v2269_v24 = vmax.f32 %v1634_v20, 0.0  ;;  %v2918_v63 = vrot.slane %v2917_v23, 2 }
 0x2a2   : > { %15077 = vst [vmem:[#allocation19_spill] sm:$0xff] %v10940_v61  ;;  %9028 = vmatmul.msk.f32.gmra.mxu3 %vm2459_vm1, %v5022_v12  ;;  %v473_v12 = vld [vmem:[%s9802_s26 + $0x2b0] sm:$0xff] }
 0x2a3   : > { %7536 = vst.msk [vmem:[#allocation2 + $0x228] sm:$0x1] %vm4253_vm2, %v14902_v40  ;;  %9014 = vmatmul.msk.f32.gmra.mxu2 %vm2459_vm1, %v4861_v15  ;;  %v2922_v3 = vsel %vm2459_vm1, %v2269_v24, -inf }
 0x2a4   : > { %v2923_v59 = vrot.slane %v2922_v3, 4 }
 0x2a6   : > { %v1636_v46 = vpop.f32.mrf.mxu0 }
 0x2a7   : > { %v1637_v5 = vadd.f32 %v10658_v38, %v1636_v46  ;;  %v9066_v46 = vld [vmem:[%s14893_s3 + $0x150] sm:$0xff] }
 0x2a8   : > { %5342 = vmatpush.msra.mxu3 %v9066_v46 }
 0x2a9   : > { %8819 = vmatmul.msk.f32.gmra.mxu0 %vm649_vm0, %v470_v39  ;;  %v2270_v30 = vmax.f32 %v1637_v5, 0.0  ;;  %v2924_v39 = vmax.f32 %v2922_v3, %v2923_v59  ;;  %v5201_v59 = vld [vmem:[#allocation2 + $0x1e0] sm:$0xff] }
 0x2aa   : > { %9029 = vmatmul.msk.f32.gmra.mxu3 %vm2459_vm1, %v5023_v48  ;;  %v2910_v48 = vmax.f32 %v2908_v33, %v2909_v54 }
 0x2ab   : > { %9015 = vmatmul.msk.f32.gmra.mxu2 %vm2459_vm1, %v4862_v37  ;;  %v2929_v27 = vsel %vm2459_vm1, %v2270_v30, -inf  ;;  %v2919_v30 = vmax.f32 %v2917_v23, %v2918_v63 }
 0x2ac   : > { %v2930_v22 = vrot.slane %v2929_v27, 4 }
 0x2ae   : > { %v1639_v6 = vpop.f32.mrf.mxu0 }
 0x2af   : > { %v1640_v53 = vadd.f32 %v10658_v38, %v1639_v6  ;;  %v2931_v6 = vmax.f32 %v2929_v27, %v2930_v22 }
 0x2b1   : > { %8820 = vmatmul.msk.f32.gmra.mxu0 %vm649_vm0, %v471_v32  ;;  %v2271_v8 = vmax.f32 %v1640_v53, 0.0  ;;  %v9065_v32 = vld [vmem:[%s14893_s3 + $0x148] sm:$0xff]  ;;  %v5200_v53 = vld [vmem:[#allocation2 + $0x1d0] sm:$0xff]  ;;  %v2932_v24 = vrot.slane %v2931_v6, 2 }
 0x2b2   : > { %9030 = vmatmul.msk.f32.gmra.mxu3 %vm2459_vm1, %v5024_v28  ;;  %v2911_v28 = vrot.slane %v2910_v48, 2 }
 0x2b3   : > { %9056 = vmatmul.msk.f32.vlgmr.msrb.gmra.mxu2 %vm2459_vm1, %v5198_v44  ;;  %v2936_v47 = vsel %vm2459_vm1, %v2271_v8, -inf  ;;  %5343 = vmatpush.msra.mxu3 %v9065_v32  ;;  %v2925_v44 = vrot.slane %v2924_v39, 2  ;;  %v2933_v27 = vmax.f32 %v2931_v6, %v2932_v24 }
 0x2b4   : > { %v2937_v45 = vrot.slane %v2936_v47, 4  ;;  %v2912_v33 = vmax.f32 %v2910_v48, %v2911_v28 }
 0x2b5   : > { %v2926_v42 = vmax.f32 %v2924_v39, %v2925_v44  ;;  %v2934_v13 = vrot.slane %v2933_v27, 1  ;;  %v475_v39 = vld [vmem:[%s9802_s26 + $0x2c0] sm:$0xff]  ;;  %v5202_v44 = vld [vmem:[#allocation2 + $0x1f0] sm:$0xff] }
 0x2b6   : > { %v1642_v62 = vpop.f32.mrf.mxu0  ;;  %v2938_v51 = vmax.f32 %v2936_v47, %v2937_v45  ;;  %v2913_v22 = vrot.slane %v2912_v33, 1 }
 0x2b7   : > { %v1643_v36 = vadd.f32 %v10658_v38, %v1642_v62 }
 0x2b8   : > { %v2939_v19 = vrot.slane %v2938_v51, 2  ;;  %v2914_v32 = vmax.f32 %v2912_v33, %v2913_v22  ;;  %v5203_v33 = vld [vmem:[#allocation2 + $0x200] sm:$0xff] }
 0x2b9   : > { %v2272_v16 = vmax.f32 %v1643_v36, 0.0  ;;  %8821 = vmatmul.msk.f32.gmra.mxu0 %vm649_vm0, %v472_v41  ;;  %v11004_v36 = vld [vmem:[%s14892_s2] ss:$0 sm:$0xff] }
 0x2ba   : > { %9031 = vmatmul.msk.f32.gmra.mxu3 %vm2459_vm1, %v5025_v7  ;;  %v2940_v17 = vmax.f32 %v2938_v51, %v2939_v19  ;;  %v2935_v51 = vmax.f32 %v2933_v27, %v2934_v13 }
 0x2bb   : > { %v2943_v4 = vsel %vm2459_vm1, %v2272_v16, -inf  ;;  %9057 = vmatmul.msk.f32.gmra.mxu2 %vm2459_vm1, %v5199_v43  ;;  %v2179_v14 = vpop.f32.mrf.mxu3  ;;  %v2920_v43 = vrot.slane %v2919_v30, 1 }
 0x2bc   : > { %v2944_v10 = vrot.slane %v2943_v4, 4  ;;  %v2941_v23 = vrot.slane %v2940_v17, 1 }
 0x2be   : > { %v1645_v15 = vpop.f32.mrf.mxu0  ;;  %v2945_v5 = vmax.f32 %v2943_v4, %v2944_v10  ;;  %v2927_v4 = vrot.slane %v2926_v42, 1  ;;  %v2921_v10 = vmax.f32 %v2919_v30, %v2920_v43  ;;  %v2942_v63 = vmax.f32 %v2940_v17, %v2941_v23 }
 0x2bf   : > { %v1646_v37 = vadd.f32 %v10658_v38, %v1645_v15  ;;  %v9064_v38 = vld [vmem:[%s14893_s3 + $0x140] sm:$0xff]  ;;  %v2180_v43 = vadd.f32 %v11004_v36, %v2179_v14  ;;  %v478_v14 = vld [vmem:[%s9802_s26 + $0x2d8] sm:$0xff] }
 0x2c0   : > { %5344 = vmatpush.msra.mxu3 %v9064_v38  ;;  %v2946_v8 = vrot.slane %v2945_v5, 2 }
 0x2c1   : > { %v2273_v20 = vmax.f32 %v1646_v37, 0.0  ;;  %8822 = vmatmul.msk.f32.gmra.mxu0 %vm649_vm0, %v473_v12  ;;  %v2928_v37 = vmax.f32 %v2926_v42, %v2927_v4  ;;  %v5204_v4 = vld [vmem:[#allocation2 + $0x210] sm:$0xff] }
 0x2c2   : > { %v2947_v58 = vmax.f32 %v2945_v5, %v2946_v8  ;;  %v4634_v5 = vsel %vm4328_vm3, %v2921_v10, %v2914_v32 }
 0x2c3   : > { %v2950_v56 = vsel %vm2459_vm1, %v2273_v20, -inf  ;;  %9058 = vmatmul.msk.f32.gmra.mxu2 %vm2459_vm1, %v5200_v53  ;;  %v2182_v6 = vpop.f32.mrf.mxu3 }
 0x2c4   : > { %v2951_v49 = vrot.slane %v2950_v56, 4  ;;  %v2948_v15 = vrot.slane %v2947_v58, 1 }
 0x2c6   : > { %v2952_v62 = vmax.f32 %v2950_v56, %v2951_v49  ;;  %v1648_v41 = vpop.f32.mrf.mxu0  ;;  %v2949_v53 = vmax.f32 %v2947_v58, %v2948_v15  ;;  %v4635_v56 = vsel %vm4330_vm4, %v2928_v37, %v4634_v5 }
 0x2c7   : > { %v1649_v3 = vadd.f32 %v11004_v36, %v1648_v41  ;;  %v4636_v24 = vsel %vm4332_vm5, %v2935_v51, %v4635_v56  ;;  %v476_v41 = vld [vmem:[%s9802_s26 + $0x2c8] sm:$0xff] }
 0x2c8   : > { %v2953_v16 = vrot.slane %v2952_v62, 2  ;;  %v4637_v19 = vsel %vm4334_vm6, %v2942_v63, %v4636_v24  ;;  %v479_v63 = vld [vmem:[%s9802_s26 + $0x2e0] sm:$0xff] }
 0x2c9   : > { %v2274_v47 = vmax.f32 %v1649_v3, 0.0  ;;  %8823 = vmatmul.msk.f32.gmra.mxu0 %vm649_vm0, %v474_v52  ;;  %v4638_v30 = vsel %vm4336_vm7, %v2949_v53, %v4637_v19 }
 0x2ca   : > { %v2954_v7 = vmax.f32 %v2952_v62, %v2953_v16  ;;  %v477_v16 = vld [vmem:[%s9802_s26 + $0x2d0] sm:$0xff] }
 0x2cb   : > { %v2957_v54 = vsel %vm2459_vm1, %v2274_v47, -inf  ;;  %9059 = vmatmul.msk.f32.gmra.mxu2 %vm2459_vm1, %v5201_v59  ;;  %v2185_v42 = vpop.f32.mrf.mxu3  ;;  %v2183_v59 = vadd.f32 %v11004_v36, %v2182_v6 }
 0x2cc   : > { %v2958_v45 = vrot.slane %v2957_v54, 4  ;;  %v2955_v48 = vrot.slane %v2954_v7, 1 }
 0x2ce   : > { %v2959_v12 = vmax.f32 %v2957_v54, %v2958_v45  ;;  %v1651_v46 = vpop.f32.mrf.mxu0  ;;  %v2956_v28 = vmax.f32 %v2954_v7, %v2955_v48  ;;  %v2451_v7 = vmax.f32 %v2180_v43, 0.0  ;;  %v2452_v54 = vmax.f32 %v2183_v59, 0.0 }
 0x2cf   : > { %v1652_v22 = vadd.f32 %v11004_v36, %v1651_v46  ;;  %v2186_v45 = vadd.f32 %v11004_v36, %v2185_v42 }
 0x2d0   : > { %v2960_v20 = vrot.slane %v2959_v12, 2  ;;  %v4639_v52 = vsel %vm4338_vm8, %v2956_v28, %v4638_v30  ;;  %v4196_v23 = vsel %vm2459_vm1, %v2451_v7, -inf  ;;  %v4203_v10 = vsel %vm2459_vm1, %v2452_v54, -inf  ;;  %v480_v54 = vld [vmem:[%s9802_s26 + $0x2e8] sm:$0xff] }
 0x2d1   : > { %8824 = vmatmul.msk.f32.gmra.mxu0 %vm649_vm0, %v475_v39  ;;  %v5205_v39 = vld [vmem:[#allocation2 + $0x220] sm:$0xff]  ;;  %v4197_v48 = vrot.slane %v4196_v23, 4  ;;  %v2453_v46 = vmax.f32 %v2186_v45, 0.0  ;;  %v4204_v6 = vrot.slane %v4203_v10, 4 }
 0x2d2   : > { %v2961_v38 = vmax.f32 %v2959_v12, %v2960_v20  ;;  %v2275_v12 = vmax.f32 %v1652_v22, 0.0 }
 0x2d3   : > { %9060 = vmatmul.msk.f32.gmra.mxu2 %vm2459_vm1, %v5202_v44  ;;  %v2188_v17 = vpop.f32.mrf.mxu3  ;;  %v4198_v53 = vmax.f32 %v4196_v23, %v4197_v48  ;;  %v4205_v56 = vmax.f32 %v4203_v10, %v4204_v6 }
 0x2d4   : > { %v2962_v49 = vrot.slane %v2961_v38, 1  ;;  %v2189_v37 = vadd.f32 %v11004_v36, %v2188_v17  ;;  %v2964_v51 = vsel %vm2459_vm1, %v2275_v12, -inf }
 0x2d5   : > { %v2965_v24 = vrot.slane %v2964_v51, 4 }
 0x2d6   : > { %v2963_v8 = vmax.f32 %v2961_v38, %v2962_v49  ;;  %v1654_v62 = vpop.f32.mrf.mxu0  ;;  %v2454_v5 = vmax.f32 %v2189_v37, 0.0  ;;  %v4210_v38 = vsel %vm2459_vm1, %v2453_v46, -inf }
 0x2d7   : > { %v1655_v32 = vadd.f32 %v11004_v36, %v1654_v62  ;;  %v2966_v43 = vmax.f32 %v2964_v51, %v2965_v24 }
 0x2d8   : > { %v4640_v3 = vsel %vm4340_vm9, %v2963_v8, %v4639_v52  ;;  %v4211_v8 = vrot.slane %v4210_v38, 4  ;;  %v4217_v62 = vsel %vm2459_vm1, %v2454_v5, -inf  ;;  %v4199_v52 = vrot.slane %v4198_v53, 2 }
 0x2d9   : > { %4698 = vst.msk [vmem:[#allocation2 + $0x121] sm:$0xff] %vm2459_vm1, %v4640_v3  ;;  %8825 = vmatmul.msk.f32.gmra.mxu0 %vm649_vm0, %v476_v41  ;;  %v2276_v49 = vmax.f32 %v1655_v32, 0.0  ;;  %v4218_v17 = vrot.slane %v4217_v62, 4  ;;  %v2967_v48 = vrot.slane %v2966_v43, 2 }
 0x2da   : > { %v4200_v22 = vmax.f32 %v4198_v53, %v4199_v52 }
 0x2db   : > { %9061 = vmatmul.msk.f32.gmra.mxu2 %vm2459_vm1, %v5203_v33  ;;  %v2191_v15 = vpop.f32.mrf.mxu3  ;;  %v4206_v33 = vrot.slane %v4205_v56, 2 }
 0x2dc   : > { %v2192_v28 = vadd.f32 %v11004_v36, %v2191_v15  ;;  %v4201_v51 = vrot.slane %v4200_v22, 1 }
 0x2dd   : > { %v4207_v23 = vmax.f32 %v4205_v56, %v4206_v33 }
 0x2de   : > { %v1657_v27 = vpop.f32.mrf.mxu0  ;;  %v2455_v41 = vmax.f32 %v2192_v28, 0.0  ;;  %v4202_v33 = vmax.f32 %v4200_v22, %v4201_v51 }
 0x2df   : > { %v1658_v44 = vadd.f32 %v11004_v36, %v1657_v27  ;;  %v2971_v27 = vsel %vm2459_vm1, %v2276_v49, -inf }
 0x2e0   : > { %v5288_v47 = vld [vmem:[#allocation2 + $0x121] sm:$0xff] }
 0x2e1   : > { %v11026_v58 = vld [vmem:[#allocation2 + $0x120] sm:$0xff]  ;;  %8826 = vmatmul.msk.f32.gmra.mxu0 %vm649_vm0, %v477_v16  ;;  %9072 = vmatmul.msk.f32.vlgmr.msra.gmra.mxu3 %vm2459_vm1, %v5288_v47  ;;  %v2277_v3 = vmax.f32 %v1658_v44, 0.0  ;;  %v4224_v47 = vsel %vm2459_vm1, %v2455_v41, -inf  ;;  %v4208_v44 = vrot.slane %v4207_v23, 1 }
 0x2e2   : > { %7510 = vst.msk [vmem:[#allocation2 + $0x120] sm:$0x1] %vm4253_vm2, %v14902_v40  ;;  %v4225_v10 = vrot.slane %v4224_v47, 4 }
 0x2e3   : > { %9062 = vmatmul.msk.f32.gmra.mxu2 %vm2459_vm1, %v5204_v4  ;;  %v4212_v4 = vmax.f32 %v4210_v38, %v4211_v8  ;;  %v2978_v45 = vsel %vm2459_vm1, %v2277_v3, -inf }
 0x2e4   : > { %v2979_v32 = vrot.slane %v2978_v45, 4  ;;  %v4226_v38 = vmax.f32 %v4224_v47, %v4225_v10 }
 0x2e5   : > { %v4213_v6 = vrot.slane %v4212_v4, 2 }
 0x2e6   : > { %v1660_v13 = vpop.f32.mrf.mxu0  ;;  %v2980_v3 = vmax.f32 %v2978_v45, %v2979_v32 }
 0x2e7   : > { %v1661_v19 = vadd.f32 %v11004_v36, %v1660_v13  ;;  %v2194_v42 = vpop.f32.mrf.mxu3 }
 0x2e8   : > { %v2195_v37 = vadd.f32 %v11004_v36, %v2194_v42  ;;  %v11065_v42 = vmax.f32 %v2966_v43, %v2967_v48 }
 0x2e9   : > { %8827 = vmatmul.msk.f32.gmra.mxu0 %vm649_vm0, %v478_v14  ;;  %v2278_v16 = vmax.f32 %v1661_v19, 0.0  ;;  %v2972_v14 = vrot.slane %v2971_v27, 4  ;;  %v4214_v19 = vmax.f32 %v4212_v4, %v4213_v6 }
 0x2ea   : > { %v2969_v48 = vrot.slane %v11065_v42, 1 }
 0x2eb   : > { %9063 = vmatmul.msk.f32.gmra.mxu2 %vm2459_vm1, %v5205_v39  ;;  %v2985_v15 = vsel %vm2459_vm1, %v2278_v16, -inf  ;;  %v4219_v39 = vmax.f32 %v4217_v62, %v4218_v17  ;;  %v2973_v5 = vmax.f32 %v2971_v27, %v2972_v14  ;;  %v481_v62 = vld [vmem:[%s9802_s26 + $0x2f0] sm:$0xff]  ;;  %v4227_v17 = vrot.slane %v4226_v38, 2 }
 0x2ec   : > { %v2986_v53 = vrot.slane %v2985_v15, 4  ;;  %v4209_v14 = vmax.f32 %v4207_v23, %v4208_v44  ;;  %v4215_v10 = vrot.slane %v4214_v19, 1 }
 0x2ed   : > { %v4220_v28 = vrot.slane %v4219_v39, 2 }
 0x2ee   : > { %v1663_v20 = vpop.f32.mrf.mxu0  ;;  %v2987_v16 = vmax.f32 %v2985_v15, %v2986_v53  ;;  %v4384_v23 = vsel %vm4328_vm3, %v4209_v14, %v4202_v33 }
 0x2ef   : > { %v1664_v30 = vadd.f32 %v11004_v36, %v1663_v20  ;;  %v2197_v49 = vpop.f32.mrf.mxu3 }
 0x2f0   : > { %v2198_v52 = vadd.f32 %v11004_v36, %v2197_v49  ;;  %v2988_v6 = vrot.slane %v2987_v16, 2 }
 0x2f1   : > { %8828 = vmatmul.msk.f32.gmra.mxu0 %vm649_vm0, %v479_v63  ;;  %v2279_v59 = vmax.f32 %v1664_v30, 0.0  ;;  %v2456_v63 = vmax.f32 %v2195_v37, 0.0  ;;  %v2981_v37 = vrot.slane %v2980_v3, 2 }
 0x2f3   : > { %v2992_v46 = vsel %vm2459_vm1, %v2279_v59, -inf  ;;  %v4231_v24 = vsel %vm2459_vm1, %v2456_v63, -inf  ;;  %v2457_v59 = vmax.f32 %v2198_v52, 0.0  ;;  %v2982_v49 = vmax.f32 %v2980_v3, %v2981_v37 }
 0x2f4   : > { %v2993_v56 = vrot.slane %v2992_v46, 4  ;;  %v4232_v41 = vrot.slane %v4231_v24, 4  ;;  %v2989_v52 = vmax.f32 %v2987_v16, %v2988_v6 }
 0x2f5   : > { %v4238_v43 = vsel %vm2459_vm1, %v2457_v59, -inf }
 0x2f6   : > { %v1666_v7 = vpop.f32.mrf.mxu0  ;;  %v4233_v47 = vmax.f32 %v4231_v24, %v4232_v41  ;;  %v4239_v15 = vrot.slane %v4238_v43, 4  ;;  %v482_v24 = vld [vmem:[%s9802_s26 + $0x2f8] sm:$0xff]  ;;  %v2990_v37 = vrot.slane %v2989_v52, 1 }
 0x2f7   : > { %v1667_v13 = vadd.f32 %v11004_v36, %v1666_v7  ;;  %v2974_v7 = vrot.slane %v2973_v5, 2 }
 0x2f8   : > { %v4234_v45 = vrot.slane %v4233_v47, 2  ;;  %v4240_v53 = vmax.f32 %v4238_v43, %v4239_v15 }
 0x2f9   : > { %v2280_v12 = vmax.f32 %v1667_v13, 0.0  ;;  %8829 = vmatmul.msk.f32.gmra.mxu0 %vm649_vm0, %v480_v54  ;;  %v2994_v54 = vmax.f32 %v2992_v46, %v2993_v56  ;;  %v4221_v13 = vmax.f32 %v4219_v39, %v4220_v28  ;;  %v4228_v46 = vmax.f32 %v4226_v38, %v4227_v17 }
 0x2fa   : > { %v2975_v39 = vmax.f32 %v2973_v5, %v2974_v7  ;;  %v2200_v41 = vpop.f32.mrf.mxu3 }
 0x2fb   : > { %v2999_v20 = vsel %vm2459_vm1, %v2280_v12, -inf  ;;  %v2995_v51 = vrot.slane %v2994_v54, 2  ;;  %v4222_v63 = vrot.slane %v4221_v13, 1  ;;  %v4229_v38 = vrot.slane %v4228_v46, 1 }
 0x2fc   : > { %v3000_v30 = vrot.slane %v2999_v20, 4  ;;  %v2201_v5 = vadd.f32 %v11004_v36, %v2200_v41  ;;  %v2976_v17 = vrot.slane %v2975_v39, 1 }
 0x2fd   : > { %v2996_v59 = vmax.f32 %v2994_v54, %v2995_v51  ;;  %v4223_v7 = vmax.f32 %v4221_v13, %v4222_v63 }
 0x2fe   : > { %v1669_v8 = vpop.f32.mrf.mxu0  ;;  %v3001_v12 = vmax.f32 %v2999_v20, %v3000_v30  ;;  %v4216_v20 = vmax.f32 %v4214_v19, %v4215_v10  ;;  %v2458_v14 = vmax.f32 %v2201_v5, 0.0 }
 0x2ff   : > { %v1670_v27 = vadd.f32 %v11004_v36, %v1669_v8  ;;  %v4235_v8 = vmax.f32 %v4233_v47, %v4234_v45  ;;  %v2983_v47 = vrot.slane %v2982_v49, 1  ;;  %v2997_v13 = vrot.slane %v2996_v59, 1 }
 0x300   : > { %v3002_v44 = vrot.slane %v3001_v12, 2  ;;  %v4385_v19 = vsel %vm4330_vm4, %v4216_v20, %v4384_v23  ;;  %v4245_v54 = vsel %vm2459_vm1, %v2458_v14, -inf }
 0x301   : > { %v2281_v4 = vmax.f32 %v1670_v27, 0.0  ;;  %8830 = vmatmul.msk.f32.gmra.mxu0 %vm649_vm0, %v481_v62  ;;  %v4241_v62 = vrot.slane %v4240_v53, 2  ;;  %v4236_v43 = vrot.slane %v4235_v8, 1  ;;  %v4386_v15 = vsel %vm4332_vm5, %v4223_v7, %v4385_v19 }
 0x302   : > { %v4246_v6 = vrot.slane %v4245_v54, 4  ;;  %v2984_v20 = vmax.f32 %v2982_v49, %v2983_v47  ;;  %v2998_v41 = vmax.f32 %v2996_v59, %v2997_v13 }
 0x303   : > { %v3006_v22 = vsel %vm2459_vm1, %v2281_v4, -inf  ;;  %v3003_v4 = vmax.f32 %v3001_v12, %v3002_v44  ;;  %v4242_v3 = vmax.f32 %v4240_v53, %v4241_v62  ;;  %v483_v53 = vld [vmem:[%s9802_s26 + $0x300] sm:$0xff] }
 0x304   : > { %v3007_v32 = vrot.slane %v3006_v22, 4 }
 0x305   : > { %v3004_v51 = vrot.slane %v3003_v4, 1  ;;  %v4243_v23 = vrot.slane %v4242_v3, 1 }
 0x306   : > { %v3008_v56 = vmax.f32 %v3006_v22, %v3007_v32  ;;  %v1672_v28 = vpop.f32.mrf.mxu0  ;;  %v4230_v22 = vmax.f32 %v4228_v46, %v4229_v38  ;;  %v2977_v32 = vmax.f32 %v2975_v39, %v2976_v17  ;;  %v2991_v46 = vmax.f32 %v2989_v52, %v2990_v37 }
 0x307   : > { %v1673_v30 = vadd.f32 %v11004_v36, %v1672_v28  ;;  %v4247_v28 = vmax.f32 %v4245_v54, %v4246_v6  ;;  %v3005_v38 = vmax.f32 %v3003_v4, %v3004_v51  ;;  %v4244_v17 = vmax.f32 %v4242_v3, %v4243_v23  ;;  %v484_v3 = vld [vmem:[%s9802_s26 + $0x308] sm:$0xff] }
 0x308   : > { %v3009_v27 = vrot.slane %v3008_v56, 2 }
 0x309   : > { %v2282_v33 = vmax.f32 %v1673_v30, 0.0  ;;  %8831 = vmatmul.msk.f32.gmra.mxu0 %vm649_vm0, %v482_v24  ;;  %v2970_v24 = vmax.f32 %v11065_v42, %v2969_v48  ;;  %v4387_v30 = vsel %vm4334_vm6, %v4230_v22, %v4386_v15 }
 0x30a   : > { %v3010_v10 = vmax.f32 %v3008_v56, %v3009_v27  ;;  %v4237_v56 = vmax.f32 %v4235_v8, %v4236_v43  ;;  %v4248_v27 = vrot.slane %v4247_v28, 2 }
 0x30b   : > { %v3013_v16 = vsel %vm2459_vm1, %v2282_v33, -inf  ;;  %v4641_v39 = vsel %vm4328_vm3, %v2977_v32, %v2970_v24  ;;  %v486_v32 = vld [vmem:[%s9802_s26 + $0x318] sm:$0xff] }
 0x30c   : > { %v3014_v45 = vrot.slane %v3013_v16, 4  ;;  %v3011_v44 = vrot.slane %v3010_v10, 1  ;;  %v4642_v49 = vsel %vm4330_vm4, %v2984_v20, %v4641_v39  ;;  %v4388_v7 = vsel %vm4336_vm7, %v4237_v56, %v4387_v30 }
 0x30d   : > { %v4249_v42 = vmax.f32 %v4247_v28, %v4248_v27  ;;  %v4643_v48 = vsel %vm4332_vm5, %v2991_v46, %v4642_v49  ;;  %v4389_v4 = vsel %vm4338_vm8, %v4244_v17, %v4388_v7  ;;  %v488_v27 = vld [vmem:[%s9802_s26 + $0x328] sm:$0xff] }
 0x30e   : > { %v3015_v12 = vmax.f32 %v3013_v16, %v3014_v45  ;;  %v1675_v63 = vpop.f32.mrf.mxu0  ;;  %v3012_v8 = vmax.f32 %v3010_v10, %v3011_v44  ;;  %v4644_v59 = vsel %vm4334_vm6, %v2998_v41, %v4643_v48  ;;  %v485_v45 = vld [vmem:[%s9802_s26 + $0x310] sm:$0xff] }
 0x30f   : > { %v4250_v33 = vrot.slane %v4249_v42, 1  ;;  %v4645_v19 = vsel %vm4336_vm7, %v3005_v38, %v4644_v59  ;;  %v1676_v20 = vadd.f32 %v11004_v36, %v1675_v63 }
 0x310   : > { %v3016_v62 = vrot.slane %v3015_v12, 2  ;;  %v4646_v16 = vsel %vm4338_vm8, %v3012_v8, %v4645_v19 }
 0x311   : > { %8832 = vmatmul.msk.f32.gmra.mxu0 %vm649_vm0, %v483_v53  ;;  %v4251_v10 = vmax.f32 %v4249_v42, %v4250_v33  ;;  %v2283_v46 = vmax.f32 %v1676_v20, 0.0 }
 0x312   : > { %v3017_v5 = vmax.f32 %v3015_v12, %v3016_v62  ;;  %v487_v12 = vld [vmem:[%s9802_s26 + $0x320] sm:$0xff] }
 0x313   : > { %v4390_v37 = vsel %vm4340_vm9, %v4251_v10, %v4389_v4 }
 0x314   : > { %v3018_v52 = vrot.slane %v3017_v5, 1  ;;  %4407 = vst.msk [vmem:[#allocation2 + $0x81] sm:$0xff] %vm2459_vm1, %v4390_v37 }
 0x316   : > { %v3019_v14 = vmax.f32 %v3017_v5, %v3018_v52  ;;  %v1678_v47 = vpop.f32.mrf.mxu0  ;;  %v3020_v5 = vsel %vm2459_vm1, %v2283_v46, -inf }
 0x317   : > { %v1679_v53 = vadd.f32 %v11004_v36, %v1678_v47  ;;  %v3021_v52 = vrot.slane %v3020_v5, 4  ;;  %v489_v47 = vld [vmem:[%s9802_s26 + $0x330] sm:$0xff] }
 0x318   : > { %v4647_v43 = vsel %vm4340_vm9, %v3019_v14, %v4646_v16 }
 0x319   : > { %4699 = vst.msk [vmem:[#allocation2 + $0x131] sm:$0xff] %vm2459_vm1, %v4647_v43  ;;  %8833 = vmatmul.msk.f32.gmra.mxu0 %vm649_vm0, %v484_v3  ;;  %v2284_v28 = vmax.f32 %v1679_v53, 0.0  ;;  %v3022_v10 = vmax.f32 %v3020_v5, %v3021_v52 }
 0x31b   : > { %v3027_v39 = vsel %vm2459_vm1, %v2284_v28, -inf }
 0x31c   : > { %v3028_v8 = vrot.slane %v3027_v39, 4 }
 0x31e   : > { %v1681_v22 = vpop.f32.mrf.mxu0  ;;  %v3029_v19 = vmax.f32 %v3027_v39, %v3028_v8 }
 0x31f   : > { %v1682_v23 = vadd.f32 %v11004_v36, %v1681_v22 }
 0x320   : > { %v5289_v54 = vld [vmem:[#allocation2 + $0x131] sm:$0xff] }
 0x321   : > { %8834 = vmatmul.msk.f32.gmra.mxu0 %vm649_vm0, %v485_v45  ;;  %9073 = vmatmul.msk.f32.gmra.mxu3 %vm2459_vm1, %v5289_v54  ;;  %v11102_v13 = vld [vmem:[#allocation2 + $0x130] sm:$0xff]  ;;  %v2285_v24 = vmax.f32 %v1682_v23, 0.0  ;;  %v3030_v45 = vrot.slane %v3029_v19, 2 }
 0x322   : > { %v11104_v15 = vld [vmem:[#allocation2 + $0x130] sm:$0xff] }
 0x323   : > { %15078 = vst [vmem:[#allocation20_spill] sm:$0xff] %v11104_v15  ;;  %v3034_v63 = vsel %vm2459_vm1, %v2285_v24, -inf  ;;  %v3031_v20 = vmax.f32 %v3029_v19, %v3030_v45  ;;  %v490_v24 = vld [vmem:[%s9802_s26 + $0x338] sm:$0xff] }
 0x324   : > { %7511 = vst.msk [vmem:[#allocation2 + $0x130] sm:$0x1] %vm4253_vm2, %v14902_v40  ;;  %v3035_v42 = vrot.slane %v3034_v63, 4 }
 0x326   : > { %v1684_v6 = vpop.f32.mrf.mxu0  ;;  %v3036_v3 = vmax.f32 %v3034_v63, %v3035_v42  ;;  %v3032_v63 = vrot.slane %v3031_v20, 1 }
 0x327   : > { %v1685_v44 = vadd.f32 %v11004_v36, %v1684_v6 }
 0x328   : > { %v3037_v6 = vrot.slane %v3036_v3, 2 }
 0x329   : > { %8835 = vmatmul.msk.f32.gmra.mxu0 %vm649_vm0, %v486_v32  ;;  %v2286_v30 = vmax.f32 %v1685_v44, 0.0 }
 0x32a   : > { %v3038_v46 = vmax.f32 %v3036_v3, %v3037_v6 }
 0x32b   : > { %v3041_v17 = vsel %vm2459_vm1, %v2286_v30, -inf }
 0x32c   : > { %v3042_v59 = vrot.slane %v3041_v17, 4 }
 0x32e   : > { %v1687_v51 = vpop.f32.mrf.mxu0  ;;  %v3043_v43 = vmax.f32 %v3041_v17, %v3042_v59  ;;  %v3039_v17 = vrot.slane %v3038_v46, 1  ;;  %v3033_v59 = vmax.f32 %v3031_v20, %v3032_v63  ;;  %v494_v63 = vld [vmem:[%s9802_s26 + $0x358] sm:$0xff] }
 0x32f   : > { %v1688_v56 = vadd.f32 %v11004_v36, %v1687_v51  ;;  %v3023_v51 = vrot.slane %v3022_v10, 2 }
 0x331   : > { %8836 = vmatmul.msk.f32.gmra.mxu0 %vm649_vm0, %v487_v12  ;;  %v2287_v62 = vmax.f32 %v1688_v56, 0.0  ;;  %v3044_v12 = vrot.slane %v3043_v43, 2 }
 0x333   : > { %v3048_v7 = vsel %vm2459_vm1, %v2287_v62, -inf  ;;  %v3024_v62 = vmax.f32 %v3022_v10, %v3023_v51 }
 0x334   : > { %v3049_v33 = vrot.slane %v3048_v7, 4 }
 0x336   : > { %v1690_v41 = vpop.f32.mrf.mxu0  ;;  %v3050_v37 = vmax.f32 %v3048_v7, %v3049_v33  ;;  %v3025_v7 = vrot.slane %v3024_v62, 1 }
 0x337   : > { %v1691_v38 = vadd.f32 %v11004_v36, %v1690_v41  ;;  %v3045_v41 = vmax.f32 %v3043_v43, %v3044_v12 }
 0x338   : > { %v3051_v23 = vrot.slane %v3050_v37, 2 }
 0x339   : > { %v2288_v49 = vmax.f32 %v1691_v38, 0.0  ;;  %8837 = vmatmul.msk.f32.gmra.mxu0 %vm649_vm0, %v488_v27  ;;  %v3046_v42 = vrot.slane %v3045_v41, 1 }
 0x33a   : > { %v3052_v39 = vmax.f32 %v3050_v37, %v3051_v23 }
 0x33b   : > { %v3055_v48 = vsel %vm2459_vm1, %v2288_v49, -inf  ;;  %v3047_v10 = vmax.f32 %v3045_v41, %v3046_v42 }
 0x33c   : > { %v3056_v14 = vrot.slane %v3055_v48, 4  ;;  %v3053_v52 = vrot.slane %v3052_v39, 1 }
 0x33e   : > { %v1693_v4 = vpop.f32.mrf.mxu0  ;;  %v3057_v54 = vmax.f32 %v3055_v48, %v3056_v14  ;;  %v3054_v37 = vmax.f32 %v3052_v39, %v3053_v52 }
 0x33f   : > { %v1694_v16 = vadd.f32 %v11004_v36, %v1693_v4  ;;  %v491_v4 = vld [vmem:[%s9802_s26 + $0x340] sm:$0xff] }
 0x340   : > { %v3058_v44 = vrot.slane %v3057_v54, 2 }
 0x341   : > { %v2289_v22 = vmax.f32 %v1694_v16, 0.0  ;;  %8838 = vmatmul.msk.f32.gmra.mxu0 %vm649_vm0, %v489_v47  ;;  %v3040_v47 = vmax.f32 %v3038_v46, %v3039_v17  ;;  %v3026_v16 = vmax.f32 %v3024_v62, %v3025_v7  ;;  %v11146_v46 = vld [vmem:[#allocation2 + $0xf1] sm:$0xff]  ;;  %v495_v17 = vld [vmem:[%s9802_s26 + $0x360] sm:$0xff] }
 0x342   : > { %v3059_v5 = vmax.f32 %v3057_v54, %v3058_v44  ;;  %15079 = vst [vmem:[#allocation21_spill] sm:$0xff] %v11146_v46  ;;  %v493_v62 = vld [vmem:[%s9802_s26 + $0x350] sm:$0xff] }
 0x343   : > { %v3062_v32 = vsel %vm2459_vm1, %v2289_v22, -inf  ;;  %v4648_v22 = vsel %vm4328_vm3, %v3033_v59, %v3026_v16  ;;  %7497 = vst.msk [vmem:[#allocation2 + $0xf8] sm:$0x1] %vm4253_vm2, %v14902_v40 }
 0x344   : > { %v3063_v53 = vrot.slane %v3062_v32, 4  ;;  %v3060_v33 = vrot.slane %v3059_v5, 1  ;;  %v4649_v6 = vsel %vm4330_vm4, %v3040_v47, %v4648_v22 }
 0x345   : > { %v4650_v51 = vsel %vm4332_vm5, %v3047_v10, %v4649_v6 }
 0x346   : > { %v3064_v56 = vmax.f32 %v3062_v32, %v3063_v53  ;;  %v1696_v28 = vpop.f32.mrf.mxu0  ;;  %v3061_v45 = vmax.f32 %v3059_v5, %v3060_v33  ;;  %v4651_v53 = vsel %vm4334_vm6, %v3054_v37, %v4650_v51 }
 0x347   : > { %v1697_v30 = vadd.f32 %v11004_v36, %v1696_v28 }
 0x348   : > { %v3065_v27 = vrot.slane %v3064_v56, 2  ;;  %v4652_v23 = vsel %vm4336_vm7, %v3061_v45, %v4651_v53 }
 0x349   : > { %v2290_v38 = vmax.f32 %v1697_v30, 0.0  ;;  %8839 = vmatmul.msk.f32.gmra.mxu0 %vm649_vm0, %v490_v24 }
 0x34a   : > { %v3066_v49 = vmax.f32 %v3064_v56, %v3065_v27  ;;  %v492_v56 = vld [vmem:[%s9802_s26 + $0x348] sm:$0xff] }
 0x34b   : > { %v3069_v8 = vsel %vm2459_vm1, %v2290_v38, -inf }
 0x34c   : > { %v3070_v48 = vrot.slane %v3069_v8, 4  ;;  %v3067_v3 = vrot.slane %v3066_v49, 1 }
 0x34e   : > { %v3071_v19 = vmax.f32 %v3069_v8, %v3070_v48  ;;  %v1699_v14 = vpop.f32.mrf.mxu0  ;;  %v3068_v32 = vmax.f32 %v3066_v49, %v3067_v3  ;;  %v496_v3 = vld [vmem:[%s9802_s26 + $0x368] sm:$0xff] }
 0x34f   : > { %v1700_v7 = vadd.f32 %v11004_v36, %v1699_v14 }
 0x350   : > { %v3072_v43 = vrot.slane %v3071_v19, 2  ;;  %v4653_v28 = vsel %vm4338_vm8, %v3068_v32, %v4652_v23 }
 0x351   : > { %8840 = vmatmul.msk.f32.gmra.mxu0 %vm649_vm0, %v491_v4  ;;  %v2291_v33 = vmax.f32 %v1700_v7, 0.0 }
 0x352   : > { %v3073_v54 = vmax.f32 %v3071_v19, %v3072_v43 }
 0x353   : > { %v3076_v43 = vsel %vm2459_vm1, %v2291_v33, -inf }
 0x354   : > { %v3074_v12 = vrot.slane %v3073_v54, 1  ;;  %v3077_v51 = vrot.slane %v3076_v43, 4 }
 0x356   : > { %v3075_v20 = vmax.f32 %v3073_v54, %v3074_v12  ;;  %v1702_v44 = vpop.f32.mrf.mxu0 }
 0x357   : > { %v1703_v49 = vadd.f32 %v11004_v36, %v1702_v44 }
 0x358   : > { %v4654_v24 = vsel %vm4340_vm9, %v3075_v20, %v4653_v28 }
 0x359   : > { %4700 = vst.msk [vmem:[#allocation2 + $0x141] sm:$0xff] %vm2459_vm1, %v4654_v24  ;;  %8841 = vmatmul.msk.f32.gmra.mxu0 %vm649_vm0, %v492_v56  ;;  %v2292_v52 = vmax.f32 %v1703_v49, 0.0  ;;  %v497_v56 = vld [vmem:[%s9802_s26 + $0x370] sm:$0xff] }
 0x35b   : > { %v3083_v16 = vsel %vm2459_vm1, %v2292_v52, -inf }
 0x35c   : > { %v3084_v45 = vrot.slane %v3083_v16, 4 }
 0x35e   : > { %v1705_v30 = vpop.f32.mrf.mxu0  ;;  %v3085_v23 = vmax.f32 %v3083_v16, %v3084_v45 }
 0x35f   : > { %v1706_v8 = vadd.f32 %v11004_v36, %v1705_v30  ;;  %v3078_v30 = vmax.f32 %v3076_v43, %v3077_v51 }
 0x360   : > { %v5290_v41 = vld [vmem:[#allocation2 + $0x141] sm:$0xff] }
 0x361   : > { %8842 = vmatmul.msk.f32.gmra.mxu0 %vm649_vm0, %v493_v62  ;;  %9074 = vmatmul.msk.f32.gmra.mxu3 %vm2459_vm1, %v5290_v41  ;;  %v11153_v27 = vld [vmem:[#allocation2 + $0x140] sm:$0xff]  ;;  %v2293_v59 = vmax.f32 %v1706_v8, 0.0  ;;  %v3079_v8 = vrot.slane %v3078_v30, 2 }
 0x362   : > { %15080 = vst [vmem:[#allocation22_spill] sm:$0xff] %v11153_v27  ;;  %v11155_v39 = vld [vmem:[#allocation2 + $0x140] sm:$0xff] }
 0x363   : > { %15081 = vst [vmem:[#allocation23_spill] sm:$0xff] %v11155_v39  ;;  %v3090_v14 = vsel %vm2459_vm1, %v2293_v59, -inf  ;;  %v3080_v16 = vmax.f32 %v3078_v30, %v3079_v8 }
 0x364   : > { %7512 = vst.msk [vmem:[#allocation2 + $0x140] sm:$0x1] %vm4253_vm2, %v14902_v40  ;;  %v3091_v6 = vrot.slane %v3090_v14, 4 }
 0x365   : > { %v3081_v51 = vrot.slane %v3080_v16, 1 }
 0x366   : > { %v1708_v38 = vpop.f32.mrf.mxu0  ;;  %v3092_v28 = vmax.f32 %v3090_v14, %v3091_v6 }
 0x367   : > { %v1709_v42 = vadd.f32 %v11004_v36, %v1708_v38 }
 0x369   : > { %8843 = vmatmul.msk.f32.gmra.mxu0 %vm649_vm0, %v494_v63  ;;  %v2294_v19 = vmax.f32 %v1709_v42, 0.0  ;;  %v3086_v63 = vrot.slane %v3085_v23, 2 }
 0x36b   : > { %v3097_v37 = vsel %vm2459_vm1, %v2294_v19, -inf  ;;  %v3087_v52 = vmax.f32 %v3085_v23, %v3086_v63 }
 0x36c   : > { %v3098_v12 = vrot.slane %v3097_v37, 4 }
 0x36e   : > { %v1711_v5 = vpop.f32.mrf.mxu0  ;;  %v3099_v62 = vmax.f32 %v3097_v37, %v3098_v12 }
 0x36f   : > { %v1712_v48 = vadd.f32 %v11004_v36, %v1711_v5 }
 0x370   : > { %v3100_v7 = vrot.slane %v3099_v62, 2 }
 0x371   : > { %8844 = vmatmul.msk.f32.gmra.mxu0 %vm649_vm0, %v495_v17  ;;  %v2295_v4 = vmax.f32 %v1712_v48, 0.0  ;;  %v3093_v17 = vrot.slane %v3092_v28, 2 }
 0x373   : > { %v3104_v54 = vsel %vm2459_vm1, %v2295_v4, -inf  ;;  %v498_v4 = vld [vmem:[%s9802_s26 + $0x378] sm:$0xff] }
 0x374   : > { %v3105_v53 = vrot.slane %v3104_v54, 4 }
 0x376   : > { %v1714_v47 = vpop.f32.mrf.mxu0  ;;  %v3106_v41 = vmax.f32 %v3104_v54, %v3105_v53 }
 0x377   : > { %v1715_v10 = vadd.f32 %v11004_v36, %v1714_v47  ;;  %v3094_v47 = vmax.f32 %v3092_v28, %v3093_v17 }
 0x378   : > { %v3107_v48 = vrot.slane %v3106_v41, 2 }
 0x379   : > { %v2296_v22 = vmax.f32 %v1715_v10, 0.0  ;;  %8845 = vmatmul.msk.f32.gmra.mxu0 %vm649_vm0, %v496_v3  ;;  %v3101_v10 = vmax.f32 %v3099_v62, %v3100_v7  ;;  %v3095_v54 = vrot.slane %v3094_v47, 1 }
 0x37a   : > { %v3108_v43 = vmax.f32 %v3106_v41, %v3107_v48  ;;  %v3082_v41 = vmax.f32 %v3080_v16, %v3081_v51 }
 0x37b   : > { %v3111_v32 = vsel %vm2459_vm1, %v2296_v22, -inf  ;;  %v3088_v22 = vrot.slane %v3087_v52, 1  ;;  %v3102_v12 = vrot.slane %v3101_v10, 1  ;;  %v3096_v30 = vmax.f32 %v3094_v47, %v3095_v54  ;;  %v500_v47 = vld [vmem:[%s9802_s26 + $0x388] sm:$0xff] }
 0x37c   : > { %v3112_v20 = vrot.slane %v3111_v32, 4  ;;  %v3109_v23 = vrot.slane %v3108_v43, 1 }
 0x37e   : > { %v1717_v44 = vpop.f32.mrf.mxu0  ;;  %v3113_v5 = vmax.f32 %v3111_v32, %v3112_v20  ;;  %v3089_v20 = vmax.f32 %v3087_v52, %v3088_v22 }
 0x37f   : > { %v1718_v24 = vadd.f32 %v11004_v36, %v1717_v44 }
 0x380   : > { %v3114_v59 = vrot.slane %v3113_v5, 2  ;;  %v4655_v17 = vsel %vm4328_vm3, %v3089_v20, %v3082_v41 }
 0x381   : > { %v2297_v38 = vmax.f32 %v1718_v24, 0.0  ;;  %8846 = vmatmul.msk.f32.gmra.mxu0 %vm649_vm0, %v497_v56  ;;  %v499_v24 = vld [vmem:[%s9802_s26 + $0x380] sm:$0xff]  ;;  %v4656_v7 = vsel %vm4330_vm4, %v3096_v30, %v4655_v17 }
 0x382   : > { %v3115_v45 = vmax.f32 %v3113_v5, %v3114_v59  ;;  %v3110_v5 = vmax.f32 %v3108_v43, %v3109_v23  ;;  %v501_v43 = vld [vmem:[%s9802_s26 + $0x390] sm:$0xff] }
 0x383   : > { %v3118_v49 = vsel %vm2459_vm1, %v2297_v38, -inf  ;;  %v3103_v38 = vmax.f32 %v3101_v10, %v3102_v12  ;;  %v11197_v10 = vld [vmem:[#allocation2 + $0x101] sm:$0xff] }
 0x384   : > { %v3119_v42 = vrot.slane %v3118_v49, 4  ;;  %v3116_v44 = vrot.slane %v3115_v45, 1  ;;  %15082 = vst [vmem:[#allocation24_spill] sm:$0xff] %v11197_v10  ;;  %v503_v12 = vld [vmem:[%s9802_s26 + $0x3a0] sm:$0xff] }
 0x385   : > { %v4657_v48 = vsel %vm4332_vm5, %v3103_v38, %v4656_v7  ;;  %7498 = vst.msk [vmem:[#allocation2 + $0x108] sm:$0x1] %vm4253_vm2, %v14902_v40 }
 0x386   : > { %v3120_v33 = vmax.f32 %v3118_v49, %v3119_v42  ;;  %v1720_v19 = vpop.f32.mrf.mxu0  ;;  %v3117_v49 = vmax.f32 %v3115_v45, %v3116_v44  ;;  %v4658_v59 = vsel %vm4334_vm6, %v3110_v5, %v4657_v48  ;;  %v504_v5 = vld [vmem:[%s9802_s26 + $0x3a8] sm:$0xff] }
 0x387   : > { %v1721_v3 = vadd.f32 %v11004_v36, %v1720_v19 }
 0x388   : > { %v3121_v14 = vrot.slane %v3120_v33, 2 }
 0x389   : > { %v2298_v37 = vmax.f32 %v1721_v3, 0.0  ;;  %8847 = vmatmul.msk.f32.gmra.mxu0 %vm649_vm0, %v498_v4 }
 0x38a   : > { %v3122_v6 = vmax.f32 %v3120_v33, %v3121_v14  ;;  %v4659_v33 = vsel %vm4336_vm7, %v3117_v49, %v4658_v59 }
 0x38b   : > { %v3125_v32 = vsel %vm2459_vm1, %v2298_v37, -inf }
 0x38c   : > { %v3126_v53 = vrot.slane %v3125_v32, 4  ;;  %v3123_v62 = vrot.slane %v3122_v6, 1 }
 0x38e   : > { %v3127_v56 = vmax.f32 %v3125_v32, %v3126_v53  ;;  %v1723_v28 = vpop.f32.mrf.mxu0  ;;  %v3124_v42 = vmax.f32 %v3122_v6, %v3123_v62  ;;  %v502_v6 = vld [vmem:[%s9802_s26 + $0x398] sm:$0xff] }
 0x38f   : > { %v8999_v32 = vld [vmem:[%s14893_s3 + $0x78] sm:$0xff]  ;;  %v1724_v20 = vadd.f32 %v11004_v36, %v1723_v28 }
 0x390   : > { %v3128_v63 = vrot.slane %v3127_v56, 2  ;;  %v4660_v3 = vsel %vm4338_vm8, %v3124_v42, %v4659_v33  ;;  %4920 = vmatpush.msrb.mxu1 %v8999_v32 }
 0x391   : > { %8848 = vmatmul.msk.f32.gmra.mxu0 %vm649_vm0, %v499_v24  ;;  %v2299_v62 = vmax.f32 %v1724_v20, 0.0 }
 0x392   : > { %v3129_v8 = vmax.f32 %v3127_v56, %v3128_v63 }
 0x394   : > { %v3130_v52 = vrot.slane %v3129_v8, 1 }
 0x396   : > { %v3131_v19 = vmax.f32 %v3129_v8, %v3130_v52  ;;  %v1726_v4 = vpop.f32.mrf.mxu0  ;;  %v3132_v8 = vsel %vm2459_vm1, %v2299_v62, -inf }
 0x397   : > { %v1727_v53 = vadd.f32 %v11004_v36, %v1726_v4 }
 0x398   : > { %v4661_v16 = vsel %vm4340_vm9, %v3131_v19, %v4660_v3  ;;  %v3133_v19 = vrot.slane %v3132_v8, 4 }
 0x399   : > { %4701 = vst.msk [vmem:[#allocation2 + $0x151] sm:$0xff] %vm2459_vm1, %v4661_v16  ;;  %8849 = vmatmul.msk.f32.gmra.mxu0 %vm649_vm0, %v500_v47  ;;  %v2300_v24 = vmax.f32 %v1727_v53, 0.0 }
 0x39b   : > { %v3139_v17 = vsel %vm2459_vm1, %v2300_v24, -inf }
 0x39c   : > { %v3140_v48 = vrot.slane %v3139_v17, 4 }
 0x39e   : > { %v1729_v14 = vpop.f32.mrf.mxu0 }
 0x39f   : > { %v1730_v23 = vadd.f32 %v11004_v36, %v1729_v14  ;;  %v505_v14 = vld [vmem:[%s9802_s26 + $0x3b0] sm:$0xff] }
 0x3a0   : > { %v5291_v37 = vld [vmem:[#allocation2 + $0x151] sm:$0xff] }
 0x3a1   : > { %8850 = vmatmul.msk.f32.gmra.mxu0 %vm649_vm0, %v501_v43  ;;  %9075 = vmatmul.msk.f32.gmra.mxu3 %vm2459_vm1, %v5291_v37  ;;  %v11204_v22 = vld [vmem:[#allocation2 + $0x150] sm:$0xff]  ;;  %v2301_v30 = vmax.f32 %v1730_v23, 0.0  ;;  %v11235_v37 = vld [vmem:[%s14892_s2] ss:$0 sm:$0xff] }
 0x3a2   : > { %15083 = vst [vmem:[#allocation25_spill] sm:$0xff] %v11204_v22  ;;  %v11206_v45 = vld [vmem:[#allocation2 + $0x150] sm:$0xff] }
 0x3a3   : > { %15084 = vst [vmem:[#allocation26_spill] sm:$0xff] %v11206_v45  ;;  %v3146_v28 = vsel %vm2459_vm1, %v2301_v30, -inf }
 0x3a4   : > { %7513 = vst.msk [vmem:[#allocation2 + $0x150] sm:$0x1] %vm4253_vm2, %v14902_v40  ;;  %v3147_v59 = vrot.slane %v3146_v28, 4 }
 0x3a6   : > { %v1732_v54 = vpop.f32.mrf.mxu0  ;;  %v3148_v43 = vmax.f32 %v3146_v28, %v3147_v59 }
 0x3a7   : > { %v1733_v44 = vadd.f32 %v11004_v36, %v1732_v54 }
 0x3a8   : > { %v3149_v20 = vrot.slane %v3148_v43, 2 }
 0x3a9   : > { %8851 = vmatmul.msk.f32.gmra.mxu0 %vm649_vm0, %v502_v6  ;;  %v2302_v41 = vmax.f32 %v1733_v44, 0.0  ;;  %v3134_v6 = vmax.f32 %v3132_v8, %v3133_v19 }
 0x3ab   : > { %v3153_v7 = vsel %vm2459_vm1, %v2302_v41, -inf }
 0x3ac   : > { %v3154_v4 = vrot.slane %v3153_v7, 4 }
 0x3ae   : > { %v1735_v51 = vpop.f32.mrf.mxu0  ;;  %v3155_v32 = vmax.f32 %v3153_v7, %v3154_v4 }
 0x3af   : > { %v1736_v56 = vadd.f32 %v11004_v36, %v1735_v51 }
 0x3b0   : > { %v3156_v24 = vrot.slane %v3155_v32, 2 }
 0x3b1   : > { %8852 = vmatmul.msk.f32.gmra.mxu0 %vm649_vm0, %v503_v12  ;;  %v2303_v38 = vmax.f32 %v1736_v56, 0.0  ;;  %v3135_v56 = vrot.slane %v3134_v6, 2 }
 0x3b2   : > { %v3157_v7 = vmax.f32 %v3155_v32, %v3156_v24 }
 0x3b3   : > { %v3160_v52 = vsel %vm2459_vm1, %v2303_v38, -inf  ;;  %v3136_v8 = vmax.f32 %v3134_v6, %v3135_v56 }
 0x3b4   : > { %v3161_v47 = vrot.slane %v3160_v52, 4 }
 0x3b6   : > { %v1738_v63 = vpop.f32.mrf.mxu0  ;;  %v3162_v51 = vmax.f32 %v3160_v52, %v3161_v47 }
 0x3b7   : > { %v1739_v49 = vadd.f32 %v11004_v36, %v1738_v63  ;;  %v3141_v36 = vmax.f32 %v3139_v17, %v3140_v48  ;;  %v506_v17 = vld [vmem:[%s9802_s26 + $0x3b8] sm:$0xff] }
 0x3b8   : > { %v3163_v62 = vrot.slane %v3162_v51, 2 }
 0x3b9   : > { %v2304_v42 = vmax.f32 %v1739_v49, 0.0  ;;  %8853 = vmatmul.msk.f32.gmra.mxu0 %vm649_vm0, %v504_v5  ;;  %v3142_v53 = vrot.slane %v3141_v36, 2  ;;  %v3150_v49 = vmax.f32 %v3148_v43, %v3149_v20 }
 0x3ba   : > { %v3164_v48 = vmax.f32 %v3162_v51, %v3163_v62 }
 0x3bb   : > { %v3167_v33 = vsel %vm2459_vm1, %v2304_v42, -inf  ;;  %v3143_v41 = vmax.f32 %v3141_v36, %v3142_v53  ;;  %v3151_v19 = vrot.slane %v3150_v49, 1  ;;  %v3137_v36 = vrot.slane %v3136_v8, 1 }
 0x3bc   : > { %v3168_v3 = vrot.slane %v3167_v33, 4 }
 0x3bd   : > { %v3144_v59 = vrot.slane %v3143_v41, 1  ;;  %v3152_v51 = vmax.f32 %v3150_v49, %v3151_v19  ;;  %v3138_v20 = vmax.f32 %v3136_v8, %v3137_v36 }
 0x3be   : > { %v1741_v16 = vpop.f32.mrf.mxu0  ;;  %v3169_v23 = vmax.f32 %v3167_v33, %v3168_v3  ;;  %v3158_v3 = vrot.slane %v3157_v7, 1 }
 0x3bf   : > { %v1742_v54 = vadd.f32 %v11235_v37, %v1741_v16  ;;  %v3145_v43 = vmax.f32 %v3143_v41, %v3144_v59 }
 0x3c0   : > { %v3170_v38 = vrot.slane %v3169_v23, 2 }
 0x3c1   : > { %v2305_v12 = vmax.f32 %v1742_v54, 0.0  ;;  %8854 = vmatmul.msk.f32.gmra.mxu0 %vm649_vm0, %v505_v14  ;;  %v3165_v14 = vrot.slane %v3164_v48, 1  ;;  %v4662_v24 = vsel %vm4328_vm3, %v3145_v43, %v3138_v20  ;;  %v511_v43 = vld [vmem:[%s9802_s26 + $0x3e0] sm:$0xff] }
 0x3c2   : > { %v3171_v33 = vmax.f32 %v3169_v23, %v3170_v38  ;;  %v4663_v38 = vsel %vm4330_vm4, %v3152_v51, %v4662_v24 }
 0x3c3   : > { %v3174_v44 = vsel %vm2459_vm1, %v2305_v12, -inf  ;;  %v507_v12 = vld [vmem:[%s9802_s26 + $0x3c0] sm:$0xff]  ;;  %v3166_v23 = vmax.f32 %v3164_v48, %v3165_v14 }
 0x3c4   : > { %v3175_v30 = vrot.slane %v3174_v44, 4  ;;  %v3172_v54 = vrot.slane %v3171_v33, 1 }
 0x3c6   : > { %v3176_v63 = vmax.f32 %v3174_v44, %v3175_v30  ;;  %v1744_v5 = vpop.f32.mrf.mxu0  ;;  %v3159_v44 = vmax.f32 %v3157_v7, %v3158_v3  ;;  %v3173_v30 = vmax.f32 %v3171_v33, %v3172_v54  ;;  %v508_v7 = vld [vmem:[%s9802_s26 + $0x3c8] sm:$0xff]  ;;  %v509_v33 = vld [vmem:[%s9802_s26 + $0x3d0] sm:$0xff]  ;;  %v510_v3 = vld [vmem:[%s9802_s26 + $0x3d8] sm:$0xff] }
 0x3c7   : > { %v1745_v28 = vadd.f32 %v11235_v37, %v1744_v5 }
 0x3c8   : > { %v3177_v42 = vrot.slane %v3176_v63, 2 }
 0x3c9   : > { %v2306_v52 = vmax.f32 %v1745_v28, 0.0  ;;  %8855 = vmatmul.msk.f32.gmra.mxu0 %vm649_vm0, %v506_v17 }
 0x3ca   : > { %v3178_v4 = vmax.f32 %v3176_v63, %v3177_v42  ;;  %v4664_v63 = vsel %vm4332_vm5, %v3159_v44, %v4663_v38 }
 0x3cb   : > { %v3181_v47 = vsel %vm2459_vm1, %v2306_v52, -inf  ;;  %v4665_v17 = vsel %vm4334_vm6, %v3166_v23, %v4664_v63  ;;  %v11256_v52 = vld [vmem:[#allocation2 + $0x111] sm:$0xff] }
 0x3cc   : > { %v3182_v16 = vrot.slane %v3181_v47, 4  ;;  %v3179_v53 = vrot.slane %v3178_v4, 1  ;;  %v4666_v49 = vsel %vm4336_vm7, %v3173_v30, %v4665_v17  ;;  %15085 = vst [vmem:[#allocation27_spill] sm:$0xff] %v11256_v52 }
 0x3cd   : > { %7499 = vst.msk [vmem:[#allocation2 + $0x118] sm:$0x1] %vm4253_vm2, %v14902_v40 }
 0x3ce   : > { %v3183_v6 = vmax.f32 %v3181_v47, %v3182_v16  ;;  %v1747_v32 = vpop.f32.mrf.mxu0  ;;  %v3180_v41 = vmax.f32 %v3178_v4, %v3179_v53  ;;  %v8998_v16 = vld [vmem:[%s14893_s3 + $0x70] sm:$0xff] }
 0x3cf   : > { %4921 = vmatpush.msrb.mxu1 %v8998_v16 }
 0x3d0   : > { %v3184_v56 = vrot.slane %v3183_v6, 2  ;;  %v4667_v42 = vsel %vm4338_vm8, %v3180_v41, %v4666_v49 }
 0x3d1   : > { %8856 = vmatmul.msk.f32.gmra.mxu0 %vm649_vm0, %v507_v12  ;;  %v1748_v12 = vadd.f32 %v11235_v37, %v1747_v32 }
 0x3d2   : > { %v3185_v62 = vmax.f32 %v3183_v6, %v3184_v56 }
 0x3d3   : > { %v2307_v56 = vmax.f32 %v1748_v12, 0.0 }
 0x3d4   : > { %v3186_v5 = vrot.slane %v3185_v62, 1 }
 0x3d5   : > { %v3188_v63 = vsel %vm2459_vm1, %v2307_v56, -inf }
 0x3d6   : > { %v3187_v28 = vmax.f32 %v3185_v62, %v3186_v5  ;;  %v1750_v8 = vpop.f32.mrf.mxu0  ;;  %v512_v62 = vld [vmem:[%s9802_s26 + $0x3e8] sm:$0xff] }
 0x3d7   : > { %v1751_v54 = vadd.f32 %v11235_v37, %v1750_v8 }
 0x3d8   : > { %v4668_v48 = vsel %vm4340_vm9, %v3187_v28, %v4667_v42  ;;  %v3189_v42 = vrot.slane %v3188_v63, 4 }
 0x3d9   : > { %4702 = vst.msk [vmem:[#allocation2 + $0x161] sm:$0xff] %vm2459_vm1, %v4668_v48  ;;  %8857 = vmatmul.msk.f32.gmra.mxu0 %vm649_vm0, %v508_v7  ;;  %v2308_v20 = vmax.f32 %v1751_v54, 0.0 }
 0x3db   : > { %v3195_v38 = vsel %vm2459_vm1, %v2308_v20, -inf }
 0x3dc   : > { %v3196_v49 = vrot.slane %v3195_v38, 4 }
 0x3de   : > { %v1753_v59 = vpop.f32.mrf.mxu0 }
 0x3df   : > { %v1754_v6 = vadd.f32 %v11235_v37, %v1753_v59 }
 0x3e0   : > { %v5292_v19 = vld [vmem:[#allocation2 + $0x161] sm:$0xff] }
 0x3e1   : > { %8858 = vmatmul.msk.f32.gmra.mxu0 %vm649_vm0, %v509_v33  ;;  %9076 = vmatmul.msk.f32.gmra.mxu3 %vm2459_vm1, %v5292_v19  ;;  %v11263_v4 = vld [vmem:[#allocation2 + $0x160] sm:$0xff]  ;;  %v2309_v44 = vmax.f32 %v1754_v6, 0.0  ;;  %v3197_v33 = vmax.f32 %v3195_v38, %v3196_v49 }
 0x3e2   : > { %15086 = vst [vmem:[#allocation28_spill] sm:$0xff] %v11263_v4  ;;  %v11265_v47 = vld [vmem:[#allocation2 + $0x160] sm:$0xff] }
 0x3e3   : > { %15087 = vst [vmem:[#allocation29_spill] sm:$0xff] %v11265_v47  ;;  %v3202_v32 = vsel %vm2459_vm1, %v2309_v44, -inf  ;;  %v9097_v47 = vld [vmem:[%s14893_s3 + $0x1c8] sm:$0xff] }
 0x3e4   : > { %7514 = vst.msk [vmem:[#allocation2 + $0x160] sm:$0x1] %vm4253_vm2, %v14902_v40  ;;  %v3203_v8 = vrot.slane %v3202_v32, 4 }
 0x3e6   : > { %v1756_v36 = vpop.f32.mrf.mxu0  ;;  %v3204_v16 = vmax.f32 %v3202_v32, %v3203_v8 }
 0x3e7   : > { %v1757_v51 = vadd.f32 %v11235_v37, %v1756_v36 }
 0x3e8   : > { %v3205_v20 = vrot.slane %v3204_v16, 2 }
 0x3e9   : > { %8859 = vmatmul.msk.f32.gmra.mxu0 %vm649_vm0, %v510_v3  ;;  %v2310_v23 = vmax.f32 %v1757_v51, 0.0  ;;  %v513_v3 = vld [vmem:[%s9802_s26 + $0x3f0] sm:$0xff]  ;;  %v3198_v51 = vrot.slane %v3197_v33, 2 }
 0x3eb   : > { %v3209_v5 = vsel %vm2459_vm1, %v2310_v23, -inf }
 0x3ec   : > { %v3210_v48 = vrot.slane %v3209_v5, 4 }
 0x3ee   : > { %v1759_v14 = vpop.f32.mrf.mxu0  ;;  %v3211_v54 = vmax.f32 %v3209_v5, %v3210_v48  ;;  %v3206_v5 = vmax.f32 %v3204_v16, %v3205_v20 }
 0x3ef   : > { %v1760_v53 = vadd.f32 %v11235_v37, %v1759_v14 }
 0x3f0   : > { %v3212_v23 = vrot.slane %v3211_v54, 2 }
 0x3f1   : > { %8860 = vmatmul.msk.f32.gmra.mxu0 %vm649_vm0, %v511_v43  ;;  %v2311_v24 = vmax.f32 %v1760_v53, 0.0  ;;  %v3190_v43 = vmax.f32 %v3188_v63, %v3189_v42  ;;  %v514_v63 = vld [vmem:[%s9802_s26 + $0x3f8] sm:$0xff] }
 0x3f3   : > { %v3216_v28 = vsel %vm2459_vm1, %v2311_v24, -inf  ;;  %v3191_v56 = vrot.slane %v3190_v43, 2 }
 0x3f4   : > { %v3217_v59 = vrot.slane %v3216_v28, 4 }
 0x3f5   : > { %v3192_v49 = vmax.f32 %v3190_v43, %v3191_v56 }
 0x3f6   : > { %v1762_v30 = vpop.f32.mrf.mxu0  ;;  %v3218_v6 = vmax.f32 %v3216_v28, %v3217_v59  ;;  %v3213_v28 = vmax.f32 %v3211_v54, %v3212_v23 }
 0x3f7   : > { %v1763_v41 = vadd.f32 %v11235_v37, %v1762_v30 }
 0x3f8   : > { %v3219_v30 = vrot.slane %v3218_v6, 2 }
 0x3f9   : > { %v2312_v17 = vmax.f32 %v1763_v41, 0.0  ;;  %8861 = vmatmul.msk.f32.gmra.mxu0 %vm649_vm0, %v512_v62  ;;  %v3199_v62 = vmax.f32 %v3197_v33, %v3198_v51 }
 0x3fa   : > { %v3220_v42 = vmax.f32 %v3218_v6, %v3219_v30 }
 0x3fb   : > { %v3223_v7 = vsel %vm2459_vm1, %v2312_v17, -inf  ;;  %v3200_v48 = vrot.slane %v3199_v62, 1 }
 0x3fc   : > { %v3224_v19 = vrot.slane %v3223_v7, 4  ;;  %v3221_v16 = vrot.slane %v3220_v42, 1 }
 0x3fd   : > { %v3201_v51 = vmax.f32 %v3199_v62, %v3200_v48 }
 0x3fe   : > { %v1765_v36 = vpop.f32.mrf.mxu0  ;;  %v3225_v53 = vmax.f32 %v3223_v7, %v3224_v19  ;;  %v3207_v19 = vrot.slane %v3206_v5, 1 }
 0x3ff   : > { %v1766_v14 = vadd.f32 %v11235_v37, %v1765_v36 }
 0x400   : > { %v3226_v38 = vrot.slane %v3225_v53, 2  ;;  %v3208_v6 = vmax.f32 %v3206_v5, %v3207_v19 }
 0x401   : > { %v2313_v12 = vmax.f32 %v1766_v14, 0.0  ;;  %8862 = vmatmul.msk.f32.gmra.mxu0 %vm649_vm0, %v513_v3  ;;  %v3193_v3 = vrot.slane %v3192_v49, 1  ;;  %v3214_v14 = vrot.slane %v3213_v28, 1 }
 0x402   : > { %v3227_v59 = vmax.f32 %v3225_v53, %v3226_v38  ;;  %v3222_v53 = vmax.f32 %v3220_v42, %v3221_v16  ;;  %v518_v16 = vld [vmem:[%s9802_s26 + $0x418] sm:$0xff] }
 0x403   : > { %v3230_v44 = vsel %vm2459_vm1, %v2313_v12, -inf  ;;  %v3194_v23 = vmax.f32 %v3192_v49, %v3193_v3 }
 0x404   : > { %v3231_v24 = vrot.slane %v3230_v44, 4  ;;  %v3228_v20 = vrot.slane %v3227_v59, 1 }
 0x405   : > { %v4669_v38 = vsel %vm4328_vm3, %v3201_v51, %v3194_v23  ;;  %v8997_v51 = vld [vmem:[%s14893_s3 + $0x68] sm:$0xff] }
 0x406   : > { %v3232_v41 = vmax.f32 %v3230_v44, %v3231_v24  ;;  %v1768_v32 = vpop.f32.mrf.mxu0  ;;  %v515_v44 = vld [vmem:[%s9802_s26 + $0x400] sm:$0xff]  ;;  %v3215_v24 = vmax.f32 %v3213_v28, %v3214_v14  ;;  %v4670_v62 = vsel %vm4330_vm4, %v3208_v6, %v4669_v38  ;;  %4922 = vmatpush.msrb.mxu1 %v8997_v51 }
 0x407   : > { %v1769_v17 = vadd.f32 %v11235_v37, %v1768_v32 }
 0x408   : > { %v3233_v8 = vrot.slane %v3232_v41, 2 }
 0x409   : > { %v2314_v7 = vmax.f32 %v1769_v17, 0.0  ;;  %8863 = vmatmul.msk.f32.gmra.mxu0 %vm649_vm0, %v514_v63  ;;  %v4671_v17 = vsel %vm4332_vm5, %v3215_v24, %v4670_v62 }
 0x40a   : > { %v3234_v36 = vmax.f32 %v3232_v41, %v3233_v8  ;;  %v3229_v41 = vmax.f32 %v3227_v59, %v3228_v20  ;;  %v4672_v5 = vsel %vm4334_vm6, %v3222_v53, %v4671_v17 }
 0x40b   : > { %v3237_v33 = vsel %vm2459_vm1, %v2314_v7, -inf  ;;  %v516_v7 = vld [vmem:[%s9802_s26 + $0x408] sm:$0xff] }
 0x40c   : > { %v3238_v12 = vrot.slane %v3237_v33, 4  ;;  %v3235_v56 = vrot.slane %v3234_v36, 1  ;;  %v4673_v49 = vsel %vm4336_vm7, %v3229_v41, %v4672_v5 }
 0x40e   : > { %v3239_v43 = vmax.f32 %v3237_v33, %v3238_v12  ;;  %v1771_v54 = vpop.f32.mrf.mxu0  ;;  %v3236_v63 = vmax.f32 %v3234_v36, %v3235_v56  ;;  %v517_v36 = vld [vmem:[%s9802_s26 + $0x410] sm:$0xff] }
 0x40f   : > { %v1772_v56 = vadd.f32 %v11235_v37, %v1771_v54 }
 0x410   : > { %v3240_v30 = vrot.slane %v3239_v43, 2  ;;  %v4674_v48 = vsel %vm4338_vm8, %v3236_v63, %v4673_v49  ;;  %v520_v63 = vld [vmem:[%s9802_s26 + $0x428] sm:$0xff] }
 0x411   : > { %8864 = vmatmul.msk.f32.gmra.mxu0 %vm649_vm0, %v515_v44  ;;  %v2315_v38 = vmax.f32 %v1772_v56, 0.0 }
 0x412   : > { %v3241_v32 = vmax.f32 %v3239_v43, %v3240_v30  ;;  %v519_v43 = vld [vmem:[%s9802_s26 + $0x420] sm:$0xff] }
 0x413   : > { %v3244_v5 = vsel %vm2459_vm1, %v2315_v38, -inf }
 0x414   : > { %v3242_v8 = vrot.slane %v3241_v32, 1 }
 0x416   : > { %v3243_v28 = vmax.f32 %v3241_v32, %v3242_v8  ;;  %v1774_v42 = vpop.f32.mrf.mxu0 }
 0x417   : > { %v1775_v44 = vadd.f32 %v11235_v37, %v1774_v42 }
 0x418   : > { %v4675_v59 = vsel %vm4340_vm9, %v3243_v28, %v4674_v48 }
 0x419   : > { %4703 = vst.msk [vmem:[#allocation2 + $0x171] sm:$0xff] %vm2459_vm1, %v4675_v59  ;;  %8865 = vmatmul.msk.f32.gmra.mxu0 %vm649_vm0, %v516_v7  ;;  %v2316_v30 = vmax.f32 %v1775_v44, 0.0 }
 0x41b   : > { %v3251_v17 = vsel %vm2459_vm1, %v2316_v30, -inf }
 0x41c   : > { %v3252_v42 = vrot.slane %v3251_v17, 4 }
 0x41e   : > { %v1777_v19 = vpop.f32.mrf.mxu0 }
 0x41f   : > { %v1778_v6 = vadd.f32 %v11235_v37, %v1777_v19  ;;  %v3245_v19 = vrot.slane %v3244_v5, 4 }
 0x420   : > { %v5293_v33 = vld [vmem:[#allocation2 + $0x171] sm:$0xff] }
 0x421   : > { %8866 = vmatmul.msk.f32.gmra.mxu0 %vm649_vm0, %v517_v36  ;;  %9077 = vmatmul.msk.f32.gmra.mxu3 %vm2459_vm1, %v5293_v33  ;;  %v11313_v3 = vld [vmem:[#allocation2 + $0x170] sm:$0xff]  ;;  %v2317_v53 = vmax.f32 %v1778_v6, 0.0  ;;  %v3246_v6 = vmax.f32 %v3244_v5, %v3245_v19  ;;  %v522_v5 = vld [vmem:[%s9802_s26 + $0x438] sm:$0xff] }
 0x422   : > { %15088 = vst [vmem:[#allocation30_spill] sm:$0xff] %v11313_v3  ;;  %v11315_v14 = vld [vmem:[#allocation2 + $0x170] sm:$0xff] }
 0x423   : > { %15089 = vst [vmem:[#allocation31_spill] sm:$0xff] %v11315_v14  ;;  %v3258_v54 = vsel %vm2459_vm1, %v2317_v53, -inf }
 0x424   : > { %7515 = vst.msk [vmem:[#allocation2 + $0x170] sm:$0x1] %vm4253_vm2, %v14902_v40  ;;  %v3259_v48 = vrot.slane %v3258_v54, 4 }
 0x426   : > { %v1780_v12 = vpop.f32.mrf.mxu0 }
 0x427   : > { %v1781_v23 = vadd.f32 %v11235_v37, %v1780_v12  ;;  %v3253_v12 = vmax.f32 %v3251_v17, %v3252_v42 }
 0x429   : > { %8867 = vmatmul.msk.f32.gmra.mxu0 %vm649_vm0, %v518_v16  ;;  %v2318_v41 = vmax.f32 %v1781_v23, 0.0  ;;  %v3254_v30 = vrot.slane %v3253_v12, 2 }
 0x42b   : > { %v3265_v49 = vsel %vm2459_vm1, %v2318_v41, -inf }
 0x42c   : > { %v3266_v36 = vrot.slane %v3265_v49, 4 }
 0x42e   : > { %v1783_v20 = vpop.f32.mrf.mxu0  ;;  %v3267_v56 = vmax.f32 %v3265_v49, %v3266_v36 }
 0x42f   : > { %v1784_v24 = vadd.f32 %v11235_v37, %v1783_v20  ;;  %v521_v20 = vld [vmem:[%s9802_s26 + $0x430] sm:$0xff] }
 0x431   : > { %8868 = vmatmul.msk.f32.gmra.mxu0 %vm649_vm0, %v519_v43  ;;  %v2319_v32 = vmax.f32 %v1784_v24, 0.0  ;;  %v3260_v43 = vmax.f32 %v3258_v54, %v3259_v48 }
 0x433   : > { %v3272_v7 = vsel %vm2459_vm1, %v2319_v32, -inf  ;;  %v3261_v38 = vrot.slane %v3260_v43, 2  ;;  %v3247_v32 = vrot.slane %v3246_v6, 2 }
 0x434   : > { %v3273_v33 = vrot.slane %v3272_v7, 4 }
 0x435   : > { %v3262_v49 = vmax.f32 %v3260_v43, %v3261_v38  ;;  %v3248_v48 = vmax.f32 %v3246_v6, %v3247_v32  ;;  %v523_v32 = vld [vmem:[%s9802_s26 + $0x440] sm:$0xff] }
 0x436   : > { %v1786_v62 = vpop.f32.mrf.mxu0  ;;  %v3274_v23 = vmax.f32 %v3272_v7, %v3273_v33 }
 0x437   : > { %v1787_v8 = vadd.f32 %v11235_v37, %v1786_v62  ;;  %v3268_v62 = vrot.slane %v3267_v56, 2 }
 0x438   : > { %v3275_v17 = vrot.slane %v3274_v23, 2 }
 0x439   : > { %v2320_v28 = vmax.f32 %v1787_v8, 0.0  ;;  %8869 = vmatmul.msk.f32.gmra.mxu0 %vm649_vm0, %v520_v63  ;;  %v3255_v8 = vmax.f32 %v3253_v12, %v3254_v30  ;;  %v3269_v19 = vmax.f32 %v3267_v56, %v3268_v62 }
 0x43a   : > { %v3276_v33 = vmax.f32 %v3274_v23, %v3275_v17 }
 0x43b   : > { %v3279_v59 = vsel %vm2459_vm1, %v2320_v28, -inf  ;;  %v3270_v30 = vrot.slane %v3269_v19, 1 }
 0x43c   : > { %v3280_v16 = vrot.slane %v3279_v59, 4  ;;  %v3277_v43 = vrot.slane %v3276_v33, 1 }
 0x43e   : > { %v1789_v51 = vpop.f32.mrf.mxu0  ;;  %v3281_v53 = vmax.f32 %v3279_v59, %v3280_v16  ;;  %v3256_v16 = vrot.slane %v3255_v8, 1 }
 0x43f   : > { %v1790_v44 = vadd.f32 %v11235_v37, %v1789_v51 }
 0x440   : > { %v3282_v54 = vrot.slane %v3281_v53, 2  ;;  %v3257_v38 = vmax.f32 %v3255_v8, %v3256_v16 }
 0x441   : > { %v2321_v24 = vmax.f32 %v1790_v44, 0.0  ;;  %8870 = vmatmul.msk.f32.gmra.mxu0 %vm649_vm0, %v521_v20  ;;  %v3263_v20 = vrot.slane %v3262_v49, 1 }
 0x442   : > { %v3283_v51 = vmax.f32 %v3281_v53, %v3282_v54  ;;  %v3278_v53 = vmax.f32 %v3276_v33, %v3277_v43  ;;  %v524_v33 = vld [vmem:[%s9802_s26 + $0x448] sm:$0xff] }
 0x443   : > { %v3286_v41 = vsel %vm2459_vm1, %v2321_v24, -inf  ;;  %v3249_v24 = vrot.slane %v3248_v48, 1  ;;  %v3264_v23 = vmax.f32 %v3262_v49, %v3263_v20 }
 0x444   : > { %v3287_v63 = vrot.slane %v3286_v41, 4 }
 0x445   : > { %v3250_v17 = vmax.f32 %v3248_v48, %v3249_v24 }
 0x446   : > { %v3288_v28 = vmax.f32 %v3286_v41, %v3287_v63  ;;  %v1792_v42 = vpop.f32.mrf.mxu0  ;;  %v3284_v63 = vrot.slane %v3283_v51, 1 }
 0x447   : > { %v1793_v7 = vadd.f32 %v11235_v37, %v1792_v42  ;;  %v3271_v42 = vmax.f32 %v3269_v19, %v3270_v30  ;;  %v4676_v54 = vsel %vm4328_vm3, %v3257_v38, %v3250_v17  ;;  %v525_v30 = vld [vmem:[%s9802_s26 + $0x450] sm:$0xff] }
 0x448   : > { %v3289_v36 = vrot.slane %v3288_v28, 2 }
 0x449   : > { %v2322_v59 = vmax.f32 %v1793_v7, 0.0  ;;  %8871 = vmatmul.msk.f32.gmra.mxu0 %vm649_vm0, %v522_v5 }
 0x44a   : > { %v3290_v44 = vmax.f32 %v3288_v28, %v3289_v36  ;;  %v3285_v28 = vmax.f32 %v3283_v51, %v3284_v63  ;;  %v4677_v36 = vsel %vm4330_vm4, %v3264_v23, %v4676_v54 }
 0x44b   : > { %v3293_v12 = vsel %vm2459_vm1, %v2322_v59, -inf  ;;  %v4678_v59 = vsel %vm4332_vm5, %v3271_v42, %v4677_v36 }
 0x44c   : > { %v3294_v41 = vrot.slane %v3293_v12, 4  ;;  %v3291_v62 = vrot.slane %v3290_v44, 1  ;;  %v4679_v49 = vsel %vm4334_vm6, %v3278_v53, %v4678_v59 }
 0x44d   : > { %v4680_v48 = vsel %vm4336_vm7, %v3285_v28, %v4679_v49  ;;  %v528_v49 = vld [vmem:[%s9802_s26 + $0x468] sm:$0xff] }
 0x44e   : > { %v3295_v6 = vmax.f32 %v3293_v12, %v3294_v41  ;;  %v1795_v56 = vpop.f32.mrf.mxu0  ;;  %v3292_v8 = vmax.f32 %v3290_v44, %v3291_v62  ;;  %v11360_v44 = vld [vmem:[#allocation2 + $0x20] sm:$0xff] }
 0x44f   : > { %15090 = vst [vmem:[#allocation32_spill] sm:$0xff] %v11360_v44  ;;  %v527_v62 = vld [vmem:[%s9802_s26 + $0x460] sm:$0xff] }
 0x450   : > { %v3296_v5 = vrot.slane %v3295_v6, 2  ;;  %v4681_v12 = vsel %vm4338_vm8, %v3292_v8, %v4680_v48  ;;  %7474 = vst.msk [vmem:[#allocation2 + $0x20] sm:$0x1] %vm4253_vm2, %v14902_v40 }
 0x451   : > { %8872 = vmatmul.msk.f32.gmra.mxu0 %vm649_vm0, %v523_v32  ;;  %v8996_v32 = vld [vmem:[%s14893_s3 + $0x60] sm:$0xff] }
 0x452   : > { %v3297_v7 = vmax.f32 %v3295_v6, %v3296_v5  ;;  %v526_v6 = vld [vmem:[%s9802_s26 + $0x458] sm:$0xff]  ;;  %4923 = vmatpush.msrb.mxu1 %v8996_v32  ;;  %v1796_v5 = vadd.f32 %v11235_v37, %v1795_v56 }
 0x453   : > { %v11397_v32 = vld [vmem:[%s14893_s3 + $0x238] sm:$0xff] }
 0x454   : > { %v3298_v16 = vrot.slane %v3297_v7, 1  ;;  %v2323_v36 = vmax.f32 %v1796_v5, 0.0  ;;  %5607 = vmatpush.msrb.mxu3 %v11397_v32  ;;  %v529_v5 = vld [vmem:[%s9802_s26 + $0x470] sm:$0xff] }
 0x456   : > { %v3299_v19 = vmax.f32 %v3297_v7, %v3298_v16  ;;  %v1798_v20 = vpop.f32.mrf.mxu0  ;;  %v3300_v56 = vsel %vm2459_vm1, %v2323_v36, -inf }
 0x457   : > { %v1799_v17 = vadd.f32 %v11235_v37, %v1798_v20 }
 0x458   : > { %v4682_v51 = vsel %vm4340_vm9, %v3299_v19, %v4681_v12 }
 0x459   : > { %4704 = vst.msk [vmem:[#allocation2 + $0x181] sm:$0xff] %vm2459_vm1, %v4682_v51  ;;  %8873 = vmatmul.msk.f32.gmra.mxu0 %vm649_vm0, %v524_v33  ;;  %v2324_v28 = vmax.f32 %v1799_v17, 0.0 }
 0x45b   : > { %v3307_v48 = vsel %vm2459_vm1, %v2324_v28, -inf }
 0x45c   : > { %v3308_v51 = vrot.slane %v3307_v48, 4 }
 0x45e   : > { %v1801_v24 = vpop.f32.mrf.mxu0 }
 0x45f   : > { %v1802_v42 = vadd.f32 %v11235_v37, %v1801_v24 }
 0x460   : > { %v5294_v41 = vld [vmem:[#allocation2 + $0x181] sm:$0xff] }
 0x461   : > { %8874 = vmatmul.msk.f32.gmra.mxu0 %vm649_vm0, %v525_v30  ;;  %9078 = vmatmul.msk.f32.gmra.mxu3 %vm2459_vm1, %v5294_v41  ;;  %v11367_v43 = vld [vmem:[#allocation2 + $0x180] sm:$0xff]  ;;  %v2325_v7 = vmax.f32 %v1802_v42, 0.0 }
 0x462   : > { %15091 = vst [vmem:[#allocation33_spill] sm:$0xff] %v11367_v43  ;;  %v11369_v38 = vld [vmem:[#allocation2 + $0x180] sm:$0xff] }
 0x463   : > { %15092 = vst [vmem:[#allocation34_spill] sm:$0xff] %v11369_v38  ;;  %v3314_v20 = vsel %vm2459_vm1, %v2325_v7, -inf  ;;  %v531_v38 = vld [vmem:[%s9802_s26 + $0x480] sm:$0xff] }
 0x464   : > { %7516 = vst.msk [vmem:[#allocation2 + $0x180] sm:$0x1] %vm4253_vm2, %v14902_v40  ;;  %v3315_v30 = vrot.slane %v3314_v20, 4 }
 0x466   : > { %v1804_v63 = vpop.f32.mrf.mxu0 }
 0x467   : > { %v1805_v53 = vadd.f32 %v11235_v37, %v1804_v63  ;;  %v3301_v63 = vrot.slane %v3300_v56, 4 }
 0x469   : > { %8875 = vmatmul.msk.f32.gmra.mxu0 %vm649_vm0, %v526_v6  ;;  %v2326_v8 = vmax.f32 %v1805_v53, 0.0  ;;  %v11404_v53 = vld [vmem:[%s14893_s3 + $0x230] sm:$0xff]  ;;  %v3302_v7 = vmax.f32 %v3300_v56, %v3301_v63 }
 0x46a   : > { %5608 = vmatpush.msrb.mxu3 %v11404_v53 }
 0x46b   : > { %v3321_v33 = vsel %vm2459_vm1, %v2326_v8, -inf  ;;  %v11411_v8 = vld [vmem:[%s14893_s3 + $0x228] sm:$0xff] }
 0x46c   : > { %v3322_v6 = vrot.slane %v3321_v33, 4  ;;  %5609 = vmatpush.msrb.mxu3 %v11411_v8 }
 0x46e   : > { %v1807_v23 = vpop.f32.mrf.mxu0  ;;  %v3323_v36 = vmax.f32 %v3321_v33, %v3322_v6  ;;  %v3303_v33 = vrot.slane %v3302_v7, 2 }
 0x46f   : > { %v1808_v54 = vadd.f32 %v11235_v37, %v1807_v23 }
 0x471   : > { %8876 = vmatmul.msk.f32.gmra.mxu0 %vm649_vm0, %v527_v62  ;;  %v2327_v59 = vmax.f32 %v1808_v54, 0.0  ;;  %v3309_v62 = vmax.f32 %v3307_v48, %v3308_v51  ;;  %v3316_v54 = vmax.f32 %v3314_v20, %v3315_v30 }
 0x473   : > { %v3328_v24 = vsel %vm2459_vm1, %v2327_v59, -inf  ;;  %v3317_v20 = vrot.slane %v3316_v54, 2 }
 0x474   : > { %v3329_v23 = vrot.slane %v3328_v24, 4 }
 0x476   : > { %v1810_v16 = vpop.f32.mrf.mxu0  ;;  %v3330_v59 = vmax.f32 %v3328_v24, %v3329_v23  ;;  %v11425_v24 = vld [vmem:[%s14893_s3 + $0x218] sm:$0xff] }
 0x477   : > { %v1811_v19 = vadd.f32 %v11235_v37, %v1810_v16 }
 0x478   : > { %v3331_v30 = vrot.slane %v3330_v59, 2 }
 0x479   : > { %v2328_v12 = vmax.f32 %v1811_v19, 0.0  ;;  %8877 = vmatmul.msk.f32.gmra.mxu0 %vm649_vm0, %v528_v49  ;;  %v3310_v49 = vrot.slane %v3309_v62, 2  ;;  %v11418_v19 = vld [vmem:[%s14893_s3 + $0x220] sm:$0xff] }
 0x47a   : > { %5610 = vmatpush.msrb.mxu3 %v11418_v19 }
 0x47b   : > { %v3335_v41 = vsel %vm2459_vm1, %v2328_v12, -inf  ;;  %v3324_v12 = vrot.slane %v3323_v36, 2 }
 0x47c   : > { %v3336_v17 = vrot.slane %v3335_v41, 4  ;;  %5611 = vmatpush.msrb.mxu3 %v11425_v24 }
 0x47d   : > { %v3325_v40 = vmax.f32 %v3323_v36, %v3324_v12 }
 0x47e   : > { %v1813_v42 = vpop.f32.mrf.mxu0  ;;  %v3337_v48 = vmax.f32 %v3335_v41, %v3336_v17  ;;  %v3311_v41 = vmax.f32 %v3309_v62, %v3310_v49  ;;  %v530_v17 = vld [vmem:[%s9802_s26 + $0x478] sm:$0xff]  ;;  %v11439_v62 = vld [vmem:[%s14893_s3 + $0x208] sm:$0xff]  ;;  %v3332_v49 = vmax.f32 %v3330_v59, %v3331_v30 }
 0x47f   : > { %v1814_v28 = vadd.f32 %v11235_v37, %v1813_v42  ;;  %v11432_v42 = vld [vmem:[%s14893_s3 + $0x210] sm:$0xff]  ;;  %v3326_v12 = vrot.slane %v3325_v40, 1 }
 0x480   : > { %v3338_v63 = vrot.slane %v3337_v48, 2  ;;  %5612 = vmatpush.msrb.mxu3 %v11432_v42 }
 0x481   : > { %v2329_v16 = vmax.f32 %v1814_v28, 0.0  ;;  %8878 = vmatmul.msk.f32.gmra.mxu0 %vm649_vm0, %v529_v5  ;;  %v3318_v5 = vmax.f32 %v3316_v54, %v3317_v20  ;;  %v3327_v14 = vmax.f32 %v3325_v40, %v3326_v12  ;;  %v532_v12 = vld [vmem:[%s9802_s26 + $0x488] sm:$0xff] }
 0x482   : > { %5613 = vmatpush.msrb.mxu3 %v11439_v62  ;;  %v3339_v54 = vmax.f32 %v3337_v48, %v3338_v63  ;;  %v3333_v48 = vrot.slane %v3332_v49, 1 }
 0x483   : > { %v3342_v56 = vsel %vm2459_vm1, %v2329_v16, -inf  ;;  %v3304_v16 = vmax.f32 %v3302_v7, %v3303_v33  ;;  %v11446_v7 = vld [vmem:[%s14893_s3 + $0x200] sm:$0xff]  ;;  %v3319_v36 = vrot.slane %v3318_v5, 1 }
 0x484   : > { %v3343_v51 = vrot.slane %v3342_v56, 4  ;;  %5614 = vmatpush.msrb.mxu3 %v11446_v7 }
 0x485   : > { %v3305_v59 = vrot.slane %v3304_v16, 1 }
 0x486   : > { %v3344_v6 = vmax.f32 %v3342_v56, %v3343_v51  ;;  %v1816_v23 = vpop.f32.mrf.mxu0  ;;  %v3312_v51 = vrot.slane %v3311_v41, 1 }
 0x487   : > { %v1817_v28 = vadd.f32 %v11235_v37, %v1816_v23  ;;  %v9547_v23 = vld [vmem:[%s14893_s3 + $0xb8] sm:$0xff]  ;;  %v3306_v18 = vmax.f32 %v3304_v16, %v3305_v59 }
 0x488   : > { %v3345_v61 = vrot.slane %v3344_v6, 2  ;;  %5770 = vmatpush.msra.mxu3 %v9547_v23  ;;  %v3313_v63 = vmax.f32 %v3311_v41, %v3312_v51  ;;  %v9549_v23 = vld [vmem:[%s14893_s3 + $0xa8] sm:$0xff]  ;;  %v3334_v41 = vmax.f32 %v3332_v49, %v3333_v48 }
 0x489   : > { %v2330_v56 = vmax.f32 %v1817_v28, 0.0  ;;  %8879 = vmatmul.msk.f32.gmra.mxu0 %vm649_vm0, %v530_v17  ;;  %v3340_v17 = vrot.slane %v3339_v54, 1 }
 0x48a   : > { %v3346_v20 = vmax.f32 %v3344_v6, %v3345_v61  ;;  %v9548_v61 = vld [vmem:[%s14893_s3 + $0xb0] sm:$0xff]  ;;  %v3320_v6 = vmax.f32 %v3318_v5, %v3319_v36  ;;  %v4683_v51 = vsel %vm4328_vm3, %v3313_v63, %v3306_v18  ;;  %v9550_v5 = vld [vmem:[%s14893_s3 + $0xa0] sm:$0xff]  ;;  %v9553_v63 = vld [vmem:[%s14893_s3 + $0x88] sm:$0xff] }
 0x48b   : > { %v3349_v33 = vsel %vm2459_vm1, %v2330_v56, -inf  ;;  %5771 = vmatpush.msra.mxu3 %v9548_v61  ;;  %v15094_v61 = vmov 0.0  }
 0x48c   : > { %v3350_v30 = vrot.slane %v3349_v33, 4  ;;  %v3347_v56 = vrot.slane %v3346_v20, 1  ;;  %v4684_v40 = vsel %vm4330_vm4, %v3320_v6, %v4683_v51 }
 0x48d   : > { %5772 = vmatpush.msra.mxu3 %v9549_v23  ;;  %v4685_v36 = vsel %vm4332_vm5, %v3327_v14, %v4684_v40  ;;  %v8995_v40 = vld [vmem:[%s14893_s3 + $0x58] sm:$0xff] }
 0x48e   : > { %v3351_v28 = vmax.f32 %v3349_v33, %v3350_v30  ;;  %v11453_v26 = vpop.f32.mrf.mxu0  ;;  %v3341_v33 = vmax.f32 %v3339_v54, %v3340_v17  ;;  %v3348_v16 = vmax.f32 %v3346_v20, %v3347_v56  ;;  %v4686_v18 = vsel %vm4334_vm6, %v3334_v41, %v4685_v36  ;;  %v9552_v20 = vld [vmem:[%s14893_s3 + $0x90] sm:$0xff]  ;;  %v9554_v17 = vld [vmem:[%s14893_s3 + $0x80] sm:$0xff]  ;;  %4924 = vmatpush.msrb.mxu1 %v8995_v40 }
 0x48f   : > { %5773 = vmatpush.msra.mxu3 %v9550_v5  ;;  %v533_v56 = vld [vmem:[%s9802_s26 + $0x490] sm:$0xff] }
 0x490   : > { %v3352_v25 = vrot.slane %v3351_v28, 2  ;;  %v5558_v5 = vld [vmem:[#allocation2 + $0x11] sm:$0xff] }
 0x491   : > { %8880 = vmatmul.msk.f32.gmra.mxu0 %vm649_vm0, %v531_v38  ;;  %v9551_v38 = vld [vmem:[%s14893_s3 + $0x98] sm:$0xff]  ;;  %v9556_v36 = vld [vmem:[%s14893_s3 + $0x170] sm:$0xff] }
 0x492   : > { %v3353_v30 = vmax.f32 %v3351_v28, %v3352_v25  ;;  %5774 = vmatpush.msra.mxu3 %v9551_v38  ;;  %v4687_v25 = vsel %vm4336_vm7, %v3341_v33, %v4686_v18  ;;  %v11488_v28 = vld [vmem:[#allocation2 + $0x30] sm:$0xff]  ;;  %v535_v38 = vld [vmem:[%s9802_s26 + $0x4a0] sm:$0xff]  ;;  %v9557_v18 = vld [vmem:[%s14893_s3 + $0x168] sm:$0xff] }
 0x493   : > { %v4688_v14 = vsel %vm4338_vm8, %v3348_v16, %v4687_v25  ;;  %15093 = vst [vmem:[#allocation35_spill] sm:$0xff] %v11488_v28  ;;  %v9555_v16 = vld [vmem:[%s14893_s3 + $0x178] sm:$0xff] }
 0x494   : > { %v3354_v59 = vrot.slane %v3353_v30, 1  ;;  %5775 = vmatpush.msra.mxu3 %v9552_v20  ;;  %7475 = vst.msk [vmem:[#allocation2 + $0x30] sm:$0x1] %vm4253_vm2, %v15094_v61  ;;  %v9558_v20 = vld [vmem:[%s14893_s3 + $0x160] sm:$0xff] }
 0x496   : > { %v3355_v49 = vmax.f32 %v3353_v30, %v3354_v59  ;;  %v1822_v54 = vpop.f32.mrf.mxu0  ;;  %5776 = vmatpush.msra.mxu3 %v9553_v63  ;;  %v534_v30 = vld [vmem:[%s9802_s26 + $0x498] sm:$0xff] }
 0x497   : > { %v1823_v25 = vadd.f32 %v11235_v37, %v1822_v54  ;;  %v9559_v63 = vld [vmem:[%s14893_s3 + $0x158] sm:$0xff] }
 0x498   : > { %v4689_v48 = vsel %vm4340_vm9, %v3355_v49, %v4688_v14  ;;  %5777 = vmatpush.msra.mxu3 %v9554_v17  ;;  %v1820_v14 = vadd.f32 %v11235_v37, %v11453_v26  ;;  %v9103_v26 = vld [vmem:[%s14893_s3 + $0x1f8] sm:$0xff] }
 0x499   : > { %4705 = vst.msk [vmem:[#allocation2 + $0x191] sm:$0xff] %vm2459_vm1, %v4689_v48  ;;  %8881 = vmatmul.msk.f32.gmra.mxu0 %vm649_vm0, %v532_v12  ;;  %v5559_v12 = vld [vmem:[#allocation2 + $0x21] sm:$0xff]  ;;  %v2332_v17 = vmax.f32 %v1823_v25, 0.0  ;;  %5517 = vmatpush.msra.mxu2 %v9103_v26 }
 0x49a   : > { %v8992_v26 = vld [vmem:[%s14893_s3 + $0x40] sm:$0xff] }
 0x49e   : > { %v1825_v6 = vpop.f32.mrf.mxu0 }
 0x49f   : > { %v1826_v49 = vadd.f32 %v11235_v37, %v1825_v6 }
 0x4a0   : > { %v5295_v23 = vld [vmem:[#allocation2 + $0x191] sm:$0xff] }
 0x4a1   : > { %8882 = vmatmul.msk.f32.gmra.mxu0 %vm649_vm0, %v533_v56  ;;  %9079 = vmatmul.msk.f32.gmra.mxu3 %vm2459_vm1, %v5295_v23  ;;  %v11495_v41 = vld [vmem:[#allocation2 + $0x190] sm:$0xff]  ;;  %v2333_v6 = vmax.f32 %v1826_v49, 0.0  ;;  %v2331_v23 = vmax.f32 %v1820_v14, 0.0  ;;  %v9562_v14 = vld [vmem:[%s14893_s3 + $0x140] sm:$0xff] }
 0x4a2   : > { %15095 = vst [vmem:[#allocation36_spill] sm:$0xff] %v11495_v41  ;;  %v11497_v51 = vld [vmem:[#allocation2 + $0x190] sm:$0xff] }
 0x4a3   : > { %15096 = vst [vmem:[#allocation37_spill] sm:$0xff] %v11497_v51  ;;  %v9560_v56 = vld [vmem:[%s14893_s3 + $0x150] sm:$0xff]  ;;  %v3370_v49 = vsel %vm2459_vm1, %v2333_v6, -inf }
 0x4a4   : > { %7517 = vst.msk [vmem:[#allocation2 + $0x190] sm:$0x1] %vm4253_vm2, %v15094_v61 }
 0x4a6   : > { %v1828_v33 = vpop.f32.mrf.mxu0 }
 0x4a7   : > { %v1829_v48 = vadd.f32 %v11235_v37, %v1828_v33 }
 0x4a9   : > { %8883 = vmatmul.msk.f32.gmra.mxu0 %vm649_vm0, %v534_v30  ;;  %9120 = vmatmul.msk.f32.vlgmr.msrb.gmra.mxu3 %vm2459_vm1, %v5558_v5  ;;  %v2334_v33 = vmax.f32 %v1829_v48, 0.0  ;;  %v5560_v30 = vld [vmem:[#allocation2 + $0x31] sm:$0xff]  ;;  %v3356_v48 = vsel %vm2459_vm1, %v2331_v23, -inf  ;;  %v3371_v23 = vrot.slane %v3370_v49, 4 }
 0x4aa   : > { %5949 = vmatpush.msrb.mxu3 %v9555_v16  ;;  %v536_v16 = vld [vmem:[%s9802_s26 + $0x4a8] sm:$0xff] }
 0x4ac   : > { %5950 = vmatpush.msrb.mxu3 %v9556_v36  ;;  %v8994_v36 = vld [vmem:[%s14893_s3 + $0x50] sm:$0xff] }
 0x4ad   : > { %4925 = vmatpush.msrb.mxu1 %v8994_v36 }
 0x4ae   : > { %v1831_v59 = vpop.f32.mrf.mxu0  ;;  %5951 = vmatpush.msrb.mxu3 %v9557_v18  ;;  %v3363_v18 = vsel %vm2459_vm1, %v2332_v17, -inf }
 0x4af   : > { %v1832_v54 = vadd.f32 %v11235_v37, %v1831_v59  ;;  %v9102_v59 = vld [vmem:[%s14893_s3 + $0x1f0] sm:$0xff]  ;;  %v3364_v17 = vrot.slane %v3363_v18, 4 }
 0x4b0   : > { %5952 = vmatpush.msrb.mxu3 %v9558_v20  ;;  %5518 = vmatpush.msra.mxu2 %v9102_v59  ;;  %v9101_v20 = vld [vmem:[%s14893_s3 + $0x1e8] sm:$0xff] }
 0x4b1   : > { %8884 = vmatmul.msk.f32.gmra.mxu0 %vm649_vm0, %v535_v38  ;;  %9121 = vmatmul.msk.f32.gmra.mxu3 %vm2459_vm1, %v5559_v12  ;;  %v2335_v5 = vmax.f32 %v1832_v54, 0.0  ;;  %v9561_v38 = vld [vmem:[%s14893_s3 + $0x148] sm:$0xff]  ;;  %v3377_v54 = vsel %vm2459_vm1, %v2334_v33, -inf  ;;  %v3365_v59 = vmax.f32 %v3363_v18, %v3364_v17 }
 0x4b2   : > { %5953 = vmatpush.msrb.mxu3 %v9559_v63  ;;  %v8993_v12 = vld [vmem:[%s14893_s3 + $0x48] sm:$0xff]  ;;  %5519 = vmatpush.msra.mxu2 %v9101_v20 }
 0x4b3   : > { %v3384_v6 = vsel %vm2459_vm1, %v2335_v5, -inf  ;;  %4926 = vmatpush.msrb.mxu1 %v8993_v12  ;;  %v9099_v5 = vld [vmem:[%s14893_s3 + $0x1d8] sm:$0xff]  ;;  %v537_v12 = vld [vmem:[%s9802_s26 + $0x4b0] sm:$0xff]  ;;  %v5561_v20 = vld [vmem:[#allocation2 + $0x41] sm:$0xff] }
 0x4b4   : > { %5954 = vmatpush.msrb.mxu3 %v9560_v56  ;;  %v9100_v56 = vld [vmem:[%s14893_s3 + $0x1e0] sm:$0xff]  ;;  %v3385_v36 = vrot.slane %v3384_v6, 4 }
 0x4b5   : > { %4927 = vmatpush.msrb.mxu1 %v8992_v26  ;;  %5520 = vmatpush.msra.mxu2 %v9100_v56 }
 0x4b6   : > { %v1834_v40 = vpop.f32.mrf.mxu0  ;;  %5955 = vmatpush.msrb.mxu3 %v9561_v38  ;;  %v3386_v18 = vmax.f32 %v3384_v6, %v3385_v36 }
 0x4b7   : > { %v1835_v25 = vadd.f32 %v11235_v37, %v1834_v40  ;;  %v11571_v40 = vld [vmem:[#allocation2 + $0x90] sm:$0xff]  ;;  %5521 = vmatpush.msra.mxu2 %v9099_v5  ;;  %v3366_v5 = vrot.slane %v3365_v59, 2 }
 0x4b8   : > { %5956 = vmatpush.msrb.mxu3 %v9562_v14  ;;  %9000 = vmatmul.msk.f32.vlgmr.msrb.gmra.mxu1 %vm2459_vm1, %v11571_v40  ;;  %v9098_v14 = vld [vmem:[%s14893_s3 + $0x1d0] sm:$0xff]  ;;  %v3387_v6 = vrot.slane %v3386_v18, 2 }
 0x4b9   : > { %v2336_v63 = vmax.f32 %v1835_v25, 0.0  ;;  %8885 = vmatmul.msk.f32.gmra.mxu0 %vm649_vm0, %v536_v16  ;;  %9122 = vmatmul.msk.f32.gmra.mxu3 %vm2459_vm1, %v5560_v30  ;;  %v3357_v30 = vrot.slane %v3356_v48, 4  ;;  %v3378_v16 = vrot.slane %v3377_v54, 4 }
 0x4ba   : > { %5522 = vmatpush.msra.mxu2 %v9098_v14  ;;  %v11599_v14 = vld [vmem:[%s14892_s2] ss:$0 sm:$0xff] }
 0x4bb   : > { %v3391_v33 = vsel %vm2459_vm1, %v2336_v63, -inf  ;;  %v3372_v63 = vmax.f32 %v3370_v49, %v3371_v23  ;;  %v3358_v56 = vmax.f32 %v3356_v48, %v3357_v30  ;;  %v3379_v51 = vmax.f32 %v3377_v54, %v3378_v16  ;;  %v9563_v16 = vld [vmem:[%s14893_s3 + $0x38] sm:$0xff] }
 0x4bc   : > { %v3392_v38 = vrot.slane %v3391_v33, 4  ;;  %5523 = vmatpush.msra.mxu2 %v9097_v47 }
 0x4bd   : > { %v3373_v49 = vrot.slane %v3372_v63, 2  ;;  %v3359_v54 = vrot.slane %v3358_v56, 2  ;;  %v3380_v23 = vrot.slane %v3379_v51, 2 }
 0x4be   : > { %v1837_v25 = vpop.f32.mrf.mxu0  ;;  %v3393_v57 = vmax.f32 %v3391_v33, %v3392_v38  ;;  %v3367_v33 = vmax.f32 %v3365_v59, %v3366_v5 }
 0x4bf   : > { %v1838_v26 = vadd.f32 %v11235_v37, %v1837_v25  ;;  %v9096_v37 = vld [vmem:[%s14893_s3 + $0x1c0] sm:$0xff]  ;;  %v538_v25 = vld [vmem:[%s9802_s26 + $0x4b8] sm:$0xff]  ;;  %v3360_v59 = vmax.f32 %v3358_v56, %v3359_v54  ;;  %v3381_v5 = vmax.f32 %v3379_v51, %v3380_v23 }
 0x4c0   : > { %5524 = vmatpush.msra.mxu2 %v9096_v37  ;;  %v3394_v36 = vrot.slane %v3393_v57, 2  ;;  %v11605_v37 = vld [vmem:[#allocation2 + $0x50] sm:$0xff] }
 0x4c1   : > { %v2337_v17 = vmax.f32 %v1838_v26, 0.0  ;;  %8886 = vmatmul.msk.f32.gmra.mxu0 %vm649_vm0, %v537_v12  ;;  %9123 = vmatmul.msk.f32.gmra.mxu3 %vm2459_vm1, %v5561_v20  ;;  %v5562_v12 = vld [vmem:[#allocation2 + $0x51] sm:$0xff]  ;;  %v3374_v20 = vmax.f32 %v3372_v63, %v3373_v49  ;;  %15097 = vst [vmem:[#allocation38_spill] sm:$0xff] %v11605_v37  ;;  %v3388_v63 = vmax.f32 %v3386_v18, %v3387_v6  ;;  %v3361_v18 = vrot.slane %v3360_v59, 1 }
 0x4c2   : > { %5697 = vmatpush.msrb.mxu2 %v9563_v16  ;;  %7477 = vst.msk [vmem:[#allocation2 + $0x50] sm:$0x1] %vm4253_vm2, %v15094_v61  ;;  %v3395_v16 = vmax.f32 %v3393_v57, %v3394_v36  ;;  %v11615_v54 = vld [vmem:[#allocation2 + $0x91] sm:$0xff]  ;;  %v3382_v23 = vrot.slane %v3381_v5, 1  ;;  %v9567_v57 = vld [vmem:[%s14893_s3 + $0x20] sm:$0xff] }
 0x4c3   : > { %v3398_v48 = vsel %vm2459_vm1, %v2337_v17, -inf  ;;  %v9565_v17 = vld [vmem:[%s14893_s3 + $0x30] sm:$0xff]  ;;  %7489 = vst.msk [vmem:[#allocation2 + $0x90] sm:$0xff] %vm2459_vm1, %v15094_v61  ;;  %v3389_v36 = vrot.slane %v3388_v63, 1  ;;  %v3362_v21 = vmax.f32 %v3360_v59, %v3361_v18  ;;  %v9571_v18 = vld [vmem:[%s14893_s3] sm:$0xff] }
 0x4c4   : > { %v3399_v30 = vrot.slane %v3398_v48, 4  ;;  %5698 = vmatpush.msrb.mxu2 %v9565_v17  ;;  %v3375_v17 = vrot.slane %v3374_v20, 1  ;;  %7490 = vst.msk [vmem:[#allocation2 + $0x98] sm:$0x1] %vm4253_vm2, %v15094_v61  ;;  %v3383_v39 = vmax.f32 %v3381_v5, %v3382_v23 }
 0x4c5   : > { %7491 = vst.msk [vmem:[#allocation2 + $0x98] sm:$0x1] %vm4253_vm2, %v15094_v61 }
 0x4c6   : > { %v3400_v47 = vmax.f32 %v3398_v48, %v3399_v30  ;;  %v1840_v38 = vpop.f32.mrf.mxu0  ;;  %v3368_v30 = vrot.slane %v3367_v33, 1 }
 0x4c7   : > { %v1841_v26 = vadd.f32 %v11599_v14, %v1840_v38  ;;  %v9566_v38 = vld [vmem:[%s14893_s3 + $0x28] sm:$0xff] }
 0x4c8   : > { %v3401_v48 = vrot.slane %v3400_v47, 2  ;;  %5699 = vmatpush.msrb.mxu2 %v9566_v38  ;;  %v9568_v38 = vld [vmem:[%s14893_s3 + $0x18] sm:$0xff] }
 0x4c9   : > { %v2338_v49 = vmax.f32 %v1841_v26, 0.0  ;;  %8887 = vmatmul.msk.f32.gmra.mxu0 %vm649_vm0, %v538_v25  ;;  %9124 = vmatmul.msk.f32.gmra.mxu3 %vm2459_vm1, %v5562_v12  ;;  %v3396_v25 = vrot.slane %v3395_v16, 1 }
 0x4ca   : > { %v3402_v51 = vmax.f32 %v3400_v47, %v3401_v48  ;;  %5700 = vmatpush.msrb.mxu2 %v9567_v57  ;;  %v3369_v47 = vmax.f32 %v3367_v33, %v3368_v30  ;;  %v539_v48 = vld [vmem:[%s9802_s26 + $0x4c0] sm:$0xff]  ;;  %v3376_v57 = vmax.f32 %v3374_v20, %v3375_v17  ;;  %v9569_v33 = vld [vmem:[%s14893_s3 + $0x10] sm:$0xff]  ;;  %v3390_v30 = vmax.f32 %v3388_v63, %v3389_v36  ;;  %v9570_v20 = vld [vmem:[%s14893_s3 + $0x8] sm:$0xff] }
 0x4cb   : > { %v3405_v56 = vsel %vm2459_vm1, %v2338_v49, -inf  ;;  %v5563_v49 = vld [vmem:[#allocation2 + $0x61] sm:$0xff] }
 0x4cc   : > { %v3406_v6 = vrot.slane %v3405_v56, 4  ;;  %5701 = vmatpush.msrb.mxu2 %v9568_v38  ;;  %v3403_v45 = vrot.slane %v3402_v51, 1  ;;  %v540_v36 = vld [vmem:[%s9802_s26 + $0x4c8] sm:$0xff] }
 0x4ce   : > { %v3407_v12 = vmax.f32 %v3405_v56, %v3406_v6  ;;  %v11624_v26 = vpop.f32.mrf.mxu0  ;;  %5702 = vmatpush.msrb.mxu2 %v9569_v33  ;;  %v4484_v56 = vsel %vm4328_vm3, %v3369_v47, %v3362_v21  ;;  %v3397_v6 = vmax.f32 %v3395_v16, %v3396_v25  ;;  %v3404_v5 = vmax.f32 %v3402_v51, %v3403_v45  ;;  %v5564_v47 = vld [vmem:[#allocation2 + $0x71] sm:$0xff]  ;;  %v11658_v51 = vld [vmem:[#allocation2 + $0x60] sm:$0xff] }
 0x4cf   : > { %v4485_v59 = vsel %vm4330_vm4, %v3376_v57, %v4484_v56  ;;  %15099 = vst [vmem:[#allocation40_spill] sm:$0xff] %v11658_v51  ;;  %v9573_v56 = vld [vmem:[%s14893_s3 + $0x130] sm:$0xff] }
 0x4d0   : > { %v3408_v2 = vrot.slane %v3407_v12, 2  ;;  %5703 = vmatpush.msrb.mxu2 %v9570_v20  ;;  %v4486_v17 = vsel %vm4332_vm5, %v3383_v39, %v4485_v59  ;;  %v11654_v39 = vld [vmem:[#allocation2 + $0x40] sm:$0xff]  ;;  %7478 = vst.msk [vmem:[#allocation2 + $0x60] sm:$0x1] %vm4253_vm2, %v15094_v61  ;;  %v9574_v20 = vld [vmem:[%s14893_s3 + $0x128] sm:$0xff]  ;;  %v11685_v59 = vpop.f32.mrf.mxu3 }
 0x4d1   : > { %8888 = vmatmul.msk.f32.gmra.mxu0 %vm649_vm0, %v539_v48  ;;  %9125 = vmatmul.msk.f32.gmra.mxu3 %vm2459_vm1, %v5563_v49  ;;  %v4487_v21 = vsel %vm4334_vm6, %v3390_v30, %v4486_v17  ;;  %15098 = vst [vmem:[#allocation39_spill] sm:$0xff] %v11654_v39  ;;  %v541_v48 = vld [vmem:[%s9802_s26 + $0x4d0] sm:$0xff]  ;;  %v5565_v49 = vld [vmem:[#allocation2 + $0x81] sm:$0xff]  ;;  %v9572_v30 = vld [vmem:[%s14893_s3 + $0x138] sm:$0xff] }
 0x4d2   : > { %v3409_v38 = vmax.f32 %v3407_v12, %v3408_v2  ;;  %5704 = vmatpush.msrb.mxu2 %v9571_v18  ;;  %v4488_v2 = vsel %vm4336_vm7, %v3397_v6, %v4487_v21  ;;  %7476 = vst.msk [vmem:[#allocation2 + $0x40] sm:$0x1] %vm4253_vm2, %v15094_v61  ;;  %v9576_v17 = vld [vmem:[%s14893_s3 + $0x118] sm:$0xff]  ;;  %v543_v21 = vld [vmem:[%s9802_s26 + $0x4e0] sm:$0xff] }
 0x4d3   : > { %v4489_v25 = vsel %vm4338_vm8, %v3404_v5, %v4488_v2  ;;  %15101 = vst [vmem:[#allocation42_spill] sm:$0xff] %v11685_v59  ;;  %v9575_v5 = vld [vmem:[%s14893_s3 + $0x120] sm:$0xff] }
 0x4d4   : > { %v3410_v63 = vrot.slane %v3409_v38, 1 }
 0x4d6   : > { %v3411_v16 = vmax.f32 %v3409_v38, %v3410_v63  ;;  %v1846_v23 = vpop.f32.mrf.mxu0  ;;  %v542_v38 = vld [vmem:[%s9802_s26 + $0x4d8] sm:$0xff]  ;;  %v9577_v63 = vld [vmem:[%s14893_s3 + $0x110] sm:$0xff] }
 0x4d7   : > { %v1847_v2 = vadd.f32 %v11599_v14, %v1846_v23  ;;  %v9579_v23 = vld [vmem:[%s14893_s3 + $0x100] sm:$0xff] }
 0x4d8   : > { %v4490_v45 = vsel %vm4340_vm9, %v3411_v16, %v4489_v25  ;;  %v1844_v16 = vadd.f32 %v11599_v14, %v11624_v26 }
 0x4d9   : > { %4549 = vst.msk [vmem:[#allocation2 + $0xa0] sm:$0xff] %vm2459_vm1, %v4490_v45  ;;  %8889 = vmatmul.msk.f32.gmra.mxu0 %vm649_vm0, %v540_v36  ;;  %9126 = vmatmul.msk.f32.gmra.mxu3 %vm2459_vm1, %v5564_v47  ;;  %v2340_v26 = vmax.f32 %v1847_v2, 0.0 }
 0x4da   : > { %v2339_v25 = vmax.f32 %v1844_v16, 0.0 }
 0x4de   : > { %v1849_v12 = vpop.f32.mrf.mxu0 }
 0x4e0   : > { %v11663_v57 = vld [vmem:[#allocation2 + $0xa0] sm:$0xff] }
 0x4e1   : > { %v11665_v33 = vld [vmem:[#allocation2 + $0xa1] sm:$0xff]  ;;  %8890 = vmatmul.msk.f32.gmra.mxu0 %vm649_vm0, %v541_v48  ;;  %9001 = vmatmul.msk.f32.gmra.mxu1 %vm2459_vm1, %v11663_v57 }
 0x4e2   : > { %15100 = vst [vmem:[#allocation41_spill] sm:$0xff] %v11665_v33  ;;  %9104 = vmatmul.msk.f32.vlgmr.msra.gmra.mxu2 %vm2459_vm1, %v11663_v57  ;;  %9127 = vmatmul.msk.f32.gmra.mxu3 %vm2459_vm1, %v5565_v49  ;;  %v544_v48 = vld [vmem:[%s9802_s26 + $0x4e8] sm:$0xff]  ;;  %v3419_v49 = vsel %vm2459_vm1, %v2340_v26, -inf }
 0x4e3   : > { %7492 = vst.msk [vmem:[#allocation2 + $0xa8] sm:$0x1] %vm4253_vm2, %v15094_v61  ;;  %5868 = vmatpush.msra.mxu2 %v9572_v30 }
 0x4e5   : > { %5869 = vmatpush.msra.mxu2 %v9573_v56 }
 0x4e6   : > { %v1852_v6 = vpop.f32.mrf.mxu0 }
 0x4e7   : > { %5870 = vmatpush.msra.mxu2 %v9574_v20  ;;  %v1853_v36 = vadd.f32 %v11599_v14, %v1852_v6  ;;  %v3412_v6 = vsel %vm2459_vm1, %v2339_v25, -inf }
 0x4e9   : > { %8891 = vmatmul.msk.f32.gmra.mxu0 %vm649_vm0, %v542_v38  ;;  %5871 = vmatpush.msra.mxu2 %v9575_v5  ;;  %v2342_v45 = vmax.f32 %v1853_v36, 0.0 }
 0x4ea   : > { %9144 = vmatmul.msk.f32.vlgmr.msra.gmra.mxu3 %vm2459_vm1, %v11615_v54  ;;  %v9578_v54 = vld [vmem:[%s14893_s3 + $0x108] sm:$0xff] }
 0x4eb   : > { %5872 = vmatpush.msra.mxu2 %v9576_v17  ;;  %6128 = vmatpush.msra.mxu3 %v11397_v32  ;;  %v1850_v32 = vadd.f32 %v11599_v14, %v1849_v12 }
 0x4ed   : > { %5873 = vmatpush.msra.mxu2 %v9577_v63  ;;  %6129 = vmatpush.msra.mxu3 %v11404_v53  ;;  %v11713_v53 = vpop.f32.mrf.mxu3  ;;  %v2341_v47 = vmax.f32 %v1850_v32, 0.0  ;;  %v3413_v63 = vrot.slane %v3412_v6, 4  ;;  %v545_v32 = vld [vmem:[%s9802_s26 + $0x4f0] sm:$0xff] }
 0x4ee   : > { %v1855_v18 = vpop.f32.mrf.mxu0  ;;  %15102 = vst [vmem:[#allocation43_spill] sm:$0xff] %v11713_v53 }
 0x4ef   : > { %6130 = vmatpush.msra.mxu3 %v11411_v8  ;;  %5874 = vmatpush.msra.mxu2 %v9578_v54  ;;  %v1856_v8 = vadd.f32 %v11599_v14, %v1855_v18  ;;  %v3426_v56 = vsel %vm2459_vm1, %v2341_v47, -inf }
 0x4f0   : > { %v3427_v5 = vrot.slane %v3426_v56, 4 }
 0x4f1   : > { %8892 = vmatmul.msk.f32.gmra.mxu0 %vm649_vm0, %v543_v21  ;;  %6131 = vmatpush.msra.mxu3 %v11418_v19  ;;  %v2343_v19 = vmax.f32 %v1856_v8, 0.0  ;;  %v3414_v8 = vmax.f32 %v3412_v6, %v3413_v63  ;;  %v546_v6 = vld [vmem:[%s9802_s26 + $0x4f8] sm:$0xff] }
 0x4f2   : > { %9145 = vmatmul.msk.f32.gmra.mxu3 %vm2459_vm1, %v11665_v33  ;;  %5875 = vmatpush.msra.mxu2 %v9579_v23  ;;  %v3428_v16 = vmax.f32 %v3426_v56, %v3427_v5 }
 0x4f3   : > { %6132 = vmatpush.msra.mxu3 %v11425_v24  ;;  %v3433_v24 = vsel %vm2459_vm1, %v2342_v45, -inf  ;;  %v3440_v20 = vsel %vm2459_vm1, %v2343_v19, -inf }
 0x4f4   : > { %v3441_v18 = vrot.slane %v3440_v20, 4  ;;  %v3429_v45 = vrot.slane %v3428_v16, 2 }
 0x4f5   : > { %6133 = vmatpush.msra.mxu3 %v11432_v42  ;;  %v3420_v42 = vrot.slane %v3419_v49, 4 }
 0x4f6   : > { %v1858_v12 = vpop.f32.mrf.mxu0 }
 0x4f7   : > { %v1859_v30 = vadd.f32 %v11599_v14, %v1858_v12  ;;  %6134 = vmatpush.msra.mxu3 %v11439_v62  ;;  %v3434_v62 = vrot.slane %v3433_v24, 4  ;;  %v3421_v21 = vmax.f32 %v3419_v49, %v3420_v42  ;;  %v3415_v12 = vrot.slane %v3414_v8, 2 }
 0x4f9   : > { %v2344_v38 = vmax.f32 %v1859_v30, 0.0  ;;  %8893 = vmatmul.msk.f32.gmra.mxu0 %vm649_vm0, %v544_v48  ;;  %6135 = vmatpush.msra.mxu3 %v11446_v7  ;;  %v3435_v23 = vmax.f32 %v3433_v24, %v3434_v62  ;;  %v3442_v7 = vmax.f32 %v3440_v20, %v3441_v18  ;;  %v3422_v47 = vrot.slane %v3421_v21, 2 }
 0x4fa   : > { %v3430_v24 = vmax.f32 %v3428_v16, %v3429_v45  ;;  %v3416_v63 = vmax.f32 %v3414_v8, %v3415_v12  ;;  %v547_v12 = vld [vmem:[%s9802_s26 + $0x500] sm:$0xff] }
 0x4fb   : > { %v3447_v17 = vsel %vm2459_vm1, %v2344_v38, -inf  ;;  %v3436_v48 = vrot.slane %v3435_v23, 2  ;;  %v3443_v30 = vrot.slane %v3442_v7, 2  ;;  %v3423_v38 = vmax.f32 %v3421_v21, %v3422_v47 }
 0x4fc   : > { %v3448_v2 = vrot.slane %v3447_v17, 4  ;;  %v3417_v47 = vrot.slane %v3416_v63, 1 }
 0x4fd   : > { %v3437_v62 = vmax.f32 %v3435_v23, %v3436_v48 }
 0x4fe   : > { %v1861_v54 = vpop.f32.mrf.mxu0  ;;  %v3449_v25 = vmax.f32 %v3447_v17, %v3448_v2  ;;  %v3424_v2 = vrot.slane %v3423_v38, 1 }
 0x4ff   : > { %v1862_v36 = vadd.f32 %v11599_v14, %v1861_v54  ;;  %v3444_v54 = vmax.f32 %v3442_v7, %v3443_v30  ;;  %v3418_v30 = vmax.f32 %v3416_v63, %v3417_v47 }
 0x500   : > { %v3450_v56 = vrot.slane %v3449_v25, 2  ;;  %v3425_v45 = vmax.f32 %v3423_v38, %v3424_v2 }
 0x501   : > { %v2345_v26 = vmax.f32 %v1862_v36, 0.0  ;;  %8894 = vmatmul.msk.f32.gmra.mxu0 %vm649_vm0, %v545_v32  ;;  %v3431_v36 = vrot.slane %v3430_v24, 1  ;;  %v3445_v16 = vrot.slane %v3444_v54, 1 }
 0x502   : > { %v3451_v32 = vmax.f32 %v3449_v25, %v3450_v56  ;;  %v4491_v56 = vsel %vm4328_vm3, %v3425_v45, %v3418_v30 }
 0x503   : > { %v3454_v19 = vsel %vm2459_vm1, %v2345_v26, -inf  ;;  %v3432_v7 = vmax.f32 %v3430_v24, %v3431_v36  ;;  %v3446_v25 = vmax.f32 %v3444_v54, %v3445_v16  ;;  %v548_v54 = vld [vmem:[%s9802_s26 + $0x508] sm:$0xff] }
 0x504   : > { %v3455_v49 = vrot.slane %v3454_v19, 4 }
 0x506   : > { %v3456_v42 = vmax.f32 %v3454_v19, %v3455_v49  ;;  %v1864_v5 = vpop.f32.mrf.mxu0  ;;  %v3438_v19 = vrot.slane %v3437_v62, 1 }
 0x507   : > { %v1865_v20 = vadd.f32 %v11599_v14, %v1864_v5  ;;  %v3452_v5 = vrot.slane %v3451_v32, 1 }
 0x508   : > { %v3457_v18 = vrot.slane %v3456_v42, 2 }
 0x509   : > { %v2346_v17 = vmax.f32 %v1865_v20, 0.0  ;;  %8895 = vmatmul.msk.f32.gmra.mxu0 %vm649_vm0, %v546_v6  ;;  %v3439_v6 = vmax.f32 %v3437_v62, %v3438_v19 }
 0x50a   : > { %v3458_v26 = vmax.f32 %v3456_v42, %v3457_v18  ;;  %v3453_v42 = vmax.f32 %v3451_v32, %v3452_v5  ;;  %v11754_v32 = vld [vmem:[#allocation2 + $0x70] sm:$0xff]  ;;  %v11768_v5 = vpop.f32.mrf.mxu3 }
 0x50b   : > { %v3461_v21 = vsel %vm2459_vm1, %v2346_v17, -inf  ;;  %v4492_v17 = vsel %vm4330_vm4, %v3432_v7, %v4491_v56  ;;  %15103 = vst [vmem:[#allocation44_spill] sm:$0xff] %v11754_v32 }
 0x50c   : > { %v3462_v49 = vrot.slane %v3461_v21, 4  ;;  %v3459_v48 = vrot.slane %v3458_v26, 1  ;;  %v4493_v2 = vsel %vm4332_vm5, %v3439_v6, %v4492_v17  ;;  %7479 = vst.msk [vmem:[#allocation2 + $0x70] sm:$0x1] %vm4253_vm2, %v15094_v61 }
 0x50d   : > { %v4494_v24 = vsel %vm4334_vm6, %v3446_v25, %v4493_v2  ;;  %15105 = vst [vmem:[#allocation46_spill] sm:$0xff] %v11768_v5 }
 0x50e   : > { %v3463_v8 = vmax.f32 %v3461_v21, %v3462_v49  ;;  %v1867_v23 = vpop.f32.mrf.mxu0  ;;  %v3460_v38 = vmax.f32 %v3458_v26, %v3459_v48  ;;  %v4495_v63 = vsel %vm4336_vm7, %v3453_v42, %v4494_v24  ;;  %v549_v49 = vld [vmem:[%s9802_s26 + $0x510] sm:$0xff]  ;;  %v551_v48 = vld [vmem:[%s9802_s26 + $0x520] sm:$0xff]  ;;  %v552_v24 = vld [vmem:[%s9802_s26 + $0x528] sm:$0xff] }
 0x510   : > { %v3464_v20 = vrot.slane %v3463_v8, 2  ;;  %v4496_v47 = vsel %vm4338_vm8, %v3460_v38, %v4495_v63 }
 0x511   : > { %8896 = vmatmul.msk.f32.gmra.mxu0 %vm649_vm0, %v547_v12  ;;  %v550_v12 = vld [vmem:[%s9802_s26 + $0x518] sm:$0xff] }
 0x512   : > { %v3465_v18 = vmax.f32 %v3463_v8, %v3464_v20  ;;  %v1868_v20 = vadd.f32 %v11599_v14, %v1867_v23 }
 0x514   : > { %v3466_v21 = vrot.slane %v3465_v18, 1  ;;  %v2347_v17 = vmax.f32 %v1868_v20, 0.0 }
 0x516   : > { %v3467_v62 = vmax.f32 %v3465_v18, %v3466_v21  ;;  %v1870_v36 = vpop.f32.mrf.mxu0 }
 0x517   : > { %v1871_v30 = vadd.f32 %v11599_v14, %v1870_v36  ;;  %v3468_v36 = vsel %vm2459_vm1, %v2347_v17, -inf }
 0x518   : > { %v4497_v19 = vsel %vm4340_vm9, %v3467_v62, %v4496_v47 }
 0x519   : > { %4550 = vst.msk [vmem:[#allocation2 + $0xb0] sm:$0xff] %vm2459_vm1, %v4497_v19  ;;  %8897 = vmatmul.msk.f32.gmra.mxu0 %vm649_vm0, %v548_v54  ;;  %v2348_v42 = vmax.f32 %v1871_v30, 0.0 }
 0x51b   : > { %v3475_v63 = vsel %vm2459_vm1, %v2348_v42, -inf }
 0x51c   : > { %v3476_v19 = vrot.slane %v3475_v63, 4 }
 0x51e   : > { %v1873_v26 = vpop.f32.mrf.mxu0  ;;  %v3477_v30 = vmax.f32 %v3475_v63, %v3476_v19 }
 0x51f   : > { %v1874_v6 = vadd.f32 %v11599_v14, %v1873_v26 }
 0x520   : > { %v11759_v16 = vld [vmem:[#allocation2 + $0xb0] sm:$0xff] }
 0x521   : > { %v11761_v45 = vld [vmem:[#allocation2 + $0xb1] sm:$0xff]  ;;  %8898 = vmatmul.msk.f32.gmra.mxu0 %vm649_vm0, %v549_v49  ;;  %9002 = vmatmul.msk.f32.gmra.mxu1 %vm2459_vm1, %v11759_v16  ;;  %v2349_v18 = vmax.f32 %v1874_v6, 0.0 }
 0x522   : > { %15104 = vst [vmem:[#allocation45_spill] sm:$0xff] %v11761_v45  ;;  %9105 = vmatmul.msk.f32.gmra.mxu2 %vm2459_vm1, %v11759_v16  ;;  %9146 = vmatmul.msk.f32.gmra.mxu3 %vm2459_vm1, %v11761_v45 }
 0x523   : > { %7493 = vst.msk [vmem:[#allocation2 + $0xb8] sm:$0x1] %vm4253_vm2, %v15094_v61  ;;  %v3482_v23 = vsel %vm2459_vm1, %v2349_v18, -inf }
 0x524   : > { %v3483_v49 = vrot.slane %v3482_v23, 4 }
 0x526   : > { %v1876_v8 = vpop.f32.mrf.mxu0 }
 0x527   : > { %v1877_v25 = vadd.f32 %v11599_v14, %v1876_v8 }
 0x529   : > { %8899 = vmatmul.msk.f32.gmra.mxu0 %vm649_vm0, %v550_v12  ;;  %v2350_v38 = vmax.f32 %v1877_v25, 0.0  ;;  %v3469_v12 = vrot.slane %v3468_v36, 4  ;;  %v553_v25 = vld [vmem:[%s9802_s26 + $0x530] sm:$0xff] }
 0x52b   : > { %v3489_v54 = vsel %vm2459_vm1, %v2350_v38, -inf  ;;  %v3470_v18 = vmax.f32 %v3468_v36, %v3469_v12 }
 0x52d   : > { %v3471_v15 = vrot.slane %v3470_v18, 2 }
 0x52e   : > { %v1879_v7 = vpop.f32.mrf.mxu0 }
 0x52f   : > { %v1880_v56 = vadd.f32 %v11599_v14, %v1879_v7  ;;  %v3490_v7 = vrot.slane %v3489_v54, 4 }
 0x531   : > { %8900 = vmatmul.msk.f32.gmra.mxu0 %vm649_vm0, %v551_v48  ;;  %v2351_v2 = vmax.f32 %v1880_v56, 0.0  ;;  %v3484_v56 = vmax.f32 %v3482_v23, %v3483_v49  ;;  %v3491_v17 = vmax.f32 %v3489_v54, %v3490_v7  ;;  %v3472_v54 = vmax.f32 %v3470_v18, %v3471_v15 }
 0x533   : > { %v3496_v26 = vsel %vm2459_vm1, %v2351_v2, -inf  ;;  %v3478_v2 = vrot.slane %v3477_v30, 2  ;;  %v3492_v5 = vrot.slane %v3491_v17, 2  ;;  %v3473_v50 = vrot.slane %v3472_v54, 1 }
 0x534   : > { %v3497_v48 = vrot.slane %v3496_v26, 4 }
 0x535   : > { %v3479_v53 = vmax.f32 %v3477_v30, %v3478_v2 }
 0x536   : > { %v1882_v21 = vpop.f32.mrf.mxu0  ;;  %v3498_v38 = vmax.f32 %v3496_v26, %v3497_v48  ;;  %v3493_v26 = vmax.f32 %v3491_v17, %v3492_v5  ;;  %v3474_v5 = vmax.f32 %v3472_v54, %v3473_v50 }
 0x537   : > { %v1883_v62 = vadd.f32 %v11599_v14, %v1882_v21 }
 0x538   : > { %v3499_v19 = vrot.slane %v3498_v38, 2  ;;  %v3494_v52 = vrot.slane %v3493_v26, 1 }
 0x539   : > { %v2352_v47 = vmax.f32 %v1883_v62, 0.0  ;;  %8901 = vmatmul.msk.f32.gmra.mxu0 %vm649_vm0, %v552_v24  ;;  %v3485_v62 = vrot.slane %v3484_v56, 2 }
 0x53a   : > { %v3500_v7 = vmax.f32 %v3498_v38, %v3499_v19  ;;  %v3495_v18 = vmax.f32 %v3493_v26, %v3494_v52 }
 0x53b   : > { %v3503_v8 = vsel %vm2459_vm1, %v2352_v47, -inf }
 0x53c   : > { %v3504_v6 = vrot.slane %v3503_v8, 4  ;;  %v3501_v2 = vrot.slane %v3500_v7, 1 }
 0x53e   : > { %v1885_v20 = vpop.f32.mrf.mxu0  ;;  %v3505_v24 = vmax.f32 %v3503_v8, %v3504_v6  ;;  %v3480_v8 = vrot.slane %v3479_v53, 1  ;;  %v3502_v38 = vmax.f32 %v3500_v7, %v3501_v2 }
 0x53f   : > { %v1886_v42 = vadd.f32 %v11599_v14, %v1885_v20  ;;  %v3486_v20 = vmax.f32 %v3484_v56, %v3485_v62 }
 0x540   : > { %v3506_v59 = vrot.slane %v3505_v24, 2 }
 0x541   : > { %v2353_v21 = vmax.f32 %v1886_v42, 0.0  ;;  %8902 = vmatmul.msk.f32.gmra.mxu0 %vm649_vm0, %v553_v25  ;;  %v3487_v25 = vrot.slane %v3486_v20, 1 }
 0x542   : > { %v3507_v6 = vmax.f32 %v3505_v24, %v3506_v59 }
 0x543   : > { %v3510_v47 = vsel %vm2459_vm1, %v2353_v21, -inf }
 0x544   : > { %v3511_v63 = vrot.slane %v3510_v47, 4 }
 0x546   : > { %v3512_v23 = vmax.f32 %v3510_v47, %v3511_v63  ;;  %v1888_v49 = vpop.f32.mrf.mxu0  ;;  %v3481_v47 = vmax.f32 %v3479_v53, %v3480_v8  ;;  %v3508_v63 = vrot.slane %v3507_v6, 1 }
 0x547   : > { %v1889_v36 = vadd.f32 %v11599_v14, %v1888_v49  ;;  %v3488_v49 = vmax.f32 %v3486_v20, %v3487_v25 }
 0x548   : > { %v3513_v12 = vrot.slane %v3512_v23, 2  ;;  %v4498_v59 = vsel %vm4328_vm3, %v3481_v47, %v3474_v5  ;;  %v3509_v24 = vmax.f32 %v3507_v6, %v3508_v63  ;;  %v11816_v6 = vpop.f32.mrf.mxu3 }
 0x549   : > { %v2354_v48 = vmax.f32 %v1889_v36, 0.0  ;;  %15107 = vst [vmem:[#allocation48_spill] sm:$0xff] %v11816_v6 }
 0x54a   : > { %v3514_v42 = vmax.f32 %v3512_v23, %v3513_v12  ;;  %v4499_v23 = vsel %vm4330_vm4, %v3488_v49, %v4498_v59 }
 0x54b   : > { %v3517_v21 = vsel %vm2459_vm1, %v2354_v48, -inf  ;;  %v4500_v12 = vsel %vm4332_vm5, %v3495_v18, %v4499_v23 }
 0x54c   : > { %v3518_v30 = vrot.slane %v3517_v21, 4  ;;  %v3515_v15 = vrot.slane %v3514_v42, 1  ;;  %v4501_v53 = vsel %vm4334_vm6, %v3502_v38, %v4500_v12 }
 0x54d   : > { %v4502_v8 = vsel %vm4336_vm7, %v3509_v24, %v4501_v53 }
 0x54e   : > { %v3519_v56 = vmax.f32 %v3517_v21, %v3518_v30  ;;  %v1891_v62 = vpop.f32.mrf.mxu0  ;;  %v3516_v36 = vmax.f32 %v3514_v42, %v3515_v15 }
 0x54f   : > { %v1892_v47 = vadd.f32 %v11599_v14, %v1891_v62 }
 0x550   : > { %v3520_v17 = vrot.slane %v3519_v56, 2  ;;  %v4503_v50 = vsel %vm4338_vm8, %v3516_v36, %v4502_v8  ;;  %v11830_v12 = vpop.f32.mrf.mxu3 }
 0x551   : > { %v2355_v5 = vmax.f32 %v1892_v47, 0.0  ;;  %15108 = vst [vmem:[#allocation49_spill] sm:$0xff] %v11830_v12 }
 0x552   : > { %v3521_v19 = vmax.f32 %v3519_v56, %v3520_v17 }
 0x553   : > { %v3524_v23 = vsel %vm2459_vm1, %v2355_v5, -inf }
 0x554   : > { %v3522_v48 = vrot.slane %v3521_v19, 1 }
 0x556   : > { %v3523_v20 = vmax.f32 %v3521_v19, %v3522_v48  ;;  %v1894_v25 = vpop.f32.mrf.mxu0 }
 0x557   : > { %v1895_v30 = vadd.f32 %v11599_v14, %v1894_v25  ;;  %v3525_v25 = vrot.slane %v3524_v23, 4 }
 0x558   : > { %v4504_v52 = vsel %vm4340_vm9, %v3523_v20, %v4503_v50 }
 0x559   : > { %4551 = vst.msk [vmem:[#allocation2 + $0xc0] sm:$0xff] %vm2459_vm1, %v4504_v52  ;;  %v2356_v49 = vmax.f32 %v1895_v30, 0.0  ;;  %v3526_v47 = vmax.f32 %v3524_v23, %v3525_v25 }
 0x55b   : > { %v3531_v59 = vsel %vm2459_vm1, %v2356_v49, -inf }
 0x55c   : > { %v3532_v48 = vrot.slane %v3531_v59, 4 }
 0x55e   : > { %v1897_v54 = vpop.f32.mrf.mxu0 }
 0x55f   : > { %v1898_v2 = vadd.f32 %v11599_v14, %v1897_v54  ;;  %v3533_v54 = vmax.f32 %v3531_v59, %v3532_v48 }
 0x560   : > { %v11806_v26 = vld [vmem:[#allocation2 + $0xc0] sm:$0xff] }
 0x561   : > { %v11808_v7 = vld [vmem:[#allocation2 + $0xc1] sm:$0xff]  ;;  %9003 = vmatmul.msk.f32.gmra.mxu1 %vm2459_vm1, %v11806_v26  ;;  %9106 = vmatmul.msk.f32.gmra.mxu2 %vm2459_vm1, %v11806_v26  ;;  %v2357_v15 = vmax.f32 %v1898_v2, 0.0 }
 0x562   : > { %15106 = vst [vmem:[#allocation47_spill] sm:$0xff] %v11808_v7  ;;  %9147 = vmatmul.msk.f32.gmra.mxu3 %vm2459_vm1, %v11808_v7 }
 0x563   : > { %7494 = vst.msk [vmem:[#allocation2 + $0xc8] sm:$0x1] %vm4253_vm2, %v15094_v61  ;;  %v3538_v19 = vsel %vm2459_vm1, %v2357_v15, -inf  ;;  %v3534_v15 = vrot.slane %v3533_v54, 2 }
 0x564   : > { %v3539_v8 = vrot.slane %v3538_v19, 4 }
 0x565   : > { %v3535_v48 = vmax.f32 %v3533_v54, %v3534_v15 }
 0x566   : > { %v1900_v42 = vpop.f32.mrf.mxu0  ;;  %v3540_v30 = vmax.f32 %v3538_v19, %v3539_v8 }
 0x567   : > { %v1901_v63 = vadd.f32 %v11599_v14, %v1900_v42 }
 0x569   : > { %v2358_v18 = vmax.f32 %v1901_v63, 0.0 }
 0x56b   : > { %v3545_v62 = vsel %vm2459_vm1, %v2358_v18, -inf  ;;  %v3541_v18 = vrot.slane %v3540_v30, 2 }
 0x56c   : > { %v3546_v50 = vrot.slane %v3545_v62, 4 }
 0x56e   : > { %v1903_v21 = vpop.f32.mrf.mxu0  ;;  %v3547_v63 = vmax.f32 %v3545_v62, %v3546_v50 }
 0x56f   : > { %v1904_v56 = vadd.f32 %v11599_v14, %v1903_v21 }
 0x571   : > { %v2359_v17 = vmax.f32 %v1904_v56, 0.0 }
 0x573   : > { %v3552_v53 = vsel %vm2459_vm1, %v2359_v17, -inf }
 0x574   : > { %v3553_v52 = vrot.slane %v3552_v53, 4 }
 0x576   : > { %v1906_v38 = vpop.f32.mrf.mxu0  ;;  %v3554_v56 = vmax.f32 %v3552_v53, %v3553_v52  ;;  %v3536_v52 = vrot.slane %v3535_v48, 1 }
 0x577   : > { %v1907_v24 = vadd.f32 %v11599_v14, %v1906_v38  ;;  %v11836_v38 = vpop.f32.mrf.mxu3 }
 0x578   : > { %15109 = vst [vmem:[#allocation50_spill] sm:$0xff] %v11836_v38  ;;  %v3555_v59 = vrot.slane %v3554_v56, 2 }
 0x579   : > { %v2360_v36 = vmax.f32 %v1907_v24, 0.0  ;;  %v3527_v24 = vrot.slane %v3526_v47, 2 }
 0x57b   : > { %v3559_v20 = vsel %vm2459_vm1, %v2360_v36, -inf  ;;  %v3548_v36 = vrot.slane %v3547_v63, 2  ;;  %v3528_v62 = vmax.f32 %v3526_v47, %v3527_v24 }
 0x57c   : > { %v3560_v42 = vrot.slane %v3559_v20, 4 }
 0x57d   : > { %v3549_v53 = vmax.f32 %v3547_v63, %v3548_v36  ;;  %v3529_v32 = vrot.slane %v3528_v62, 1 }
 0x57e   : > { %v1909_v21 = vpop.f32.mrf.mxu0  ;;  %v3561_v5 = vmax.f32 %v3559_v20, %v3560_v42  ;;  %v3556_v20 = vmax.f32 %v3554_v56, %v3555_v59 }
 0x57f   : > { %v1910_v2 = vadd.f32 %v11599_v14, %v1909_v21  ;;  %v3542_v21 = vmax.f32 %v3540_v30, %v3541_v18  ;;  %v3550_v51 = vrot.slane %v3549_v53, 1  ;;  %v3537_v30 = vmax.f32 %v3535_v48, %v3536_v52 }
 0x580   : > { %v3562_v6 = vrot.slane %v3561_v5, 2  ;;  %v3557_v15 = vrot.slane %v3556_v20, 1  ;;  %v3530_v56 = vmax.f32 %v3528_v62, %v3529_v32 }
 0x581   : > { %v2361_v49 = vmax.f32 %v1910_v2, 0.0  ;;  %v3543_v2 = vrot.slane %v3542_v21, 1  ;;  %v3551_v36 = vmax.f32 %v3549_v53, %v3550_v51 }
 0x582   : > { %v3563_v42 = vmax.f32 %v3561_v5, %v3562_v6  ;;  %v3558_v6 = vmax.f32 %v3556_v20, %v3557_v15  ;;  %v4505_v5 = vsel %vm4328_vm3, %v3537_v30, %v3530_v56  ;;  %v11852_v20 = vpop.f32.mrf.mxu2  ;;  %v11878_v30 = vld [vmem:[%s14893_s3 + $0xf0] sm:$0xff] }
 0x583   : > { %v3566_v17 = vsel %vm2459_vm1, %v2361_v49, -inf  ;;  %v3544_v63 = vmax.f32 %v3542_v21, %v3543_v2  ;;  %15112 = vst [vmem:[#allocation53_spill] sm:$0xff] %v11852_v20 }
 0x584   : > { %v3567_v12 = vrot.slane %v3566_v17, 4  ;;  %v3564_v18 = vrot.slane %v3563_v42, 1 }
 0x586   : > { %v3568_v19 = vmax.f32 %v3566_v17, %v3567_v12  ;;  %v1912_v8 = vpop.f32.mrf.mxu0  ;;  %v11840_v12 = vpop.f32.mrf.mxu3 }
 0x587   : > { %v1913_v23 = vadd.f32 %v11599_v14, %v1912_v8  ;;  %15110 = vst [vmem:[#allocation51_spill] sm:$0xff] %v11840_v12 }
 0x588   : > { %v3569_v25 = vrot.slane %v3568_v19, 2 }
 0x589   : > { %v2362_v50 = vmax.f32 %v1913_v23, 0.0  ;;  %v4506_v23 = vsel %vm4330_vm4, %v3544_v63, %v4505_v5 }
 0x58a   : > { %v3570_v49 = vmax.f32 %v3568_v19, %v3569_v25  ;;  %v3565_v19 = vmax.f32 %v3563_v42, %v3564_v18  ;;  %v11880_v18 = vpop.f32.mrf.mxu2 }
 0x58b   : > { %v3573_v38 = vsel %vm2459_vm1, %v2362_v50, -inf  ;;  %v4507_v50 = vsel %vm4332_vm5, %v3551_v36, %v4506_v23  ;;  %15115 = vst [vmem:[#allocation56_spill] sm:$0xff] %v11880_v18  ;;  %v1937_v23 = vadd.f32 %v11599_v14, %v9868_v35  ;;  %v11905_v35 = vld [vmem:[%s14893_s3 + $0xe0] sm:$0xff] }
 0x58c   : > { %v3574_v54 = vrot.slane %v3573_v38, 4  ;;  %v3571_v24 = vrot.slane %v3570_v49, 1  ;;  %v4508_v48 = vsel %vm4334_vm6, %v3558_v6, %v4507_v50  ;;  %15119 = vst [vmem:[#allocation60_spill] sm:$0xff] %v11905_v35 }
 0x58e   : > { %v3575_v17 = vmax.f32 %v3573_v38, %v3574_v54  ;;  %v1915_v47 = vpop.f32.mrf.mxu0  ;;  %v3572_v25 = vmax.f32 %v3570_v49, %v3571_v24  ;;  %v4509_v38 = vsel %vm4336_vm7, %v3565_v19, %v4508_v48  ;;  %v11848_v32 = vpop.f32.mrf.mxu3  ;;  %v11861_v49 = vld [vmem:[%s14893_s3 + $0xf8] sm:$0xff] }
 0x58f   : > { %15111 = vst [vmem:[#allocation52_spill] sm:$0xff] %v11848_v32  ;;  %5157 = vmatpush.msra.mxu1 %v11861_v49  ;;  %v1916_v24 = vadd.f32 %v11599_v14, %v1915_v47 }
 0x590   : > { %v3576_v59 = vrot.slane %v3575_v17, 2  ;;  %v4510_v51 = vsel %vm4338_vm8, %v3572_v25, %v4509_v38 }
 0x591   : > { %5158 = vmatpush.msra.mxu1 %v11878_v30  ;;  %v2363_v6 = vmax.f32 %v1916_v24, 0.0 }
 0x592   : > { %v3577_v8 = vmax.f32 %v3575_v17, %v3576_v59 }
 0x593   : > { %v3580_v47 = vsel %vm2459_vm1, %v2363_v6, -inf }
 0x594   : > { %v3578_v12 = vrot.slane %v3577_v8, 1  ;;  %v3581_v24 = vrot.slane %v3580_v47, 4 }
 0x596   : > { %v3579_v21 = vmax.f32 %v3577_v8, %v3578_v12  ;;  %v1918_v52 = vpop.f32.mrf.mxu0  ;;  %v11869_v54 = vpop.f32.mrf.mxu3 }
 0x597   : > { %15114 = vst [vmem:[#allocation55_spill] sm:$0xff] %v11869_v54  ;;  %v1919_v12 = vadd.f32 %v11599_v14, %v1918_v52  ;;  %v11900_v52 = vld [vmem:[%s14893_s3 + $0xe8] sm:$0xff] }
 0x598   : > { %v4511_v62 = vsel %vm4340_vm9, %v3579_v21, %v4510_v51  ;;  %15118 = vst [vmem:[#allocation59_spill] sm:$0xff] %v11900_v52  ;;  %v11907_v51 = vpop.f32.mrf.mxu2  ;;  %5159 = vmatpush.msra.mxu1 %v11900_v52 }
 0x599   : > { %4552 = vst.msk [vmem:[#allocation2 + $0xd0] sm:$0xff] %vm2459_vm1, %v4511_v62  ;;  %v2364_v36 = vmax.f32 %v1919_v12, 0.0 }
 0x59a   : > { %15120 = vst [vmem:[#allocation61_spill] sm:$0xff] %v11907_v51  ;;  %5160 = vmatpush.msra.mxu1 %v11905_v35  ;;  %v11925_v51 = vld [vmem:[%s14893_s3 + $0xd0] sm:$0xff] }
 0x59b   : > { %v3587_v25 = vsel %vm2459_vm1, %v2364_v36, -inf  ;;  %15123 = vst [vmem:[#allocation64_spill] sm:$0xff] %v11925_v51 }
 0x59c   : > { %v3588_v62 = vrot.slane %v3587_v25, 4 }
 0x59e   : > { %v1921_v53 = vpop.f32.mrf.mxu0  ;;  %v11884_v63 = vpop.f32.mrf.mxu3  ;;  %v3589_v6 = vmax.f32 %v3587_v25, %v3588_v62 }
 0x59f   : > { %v1922_v17 = vadd.f32 %v11599_v14, %v1921_v53  ;;  %15116 = vst [vmem:[#allocation57_spill] sm:$0xff] %v11884_v63 }
 0x5a0   : > { %v11854_v42 = vld [vmem:[#allocation2 + $0xd0] sm:$0xff]  ;;  %v3590_v25 = vrot.slane %v3589_v6, 2 }
 0x5a1   : > { %v11856_v2 = vld [vmem:[#allocation2 + $0xd1] sm:$0xff]  ;;  %9004 = vmatmul.msk.f32.gmra.mxu1 %vm2459_vm1, %v11854_v42  ;;  %9107 = vmatmul.msk.f32.gmra.mxu2 %vm2459_vm1, %v11854_v42  ;;  %v2365_v59 = vmax.f32 %v1922_v17, 0.0 }
 0x5a2   : > { %15113 = vst [vmem:[#allocation54_spill] sm:$0xff] %v11856_v2  ;;  %9148 = vmatmul.msk.f32.gmra.mxu3 %vm2459_vm1, %v11856_v2  ;;  %v11914_v17 = vld [vmem:[%s14893_s3 + $0xd8] sm:$0xff] }
 0x5a3   : > { %7495 = vst.msk [vmem:[#allocation2 + $0xd8] sm:$0x1] %vm4253_vm2, %v15094_v61  ;;  %v3594_v50 = vsel %vm2459_vm1, %v2365_v59, -inf  ;;  %5161 = vmatpush.msra.mxu1 %v11914_v17 }
 0x5a4   : > { %v3595_v12 = vrot.slane %v3594_v50, 4  ;;  %15121 = vst [vmem:[#allocation62_spill] sm:$0xff] %v11914_v17 }
 0x5a5   : > { %5162 = vmatpush.msra.mxu1 %v11925_v51 }
 0x5a6   : > { %v1924_v15 = vpop.f32.mrf.mxu0  ;;  %v11893_v38 = vpop.f32.mrf.mxu3 }
 0x5a7   : > { %v1925_v56 = vadd.f32 %v11599_v14, %v1924_v15  ;;  %15117 = vst [vmem:[#allocation58_spill] sm:$0xff] %v11893_v38  ;;  %v2370_v15 = vmax.f32 %v1937_v23, 0.0  ;;  %v3582_v23 = vmax.f32 %v3580_v47, %v3581_v24 }
 0x5a9   : > { %v2366_v5 = vmax.f32 %v1925_v56, 0.0  ;;  %v3583_v47 = vrot.slane %v3582_v23, 2 }
 0x5ab   : > { %v3601_v21 = vsel %vm2459_vm1, %v2366_v5, -inf  ;;  %v3584_v20 = vmax.f32 %v3582_v23, %v3583_v47 }
 0x5ac   : > { %v3602_v56 = vrot.slane %v3601_v21, 4 }
 0x5ae   : > { %v1927_v19 = vpop.f32.mrf.mxu0  ;;  %v11920_v38 = vpop.f32.mrf.mxu3 }
 0x5af   : > { %v1928_v8 = vadd.f32 %v11599_v14, %v1927_v19  ;;  %v3629_v19 = vsel %vm2459_vm1, %v2370_v15, -inf  ;;  %15122 = vst [vmem:[#allocation63_spill] sm:$0xff] %v11920_v38 }
 0x5b0   : > { %v3630_v54 = vrot.slane %v3629_v19, 4 }
 0x5b1   : > { %v2367_v48 = vmax.f32 %v1928_v8, 0.0  ;;  %v3596_v8 = vmax.f32 %v3594_v50, %v3595_v12  ;;  %v11929_v50 = vpop.f32.mrf.mxu2 }
 0x5b2   : > { %15124 = vst [vmem:[#allocation65_spill] sm:$0xff] %v11929_v50  ;;  %v11937_v50 = vld [vmem:[%s14893_s3 + $0xc8] sm:$0xff] }
 0x5b3   : > { %v3608_v53 = vsel %vm2459_vm1, %v2367_v48, -inf  ;;  %v3603_v48 = vmax.f32 %v3601_v21, %v3602_v56  ;;  %v3631_v56 = vmax.f32 %v3629_v19, %v3630_v54  ;;  %15126 = vst [vmem:[#allocation67_spill] sm:$0xff] %v11937_v50  ;;  %5163 = vmatpush.msra.mxu1 %v11937_v50  ;;  %v3585_v19 = vrot.slane %v3584_v20, 1 }
 0x5b4   : > { %v3609_v36 = vrot.slane %v3608_v53, 4 }
 0x5b5   : > { %v3604_v21 = vrot.slane %v3603_v48, 2  ;;  %v3632_v7 = vrot.slane %v3631_v56, 2 }
 0x5b6   : > { %v1930_v59 = vpop.f32.mrf.mxu0  ;;  %v3610_v63 = vmax.f32 %v3608_v53, %v3609_v36  ;;  %v3591_v36 = vmax.f32 %v3589_v6, %v3590_v25  ;;  %v11932_v2 = vpop.f32.mrf.mxu3 }
 0x5b7   : > { %v1931_v5 = vadd.f32 %v11599_v14, %v1930_v59  ;;  %v3597_v59 = vrot.slane %v3596_v8, 2  ;;  %v3605_v37 = vmax.f32 %v3603_v48, %v3604_v21  ;;  %15125 = vst [vmem:[#allocation66_spill] sm:$0xff] %v11932_v2  ;;  %v3633_v25 = vmax.f32 %v3631_v56, %v3632_v7  ;;  %v11948_v2 = vld [vmem:[%s14893_s3 + $0xc0] sm:$0xff] }
 0x5b8   : > { %v3611_v12 = vrot.slane %v3610_v63, 2  ;;  %15128 = vst [vmem:[#allocation69_spill] sm:$0xff] %v11948_v2  ;;  %5164 = vmatpush.msra.mxu1 %v11948_v2 }
 0x5b9   : > { %v2368_v32 = vmax.f32 %v1931_v5, 0.0  ;;  %v3598_v38 = vmax.f32 %v3596_v8, %v3597_v59  ;;  %v3606_v8 = vrot.slane %v3605_v37, 1  ;;  %v3634_v28 = vrot.slane %v3633_v25, 1 }
 0x5ba   : > { %v3612_v39 = vmax.f32 %v3610_v63, %v3611_v12  ;;  %v11941_v63 = vpop.f32.mrf.mxu2 }
 0x5bb   : > { %v3615_v62 = vsel %vm2459_vm1, %v2368_v32, -inf }
 0x5bc   : > { %v3616_v15 = vrot.slane %v3615_v62, 4  ;;  %v3613_v23 = vrot.slane %v3612_v39, 1 }
 0x5be   : > { %v3617_v24 = vmax.f32 %v3615_v62, %v3616_v15  ;;  %v1933_v53 = vpop.f32.mrf.mxu0  ;;  %v3592_v62 = vrot.slane %v3591_v36, 1 }
 0x5bf   : > { %v1934_v5 = vadd.f32 %v11599_v14, %v1933_v53  ;;  %v3599_v14 = vrot.slane %v3598_v38, 1  ;;  %v3586_v53 = vmax.f32 %v3584_v20, %v3585_v19 }
 0x5c0   : > { %v3618_v18 = vrot.slane %v3617_v24, 2  ;;  %v3593_v59 = vmax.f32 %v3591_v36, %v3592_v62  ;;  %v3635_v62 = vmax.f32 %v3633_v25, %v3634_v28  ;;  %v11982_v25 = vld [vmem:[%s14893_s3 + $0x1b0] sm:$0xff] }
 0x5c1   : > { %v2369_v32 = vmax.f32 %v1934_v5, 0.0  ;;  %v3600_v21 = vmax.f32 %v3598_v38, %v3599_v14  ;;  %v3607_v5 = vmax.f32 %v3605_v37, %v3606_v8  ;;  %v11966_v8 = vld [vmem:[%s14893_s3 + $0x1b8] sm:$0xff]  ;;  %15135 = vst [vmem:[#allocation76_spill] sm:$0xff] %v11982_v25 }
 0x5c2   : > { %v3619_v15 = vmax.f32 %v3617_v24, %v3618_v18  ;;  %v11943_v18 = vpop.f32.mrf.mxu3  ;;  %v3614_v24 = vmax.f32 %v3612_v39, %v3613_v23  ;;  %v4512_v7 = vsel %vm4328_vm3, %v3593_v59, %v3586_v53  ;;  %15131 = vst [vmem:[#allocation72_spill] sm:$0xff] %v11966_v8  ;;  %5427 = vmatpush.msrb.mxu1 %v11966_v8 }
 0x5c3   : > { %v3622_v54 = vsel %vm2459_vm1, %v2369_v32, -inf  ;;  %15127 = vst [vmem:[#allocation68_spill] sm:$0xff] %v11943_v18  ;;  %v4513_v38 = vsel %vm4330_vm4, %v3600_v21, %v4512_v7  ;;  %v12000_v21 = vld [vmem:[%s14893_s3 + $0x1a8] sm:$0xff]  ;;  %v12134_v18 = vld [vmem:[%s14893_s3 + $0x1e0] sm:$0xff] }
 0x5c4   : > { %v3623_v6 = vrot.slane %v3622_v54, 4  ;;  %v3620_v47 = vrot.slane %v3619_v15, 1  ;;  %v4514_v37 = vsel %vm4332_vm5, %v3607_v5, %v4513_v38  ;;  %5428 = vmatpush.msrb.mxu1 %v11982_v25  ;;  %15138 = vst [vmem:[#allocation79_spill] sm:$0xff] %v12000_v21  ;;  %v12009_v5 = vld [vmem:[#allocation2 + $0x100] sm:$0xff]  ;;  %v12029_v38 = vld [vmem:[#allocation2 + $0x110] sm:$0xff] }
 0x5c5   : > { %v4515_v20 = vsel %vm4334_vm6, %v3614_v24, %v4514_v37  ;;  %15140 = vst [vmem:[#allocation81_spill] sm:$0xff] %v12009_v5  ;;  %v12018_v24 = vld [vmem:[%s14893_s3 + $0x1a0] sm:$0xff]  ;;  %v12048_v37 = vld [vmem:[%s14893_s3 + $0xb8] sm:$0xff] }
 0x5c6   : > { %v3624_v48 = vmax.f32 %v3622_v54, %v3623_v6  ;;  %v3621_v56 = vmax.f32 %v3619_v15, %v3620_v47  ;;  %v11957_v6 = vpop.f32.mrf.mxu2  ;;  %v11991_v47 = vld [vmem:[#allocation2 + $0xf0] sm:$0xff]  ;;  %5429 = vmatpush.msrb.mxu1 %v12000_v21  ;;  %15141 = vst [vmem:[#allocation82_spill] sm:$0xff] %v12018_v24 }
 0x5c7   : > { %15129 = vst [vmem:[#allocation70_spill] sm:$0xff] %v11957_v6 }
 0x5c8   : > { %v3625_v12 = vrot.slane %v3624_v48, 2  ;;  %v4516_v54 = vsel %vm4336_vm7, %v3621_v56, %v4515_v20  ;;  %15137 = vst [vmem:[#allocation78_spill] sm:$0xff] %v11991_v47  ;;  %5430 = vmatpush.msrb.mxu1 %v12018_v24  ;;  %v12027_v56 = vld [vmem:[#allocation2 + $0x80] sm:$0xff]  ;;  %v12054_v20 = vld [vmem:[%s14893_s3 + $0xb0] sm:$0xff] }
 0x5c9   : > { %15142 = vst [vmem:[#allocation83_spill] sm:$0xff] %v12027_v56 }
 0x5ca   : > { %v3626_v32 = vmax.f32 %v3624_v48, %v3625_v12  ;;  %v11960_v15 = vpop.f32.mrf.mxu3  ;;  %15143 = vst [vmem:[#allocation84_spill] sm:$0xff] %v12029_v38 }
 0x5cb   : > { %15130 = vst [vmem:[#allocation71_spill] sm:$0xff] %v11960_v15  ;;  %v12124_v15 = vld [vmem:[%s14893_s3 + $0x188] sm:$0xff] }
 0x5cc   : > { %v3627_v36 = vrot.slane %v3626_v32, 1  ;;  %7480 = vst.msk [vmem:[#allocation2 + $0x80] sm:$0x1] %vm4253_vm2, %v15094_v61 }
 0x5cd   : > { %15148 = vst [vmem:[#allocation89_spill] sm:$0xff] %v12124_v15 }
 0x5ce   : > { %v3628_v39 = vmax.f32 %v3626_v32, %v3627_v36  ;;  %v11986_v59 = vpop.f32.mrf.mxu2  ;;  %v12040_v36 = vld [vmem:[%s14893_s3 + $0x198] sm:$0xff] }
 0x5cf   : > { %15136 = vst [vmem:[#allocation77_spill] sm:$0xff] %v11986_v59  ;;  %5431 = vmatpush.msrb.mxu1 %v12040_v36  ;;  %v12152_v59 = vld [vmem:[%s14893_s3 + $0x80] sm:$0xff] }
 0x5d0   : > { %v4517_v14 = vsel %vm4338_vm8, %v3628_v39, %v4516_v54  ;;  %15144 = vst [vmem:[#allocation85_spill] sm:$0xff] %v12040_v36 }
 0x5d1   : > { %v4518_v19 = vsel %vm4340_vm9, %v3635_v62, %v4517_v14  ;;  %v12062_v62 = vld [vmem:[%s14893_s3 + $0xa8] sm:$0xff]  ;;  %v12074_v14 = vld [vmem:[%s14893_s3 + $0x190] sm:$0xff]  ;;  %15150 = vst [vmem:[#allocation91_spill] sm:$0xff] %v12152_v59 }
 0x5d2   : > { %4553 = vst.msk [vmem:[#allocation2 + $0xe0] sm:$0xff] %vm2459_vm1, %v4518_v19  ;;  %v11973_v48 = vpop.f32.mrf.mxu3  ;;  %5432 = vmatpush.msrb.mxu1 %v12074_v14  ;;  %v12082_v19 = vld [vmem:[%s14893_s3 + $0x1f8] sm:$0xff] }
 0x5d3   : > { %15134 = vst [vmem:[#allocation75_spill] sm:$0xff] %v11973_v48 }
 0x5d4   : > { %15146 = vst [vmem:[#allocation87_spill] sm:$0xff] %v12074_v14  ;;  %5433 = vmatpush.msrb.mxu1 %v12124_v15 }
 0x5d6   : > { %v12007_v53 = vpop.f32.mrf.mxu2 }
 0x5d7   : > { %15139 = vst [vmem:[#allocation80_spill] sm:$0xff] %v12007_v53 }
 0x5d9   : > { %v11969_v28 = vld [vmem:[#allocation2 + $0xe0] sm:$0xff] }
 0x5da   : > { %15132 = vst [vmem:[#allocation73_spill] sm:$0xff] %v11969_v28  ;;  %v11971_v23 = vld [vmem:[#allocation2 + $0xe1] sm:$0xff]  ;;  %9005 = vmatmul.msk.f32.gmra.mxu1 %vm2459_vm1, %v11969_v28  ;;  %9108 = vmatmul.msk.f32.gmra.mxu2 %vm2459_vm1, %v11969_v28  ;;  %v12005_v12 = vpop.f32.mrf.mxu3 }
 0x5db   : > { %15133 = vst [vmem:[#allocation74_spill] sm:$0xff] %v11971_v23  ;;  %9149 = vmatmul.msk.f32.gmra.mxu3 %vm2459_vm1, %v11971_v23 }
 0x5dc   : > { %7496 = vst.msk [vmem:[#allocation2 + $0xe8] sm:$0x1] %vm4253_vm2, %v15094_v61  ;;  %v12112_v61 = vld [vmem:[%s14893_s3 + $0x90] sm:$0xff] }
 0x5de   : > { %v12025_v7 = vpop.f32.mrf.mxu2 }
 0x5e2   : > { %9006 = vmatmul.msk.f32.gmra.mxu1 %vm2459_vm1, %v11991_v47  ;;  %9109 = vmatmul.msk.f32.gmra.mxu2 %vm2459_vm1, %v11991_v47  ;;  %v12023_v32 = vpop.f32.mrf.mxu3 }
 0x5e3   : > { %9150 = vmatmul.msk.f32.gmra.mxu3 %vm2459_vm1, %v11146_v46 }
 0x5e6   : > { %v12065_v54 = vpop.f32.mrf.mxu2 }
 0x5ea   : > { %9007 = vmatmul.msk.f32.gmra.mxu1 %vm2459_vm1, %v12009_v5  ;;  %9110 = vmatmul.msk.f32.gmra.mxu2 %vm2459_vm1, %v12009_v5  ;;  %v12057_v39 = vpop.f32.mrf.mxu3 }
 0x5eb   : > { %9151 = vmatmul.msk.f32.gmra.mxu3 %vm2459_vm1, %v11197_v10  ;;  %15145 = vst [vmem:[#allocation86_spill] sm:$0xff] %v12057_v39 }
 0x5ee   : > { %v12126_v53 = vpop.f32.mrf.mxu2 }
 0x5f2   : > { %9040 = vmatmul.msk.f32.vlgmr.msra.gmra.mxu1 %vm2459_vm1, %v11026_v58  ;;  %9111 = vmatmul.msk.f32.gmra.mxu2 %vm2459_vm1, %v12029_v38  ;;  %v12106_v38 = vld [vmem:[%s14893_s3 + $0x1e8] sm:$0xff]  ;;  %v12115_v48 = vpop.f32.mrf.mxu3 }
 0x5f3   : > { %9168 = vmatmul.msk.f32.vlgmr.msrb.gmra.mxu3 %vm2459_vm1, %v10062_v60  ;;  %v12100_v60 = vld [vmem:[%s14893_s3 + $0x98] sm:$0xff]  ;;  %15147 = vst [vmem:[#allocation88_spill] sm:$0xff] %v12115_v48  ;;  %v12158_v48 = vld [vmem:[%s14893_s3 + $0x1d0] sm:$0xff] }
 0x5f4   : > { %6259 = vmatpush.msrb.mxu3 %v12048_v37  ;;  %15151 = vst [vmem:[#allocation92_spill] sm:$0xff] %v12158_v48 }
 0x5f6   : > { %6260 = vmatpush.msrb.mxu3 %v12054_v20 }
 0x5f8   : > { %6261 = vmatpush.msrb.mxu3 %v12062_v62 }
 0x5fa   : > { %9041 = vmatmul.msk.f32.gmra.mxu1 %vm2459_vm1, %v11102_v13  ;;  %9136 = vmatmul.msk.f32.vlgmr.msrb.gmra.mxu2 %vm2459_vm1, %v11571_v40  ;;  %v12088_v40 = vld [vmem:[%s14893_s3 + $0xa0] sm:$0xff]  ;;  %v12173_v6 = vpop.f32.mrf.mxu3 }
 0x5fb   : > { %9169 = vmatmul.msk.f32.gmra.mxu3 %vm2459_vm1, %v10144_v1  ;;  %6047 = vmatpush.msrb.mxu2 %v12082_v19  ;;  %v12094_v1 = vld [vmem:[%s14893_s3 + $0x1f0] sm:$0xff]  ;;  %15153 = vst [vmem:[#allocation94_spill] sm:$0xff] %v12173_v6  ;;  %v12198_v6 = vld [vmem:[%s14893_s3 + $0x1c0] sm:$0xff] }
 0x5fc   : > { %6262 = vmatpush.msrb.mxu3 %v12088_v40  ;;  %15155 = vst [vmem:[#allocation96_spill] sm:$0xff] %v12198_v6 }
 0x5fd   : > { %6048 = vmatpush.msrb.mxu2 %v12094_v1 }
 0x5fe   : > { %6263 = vmatpush.msrb.mxu3 %v12100_v60 }
 0x5ff   : > { %6049 = vmatpush.msrb.mxu2 %v12106_v38 }
 0x600   : > { %6264 = vmatpush.msrb.mxu3 %v12112_v61 }
 0x601   : > { %6050 = vmatpush.msrb.mxu2 %v12134_v18 }
 0x602   : > { %9042 = vmatmul.msk.f32.gmra.mxu1 %vm2459_vm1, %v11153_v27  ;;  %9137 = vmatmul.msk.f32.gmra.mxu2 %vm2459_vm1, %v11663_v57  ;;  %v12140_v57 = vld [vmem:[%s14893_s3 + $0x88] sm:$0xff]  ;;  %v12168_v27 = vld [vmem:[%s14893_s3 + $0x180] sm:$0xff] }
 0x603   : > { %9170 = vmatmul.msk.f32.gmra.mxu3 %vm2459_vm1, %v10238_v9  ;;  %15149 = vst [vmem:[#allocation90_spill] sm:$0xff] %v12140_v57  ;;  %v12146_v9 = vld [vmem:[%s14893_s3 + $0x1d8] sm:$0xff]  ;;  %5434 = vmatpush.msrb.mxu1 %v12168_v27 }
 0x604   : > { %6265 = vmatpush.msrb.mxu3 %v12140_v57  ;;  %6051 = vmatpush.msrb.mxu2 %v12146_v9  ;;  %15152 = vst [vmem:[#allocation93_spill] sm:$0xff] %v12168_v27  ;;  %v12238_v57 = vld [vmem:[%s14893_s3 + $0x48] sm:$0xff] }
 0x606   : > { %6266 = vmatpush.msrb.mxu3 %v12152_v59  ;;  %6052 = vmatpush.msrb.mxu2 %v12158_v48  ;;  %v12178_v59 = vld [vmem:[%s14893_s3 + $0x78] sm:$0xff] }
 0x607   : > { %5656 = vmatpush.msra.mxu1 %v12178_v59  ;;  %v12222_v48 = vld [vmem:[%s14893_s3 + $0x58] sm:$0xff] }
 0x60a   : > { %9043 = vmatmul.msk.f32.gmra.mxu1 %vm2459_vm1, %v11204_v22  ;;  %9138 = vmatmul.msk.f32.gmra.mxu2 %vm2459_vm1, %v11759_v16  ;;  %v12184_v16 = vld [vmem:[%s14893_s3 + $0x1c8] sm:$0xff]  ;;  %v12187_v22 = vpop.f32.mrf.mxu2 }
 0x60b   : > { %9171 = vmatmul.msk.f32.gmra.mxu3 %vm2459_vm1, %v10343_v55  ;;  %15154 = vst [vmem:[#allocation95_spill] sm:$0xff] %v12184_v16  ;;  %6053 = vmatpush.msrb.mxu2 %v12184_v16  ;;  %v12192_v55 = vld [vmem:[%s14893_s3 + $0x70] sm:$0xff]  ;;  %v12204_v16 = vld [vmem:[%s14893_s3 + $0x68] sm:$0xff] }
 0x60c   : > { %5657 = vmatpush.msra.mxu1 %v12192_v55 }
 0x60d   : > { %6054 = vmatpush.msrb.mxu2 %v12198_v6  ;;  %v12216_v6 = vld [vmem:[%s14893_s3 + $0x60] sm:$0xff] }
 0x60e   : > { %5658 = vmatpush.msra.mxu1 %v12204_v16 }
 0x610   : > { %5659 = vmatpush.msra.mxu1 %v12216_v6 }
 0x612   : > { %9044 = vmatmul.msk.f32.gmra.mxu1 %vm2459_vm1, %v11263_v4  ;;  %9139 = vmatmul.msk.f32.gmra.mxu2 %vm2459_vm1, %v11806_v26  ;;  %v12225_v4 = vpop.f32.mrf.mxu3  ;;  %v12227_v26 = vpop.f32.mrf.mxu2 }
 0x613   : > { %9172 = vmatmul.msk.f32.gmra.mxu3 %vm2459_vm1, %v10453_v34  ;;  %5660 = vmatpush.msra.mxu1 %v12222_v48  ;;  %15156 = vst [vmem:[#allocation97_spill] sm:$0xff] %v12225_v4  ;;  %v12232_v34 = vld [vmem:[%s14893_s3 + $0x50] sm:$0xff]  ;;  %v12250_v4 = vld [vmem:[%s14893_s3 + $0x40] sm:$0xff] }
 0x614   : > { %15157 = vst [vmem:[#allocation98_spill] sm:$0xff] %v12227_v26 }
 0x615   : > { %5661 = vmatpush.msra.mxu1 %v12232_v34 }
 0x617   : > { %5662 = vmatpush.msra.mxu1 %v12238_v57 }
 0x619   : > { %5663 = vmatpush.msra.mxu1 %v12250_v4 }
 0x61a   : > { %9045 = vmatmul.msk.f32.gmra.mxu1 %vm2459_vm1, %v11313_v3  ;;  %9140 = vmatmul.msk.f32.gmra.mxu2 %vm2459_vm1, %v11854_v42  ;;  %v12253_v26 = vpop.f32.mrf.mxu3  ;;  %v12255_v39 = vpop.f32.mrf.mxu2 }
 0x61b   : > { %9173 = vmatmul.msk.f32.gmra.mxu3 %vm2459_vm1, %v10573_v11  ;;  %15158 = vst [vmem:[#allocation99_spill] sm:$0xff] %v12253_v26  ;;  %v12463_v26 = vld [vmem:[#allocation2 + $0x171] sm:$0xff] }
 0x61c   : > { %15196 = vst [vmem:[#allocation130_spill] sm:$0xff] %v12463_v26 }
 0x622   : > { %9046 = vmatmul.msk.f32.gmra.mxu1 %vm2459_vm1, %v11367_v43  ;;  %9141 = vmatmul.msk.f32.gmra.mxu2 %vm2459_vm1, %v11969_v28  ;;  %v12263_v42 = vpop.f32.mrf.mxu3  ;;  %v12269_v11 = vpop.f32.mrf.mxu2 }
 0x623   : > { %9174 = vmatmul.msk.f32.gmra.mxu3 %vm2459_vm1, %v10753_v29  ;;  %15159 = vst [vmem:[#allocation100_spill] sm:$0xff] %v12263_v42  ;;  %v12273_v43 = vpop.f32.mrf.mxu1 }
 0x624   : > { %15160 = vst [vmem:[#allocation101_spill] sm:$0xff] %v12269_v11  ;;  %v12491_v11 = vld [vmem:[#allocation2 + $0x191] sm:$0xff] }
 0x62a   : > { %9047 = vmatmul.msk.f32.gmra.mxu1 %vm2459_vm1, %v11495_v41  ;;  %9142 = vmatmul.msk.f32.gmra.mxu2 %vm2459_vm1, %v11991_v47  ;;  %v12282_v29 = vpop.f32.mrf.mxu3  ;;  %v12287_v47 = vld [vmem:[%s14893_s3 + $0x178] sm:$0xff]  ;;  %v12449_v41 = vld [vmem:[#allocation2 + $0x161] sm:$0xff] }
 0x62b   : > { %9175 = vmatmul.msk.f32.gmra.mxu3 %vm2459_vm1, %v10938_v31  ;;  %15161 = vst [vmem:[#allocation102_spill] sm:$0xff] %v12282_v29  ;;  %v12290_v31 = vpop.f32.mrf.mxu2  ;;  %v12320_v29 = vld [vmem:[%s14893_s3 + $0x38] sm:$0xff] }
 0x62c   : > { %15162 = vst [vmem:[#allocation103_spill] sm:$0xff] %v12287_v47 }
 0x62d   : > { %15163 = vst [vmem:[#allocation104_spill] sm:$0xff] %v12290_v31 }
 0x62e   : > { %15167 = vst [vmem:[#allocation108_spill] sm:$0xff] %v12320_v29 }
 0x62f   : > { %15193 = vst [vmem:[#allocation128_spill] sm:$0xff] %v12449_v41 }
 0x632   : > { %9088 = vmatmul.msk.f32.vlgmr.msrb.gmra.mxu1 %vm2459_vm1, %v10737_v0  ;;  %9143 = vmatmul.msk.f32.gmra.mxu2 %vm2459_vm1, %v12009_v5  ;;  %v12296_v0 = vld [vmem:[%s14893_s3 + $0x170] sm:$0xff]  ;;  %v12338_v28 = vpop.f32.mrf.mxu3 }
 0x633   : > { %9192 = vmatmul.msk.f32.vlgmr.msra.gmra.mxu3 %vm2459_vm1, %v11665_v33  ;;  %5819 = vmatpush.msrb.mxu1 %v11861_v49  ;;  %15164 = vst [vmem:[#allocation105_spill] sm:$0xff] %v12296_v0  ;;  %v12299_v49 = vpop.f32.mrf.mxu1  ;;  %v12305_v33 = vld [vmem:[%s14893_s3 + $0x168] sm:$0xff]  ;;  %v12330_v5 = vpop.f32.mrf.mxu2 }
 0x634   : > { %6406 = vmatpush.msra.mxu3 %v12287_v47  ;;  %15165 = vst [vmem:[#allocation106_spill] sm:$0xff] %v12305_v33 }
 0x635   : > { %5820 = vmatpush.msrb.mxu1 %v11878_v30  ;;  %v12311_v30 = vld [vmem:[#allocation2 + $0x121] sm:$0xff]  ;;  %15170 = vst [vmem:[#allocation111_spill] sm:$0xff] %v12338_v28  ;;  %v12359_v28 = vld [vmem:[%s14893_s3 + $0x150] sm:$0xff] }
 0x636   : > { %6407 = vmatpush.msra.mxu3 %v12296_v0  ;;  %15166 = vst [vmem:[#allocation107_spill] sm:$0xff] %v12311_v30  ;;  %v15189_v0 = vld [vmem:[#allocation38_spill] sm:$0xff] }
 0x637   : > { %5821 = vmatpush.msrb.mxu1 %v11900_v52  ;;  %15173 = vst [vmem:[#allocation114_spill] sm:$0xff] %v12359_v28 }
 0x638   : > { %6408 = vmatpush.msra.mxu3 %v12305_v33 }
 0x639   : > { %5822 = vmatpush.msrb.mxu1 %v11905_v35  ;;  %v15187_v35 = vld [vmem:[#allocation54_spill] sm:$0xff] }
 0x63a   : > { %9089 = vmatmul.msk.f32.gmra.mxu1 %vm2459_vm1, %v11360_v44  ;;  %9160 = vmatmul.msk.f32.vlgmr.msra.gmra.mxu2 %vm2459_vm1, %v12311_v30  ;;  %v12327_v44 = vld [vmem:[%s14893_s3 + $0x160] sm:$0xff] }
 0x63b   : > { %9193 = vmatmul.msk.f32.gmra.mxu3 %vm2459_vm1, %v11761_v45  ;;  %6218 = vmatpush.msra.mxu2 %v12320_v29  ;;  %15168 = vst [vmem:[#allocation109_spill] sm:$0xff] %v12327_v44  ;;  %v12335_v45 = vld [vmem:[%s14893_s3 + $0x30] sm:$0xff]  ;;  %v12352_v29 = vld [vmem:[%s14893_s3 + $0x28] sm:$0xff] }
 0x63c   : > { %5823 = vmatpush.msrb.mxu1 %v11914_v17  ;;  %6409 = vmatpush.msra.mxu3 %v12327_v44  ;;  %15169 = vst [vmem:[#allocation110_spill] sm:$0xff] %v12335_v45  ;;  %v12344_v17 = vld [vmem:[%s14893_s3 + $0x158] sm:$0xff]  ;;  %v12347_v44 = vpop.f32.mrf.mxu1 }
 0x63d   : > { %6219 = vmatpush.msra.mxu2 %v12335_v45  ;;  %15171 = vst [vmem:[#allocation112_spill] sm:$0xff] %v12344_v17  ;;  %v12397_v45 = vpop.f32.mrf.mxu3 }
 0x63e   : > { %5824 = vmatpush.msrb.mxu1 %v11925_v51  ;;  %6410 = vmatpush.msra.mxu3 %v12344_v17  ;;  %15172 = vst [vmem:[#allocation113_spill] sm:$0xff] %v12352_v29  ;;  %v12365_v17 = vld [vmem:[%s14893_s3 + $0x20] sm:$0xff] }
 0x63f   : > { %6220 = vmatpush.msra.mxu2 %v12352_v29  ;;  %15174 = vst [vmem:[#allocation115_spill] sm:$0xff] %v12365_v17  ;;  %v15175_v51 = vld [vmem:[#allocation35_spill] sm:$0xff]  ;;  %v12370_v29 = vld [vmem:[#allocation2 + $0x131] sm:$0xff] }
 0x640   : > { %5825 = vmatpush.msrb.mxu1 %v11937_v50  ;;  %6411 = vmatpush.msra.mxu3 %v12359_v28  ;;  %15176 = vst [vmem:[#allocation116_spill] sm:$0xff] %v12370_v29  ;;  %v15177_v50 = vld [vmem:[#allocation47_spill] sm:$0xff]  ;;  %v12379_v28 = vld [vmem:[%s14893_s3 + $0x18] sm:$0xff] }
 0x641   : > { %6221 = vmatpush.msra.mxu2 %v12365_v17  ;;  %15178 = vst [vmem:[#allocation117_spill] sm:$0xff] %v12379_v28  ;;  %v12389_v17 = vpop.f32.mrf.mxu2 }
 0x642   : > { %9090 = vmatmul.msk.f32.gmra.mxu1 %vm2459_vm1, %v15175_v51  ;;  %9161 = vmatmul.msk.f32.gmra.mxu2 %vm2459_vm1, %v12370_v29  ;;  %v12386_v51 = vld [vmem:[%s14893_s3 + $0x148] sm:$0xff]  ;;  %15181 = vst [vmem:[#allocation120_spill] sm:$0xff] %v12397_v45  ;;  %v12416_v45 = vld [vmem:[%s14893_s3] sm:$0xff] }
 0x643   : > { %9194 = vmatmul.msk.f32.gmra.mxu3 %vm2459_vm1, %v15177_v50  ;;  %6222 = vmatpush.msra.mxu2 %v12379_v28  ;;  %15179 = vst [vmem:[#allocation118_spill] sm:$0xff] %v12386_v51  ;;  %v12394_v50 = vld [vmem:[%s14893_s3 + $0x10] sm:$0xff] }
 0x644   : > { %5826 = vmatpush.msrb.mxu1 %v11948_v2  ;;  %6412 = vmatpush.msra.mxu3 %v12386_v51  ;;  %15180 = vst [vmem:[#allocation119_spill] sm:$0xff] %v12394_v50  ;;  %v12402_v2 = vld [vmem:[%s14893_s3 + $0x140] sm:$0xff]  ;;  %v12405_v28 = vpop.f32.mrf.mxu1  ;;  %v12410_v51 = vld [vmem:[%s14893_s3 + $0x8] sm:$0xff] }
 0x645   : > { %6223 = vmatpush.msra.mxu2 %v12394_v50  ;;  %15182 = vst [vmem:[#allocation121_spill] sm:$0xff] %v12402_v2  ;;  %v15185_v50 = vld [vmem:[#allocation39_spill] sm:$0xff] }
 0x646   : > { %6413 = vmatpush.msra.mxu3 %v12402_v2  ;;  %15183 = vst [vmem:[#allocation122_spill] sm:$0xff] %v12410_v51  ;;  %v12421_v2 = vld [vmem:[#allocation2 + $0x141] sm:$0xff] }
 0x647   : > { %6224 = vmatpush.msra.mxu2 %v12410_v51  ;;  %15184 = vst [vmem:[#allocation123_spill] sm:$0xff] %v12416_v45  ;;  %v12429_v51 = vpop.f32.mrf.mxu3 }
 0x648   : > { %15186 = vst [vmem:[#allocation124_spill] sm:$0xff] %v12421_v2 }
 0x649   : > { %6225 = vmatpush.msra.mxu2 %v12416_v45  ;;  %v12427_v33 = vpop.f32.mrf.mxu2  ;;  %15188 = vst [vmem:[#allocation125_spill] sm:$0xff] %v12429_v51  ;;  %v12435_v45 = vld [vmem:[#allocation2 + $0x151] sm:$0xff]  ;;  %v15192_v51 = vld [vmem:[#allocation40_spill] sm:$0xff] }
 0x64a   : > { %9091 = vmatmul.msk.f32.gmra.mxu1 %vm2459_vm1, %v15185_v50  ;;  %9162 = vmatmul.msk.f32.gmra.mxu2 %vm2459_vm1, %v12421_v2  ;;  %15190 = vst [vmem:[#allocation126_spill] sm:$0xff] %v12435_v45 }
 0x64b   : > { %9195 = vmatmul.msk.f32.gmra.mxu3 %vm2459_vm1, %v15187_v35 }
 0x64c   : > { %v12431_v52 = vpop.f32.mrf.mxu1 }
 0x64f   : > { %v12443_v35 = vpop.f32.mrf.mxu3 }
 0x650   : > { %15191 = vst [vmem:[#allocation127_spill] sm:$0xff] %v12443_v35  ;;  %v15195_v35 = vld [vmem:[#allocation44_spill] sm:$0xff] }
 0x651   : > { %v12441_v50 = vpop.f32.mrf.mxu2 }
 0x652   : > { %9092 = vmatmul.msk.f32.gmra.mxu1 %vm2459_vm1, %v15189_v0  ;;  %9163 = vmatmul.msk.f32.gmra.mxu2 %vm2459_vm1, %v12435_v45 }
 0x653   : > { %9196 = vmatmul.msk.f32.gmra.mxu3 %vm2459_vm1, %v11971_v23 }
 0x657   : > { %v12445_v47 = vpop.f32.mrf.mxu1 }
 0x65a   : > { %9093 = vmatmul.msk.f32.gmra.mxu1 %vm2459_vm1, %v15192_v51  ;;  %9164 = vmatmul.msk.f32.gmra.mxu2 %vm2459_vm1, %v12449_v41 }
 0x65b   : > { %9197 = vmatmul.msk.f32.gmra.mxu3 %vm2459_vm1, %v11146_v46 }
 0x65d   : > { %v12455_v0 = vpop.f32.mrf.mxu2 }
 0x65e   : > { %v12457_v23 = vpop.f32.mrf.mxu3 }
 0x65f   : > { %15194 = vst [vmem:[#allocation129_spill] sm:$0xff] %v12457_v23  ;;  %v12459_v42 = vpop.f32.mrf.mxu1  ;;  %v12477_v23 = vld [vmem:[#allocation2 + $0x181] sm:$0xff] }
 0x660   : > { %15200 = vst [vmem:[#allocation134_spill] sm:$0xff] %v12477_v23 }
 0x662   : > { %9094 = vmatmul.msk.f32.gmra.mxu1 %vm2459_vm1, %v15195_v35  ;;  %9165 = vmatmul.msk.f32.gmra.mxu2 %vm2459_vm1, %v12463_v26  ;;  %v15201_v35 = vld [vmem:[#allocation27_spill] sm:$0xff] }
 0x663   : > { %9198 = vmatmul.msk.f32.gmra.mxu3 %vm2459_vm1, %v11197_v10 }
 0x665   : > { %v12469_v51 = vpop.f32.mrf.mxu2 }
 0x666   : > { %15197 = vst [vmem:[#allocation131_spill] sm:$0xff] %v12469_v51  ;;  %v12471_v46 = vpop.f32.mrf.mxu3 }
 0x667   : > { %15198 = vst [vmem:[#allocation132_spill] sm:$0xff] %v12471_v46  ;;  %v12473_v3 = vpop.f32.mrf.mxu1  ;;  %v15204_v46 = vld [vmem:[#allocation17_spill] sm:$0xff] }
 0x668   : > { %15199 = vst [vmem:[#allocation133_spill] sm:$0xff] %v12473_v3 }
 0x669   : > { %15205 = vst [vmem:[#allocation17_spill] sm:$0xff] %v12491_v11 }
 0x66a   : > { %9095 = vmatmul.msk.f32.gmra.mxu1 %vm2459_vm1, %v12027_v56  ;;  %9166 = vmatmul.msk.f32.gmra.mxu2 %vm2459_vm1, %v12477_v23 }
 0x66b   : > { %9199 = vmatmul.msk.f32.gmra.mxu3 %vm2459_vm1, %v15201_v35  ;;  %v12501_v35 = vld [vmem:[%s14893_s3 + $0x238] sm:$0xff] }
 0x66c   : > { %15206 = vst [vmem:[#allocation137_spill] sm:$0xff] %v12501_v35 }
 0x66d   : > { %v12483_v31 = vpop.f32.mrf.mxu2 }
 0x66e   : > { %15202 = vst [vmem:[#allocation135_spill] sm:$0xff] %v12483_v31  ;;  %v12485_v10 = vpop.f32.mrf.mxu3 }
 0x66f   : > { %15203 = vst [vmem:[#allocation136_spill] sm:$0xff] %v12485_v10  ;;  %v12487_v51 = vpop.f32.mrf.mxu1  ;;  %v12512_v10 = vld [vmem:[%s14893_s3 + $0x230] sm:$0xff] }
 0x670   : > { %15209 = vst [vmem:[#allocation140_spill] sm:$0xff] %v12512_v10 }
 0x672   : > { %9128 = vmatmul.msk.f32.vlgmr.msra.gmra.mxu1 %vm2459_vm1, %v15204_v46  ;;  %9167 = vmatmul.msk.f32.gmra.mxu2 %vm2459_vm1, %v12491_v11 }
 0x673   : > { %9216 = vmatmul.msk.f32.vlgmr.msrb.gmra.mxu3 %vm2459_vm1, %v12311_v30  ;;  %5998 = vmatpush.msra.mxu1 %v11966_v8 }
 0x674   : > { %6651 = vmatpush.msrb.mxu3 %v12501_v35  ;;  %v12521_v35 = vld [vmem:[%s14893_s3 + $0x228] sm:$0xff] }
 0x675   : > { %v12504_v56 = vpop.f32.mrf.mxu2  ;;  %5999 = vmatpush.msra.mxu1 %v11982_v25  ;;  %15210 = vst [vmem:[#allocation141_spill] sm:$0xff] %v12521_v35  ;;  %v12526_v25 = vld [vmem:[#allocation2 + $0x11] sm:$0xff] }
 0x676   : > { %15207 = vst [vmem:[#allocation138_spill] sm:$0xff] %v12504_v56  ;;  %v12507_v46 = vpop.f32.mrf.mxu3  ;;  %6652 = vmatpush.msrb.mxu3 %v12512_v10  ;;  %v12660_v10 = vld [vmem:[#allocation2 + $0x51] sm:$0xff]  ;;  %v9654_v56 = vld [vmem:[#allocation2 + $0x61] sm:$0xff] }
 0x677   : > { %15208 = vst [vmem:[#allocation139_spill] sm:$0xff] %v12507_v46  ;;  %v12515_v30 = vpop.f32.mrf.mxu1  ;;  %6000 = vmatpush.msra.mxu1 %v12000_v21  ;;  %v9631_v46 = vld [vmem:[#allocation2 + $0x11] sm:$0xff] }
 0x678   : > { %6653 = vmatpush.msrb.mxu3 %v12521_v35  ;;  %v12535_v21 = vld [vmem:[%s14893_s3 + $0x138] sm:$0xff]  ;;  %15232 = vst [vmem:[#allocation163_spill] sm:$0xff] %v12660_v10 }
 0x679   : > { %6001 = vmatpush.msra.mxu1 %v12018_v24  ;;  %15211 = vst [vmem:[#allocation142_spill] sm:$0xff] %v12535_v21 }
 0x67a   : > { %9129 = vmatmul.msk.f32.gmra.mxu1 %vm2459_vm1, %v9631_v46  ;;  %9184 = vmatmul.msk.f32.vlgmr.msrb.gmra.mxu2 %vm2459_vm1, %v12526_v25  ;;  %v12542_v46 = vld [vmem:[%s14893_s3 + $0x220] sm:$0xff] }
 0x67b   : > { %9217 = vmatmul.msk.f32.gmra.mxu3 %vm2459_vm1, %v12370_v29  ;;  %6357 = vmatpush.msrb.mxu2 %v12535_v21  ;;  %15212 = vst [vmem:[#allocation143_spill] sm:$0xff] %v12542_v46  ;;  %v12550_v29 = vld [vmem:[%s14893_s3 + $0x130] sm:$0xff]  ;;  %v9650_v21 = vld [vmem:[#allocation2 + $0x41] sm:$0xff] }
 0x67c   : > { %6002 = vmatpush.msra.mxu1 %v12040_v36  ;;  %6654 = vmatpush.msrb.mxu3 %v12542_v46  ;;  %15214 = vst [vmem:[#allocation145_spill] sm:$0xff] %v12550_v29  ;;  %v12559_v36 = vld [vmem:[%s14893_s3 + $0x218] sm:$0xff] }
 0x67d   : > { %v12545_v24 = vpop.f32.mrf.mxu2  ;;  %6358 = vmatpush.msrb.mxu2 %v12550_v29  ;;  %15216 = vst [vmem:[#allocation147_spill] sm:$0xff] %v12559_v36 }
 0x67e   : > { %15213 = vst [vmem:[#allocation144_spill] sm:$0xff] %v12545_v24  ;;  %v12553_v35 = vpop.f32.mrf.mxu3  ;;  %6003 = vmatpush.msra.mxu1 %v12074_v14  ;;  %6655 = vmatpush.msrb.mxu3 %v12559_v36  ;;  %v12567_v24 = vld [vmem:[%s14893_s3 + $0x128] sm:$0xff]  ;;  %v12580_v36 = vld [vmem:[%s14893_s3 + $0x120] sm:$0xff] }
 0x67f   : > { %15215 = vst [vmem:[#allocation146_spill] sm:$0xff] %v12553_v35  ;;  %v12562_v46 = vpop.f32.mrf.mxu1  ;;  %6359 = vmatpush.msrb.mxu2 %v12567_v24  ;;  %v12574_v35 = vld [vmem:[%s14893_s3 + $0x210] sm:$0xff]  ;;  %v9640_v14 = vld [vmem:[#allocation2 + $0x21] sm:$0xff] }
 0x680   : > { %15217 = vst [vmem:[#allocation148_spill] sm:$0xff] %v12567_v24  ;;  %6004 = vmatpush.msra.mxu1 %v12124_v15  ;;  %6656 = vmatpush.msrb.mxu3 %v12574_v35  ;;  %v12584_v24 = vld [vmem:[#allocation2 + $0x21] sm:$0xff] }
 0x681   : > { %15218 = vst [vmem:[#allocation149_spill] sm:$0xff] %v12574_v35  ;;  %6360 = vmatpush.msrb.mxu2 %v12580_v36  ;;  %v12593_v35 = vld [vmem:[%s14893_s3 + $0x118] sm:$0xff] }
 0x682   : > { %15219 = vst [vmem:[#allocation150_spill] sm:$0xff] %v12580_v36  ;;  %9130 = vmatmul.msk.f32.gmra.mxu1 %vm2459_vm1, %v9640_v14  ;;  %9185 = vmatmul.msk.f32.gmra.mxu2 %vm2459_vm1, %v12584_v24  ;;  %v12600_v14 = vld [vmem:[%s14893_s3 + $0x208] sm:$0xff] }
 0x683   : > { %9218 = vmatmul.msk.f32.gmra.mxu3 %vm2459_vm1, %v12421_v2  ;;  %15220 = vst [vmem:[#allocation151_spill] sm:$0xff] %v12593_v35  ;;  %6361 = vmatpush.msrb.mxu2 %v12593_v35  ;;  %v12608_v2 = vld [vmem:[%s14893_s3 + $0x110] sm:$0xff] }
 0x684   : > { %6005 = vmatpush.msra.mxu1 %v12168_v27  ;;  %15221 = vst [vmem:[#allocation152_spill] sm:$0xff] %v12600_v14  ;;  %6657 = vmatpush.msrb.mxu3 %v12600_v14  ;;  %v12616_v27 = vld [vmem:[%s14893_s3 + $0x200] sm:$0xff] }
 0x685   : > { %v12603_v36 = vpop.f32.mrf.mxu2  ;;  %15223 = vst [vmem:[#allocation154_spill] sm:$0xff] %v12608_v2  ;;  %6362 = vmatpush.msrb.mxu2 %v12608_v2  ;;  %v9648_v2 = vld [vmem:[#allocation2 + $0x31] sm:$0xff] }
 0x686   : > { %15222 = vst [vmem:[#allocation153_spill] sm:$0xff] %v12603_v36  ;;  %v12611_v15 = vpop.f32.mrf.mxu3  ;;  %6658 = vmatpush.msrb.mxu3 %v12616_v27  ;;  %v12624_v36 = vld [vmem:[%s14893_s3 + $0x108] sm:$0xff] }
 0x687   : > { %15224 = vst [vmem:[#allocation155_spill] sm:$0xff] %v12611_v15  ;;  %v12619_v35 = vpop.f32.mrf.mxu1  ;;  %6363 = vmatpush.msrb.mxu2 %v12624_v36  ;;  %v12630_v15 = vld [vmem:[%s14893_s3 + $0x100] sm:$0xff] }
 0x688   : > { %15225 = vst [vmem:[#allocation156_spill] sm:$0xff] %v12616_v27  ;;  %v12634_v27 = vld [vmem:[#allocation2 + $0x31] sm:$0xff] }
 0x689   : > { %15226 = vst [vmem:[#allocation157_spill] sm:$0xff] %v12624_v36  ;;  %6364 = vmatpush.msrb.mxu2 %v12630_v15 }
 0x68a   : > { %15227 = vst [vmem:[#allocation158_spill] sm:$0xff] %v12630_v15  ;;  %9131 = vmatmul.msk.f32.gmra.mxu1 %vm2459_vm1, %v9648_v2  ;;  %9186 = vmatmul.msk.f32.gmra.mxu2 %vm2459_vm1, %v12634_v27  ;;  %v12647_v15 = vld [vmem:[#allocation2 + $0x41] sm:$0xff] }
 0x68b   : > { %9219 = vmatmul.msk.f32.gmra.mxu3 %vm2459_vm1, %v12435_v45 }
 0x68d   : > { %v12640_v14 = vpop.f32.mrf.mxu2 }
 0x68e   : > { %15228 = vst [vmem:[#allocation159_spill] sm:$0xff] %v12640_v14  ;;  %v12642_v36 = vpop.f32.mrf.mxu3 }
 0x68f   : > { %15229 = vst [vmem:[#allocation160_spill] sm:$0xff] %v12642_v36  ;;  %v12644_v29 = vpop.f32.mrf.mxu1  ;;  %v9652_v36 = vld [vmem:[#allocation2 + $0x51] sm:$0xff] }
 0x692   : > { %9132 = vmatmul.msk.f32.gmra.mxu1 %vm2459_vm1, %v9650_v21  ;;  %9187 = vmatmul.msk.f32.gmra.mxu2 %vm2459_vm1, %v12647_v15 }
 0x693   : > { %9220 = vmatmul.msk.f32.gmra.mxu3 %vm2459_vm1, %v12449_v41 }
 0x695   : > { %v12653_v2 = vpop.f32.mrf.mxu2 }
 0x696   : > { %15230 = vst [vmem:[#allocation161_spill] sm:$0xff] %v12653_v2  ;;  %v12655_v45 = vpop.f32.mrf.mxu3 }
 0x697   : > { %15231 = vst [vmem:[#allocation162_spill] sm:$0xff] %v12655_v45  ;;  %v12657_v14 = vpop.f32.mrf.mxu1  ;;  %v15236_v45 = vld [vmem:[#allocation53_spill] sm:$0xff] }
 0x698   : > { %v4995_v8 = vadd.f32 %v15236_v45, %v12273_v43  ;;  %v15241_v45 = vld [vmem:[#allocation56_spill] sm:$0xff] }
 0x69a   : > { %9133 = vmatmul.msk.f32.gmra.mxu1 %vm2459_vm1, %v9652_v36  ;;  %9188 = vmatmul.msk.f32.gmra.mxu2 %vm2459_vm1, %v12660_v10  ;;  %v12675_v36 = vld [vmem:[#allocation2 + $0x61] sm:$0xff]  ;;  %v9656_v10 = vld [vmem:[#allocation2 + $0x71] sm:$0xff] }
 0x69b   : > { %9221 = vmatmul.msk.f32.gmra.mxu3 %vm2459_vm1, %v12463_v26  ;;  %15237 = vst [vmem:[#allocation53_spill] sm:$0xff] %v12675_v36  ;;  %v15238_v26 = vld [vmem:[#allocation42_spill] sm:$0xff] }
 0x69d   : > { %v12666_v21 = vpop.f32.mrf.mxu2 }
 0x69e   : > { %15233 = vst [vmem:[#allocation164_spill] sm:$0xff] %v12666_v21  ;;  %v12668_v41 = vpop.f32.mrf.mxu3  ;;  %v5100_v21 = vadd.f32 %v15238_v26, %v4995_v8 }
 0x69f   : > { %15234 = vst [vmem:[#allocation165_spill] sm:$0xff] %v12668_v41  ;;  %v12670_v2 = vpop.f32.mrf.mxu1 }
 0x6a0   : > { %15235 = vst [vmem:[#allocation166_spill] sm:$0xff] %v12670_v2  ;;  %v5190_v41 = vadd.f32 %v12487_v51, %v5100_v21  ;;  %v15243_v51 = vld [vmem:[#allocation43_spill] sm:$0xff] }
 0x6a2   : > { %9134 = vmatmul.msk.f32.gmra.mxu1 %vm2459_vm1, %v9654_v56  ;;  %9189 = vmatmul.msk.f32.gmra.mxu2 %vm2459_vm1, %v12675_v36  ;;  %v4998_v56 = vadd.f32 %v15241_v45, %v12299_v49  ;;  %v5280_v2 = vadd.f32 %v12025_v7, %v5190_v41  ;;  %v12693_v36 = vld [vmem:[#allocation2 + $0x71] sm:$0xff]  ;;  %v15245_v41 = vld [vmem:[#allocation55_spill] sm:$0xff] }
 0x6a3   : > { %9222 = vmatmul.msk.f32.gmra.mxu3 %vm2459_vm1, %v12477_v23  ;;  %15242 = vst [vmem:[#allocation56_spill] sm:$0xff] %v12693_v36 }
 0x6a4   : > { %v5101_v8 = vadd.f32 %v15243_v51, %v4998_v56  ;;  %v5370_v7 = vadd.f32 %v15245_v41, %v5280_v2  ;;  %v12713_v56 = vld [vmem:[%s14894_s4] ss:$0 sm:$0xff]  ;;  %v12715_v51 = vld [vmem:[#allocation2 + $0x1b0] sm:$0xff] }
 0x6a5   : > { %v12682_v31 = vpop.f32.mrf.mxu2 }
 0x6a6   : > { %15239 = vst [vmem:[#allocation42_spill] sm:$0xff] %v12682_v31  ;;  %v12685_v3 = vpop.f32.mrf.mxu3  ;;  %v5191_v21 = vadd.f32 %v12515_v30, %v5101_v8  ;;  %v12719_v30 = vld [vmem:[#allocation2 + $0x81] sm:$0xff] }
 0x6a7   : > { %15240 = vst [vmem:[#allocation167_spill] sm:$0xff] %v12685_v3  ;;  %v12687_v43 = vpop.f32.mrf.mxu1 }
 0x6a8   : > { %v5281_v31 = vadd.f32 %v12065_v54, %v5191_v21  ;;  %v15249_v21 = vld [vmem:[#allocation57_spill] sm:$0xff] }
 0x6aa   : > { %9135 = vmatmul.msk.f32.gmra.mxu1 %vm2459_vm1, %v9656_v10  ;;  %9190 = vmatmul.msk.f32.gmra.mxu2 %vm2459_vm1, %v12693_v36  ;;  %v15246_v10 = vld [vmem:[#allocation61_spill] sm:$0xff]  ;;  %v5371_v41 = vadd.f32 %v15249_v21, %v5281_v31 }
 0x6ab   : > { %9223 = vmatmul.msk.f32.gmra.mxu3 %vm2459_vm1, %v12491_v11  ;;  %v5001_v23 = vadd.f32 %v15246_v10, %v12347_v44 }
 0x6ad   : > { %v12700_v26 = vpop.f32.mrf.mxu2 }
 0x6ae   : > { %v12703_v49 = vpop.f32.mrf.mxu3 }
 0x6af   : > { %15244 = vst [vmem:[#allocation43_spill] sm:$0xff] %v12703_v49  ;;  %v5436_v45 = vpop.f32.mrf.mxu1  ;;  %v15364_v49 = vld [vmem:[#allocation82_spill] sm:$0xff] }
 0x6b0   : > { %v5460_v3 = vadd.f32 %v5436_v45, %v5370_v7 }
 0x6b2   : > { %v5550_v36 = vadd.f32 %v12330_v5, %v5460_v3  ;;  %9152 = vmatmul.msk.f32.vlgmr.msrb.gmra.mxu1 %vm2459_vm1, %v12715_v51  ;;  %9191 = vmatmul.msk.f32.gmra.mxu2 %vm2459_vm1, %v12719_v30  ;;  %v15247_v3 = vld [vmem:[#allocation46_spill] sm:$0xff] }
 0x6b3   : > { %9240 = vmatmul.msk.f32.vlgmr.msra.gmra.mxu3 %vm2459_vm1, %v12526_v25  ;;  %6177 = vmatpush.msrb.mxu1 %v12178_v59  ;;  %v5102_v44 = vadd.f32 %v15247_v3, %v5001_v23 }
 0x6b4   : > { %v5640_v5 = vadd.f32 %v12005_v12, %v5550_v36  ;;  %6782 = vmatpush.msra.mxu3 %v12048_v37  ;;  %v15250_v12 = vld [vmem:[#allocation65_spill] sm:$0xff] }
 0x6b5   : > { %v12729_v54 = vpop.f32.mrf.mxu2  ;;  %6178 = vmatpush.msrb.mxu1 %v12192_v55  ;;  %v5192_v2 = vadd.f32 %v12562_v46, %v5102_v44  ;;  %v5004_v37 = vadd.f32 %v15250_v12, %v12405_v28  ;;  %v15251_v28 = vld [vmem:[#allocation48_spill] sm:$0xff] }
 0x6b6   : > { %v12734_v8 = vadd.f32 %v12713_v56, %v5640_v5  ;;  %6783 = vmatpush.msra.mxu3 %v12054_v20  ;;  %v12738_v25 = vpop.f32.mrf.mxu3  ;;  %v12751_v20 = vld [vmem:[#allocation2 + $0x1c0] sm:$0xff]  ;;  %v15264_v12 = vld [vmem:[#allocation96_spill] sm:$0xff] }
 0x6b7   : > { %v5439_v23 = vpop.f32.mrf.mxu1  ;;  %6179 = vmatpush.msrb.mxu1 %v12204_v16  ;;  %v5282_v46 = vadd.f32 %v12126_v53, %v5192_v2  ;;  %v5103_v53 = vadd.f32 %v15251_v28, %v5004_v37  ;;  %v15262_v2 = vld [vmem:[#allocation95_spill] sm:$0xff]  ;;  %v12817_v37 = vld [vmem:[#allocation2 + $0x1d0] sm:$0xff]  ;;  %v15267_v28 = vld [vmem:[#allocation22_spill] sm:$0xff] }
 0x6b8   : > { %15248 = vst [vmem:[#allocation55_spill] sm:$0xff] %v12734_v8  ;;  %v15014_v36 = vmax.f32 %v12734_v8, 0.0  ;;  %v5461_v7 = vadd.f32 %v5439_v23, %v5371_v41  ;;  %6784 = vmatpush.msra.mxu3 %v12062_v62 }
 0x6b9   : > { %6180 = vmatpush.msrb.mxu1 %v12216_v6  ;;  %v5193_v45 = vadd.f32 %v12619_v35, %v5103_v53  ;;  %15265 = vst [vmem:[#allocation65_spill] sm:$0xff] %v12817_v37  ;;  %v15268_v53 = vld [vmem:[#allocation50_spill] sm:$0xff] }
 0x6ba   : > { %7538 = vst.msk [vmem:[#allocation2 + $0x1b0] sm:$0xff] %vm2459_vm1, %v15014_v36  ;;  %v5551_v31 = vadd.f32 %v12389_v17, %v5461_v7  ;;  %9153 = vmatmul.msk.f32.gmra.mxu1 %vm2459_vm1, %v12751_v20  ;;  %9208 = vmatmul.msk.f32.vlgmr.msra.gmra.mxu2 %vm2459_vm1, %v11026_v58 }
 0x6bb   : > { %9241 = vmatmul.msk.f32.gmra.mxu3 %vm2459_vm1, %v12584_v24  ;;  %6570 = vmatpush.msra.mxu2 %v12082_v19  ;;  %v15253_v24 = vld [vmem:[#allocation58_spill] sm:$0xff] }
 0x6bc   : > { %v5641_v62 = vadd.f32 %v12023_v32, %v5551_v31  ;;  %6181 = vmatpush.msrb.mxu1 %v12222_v48  ;;  %6785 = vmatpush.msra.mxu3 %v12088_v40  ;;  %v5372_v10 = vadd.f32 %v15253_v24, %v5282_v46  ;;  %v5007_v48 = vadd.f32 %v11941_v63, %v12431_v52  ;;  %v12787_v40 = vld [vmem:[#allocation2 + $0x1d0] sm:$0xff]  ;;  %v15257_v63 = vld [vmem:[#allocation90_spill] sm:$0xff]  ;;  %v12821_v31 = vld [vmem:[#allocation2 + $0x1e0] sm:$0xff] }
 0x6bd   : > { %v12764_v17 = vpop.f32.mrf.mxu2  ;;  %6571 = vmatpush.msra.mxu2 %v12094_v1 }
 0x6be   : > { %v12769_v58 = vadd.f32 %v12713_v56, %v5641_v62  ;;  %6182 = vmatpush.msrb.mxu1 %v12232_v34  ;;  %6786 = vmatpush.msra.mxu3 %v12100_v60  ;;  %v12780_v35 = vpop.f32.mrf.mxu3  ;;  %v12783_v34 = vld [vmem:[#allocation2 + $0x1c0] sm:$0xff]  ;;  %v5283_v60 = vadd.f32 %v12187_v22, %v5193_v45  ;;  %v15255_v22 = vld [vmem:[#allocation49_spill] sm:$0xff] }
 0x6bf   : > { %v5442_v32 = vpop.f32.mrf.mxu1  ;;  %6572 = vmatpush.msra.mxu2 %v12106_v38  ;;  %15254 = vst [vmem:[#allocation46_spill] sm:$0xff] %v12783_v34 }
 0x6c0   : > { %15252 = vst [vmem:[#allocation61_spill] sm:$0xff] %v12769_v58  ;;  %v5462_v19 = vadd.f32 %v5442_v32, %v5372_v10  ;;  %6183 = vmatpush.msrb.mxu1 %v12238_v57  ;;  %6787 = vmatpush.msra.mxu3 %v12112_v61  ;;  %v15013_v1 = vmax.f32 %v12769_v58, 0.0  ;;  %v5104_v61 = vadd.f32 %v15255_v22, %v5007_v48  ;;  %v15271_v48 = vld [vmem:[#allocation66_spill] sm:$0xff]  ;;  %v13037_v58 = vld [vmem:[#allocation2 + $0xd0] sm:$0xff] }
 0x6c1   : > { %6573 = vmatpush.msra.mxu2 %v12134_v18 }
 0x6c2   : > { %v5552_v38 = vadd.f32 %v12427_v33, %v5462_v19  ;;  %9154 = vmatmul.msk.f32.gmra.mxu1 %vm2459_vm1, %v12787_v40  ;;  %9209 = vmatmul.msk.f32.gmra.mxu2 %vm2459_vm1, %v11102_v13  ;;  %7539 = vst.msk [vmem:[#allocation2 + $0x1c0] sm:$0xff] %vm2459_vm1, %v15013_v1  ;;  %v15256_v33 = vld [vmem:[#allocation86_spill] sm:$0xff]  ;;  %v15258_v13 = vld [vmem:[#allocation92_spill] sm:$0xff]  ;;  %v5194_v57 = vadd.f32 %v12644_v29, %v5104_v61 }
 0x6c3   : > { %9242 = vmatmul.msk.f32.gmra.mxu3 %vm2459_vm1, %v12634_v27  ;;  %6574 = vmatpush.msra.mxu2 %v12146_v9  ;;  %v15260_v27 = vld [vmem:[#allocation63_spill] sm:$0xff]  ;;  %v15266_v29 = vld [vmem:[#allocation98_spill] sm:$0xff]  ;;  %v15325_v1 = vld [vmem:[#allocation112_spill] sm:$0xff] }
 0x6c4   : > { %v5642_v52 = vadd.f32 %v15256_v33, %v5552_v38  ;;  %6184 = vmatpush.msrb.mxu1 %v12250_v4  ;;  %6788 = vmatpush.msra.mxu3 %v15257_v63  ;;  %v5373_v44 = vadd.f32 %v15260_v27, %v5283_v60  ;;  %v15261_v9 = vld [vmem:[#allocation91_spill] sm:$0xff]  ;;  %v15263_v4 = vld [vmem:[#allocation70_spill] sm:$0xff]  ;;  %v5284_v7 = vadd.f32 %v15266_v29, %v5194_v57  ;;  %v15272_v38 = vld [vmem:[#allocation77_spill] sm:$0xff] }
 0x6c5   : > { %v12803_v18 = vpop.f32.mrf.mxu2  ;;  %6575 = vmatpush.msra.mxu2 %v15258_v13  ;;  %v5010_v21 = vadd.f32 %v15263_v4, %v12445_v47  ;;  %v5013_v22 = vadd.f32 %v15272_v38, %v12459_v42  ;;  %v12846_v33 = vld [vmem:[#allocation2 + $0x1e0] sm:$0xff]  ;;  %v12850_v13 = vld [vmem:[#allocation2 + $0x1f0] sm:$0xff] }
 0x6c6   : > { %v12808_v3 = vadd.f32 %v12713_v56, %v5642_v52  ;;  %6789 = vmatpush.msra.mxu3 %v15261_v9  ;;  %v12830_v47 = vpop.f32.mrf.mxu3  ;;  %v5374_v19 = vadd.f32 %v15271_v48, %v5284_v7  ;;  %15273 = vst [vmem:[#allocation58_spill] sm:$0xff] %v12846_v33  ;;  %v15275_v42 = vld [vmem:[#allocation163_spill] sm:$0xff]  ;;  %v15281_v29 = vld [vmem:[#allocation133_spill] sm:$0xff]  ;;  %v15282_v7 = vld [vmem:[#allocation80_spill] sm:$0xff] }
 0x6c7   : > { %v5445_v5 = vpop.f32.mrf.mxu1  ;;  %6576 = vmatpush.msra.mxu2 %v15262_v2  ;;  %v5105_v62 = vadd.f32 %v15268_v53, %v5010_v21  ;;  %v15276_v57 = vld [vmem:[#allocation51_spill] sm:$0xff]  ;;  %v15280_v21 = vld [vmem:[#allocation68_spill] sm:$0xff]  ;;  %v15287_v38 = vld [vmem:[#allocation53_spill] sm:$0xff] }
 0x6c8   : > { %15259 = vst [vmem:[#allocation57_spill] sm:$0xff] %v12808_v3  ;;  %v5463_v41 = vadd.f32 %v5445_v5, %v5373_v44  ;;  %v15012_v23 = vmax.f32 %v12808_v3, 0.0  ;;  %v5106_v27 = vadd.f32 %v15276_v57, %v5013_v22  ;;  %v15278_v5 = vld [vmem:[#allocation166_spill] sm:$0xff]  ;;  %v15288_v22 = vld [vmem:[#allocation52_spill] sm:$0xff]  ;;  %v15339_v3 = vld [vmem:[#allocation123_spill] sm:$0xff] }
 0x6c9   : > { %6577 = vmatpush.msra.mxu2 %v15264_v12  ;;  %v5195_v10 = vadd.f32 %v12657_v14, %v5105_v62  ;;  %v15274_v14 = vld [vmem:[#allocation25_spill] sm:$0xff]  ;;  %15340 = vst [vmem:[#allocation166_spill] sm:$0xff] %v13037_v58 }
 0x6ca   : > { %v5553_v46 = vadd.f32 %v12441_v50, %v5463_v41  ;;  %9155 = vmatmul.msk.f32.gmra.mxu1 %vm2459_vm1, %v12821_v31  ;;  %9210 = vmatmul.msk.f32.gmra.mxu2 %vm2459_vm1, %v15267_v28  ;;  %7540 = vst.msk [vmem:[#allocation2 + $0x1d0] sm:$0xff] %vm2459_vm1, %v15012_v23  ;;  %v15269_v50 = vld [vmem:[#allocation88_spill] sm:$0xff]  ;;  %v5196_v2 = vadd.f32 %v15278_v5, %v5106_v27  ;;  %v12875_v62 = vld [vmem:[#allocation2 + $0x1f0] sm:$0xff]  ;;  %v15291_v27 = vld [vmem:[#allocation71_spill] sm:$0xff] }
 0x6cb   : > { %9243 = vmatmul.msk.f32.gmra.mxu3 %vm2459_vm1, %v12647_v15  ;;  %v5285_v52 = vadd.f32 %v12255_v39, %v5195_v10  ;;  %v15277_v39 = vld [vmem:[#allocation94_spill] sm:$0xff]  ;;  %15283 = vst [vmem:[#allocation86_spill] sm:$0xff] %v12875_v62  ;;  %v15285_v10 = vld [vmem:[#allocation131_spill] sm:$0xff]  ;;  %v15324_v23 = vld [vmem:[#allocation64_spill] sm:$0xff] }
 0x6cc   : > { %v5643_v45 = vadd.f32 %v15269_v50, %v5553_v46  ;;  %v5016_v46 = vadd.f32 %v15282_v7, %v15281_v29  ;;  %v15284_v50 = vld [vmem:[#allocation101_spill] sm:$0xff]  ;;  %v15294_v7 = vld [vmem:[#allocation135_spill] sm:$0xff] }
 0x6cd   : > { %v12836_v24 = vpop.f32.mrf.mxu2  ;;  %v5375_v41 = vadd.f32 %v15280_v21, %v5285_v52  ;;  %v15289_v52 = vld [vmem:[#allocation97_spill] sm:$0xff] }
 0x6ce   : > { %v12840_v32 = vadd.f32 %v12713_v56, %v5643_v45  ;;  %v5286_v45 = vadd.f32 %v15284_v50, %v5196_v2  ;;  %v15296_v50 = vld [vmem:[#allocation56_spill] sm:$0xff] }
 0x6cf   : > { %v5448_v60 = vpop.f32.mrf.mxu1 }
 0x6d0   : > { %15270 = vst [vmem:[#allocation48_spill] sm:$0xff] %v12840_v32  ;;  %v5464_v61 = vadd.f32 %v5448_v60, %v5374_v19  ;;  %v15011_v15 = vmax.f32 %v12840_v32, 0.0  ;;  %v12879_v19 = vld [vmem:[#allocation2 + $0x200] sm:$0xff]  ;;  %v15286_v60 = vld [vmem:[#allocation28_spill] sm:$0xff]  ;;  %v15338_v32 = vld [vmem:[#allocation122_spill] sm:$0xff] }
 0x6d2   : > { %v5554_v63 = vadd.f32 %v12455_v0, %v5464_v61  ;;  %9156 = vmatmul.msk.f32.gmra.mxu1 %vm2459_vm1, %v12850_v13  ;;  %9211 = vmatmul.msk.f32.gmra.mxu2 %vm2459_vm1, %v15274_v14  ;;  %7541 = vst.msk [vmem:[#allocation2 + $0x1e0] sm:$0xff] %vm2459_vm1, %v15011_v15  ;;  %v12863_v0 = vpop.f32.mrf.mxu3  ;;  %v5107_v61 = vadd.f32 %v15288_v22, %v5016_v46  ;;  %v15323_v15 = vld [vmem:[#allocation110_spill] sm:$0xff] }
 0x6d3   : > { %9244 = vmatmul.msk.f32.gmra.mxu3 %vm2459_vm1, %v15275_v42 }
 0x6d4   : > { %v5644_v44 = vadd.f32 %v15277_v39, %v5554_v63  ;;  %v5197_v42 = vadd.f32 %v12687_v43, %v5107_v61  ;;  %v5376_v39 = vadd.f32 %v15291_v27, %v5286_v45  ;;  %v15295_v43 = vld [vmem:[#allocation30_spill] sm:$0xff]  ;;  %v15297_v45 = vld [vmem:[#allocation99_spill] sm:$0xff]  ;;  %v12927_v27 = vld [vmem:[#allocation2 + $0x210] sm:$0xff] }
 0x6d5   : > { %v12865_v9 = vpop.f32.mrf.mxu2  ;;  %15300 = vst [vmem:[#allocation91_spill] sm:$0xff] %v12927_v27 }
 0x6d6   : > { %v12869_v4 = vadd.f32 %v12713_v56, %v5644_v44 }
 0x6d7   : > { %v5451_v12 = vpop.f32.mrf.mxu1 }
 0x6d8   : > { %15279 = vst [vmem:[#allocation49_spill] sm:$0xff] %v12869_v4  ;;  %v5465_v28 = vadd.f32 %v5451_v12, %v5375_v41  ;;  %v15010_v53 = vmax.f32 %v12869_v4, 0.0  ;;  %v12902_v41 = vld [vmem:[#allocation2 + $0x200] sm:$0xff]  ;;  %v15293_v12 = vld [vmem:[#allocation104_spill] sm:$0xff] }
 0x6d9   : > { %15292 = vst [vmem:[#allocation92_spill] sm:$0xff] %v12902_v41  ;;  %v5287_v29 = vadd.f32 %v15293_v12, %v5197_v42  ;;  %v15303_v12 = vld [vmem:[#allocation33_spill] sm:$0xff] }
 0x6da   : > { %v5555_v48 = vadd.f32 %v15285_v10, %v5465_v28  ;;  %9157 = vmatmul.msk.f32.gmra.mxu1 %vm2459_vm1, %v12879_v19  ;;  %9212 = vmatmul.msk.f32.gmra.mxu2 %vm2459_vm1, %v15286_v60  ;;  %7542 = vst.msk [vmem:[#allocation2 + $0x1f0] sm:$0xff] %vm2459_vm1, %v15010_v53  ;;  %v12899_v44 = vpop.f32.mrf.mxu3  ;;  %v12906_v28 = vld [vmem:[#allocation2 + $0x210] sm:$0xff] }
 0x6db   : > { %9245 = vmatmul.msk.f32.gmra.mxu3 %vm2459_vm1, %v15287_v38  ;;  %v15299_v38 = vld [vmem:[#allocation75_spill] sm:$0xff] }
 0x6dc   : > { %v5645_v63 = vadd.f32 %v15289_v52, %v5555_v48  ;;  %v5377_v22 = vadd.f32 %v15299_v38, %v5287_v29  ;;  %v15304_v29 = vld [vmem:[#allocation100_spill] sm:$0xff]  ;;  %v12952_v38 = vld [vmem:[#allocation2 + $0xa0] sm:$0xff] }
 0x6dd   : > { %v12892_v14 = vpop.f32.mrf.mxu2  ;;  %15307 = vst [vmem:[#allocation98_spill] sm:$0xff] %v12952_v38 }
 0x6de   : > { %v12896_v57 = vadd.f32 %v12713_v56, %v5645_v63 }
 0x6df   : > { %v5454_v5 = vpop.f32.mrf.mxu1 }
 0x6e0   : > { %15290 = vst [vmem:[#allocation90_spill] sm:$0xff] %v12896_v57  ;;  %v5466_v2 = vadd.f32 %v5454_v5, %v5376_v39  ;;  %v15009_v21 = vmax.f32 %v12896_v57, 0.0  ;;  %v15301_v39 = vld [vmem:[#allocation138_spill] sm:$0xff] }
 0x6e2   : > { %v5556_v46 = vadd.f32 %v15294_v7, %v5466_v2  ;;  %9158 = vmatmul.msk.f32.gmra.mxu1 %vm2459_vm1, %v12906_v28  ;;  %9213 = vmatmul.msk.f32.gmra.mxu2 %vm2459_vm1, %v15295_v43  ;;  %7543 = vst.msk [vmem:[#allocation2 + $0x200] sm:$0xff] %vm2459_vm1, %v15009_v21  ;;  %v12925_v42 = vpop.f32.mrf.mxu3  ;;  %v12930_v2 = vld [vmem:[#allocation2 + $0x220] sm:$0xff] }
 0x6e3   : > { %9246 = vmatmul.msk.f32.gmra.mxu3 %vm2459_vm1, %v15296_v50  ;;  %15302 = vst [vmem:[#allocation95_spill] sm:$0xff] %v12930_v2  ;;  %v12994_v21 = vld [vmem:[#allocation2 + $0x141] sm:$0xff] }
 0x6e4   : > { %v5646_v10 = vadd.f32 %v15297_v45, %v5556_v46  ;;  %15318 = vst [vmem:[#allocation77_spill] sm:$0xff] %v12994_v21 }
 0x6e5   : > { %v12918_v48 = vpop.f32.mrf.mxu2 }
 0x6e6   : > { %v12921_v60 = vadd.f32 %v12713_v56, %v5646_v10  ;;  %v12950_v10 = vld [vmem:[#allocation2 + $0x220] sm:$0xff] }
 0x6e7   : > { %v5457_v61 = vpop.f32.mrf.mxu1  ;;  %15306 = vst [vmem:[#allocation96_spill] sm:$0xff] %v12950_v10 }
 0x6e8   : > { %15298 = vst [vmem:[#allocation63_spill] sm:$0xff] %v12921_v60  ;;  %v5467_v52 = vadd.f32 %v5457_v61, %v5377_v22  ;;  %v15008_v63 = vmax.f32 %v12921_v60, 0.0  ;;  %v15308_v22 = vld [vmem:[#allocation36_spill] sm:$0xff]  ;;  %v15327_v60 = vld [vmem:[#allocation67_spill] sm:$0xff] }
 0x6ea   : > { %v5557_v5 = vadd.f32 %v15301_v39, %v5467_v52  ;;  %9159 = vmatmul.msk.f32.gmra.mxu1 %vm2459_vm1, %v12930_v2  ;;  %9214 = vmatmul.msk.f32.gmra.mxu2 %vm2459_vm1, %v15303_v12  ;;  %7544 = vst.msk [vmem:[#allocation2 + $0x210] sm:$0xff] %vm2459_vm1, %v15008_v63  ;;  %v12963_v61 = vpop.f32.mrf.mxu3  ;;  %v12970_v52 = vld [vmem:[%s14893_s3 + $0xf8] sm:$0xff]  ;;  %v15311_v39 = vld [vmem:[#allocation103_spill] sm:$0xff]  ;;  %v12979_v12 = vld [vmem:[%s14893_s3 + $0xf0] sm:$0xff] }
 0x6eb   : > { %9247 = vmatmul.msk.f32.gmra.mxu3 %vm2459_vm1, %v12719_v30  ;;  %v12958_v30 = vld [vmem:[#allocation2 + $0x131] sm:$0xff]  ;;  %15310 = vst [vmem:[#allocation50_spill] sm:$0xff] %v12970_v52  ;;  %v15316_v63 = vld [vmem:[#allocation60_spill] sm:$0xff] }
 0x6ec   : > { %v5647_v7 = vadd.f32 %v15304_v29, %v5557_v5  ;;  %15309 = vst [vmem:[#allocation22_spill] sm:$0xff] %v12958_v30  ;;  %v15313_v29 = vld [vmem:[#allocation105_spill] sm:$0xff] }
 0x6ed   : > { %v12942_v46 = vpop.f32.mrf.mxu2  ;;  %15312 = vst [vmem:[#allocation88_spill] sm:$0xff] %v12979_v12 }
 0x6ee   : > { %v12945_v43 = vadd.f32 %v12713_v56, %v5647_v7 }
 0x6ef   : > { %v12947_v50 = vpop.f32.mrf.mxu1 }
 0x6f0   : > { %15305 = vst [vmem:[#allocation70_spill] sm:$0xff] %v12945_v43  ;;  %v15007_v45 = vmax.f32 %v12945_v43, 0.0  ;;  %v15326_v43 = vld [vmem:[#allocation113_spill] sm:$0xff] }
 0x6f2   : > { %9176 = vmatmul.msk.f32.vlgmr.msra.gmra.mxu1 %vm2459_vm1, %v12952_v38  ;;  %9215 = vmatmul.msk.f32.gmra.mxu2 %vm2459_vm1, %v15308_v22  ;;  %7545 = vst.msk [vmem:[#allocation2 + $0x220] sm:$0xff] %vm2459_vm1, %v15007_v45  ;;  %v15314_v22 = vld [vmem:[#allocation59_spill] sm:$0xff]  ;;  %v15315_v45 = vld [vmem:[#allocation106_spill] sm:$0xff] }
 0x6f3   : > { %9264 = vmatmul.msk.f32.vlgmr.msrb.gmra.mxu3 %vm2459_vm1, %v12958_v30  ;;  %6308 = vmatpush.msra.mxu1 %v12970_v52  ;;  %v15356_v30 = vld [vmem:[#allocation72_spill] sm:$0xff]  ;;  %v15361_v52 = vld [vmem:[#allocation79_spill] sm:$0xff] }
 0x6f4   : > { %6929 = vmatpush.msrb.mxu3 %v15311_v39  ;;  %v12988_v39 = vld [vmem:[#allocation2 + $0xb0] sm:$0xff] }
 0x6f5   : > { %v12974_v5 = vpop.f32.mrf.mxu2  ;;  %6309 = vmatpush.msra.mxu1 %v12979_v12  ;;  %15317 = vst [vmem:[#allocation66_spill] sm:$0xff] %v12988_v39 }
 0x6f6   : > { %6930 = vmatpush.msrb.mxu3 %v15313_v29  ;;  %v15319_v29 = vld [vmem:[#allocation108_spill] sm:$0xff] }
 0x6f7   : > { %v12983_v7 = vpop.f32.mrf.mxu1  ;;  %6310 = vmatpush.msra.mxu1 %v15314_v22  ;;  %v15320_v22 = vld [vmem:[#allocation62_spill] sm:$0xff] }
 0x6f8   : > { %6931 = vmatpush.msrb.mxu3 %v15315_v45  ;;  %v15321_v45 = vld [vmem:[#allocation109_spill] sm:$0xff] }
 0x6f9   : > { %6311 = vmatpush.msra.mxu1 %v15316_v63  ;;  %v13001_v63 = vpop.f32.mrf.mxu3 }
 0x6fa   : > { %9177 = vmatmul.msk.f32.gmra.mxu1 %vm2459_vm1, %v12988_v39  ;;  %9232 = vmatmul.msk.f32.vlgmr.msrb.gmra.mxu2 %vm2459_vm1, %v12952_v38  ;;  %15322 = vst [vmem:[#allocation25_spill] sm:$0xff] %v13001_v63  ;;  %v15347_v38 = vld [vmem:[#allocation78_spill] sm:$0xff]  ;;  %v15362_v63 = vld [vmem:[#allocation141_spill] sm:$0xff] }
 0x6fb   : > { %9265 = vmatmul.msk.f32.gmra.mxu3 %vm2459_vm1, %v12994_v21  ;;  %6741 = vmatpush.msrb.mxu2 %v15319_v29  ;;  %v15328_v29 = vld [vmem:[#allocation114_spill] sm:$0xff] }
 0x6fc   : > { %6312 = vmatpush.msra.mxu1 %v15320_v22  ;;  %6932 = vmatpush.msrb.mxu3 %v15321_v45  ;;  %v15329_v22 = vld [vmem:[#allocation115_spill] sm:$0xff] }
 0x6fd   : > { %v13003_v53 = vpop.f32.mrf.mxu2  ;;  %6742 = vmatpush.msrb.mxu2 %v15323_v15  ;;  %v13014_v45 = vld [vmem:[#allocation2 + $0xc0] sm:$0xff]  ;;  %v15333_v15 = vld [vmem:[#allocation69_spill] sm:$0xff] }
 0x6fe   : > { %6313 = vmatpush.msra.mxu1 %v15324_v23  ;;  %6933 = vmatpush.msrb.mxu3 %v15325_v1  ;;  %15330 = vst [vmem:[#allocation163_spill] sm:$0xff] %v13014_v45  ;;  %v13020_v23 = vld [vmem:[#allocation2 + $0x151] sm:$0xff] }
 0x6ff   : > { %v13008_v36 = vpop.f32.mrf.mxu1  ;;  %6743 = vmatpush.msrb.mxu2 %v15326_v43  ;;  %15331 = vst [vmem:[#allocation51_spill] sm:$0xff] %v13020_v23  ;;  %v15332_v1 = vld [vmem:[#allocation117_spill] sm:$0xff] }
 0x700   : > { %6314 = vmatpush.msra.mxu1 %v15327_v60  ;;  %6934 = vmatpush.msrb.mxu3 %v15328_v29  ;;  %v15334_v60 = vld [vmem:[#allocation118_spill] sm:$0xff]  ;;  %v15335_v29 = vld [vmem:[#allocation119_spill] sm:$0xff] }
 0x701   : > { %6744 = vmatpush.msrb.mxu2 %v15329_v22  ;;  %v15336_v22 = vld [vmem:[#allocation121_spill] sm:$0xff]  ;;  %v13031_v57 = vpop.f32.mrf.mxu3 }
 0x702   : > { %9178 = vmatmul.msk.f32.gmra.mxu1 %vm2459_vm1, %v13014_v45  ;;  %9233 = vmatmul.msk.f32.gmra.mxu2 %vm2459_vm1, %v12988_v39  ;;  %15337 = vst [vmem:[#allocation94_spill] sm:$0xff] %v13031_v57 }
 0x703   : > { %9266 = vmatmul.msk.f32.gmra.mxu3 %vm2459_vm1, %v13020_v23  ;;  %6745 = vmatpush.msrb.mxu2 %v15332_v1  ;;  %v13043_v1 = vld [vmem:[#allocation2 + $0x161] sm:$0xff] }
 0x704   : > { %6315 = vmatpush.msra.mxu1 %v15333_v15  ;;  %6935 = vmatpush.msrb.mxu3 %v15334_v60  ;;  %15341 = vst [vmem:[#allocation68_spill] sm:$0xff] %v13043_v1  ;;  %v13045_v15 = vld [vmem:[#allocation2 + $0x1a1] sm:$0xff]  ;;  %v15343_v60 = vmov 0.0  }
 0x705   : > { %v13027_v43 = vpop.f32.mrf.mxu2  ;;  %6746 = vmatpush.msrb.mxu2 %v15335_v29  ;;  %15342 = vst [vmem:[#allocation133_spill] sm:$0xff] %v13045_v15  ;;  %v15353_v23 = vld [vmem:[#allocation84_spill] sm:$0xff] }
 0x706   : > { %6936 = vmatpush.msrb.mxu3 %v15336_v22  ;;  %7509 = vst.msk [vmem:[#allocation2 + $0x1a8] sm:$0x1] %vm4253_vm2, %v15343_v60  ;;  %v15345_v22 = vld [vmem:[#allocation73_spill] sm:$0xff]  ;;  %v15359_v60 = vld [vmem:[#allocation76_spill] sm:$0xff] }
 0x707   : > { %v13033_v4 = vpop.f32.mrf.mxu1  ;;  %6747 = vmatpush.msrb.mxu2 %v15338_v32 }
 0x709   : > { %6748 = vmatpush.msrb.mxu2 %v15339_v3  ;;  %v13055_v29 = vpop.f32.mrf.mxu3 }
 0x70a   : > { %9179 = vmatmul.msk.f32.gmra.mxu1 %vm2459_vm1, %v13037_v58  ;;  %9234 = vmatmul.msk.f32.gmra.mxu2 %vm2459_vm1, %v13014_v45  ;;  %15344 = vst [vmem:[#allocation80_spill] sm:$0xff] %v13055_v29  ;;  %v13061_v45 = vld [vmem:[#allocation2 + $0x171] sm:$0xff]  ;;  %v13073_v29 = vld [vmem:[#allocation2 + $0x181] sm:$0xff] }
 0x70b   : > { %9267 = vmatmul.msk.f32.gmra.mxu3 %vm2459_vm1, %v13043_v1  ;;  %15346 = vst [vmem:[#allocation101_spill] sm:$0xff] %v13061_v45  ;;  %v13087_v1 = vld [vmem:[#allocation2 + $0x191] sm:$0xff] }
 0x70c   : > { %15348 = vst [vmem:[#allocation131_spill] sm:$0xff] %v13073_v29 }
 0x70d   : > { %v13051_v32 = vpop.f32.mrf.mxu2  ;;  %15351 = vst [vmem:[#allocation53_spill] sm:$0xff] %v13087_v1 }
 0x70f   : > { %v13053_v3 = vpop.f32.mrf.mxu1 }
 0x711   : > { %v13075_v11 = vpop.f32.mrf.mxu3 }
 0x712   : > { %9180 = vmatmul.msk.f32.gmra.mxu1 %vm2459_vm1, %v15345_v22  ;;  %9235 = vmatmul.msk.f32.gmra.mxu2 %vm2459_vm1, %v13037_v58  ;;  %15349 = vst [vmem:[#allocation28_spill] sm:$0xff] %v13075_v11 }
 0x713   : > { %9268 = vmatmul.msk.f32.gmra.mxu3 %vm2459_vm1, %v13061_v45  ;;  %v15350_v45 = vld [vmem:[#allocation81_spill] sm:$0xff] }
 0x715   : > { %v13065_v8 = vpop.f32.mrf.mxu2 }
 0x717   : > { %v13067_v39 = vpop.f32.mrf.mxu1 }
 0x71a   : > { %9181 = vmatmul.msk.f32.gmra.mxu1 %vm2459_vm1, %v15347_v38  ;;  %9236 = vmatmul.msk.f32.gmra.mxu2 %vm2459_vm1, %v15345_v22  ;;  %v13091_v22 = vpop.f32.mrf.mxu3 }
 0x71b   : > { %9269 = vmatmul.msk.f32.gmra.mxu3 %vm2459_vm1, %v13073_v29  ;;  %15352 = vst [vmem:[#allocation52_spill] sm:$0xff] %v13091_v22  ;;  %v15355_v22 = vld [vmem:[#allocation3_spill] sm:$0xff] }
 0x71d   : > { %v13079_v58 = vpop.f32.mrf.mxu2 }
 0x71f   : > { %v13081_v57 = vpop.f32.mrf.mxu1 }
 0x722   : > { %9182 = vmatmul.msk.f32.gmra.mxu1 %vm2459_vm1, %v15350_v45  ;;  %9237 = vmatmul.msk.f32.gmra.mxu2 %vm2459_vm1, %v15347_v38  ;;  %v13105_v21 = vpop.f32.mrf.mxu3 }
 0x723   : > { %9270 = vmatmul.msk.f32.gmra.mxu3 %vm2459_vm1, %v13087_v1  ;;  %15354 = vst [vmem:[#allocation97_spill] sm:$0xff] %v13105_v21  ;;  %v15360_v21 = vld [vmem:[#allocation140_spill] sm:$0xff] }
 0x725   : > { %v13093_v11 = vpop.f32.mrf.mxu2 }
 0x727   : > { %v13095_v29 = vpop.f32.mrf.mxu1 }
 0x72a   : > { %9183 = vmatmul.msk.f32.gmra.mxu1 %vm2459_vm1, %v15353_v23  ;;  %9238 = vmatmul.msk.f32.gmra.mxu2 %vm2459_vm1, %v15350_v45  ;;  %v15357_v45 = vld [vmem:[#allocation137_spill] sm:$0xff] }
 0x72b   : > { %9271 = vmatmul.msk.f32.gmra.mxu3 %vm2459_vm1, %v13045_v15 }
 0x72d   : > { %v13103_v38 = vpop.f32.mrf.mxu2 }
 0x72f   : > { %v13107_v1 = vpop.f32.mrf.mxu1 }
 0x732   : > { %9200 = vmatmul.msk.f32.vlgmr.msrb.gmra.mxu1 %vm2459_vm1, %v12715_v51  ;;  %9239 = vmatmul.msk.f32.gmra.mxu2 %vm2459_vm1, %v15353_v23  ;;  %v13125_v23 = vpop.f32.mrf.mxu3 }
 0x733   : > { %9288 = vmatmul.msk.f32.vlgmr.msra.gmra.mxu3 %vm2459_vm1, %v15355_v22  ;;  %6488 = vmatpush.msrb.mxu1 %v15356_v30  ;;  %15363 = vst [vmem:[#allocation104_spill] sm:$0xff] %v13125_v23  ;;  %v15365_v30 = vld [vmem:[#allocation4_spill] sm:$0xff]  ;;  %v15370_v22 = vld [vmem:[#allocation145_spill] sm:$0xff] }
 0x734   : > { %7108 = vmatpush.msra.mxu3 %v15357_v45  ;;  %v15372_v45 = vld [vmem:[#allocation147_spill] sm:$0xff] }
 0x735   : > { %v13117_v15 = vpop.f32.mrf.mxu2  ;;  %6489 = vmatpush.msrb.mxu1 %v15359_v60  ;;  %v15367_v60 = vld [vmem:[#allocation85_spill] sm:$0xff] }
 0x736   : > { %15358 = vst [vmem:[#allocation71_spill] sm:$0xff] %v13117_v15  ;;  %7109 = vmatpush.msra.mxu3 %v15360_v21  ;;  %v15366_v21 = vld [vmem:[#allocation142_spill] sm:$0xff]  ;;  %v15374_v15 = vld [vmem:[#allocation89_spill] sm:$0xff] }
 0x737   : > { %v13121_v12 = vpop.f32.mrf.mxu1  ;;  %6490 = vmatpush.msrb.mxu1 %v15361_v52  ;;  %v15368_v52 = vld [vmem:[#allocation143_spill] sm:$0xff] }
 0x738   : > { %7110 = vmatpush.msra.mxu3 %v15362_v63 }
 0x739   : > { %6491 = vmatpush.msrb.mxu1 %v15364_v49  ;;  %v15371_v49 = vld [vmem:[#allocation87_spill] sm:$0xff] }
 0x73a   : > { %9201 = vmatmul.msk.f32.gmra.mxu1 %vm2459_vm1, %v12751_v20  ;;  %9256 = vmatmul.msk.f32.vlgmr.msra.gmra.mxu2 %vm2459_vm1, %v12783_v34  ;;  %v15373_v34 = vld [vmem:[#allocation148_spill] sm:$0xff] }
 0x73b   : > { %9289 = vmatmul.msk.f32.gmra.mxu3 %vm2459_vm1, %v15365_v30  ;;  %6880 = vmatpush.msra.mxu2 %v15366_v21  ;;  %v15375_v30 = vld [vmem:[#allocation149_spill] sm:$0xff]  ;;  %v15376_v21 = vld [vmem:[#allocation150_spill] sm:$0xff] }
 0x73c   : > { %6492 = vmatpush.msrb.mxu1 %v15367_v60  ;;  %7111 = vmatpush.msra.mxu3 %v15368_v52  ;;  %v13152_v60 = vpop.f32.mrf.mxu3  ;;  %v15378_v52 = vld [vmem:[#allocation6_spill] sm:$0xff] }
 0x73d   : > { %v13137_v63 = vpop.f32.mrf.mxu2  ;;  %6881 = vmatpush.msra.mxu2 %v15370_v22  ;;  %15377 = vst [vmem:[#allocation30_spill] sm:$0xff] %v13152_v60  ;;  %v15379_v22 = vld [vmem:[#allocation151_spill] sm:$0xff]  ;;  %v15386_v60 = vld [vmem:[#allocation158_spill] sm:$0xff] }
 0x73e   : > { %15369 = vst [vmem:[#allocation135_spill] sm:$0xff] %v13137_v63  ;;  %6493 = vmatpush.msrb.mxu1 %v15371_v49  ;;  %7112 = vmatpush.msra.mxu3 %v15372_v45  ;;  %v15383_v45 = vld [vmem:[#allocation154_spill] sm:$0xff] }
 0x73f   : > { %v13142_v23 = vpop.f32.mrf.mxu1  ;;  %6882 = vmatpush.msra.mxu2 %v15373_v34  ;;  %v15380_v34 = vld [vmem:[#allocation93_spill] sm:$0xff] }
 0x740   : > { %6494 = vmatpush.msrb.mxu1 %v15374_v15  ;;  %7113 = vmatpush.msra.mxu3 %v15375_v30  ;;  %v15381_v15 = vld [vmem:[#allocation152_spill] sm:$0xff] }
 0x741   : > { %6883 = vmatpush.msra.mxu2 %v15376_v21  ;;  %v15384_v30 = vld [vmem:[#allocation156_spill] sm:$0xff] }
 0x742   : > { %9202 = vmatmul.msk.f32.gmra.mxu1 %vm2459_vm1, %v12787_v40  ;;  %9257 = vmatmul.msk.f32.gmra.mxu2 %vm2459_vm1, %v12817_v37  ;;  %v15385_v37 = vld [vmem:[#allocation157_spill] sm:$0xff] }
 0x743   : > { %9290 = vmatmul.msk.f32.gmra.mxu3 %vm2459_vm1, %v15378_v52  ;;  %6884 = vmatpush.msra.mxu2 %v15379_v22  ;;  %v15387_v52 = vld [vmem:[#allocation8_spill] sm:$0xff] }
 0x744   : > { %6495 = vmatpush.msrb.mxu1 %v15380_v34  ;;  %7114 = vmatpush.msra.mxu3 %v15381_v15  ;;  %v13173_v22 = vpop.f32.mrf.mxu3 }
 0x745   : > { %v13159_v49 = vpop.f32.mrf.mxu2  ;;  %6885 = vmatpush.msra.mxu2 %v15383_v45  ;;  %15388 = vst [vmem:[#allocation99_spill] sm:$0xff] %v13173_v22 }
 0x746   : > { %15382 = vst [vmem:[#allocation56_spill] sm:$0xff] %v13159_v49  ;;  %7115 = vmatpush.msra.mxu3 %v15384_v30 }
 0x747   : > { %v13163_v21 = vpop.f32.mrf.mxu1  ;;  %6886 = vmatpush.msra.mxu2 %v15385_v37  ;;  %v15390_v37 = vld [vmem:[#allocation10_spill] sm:$0xff] }
 0x749   : > { %6887 = vmatpush.msra.mxu2 %v15386_v60 }
 0x74a   : > { %9203 = vmatmul.msk.f32.gmra.mxu1 %vm2459_vm1, %v12821_v31  ;;  %9258 = vmatmul.msk.f32.gmra.mxu2 %vm2459_vm1, %v12846_v33 }
 0x74b   : > { %9291 = vmatmul.msk.f32.gmra.mxu3 %vm2459_vm1, %v15387_v52  ;;  %v15393_v52 = vld [vmem:[#allocation12_spill] sm:$0xff] }
 0x74c   : > { %v13187_v45 = vpop.f32.mrf.mxu3 }
 0x74d   : > { %v13175_v34 = vpop.f32.mrf.mxu2  ;;  %15392 = vst [vmem:[#allocation33_spill] sm:$0xff] %v13187_v45 }
 0x74e   : > { %15389 = vst [vmem:[#allocation75_spill] sm:$0xff] %v13175_v34  ;;  %v15397_v34 = vld [vmem:[#allocation15_spill] sm:$0xff] }
 0x74f   : > { %v13177_v15 = vpop.f32.mrf.mxu1 }
 0x752   : > { %9204 = vmatmul.msk.f32.gmra.mxu1 %vm2459_vm1, %v12850_v13  ;;  %9259 = vmatmul.msk.f32.gmra.mxu2 %vm2459_vm1, %v12875_v62 }
 0x753   : > { %9292 = vmatmul.msk.f32.gmra.mxu3 %vm2459_vm1, %v15390_v37  ;;  %v15395_v37 = vld [vmem:[#allocation144_spill] sm:$0xff] }
 0x754   : > { %v5707_v22 = vadd.f32 %v15395_v37, %v12947_v50  ;;  %v15400_v50 = vld [vmem:[#allocation153_spill] sm:$0xff] }
 0x755   : > { %v13185_v60 = vpop.f32.mrf.mxu2  ;;  %v5710_v37 = vadd.f32 %v15400_v50, %v12983_v7  ;;  %v15404_v7 = vld [vmem:[#allocation139_spill] sm:$0xff] }
 0x756   : > { %15391 = vst [vmem:[#allocation138_spill] sm:$0xff] %v13185_v60  ;;  %v13203_v60 = vpop.f32.mrf.mxu3 }
 0x757   : > { %v13189_v30 = vpop.f32.mrf.mxu1  ;;  %15396 = vst [vmem:[#allocation36_spill] sm:$0xff] %v13203_v60 }
 0x75a   : > { %9205 = vmatmul.msk.f32.gmra.mxu1 %vm2459_vm1, %v12879_v19  ;;  %9260 = vmatmul.msk.f32.gmra.mxu2 %vm2459_vm1, %v12902_v41  ;;  %v15398_v41 = vld [vmem:[#allocation102_spill] sm:$0xff] }
 0x75b   : > { %9293 = vmatmul.msk.f32.gmra.mxu3 %vm2459_vm1, %v15393_v52  ;;  %v5803_v52 = vadd.f32 %v15398_v41, %v5707_v22  ;;  %v15402_v41 = vld [vmem:[#allocation18_spill] sm:$0xff]  ;;  %v15403_v22 = vld [vmem:[#allocation111_spill] sm:$0xff] }
 0x75d   : > { %v13197_v33 = vpop.f32.mrf.mxu2 }
 0x75e   : > { %15394 = vst [vmem:[#allocation100_spill] sm:$0xff] %v13197_v33  ;;  %v5852_v33 = vadd.f32 %v13107_v1, %v5803_v52  ;;  %v5804_v1 = vadd.f32 %v15403_v22, %v5710_v37 }
 0x75f   : > { %v13199_v62 = vpop.f32.mrf.mxu1 }
 0x760   : > { %v5901_v60 = vadd.f32 %v12764_v17, %v5852_v33  ;;  %v13233_v33 = vld [vmem:[#allocation2 + $0x230] sm:$0xff] }
 0x761   : > { %15405 = vst [vmem:[#allocation59_spill] sm:$0xff] %v13233_v33 }
 0x762   : > { %9206 = vmatmul.msk.f32.gmra.mxu1 %vm2459_vm1, %v12906_v28  ;;  %9261 = vmatmul.msk.f32.gmra.mxu2 %vm2459_vm1, %v12927_v27  ;;  %v5853_v27 = vadd.f32 %v13121_v12, %v5804_v1  ;;  %v5982_v50 = vadd.f32 %v15404_v7, %v5901_v60  ;;  %v15408_v12 = vld [vmem:[#allocation41_spill] sm:$0xff]  ;;  %v15409_v60 = vld [vmem:[#allocation120_spill] sm:$0xff] }
 0x763   : > { %9294 = vmatmul.msk.f32.gmra.mxu3 %vm2459_vm1, %v15397_v34  ;;  %v13224_v34 = vpop.f32.mrf.mxu3  ;;  %v15412_v7 = vld [vmem:[#allocation32_spill] sm:$0xff] }
 0x764   : > { %15401 = vst [vmem:[#allocation105_spill] sm:$0xff] %v13224_v34  ;;  %v5902_v34 = vadd.f32 %v12803_v18, %v5853_v27 }
 0x765   : > { %v13212_v45 = vpop.f32.mrf.mxu2 }
 0x766   : > { %15399 = vst [vmem:[#allocation103_spill] sm:$0xff] %v13212_v45  ;;  %v15406_v45 = vld [vmem:[#allocation159_spill] sm:$0xff] }
 0x767   : > { %v13215_v49 = vpop.f32.mrf.mxu1  ;;  %v5713_v63 = vadd.f32 %v15406_v45, %v13008_v36 }
 0x769   : > { %v5805_v37 = vadd.f32 %v15409_v60, %v5713_v63 }
 0x76a   : > { %9207 = vmatmul.msk.f32.gmra.mxu1 %vm2459_vm1, %v12930_v2  ;;  %9262 = vmatmul.msk.f32.gmra.mxu2 %vm2459_vm1, %v12950_v10 }
 0x76b   : > { %9295 = vmatmul.msk.f32.gmra.mxu3 %vm2459_vm1, %v15402_v41  ;;  %v15407_v41 = vld [vmem:[#allocation14_spill] sm:$0xff]  ;;  %v13248_v45 = vpop.f32.mrf.mxu3 }
 0x76d   : > { %v13229_v52 = vpop.f32.mrf.mxu2 }
 0x76f   : > { %v6007_v17 = vpop.f32.mrf.mxu1 }
 0x770   : > { %v6031_v10 = vadd.f32 %v6007_v17, %v5982_v50  ;;  %v9675_v50 = vld [vmem:[%s14893_s3 + $0x1f0] sm:$0xff] }
 0x772   : > { %v6080_v2 = vadd.f32 %v13003_v53, %v6031_v10  ;;  %9224 = vmatmul.msk.f32.vlgmr.msra.gmra.mxu1 %vm2459_vm1, %v15407_v41  ;;  %9263 = vmatmul.msk.f32.gmra.mxu2 %vm2459_vm1, %v13233_v33  ;;  %v5854_v53 = vadd.f32 %v13142_v23, %v5805_v37  ;;  %v15410_v10 = vld [vmem:[#allocation146_spill] sm:$0xff] }
 0x773   : > { %9312 = vmatmul.msk.f32.vlgmr.msrb.gmra.mxu3 %vm2459_vm1, %v15408_v12  ;;  %6700 = vmatpush.msra.mxu1 %v12178_v59  ;;  %v5983_v22 = vadd.f32 %v15410_v10, %v5902_v34  ;;  %v15411_v59 = vld [vmem:[#allocation161_spill] sm:$0xff]  ;;  %v15415_v12 = vld [vmem:[#allocation155_spill] sm:$0xff]  ;;  %v13295_v37 = vpop.f32.mrf.mxu3 }
 0x774   : > { %v6161_v36 = vadd.f32 %v12738_v25, %v6080_v2  ;;  %v5716_v63 = vadd.f32 %v15411_v59, %v13033_v4 }
 0x775   : > { %v13250_v18 = vpop.f32.mrf.mxu2  ;;  %6701 = vmatpush.msra.mxu1 %v12192_v55  ;;  %v5903_v55 = vadd.f32 %v12836_v24, %v5854_v53  ;;  %v15414_v24 = vld [vmem:[#allocation125_spill] sm:$0xff]  ;;  %v9677_v53 = vld [vmem:[%s14893_s3 + $0x1e8] sm:$0xff] }
 0x776   : > { %v13255_v27 = vadd.f32 %v12713_v56, %v6161_v36  ;;  %v5806_v4 = vadd.f32 %v15414_v24, %v5716_v63  ;;  %v9679_v63 = vld [vmem:[%s14893_s3 + $0x1e0] sm:$0xff]  ;;  %v9682_v24 = vld [vmem:[%s14893_s3 + $0x1d0] sm:$0xff] }
 0x777   : > { %v6010_v1 = vpop.f32.mrf.mxu1  ;;  %6702 = vmatpush.msra.mxu1 %v12204_v16  ;;  %v15413_v16 = vld [vmem:[#allocation45_spill] sm:$0xff]  ;;  %v5984_v60 = vadd.f32 %v15415_v12, %v5903_v55  ;;  %v15421_v12 = vld [vmem:[#allocation42_spill] sm:$0xff] }
 0x778   : > { %v6032_v25 = vadd.f32 %v6010_v1, %v5983_v22  ;;  %v15053_v2 = vmax.f32 %v13255_v27, 0.0  ;;  %v5855_v17 = vadd.f32 %v13163_v21, %v5806_v4  ;;  %v15416_v21 = vld [vmem:[#allocation164_spill] sm:$0xff] }
 0x779   : > { %6703 = vmatpush.msra.mxu1 %v12216_v6  ;;  %v9673_v6 = vld [vmem:[%s14893_s3 + $0x1f8] sm:$0xff]  ;;  %v5719_v10 = vadd.f32 %v15416_v21, %v13053_v3  ;;  %v9678_v1 = vld [vmem:[%s14893_s3 + $0x48] sm:$0xff]  ;;  %v15418_v3 = vld [vmem:[#allocation47_spill] sm:$0xff] }
 0x77a   : > { %v6081_v23 = vadd.f32 %v13027_v43, %v6032_v25  ;;  %9225 = vmatmul.msk.f32.gmra.mxu1 %vm2459_vm1, %v15412_v7  ;;  %9280 = vmatmul.msk.f32.vlgmr.msrb.gmra.mxu2 %vm2459_vm1, %v12715_v51  ;;  %7519 = vst.msk [vmem:[#allocation2 + $0x121] sm:$0xff] %vm2459_vm1, %v15053_v2  ;;  %v9674_v51 = vld [vmem:[%s14893_s3 + $0x58] sm:$0xff]  ;;  %v5904_v25 = vadd.f32 %v12865_v9, %v5855_v17  ;;  %v15419_v9 = vld [vmem:[#allocation127_spill] sm:$0xff]  ;;  %v9683_v17 = vld [vmem:[%s14893_s3 + $0x1c8] sm:$0xff] }
 0x77b   : > { %9313 = vmatmul.msk.f32.gmra.mxu3 %vm2459_vm1, %v15413_v16  ;;  %7027 = vmatpush.msrb.mxu2 %v9673_v6  ;;  %v9680_v7 = vld [vmem:[%s14893_s3 + $0x1d8] sm:$0xff] }
 0x77c   : > { %v6162_v43 = vadd.f32 %v12780_v35, %v6081_v23  ;;  %6704 = vmatpush.msra.mxu1 %v9674_v51  ;;  %v9676_v35 = vld [vmem:[%s14893_s3 + $0x50] sm:$0xff]  ;;  %v15417_v23 = vld [vmem:[#allocation35_spill] sm:$0xff]  ;;  %v15420_v51 = vld [vmem:[#allocation160_spill] sm:$0xff] }
 0x77d   : > { %v13282_v34 = vpop.f32.mrf.mxu2  ;;  %7028 = vmatpush.msrb.mxu2 %v9675_v50  ;;  %v5985_v50 = vadd.f32 %v15420_v51, %v5904_v25 }
 0x77e   : > { %v13289_v41 = vadd.f32 %v12713_v56, %v6162_v43  ;;  %6705 = vmatpush.msra.mxu1 %v9676_v35 }
 0x77f   : > { %v6013_v36 = vpop.f32.mrf.mxu1  ;;  %7029 = vmatpush.msrb.mxu2 %v9677_v53  ;;  %v13344_v53 = vpop.f32.mrf.mxu3 }
 0x780   : > { %v6033_v22 = vadd.f32 %v6013_v36, %v5984_v60  ;;  %6706 = vmatpush.msra.mxu1 %v9678_v1  ;;  %v15052_v59 = vmax.f32 %v13289_v41, 0.0  ;;  %v5722_v60 = vadd.f32 %v15421_v12, %v13067_v39  ;;  %v15423_v39 = vld [vmem:[#allocation54_spill] sm:$0xff]  ;;  %v15424_v1 = vld [vmem:[#allocation129_spill] sm:$0xff] }
 0x781   : > { %7030 = vmatpush.msrb.mxu2 %v9679_v63 }
 0x782   : > { %v6082_v55 = vadd.f32 %v13051_v32, %v6033_v22  ;;  %9226 = vmatmul.msk.f32.gmra.mxu1 %vm2459_vm1, %v15417_v23  ;;  %9281 = vmatmul.msk.f32.gmra.mxu2 %vm2459_vm1, %v12751_v20  ;;  %7520 = vst.msk [vmem:[#allocation2 + $0x131] sm:$0xff] %vm2459_vm1, %v15052_v59  ;;  %v5807_v32 = vadd.f32 %v15419_v9, %v5719_v10  ;;  %v9681_v20 = vld [vmem:[%s14893_s3 + $0x40] sm:$0xff]  ;;  %v15425_v23 = vld [vmem:[#allocation162_spill] sm:$0xff]  ;;  %v15477_v59 = vld [vmem:[#allocation101_spill] sm:$0xff] }
 0x783   : > { %9314 = vmatmul.msk.f32.gmra.mxu3 %vm2459_vm1, %v15418_v3  ;;  %7031 = vmatpush.msrb.mxu2 %v9680_v7  ;;  %v15422_v22 = vld [vmem:[#allocation39_spill] sm:$0xff]  ;;  %v5808_v63 = vadd.f32 %v15424_v1, %v5722_v60  ;;  %v5725_v7 = vadd.f32 %v12700_v26, %v13081_v57  ;;  %v15427_v26 = vld [vmem:[#allocation74_spill] sm:$0xff]  ;;  %v15428_v57 = vld [vmem:[#allocation132_spill] sm:$0xff] }
 0x784   : > { %v6163_v16 = vadd.f32 %v12830_v47, %v6082_v55  ;;  %6707 = vmatpush.msra.mxu1 %v9681_v20  ;;  %v5856_v4 = vadd.f32 %v13177_v15, %v5807_v32  ;;  %v9684_v15 = vld [vmem:[%s14893_s3 + $0x1c0] sm:$0xff]  ;;  %v15426_v20 = vld [vmem:[#allocation38_spill] sm:$0xff] }
 0x785   : > { %v13328_v6 = vpop.f32.mrf.mxu2  ;;  %7032 = vmatpush.msrb.mxu2 %v9682_v24  ;;  %v5809_v24 = vadd.f32 %v15428_v57, %v5725_v7  ;;  %v15441_v57 = vld [vmem:[#allocation83_spill] sm:$0xff] }
 0x786   : > { %v13335_v43 = vadd.f32 %v12713_v56, %v6163_v16  ;;  %v5905_v21 = vadd.f32 %v12892_v14, %v5856_v4 }
 0x787   : > { %v6016_v47 = vpop.f32.mrf.mxu1  ;;  %7033 = vmatpush.msrb.mxu2 %v9683_v17  ;;  %v5858_v4 = vadd.f32 %v13199_v62, %v5809_v24  ;;  %v5728_v17 = vadd.f32 %v12729_v54, %v13095_v29  ;;  %v15432_v62 = vld [vmem:[#allocation21_spill] sm:$0xff]  ;;  %v15433_v54 = vld [vmem:[#allocation136_spill] sm:$0xff] }
 0x788   : > { %v6034_v35 = vadd.f32 %v6016_v47, %v5985_v50  ;;  %v15051_v36 = vmax.f32 %v13335_v43, 0.0  ;;  %v15443_v24 = vld [vmem:[#allocation25_spill] sm:$0xff] }
 0x789   : > { %7034 = vmatpush.msrb.mxu2 %v9684_v15  ;;  %v15431_v15 = vld [vmem:[#allocation40_spill] sm:$0xff]  ;;  %v5810_v29 = vadd.f32 %v15433_v54, %v5728_v17 }
 0x78a   : > { %v6083_v10 = vadd.f32 %v13065_v8, %v6034_v35  ;;  %9227 = vmatmul.msk.f32.gmra.mxu1 %vm2459_vm1, %v15422_v22  ;;  %9282 = vmatmul.msk.f32.gmra.mxu2 %vm2459_vm1, %v12787_v40  ;;  %7521 = vst.msk [vmem:[#allocation2 + $0x141] sm:$0xff] %vm2459_vm1, %v15051_v36  ;;  %v5857_v8 = vadd.f32 %v13189_v30, %v5808_v63  ;;  %v13381_v30 = vpop.f32.mrf.mxu3  ;;  %v9685_v54 = vld [vmem:[%s14893_s3 + $0xe8] sm:$0xff] }
 0x78b   : > { %9315 = vmatmul.msk.f32.gmra.mxu3 %vm2459_vm1, %v15423_v39  ;;  %v5986_v40 = vadd.f32 %v15425_v23, %v5905_v21  ;;  %v5907_v35 = vadd.f32 %v12942_v46, %v5858_v4 }
 0x78c   : > { %v6164_v25 = vadd.f32 %v12863_v0, %v6083_v10  ;;  %v5906_v16 = vadd.f32 %v12918_v48, %v5857_v8  ;;  %v5859_v10 = vadd.f32 %v13215_v49, %v5810_v29  ;;  %v15437_v49 = vld [vmem:[#allocation24_spill] sm:$0xff]  ;;  %v9686_v29 = vld [vmem:[%s14893_s3 + $0xe0] sm:$0xff] }
 0x78d   : > { %v13362_v14 = vpop.f32.mrf.mxu2 }
 0x78e   : > { %v13366_v55 = vadd.f32 %v12713_v56, %v6164_v25  ;;  %v5908_v8 = vadd.f32 %v12974_v5, %v5859_v10  ;;  %v9687_v10 = vld [vmem:[#allocation2 + $0x11] sm:$0xff] }
 0x78f   : > { %v6019_v3 = vpop.f32.mrf.mxu1 }
 0x790   : > { %v6035_v9 = vadd.f32 %v6019_v3, %v5986_v40  ;;  %v15050_v32 = vmax.f32 %v13366_v55, 0.0 }
 0x792   : > { %v6084_v0 = vadd.f32 %v13079_v58, %v6035_v9  ;;  %9228 = vmatmul.msk.f32.gmra.mxu1 %vm2459_vm1, %v15426_v20  ;;  %9283 = vmatmul.msk.f32.gmra.mxu2 %vm2459_vm1, %v12821_v31  ;;  %7522 = vst.msk [vmem:[#allocation2 + $0x151] sm:$0xff] %vm2459_vm1, %v15050_v32  ;;  %v15430_v31 = vld [vmem:[#allocation165_spill] sm:$0xff]  ;;  %v13410_v46 = vpop.f32.mrf.mxu3  ;;  %v15440_v20 = vld [vmem:[#allocation71_spill] sm:$0xff]  ;;  %v15473_v32 = vld [vmem:[#allocation128_spill] sm:$0xff] }
 0x793   : > { %9316 = vmatmul.msk.f32.gmra.mxu3 %vm2459_vm1, %v15427_v26  ;;  %v5987_v50 = vadd.f32 %v15430_v31, %v5906_v16 }
 0x794   : > { %v6165_v48 = vadd.f32 %v12899_v44, %v6084_v0 }
 0x795   : > { %v13387_v58 = vpop.f32.mrf.mxu2 }
 0x796   : > { %v13391_v51 = vadd.f32 %v12713_v56, %v6165_v48 }
 0x797   : > { %v6022_v47 = vpop.f32.mrf.mxu1 }
 0x798   : > { %15429 = vst [vmem:[#allocation106_spill] sm:$0xff] %v13391_v51  ;;  %v6036_v12 = vadd.f32 %v6022_v47, %v5987_v50  ;;  %v15049_v60 = vmax.f32 %v13391_v51, 0.0 }
 0x79a   : > { %v6085_v44 = vadd.f32 %v13093_v11, %v6036_v12  ;;  %9229 = vmatmul.msk.f32.gmra.mxu1 %vm2459_vm1, %v15431_v15  ;;  %9284 = vmatmul.msk.f32.gmra.mxu2 %vm2459_vm1, %v12850_v13  ;;  %7523 = vst.msk [vmem:[#allocation2 + $0x161] sm:$0xff] %vm2459_vm1, %v15049_v60  ;;  %v15435_v13 = vld [vmem:[#allocation167_spill] sm:$0xff]  ;;  %v13438_v9 = vpop.f32.mrf.mxu3  ;;  %v15449_v15 = vld [vmem:[#allocation88_spill] sm:$0xff] }
 0x79b   : > { %9317 = vmatmul.msk.f32.gmra.mxu3 %vm2459_vm1, %v15432_v62  ;;  %v5988_v39 = vadd.f32 %v15435_v13, %v5907_v35  ;;  %v15446_v12 = vld [vmem:[#allocation95_spill] sm:$0xff]  ;;  %v15447_v35 = vld [vmem:[#allocation5_spill] sm:$0xff] }
 0x79c   : > { %v6166_v21 = vadd.f32 %v12925_v42, %v6085_v44  ;;  %v15436_v42 = vld [vmem:[#allocation44_spill] sm:$0xff]  ;;  %v15471_v60 = vld [vmem:[#allocation51_spill] sm:$0xff] }
 0x79d   : > { %v13412_v11 = vpop.f32.mrf.mxu2 }
 0x79e   : > { %v13416_v22 = vadd.f32 %v12713_v56, %v6166_v21  ;;  %v15450_v21 = vld [vmem:[#allocation23_spill] sm:$0xff] }
 0x79f   : > { %v6025_v1 = vpop.f32.mrf.mxu1 }
 0x7a0   : > { %15434 = vst [vmem:[#allocation60_spill] sm:$0xff] %v13416_v22  ;;  %v6037_v63 = vadd.f32 %v6025_v1, %v5988_v39  ;;  %v15048_v25 = vmax.f32 %v13416_v22, 0.0  ;;  %v15451_v39 = vld [vmem:[#allocation7_spill] sm:$0xff]  ;;  %v9688_v1 = vld [vmem:[%s14893_s3 + $0xd8] sm:$0xff]  ;;  %v15485_v22 = vld [vmem:[#allocation17_spill] sm:$0xff] }
 0x7a2   : > { %v6086_v23 = vadd.f32 %v13103_v38, %v6037_v63  ;;  %9230 = vmatmul.msk.f32.gmra.mxu1 %vm2459_vm1, %v15436_v42  ;;  %9285 = vmatmul.msk.f32.gmra.mxu2 %vm2459_vm1, %v12879_v19  ;;  %7524 = vst.msk [vmem:[#allocation2 + $0x171] sm:$0xff] %vm2459_vm1, %v15048_v25  ;;  %v15439_v38 = vld [vmem:[#allocation43_spill] sm:$0xff]  ;;  %v13460_v17 = vpop.f32.mrf.mxu3  ;;  %v9690_v42 = vld [vmem:[%s14893_s3 + $0xc8] sm:$0xff] }
 0x7a3   : > { %9318 = vmatmul.msk.f32.gmra.mxu3 %vm2459_vm1, %v15437_v49  ;;  %v5989_v7 = vadd.f32 %v15439_v38, %v5908_v8  ;;  %v9689_v8 = vld [vmem:[%s14893_s3 + $0xd0] sm:$0xff]  ;;  %v9691_v49 = vld [vmem:[%s14893_s3 + $0xc0] sm:$0xff] }
 0x7a4   : > { %v6167_v40 = vadd.f32 %v12963_v61, %v6086_v23  ;;  %v15442_v61 = vld [vmem:[#allocation27_spill] sm:$0xff] }
 0x7a5   : > { %v13432_v3 = vpop.f32.mrf.mxu2  ;;  %v9692_v38 = vld [vmem:[#allocation2 + $0x21] sm:$0xff] }
 0x7a6   : > { %v13435_v5 = vadd.f32 %v12713_v56, %v6167_v40  ;;  %v15452_v40 = vld [vmem:[#allocation26_spill] sm:$0xff] }
 0x7a7   : > { %v6028_v16 = vpop.f32.mrf.mxu1 }
 0x7a8   : > { %15438 = vst [vmem:[#allocation108_spill] sm:$0xff] %v13435_v5  ;;  %v6038_v19 = vadd.f32 %v6028_v16, %v5989_v7  ;;  %v15047_v0 = vmax.f32 %v13435_v5, 0.0  ;;  %v15453_v7 = vld [vmem:[#allocation9_spill] sm:$0xff]  ;;  %v15484_v5 = vld [vmem:[#allocation56_spill] sm:$0xff] }
 0x7aa   : > { %v6087_v26 = vadd.f32 %v15440_v20, %v6038_v19  ;;  %9231 = vmatmul.msk.f32.gmra.mxu1 %vm2459_vm1, %v15441_v57  ;;  %9286 = vmatmul.msk.f32.gmra.mxu2 %vm2459_vm1, %v12906_v28  ;;  %7525 = vst.msk [vmem:[#allocation2 + $0x181] sm:$0xff] %vm2459_vm1, %v15047_v0  ;;  %v15445_v28 = vld [vmem:[#allocation20_spill] sm:$0xff]  ;;  %v13486_v13 = vpop.f32.mrf.mxu3  ;;  %v15454_v57 = vmov 0.0  }
 0x7ab   : > { %9319 = vmatmul.msk.f32.gmra.mxu3 %vm2459_vm1, %v15442_v61  ;;  %v15455_v61 = vld [vmem:[#allocation29_spill] sm:$0xff] }
 0x7ac   : > { %v6168_v48 = vadd.f32 %v15443_v24, %v6087_v26  ;;  %v6455_v26 = vld [vmem:[#allocation2 + $0x1a0] sm:$0xff]  ;;  %v9693_v24 = vld [vmem:[#allocation2 + $0x31] sm:$0xff] }
 0x7ad   : > { %v13452_v4 = vpop.f32.mrf.mxu2  ;;  %7508 = vst.msk [vmem:[#allocation2 + $0x1a0] sm:$0xff] %vm2459_vm1, %v15454_v57 }
 0x7ae   : > { %v13455_v31 = vadd.f32 %v12713_v56, %v6168_v48  ;;  %v15448_v56 = vld [vmem:[#allocation50_spill] sm:$0xff]  ;;  %7518 = vst.msk [vmem:[#allocation2 + $0x1a0] sm:$0x1] %vm4253_vm2, %v15454_v57  ;;  %v15456_v48 = vld [vmem:[#allocation11_spill] sm:$0xff] }
 0x7af   : > { %v13457_v50 = vpop.f32.mrf.mxu1 }
 0x7b0   : > { %15444 = vst [vmem:[#allocation62_spill] sm:$0xff] %v13455_v31  ;;  %v15046_v47 = vmax.f32 %v13455_v31, 0.0 }
 0x7b2   : > { %9248 = vmatmul.msk.f32.vlgmr.msrb.gmra.mxu1 %vm2459_vm1, %v15445_v28  ;;  %9287 = vmatmul.msk.f32.gmra.mxu2 %vm2459_vm1, %v15446_v12  ;;  %7526 = vst.msk [vmem:[#allocation2 + $0x191] sm:$0xff] %vm2459_vm1, %v15046_v47  ;;  %v13511_v16 = vpop.f32.mrf.mxu3  ;;  %v15467_v47 = vld [vmem:[#allocation124_spill] sm:$0xff] }
 0x7b3   : > { %9336 = vmatmul.msk.f32.vlgmr.msra.gmra.mxu3 %vm2459_vm1, %v15447_v35  ;;  %6831 = vmatpush.msrb.mxu1 %v15448_v56  ;;  %v15457_v56 = vld [vmem:[#allocation31_spill] sm:$0xff] }
 0x7b5   : > { %v13472_v44 = vpop.f32.mrf.mxu2  ;;  %6832 = vmatpush.msrb.mxu1 %v15449_v15  ;;  %v9694_v15 = vld [vmem:[#allocation2 + $0x41] sm:$0xff] }
 0x7b7   : > { %v13475_v62 = vpop.f32.mrf.mxu1  ;;  %6833 = vmatpush.msrb.mxu1 %v9685_v54  ;;  %v15458_v54 = vld [vmem:[#allocation13_spill] sm:$0xff] }
 0x7b8   : > { %v6231_v33 = vadd.f32 %v15484_v5, %v13475_v62  ;;  %v15491_v62 = vld [vmem:[#allocation133_spill] sm:$0xff] }
 0x7b9   : > { %6834 = vmatpush.msrb.mxu1 %v9686_v29 }
 0x7ba   : > { %9249 = vmatmul.msk.f32.gmra.mxu1 %vm2459_vm1, %v15450_v21  ;;  %9304 = vmatmul.msk.f32.vlgmr.msra.gmra.mxu2 %vm2459_vm1, %v9687_v10  ;;  %v13528_v12 = vpop.f32.mrf.mxu3 }
 0x7bb   : > { %9337 = vmatmul.msk.f32.gmra.mxu3 %vm2459_vm1, %v15451_v39  ;;  %6835 = vmatpush.msrb.mxu1 %v9688_v1  ;;  %v15459_v39 = vld [vmem:[#allocation34_spill] sm:$0xff] }
 0x7bc   : > { %v9695_v1 = vld [vmem:[#allocation2 + $0x51] sm:$0xff] }
 0x7bd   : > { %v13493_v63 = vpop.f32.mrf.mxu2  ;;  %6836 = vmatpush.msrb.mxu1 %v9689_v8  ;;  %v7224_v8 = vld [vmem:[%s14897_s7 + $0x38] sm:$0xff] }
 0x7be   : > { %7333 = vmatpush.msra.mxu2 %v7224_v8 }
 0x7bf   : > { %v13498_v23 = vpop.f32.mrf.mxu1  ;;  %6837 = vmatpush.msrb.mxu1 %v9690_v42  ;;  %v15460_v42 = vld [vmem:[#allocation16_spill] sm:$0xff] }
 0x7c1   : > { %6838 = vmatpush.msrb.mxu1 %v9691_v49 }
 0x7c2   : > { %9250 = vmatmul.msk.f32.gmra.mxu1 %vm2459_vm1, %v15452_v40  ;;  %9305 = vmatmul.msk.f32.gmra.mxu2 %vm2459_vm1, %v9692_v38  ;;  %v13541_v10 = vpop.f32.mrf.mxu3  ;;  %v15461_v38 = vld [vmem:[#allocation37_spill] sm:$0xff] }
 0x7c3   : > { %9338 = vmatmul.msk.f32.gmra.mxu3 %vm2459_vm1, %v15453_v7  ;;  %v9696_v7 = vld [vmem:[#allocation2 + $0x61] sm:$0xff] }
 0x7c5   : > { %v13513_v19 = vpop.f32.mrf.mxu2 }
 0x7c7   : > { %v13515_v20 = vpop.f32.mrf.mxu1 }
 0x7ca   : > { %9251 = vmatmul.msk.f32.gmra.mxu1 %vm2459_vm1, %v15455_v61  ;;  %9306 = vmatmul.msk.f32.gmra.mxu2 %vm2459_vm1, %v9693_v24  ;;  %v7223_v61 = vld [vmem:[%s14897_s7 + $0x30] sm:$0xff]  ;;  %v13561_v24 = vpop.f32.mrf.mxu3 }
 0x7cb   : > { %9339 = vmatmul.msk.f32.gmra.mxu3 %vm2459_vm1, %v15456_v48  ;;  %v15462_v48 = vld [vmem:[#allocation19_spill] sm:$0xff]  ;;  %7334 = vmatpush.msra.mxu2 %v7223_v61 }
 0x7cd   : > { %v13526_v28 = vpop.f32.mrf.mxu2 }
 0x7cf   : > { %v13530_v35 = vpop.f32.mrf.mxu1 }
 0x7d2   : > { %9252 = vmatmul.msk.f32.gmra.mxu1 %vm2459_vm1, %v15457_v56  ;;  %9307 = vmatmul.msk.f32.gmra.mxu2 %vm2459_vm1, %v9694_v15 }
 0x7d3   : > { %9340 = vmatmul.msk.f32.gmra.mxu3 %vm2459_vm1, %v15458_v54  ;;  %v9697_v54 = vld [vmem:[#allocation2 + $0x71] sm:$0xff] }
 0x7d5   : > { %v13537_v29 = vpop.f32.mrf.mxu2 }
 0x7d7   : > { %v13539_v21 = vpop.f32.mrf.mxu1 }
 0x7da   : > { %9253 = vmatmul.msk.f32.gmra.mxu1 %vm2459_vm1, %v15459_v39  ;;  %9308 = vmatmul.msk.f32.gmra.mxu2 %vm2459_vm1, %v9695_v1  ;;  %v7222_v39 = vld [vmem:[%s14897_s7 + $0x28] sm:$0xff] }
 0x7db   : > { %9341 = vmatmul.msk.f32.gmra.mxu3 %vm2459_vm1, %v15460_v42  ;;  %7335 = vmatpush.msra.mxu2 %v7222_v39  ;;  %v15463_v42 = vld [vmem:[#allocation107_spill] sm:$0xff]  ;;  %v9701_v39 = vld [vmem:[%s14893_s3 + $0x1a8] sm:$0xff] }
 0x7dd   : > { %v13551_v49 = vpop.f32.mrf.mxu2 }
 0x7df   : > { %v13553_v40 = vpop.f32.mrf.mxu1 }
 0x7e2   : > { %9254 = vmatmul.msk.f32.gmra.mxu1 %vm2459_vm1, %v15461_v38  ;;  %9309 = vmatmul.msk.f32.gmra.mxu2 %vm2459_vm1, %v9696_v7  ;;  %v9698_v38 = vld [vmem:[#allocation2 + $0x81] sm:$0xff]  ;;  %v9699_v7 = vld [vmem:[%s14893_s3 + $0x1b8] sm:$0xff] }
 0x7e3   : > { %9342 = vmatmul.msk.f32.gmra.mxu3 %vm2459_vm1, %v15462_v48  ;;  %v9700_v48 = vld [vmem:[%s14893_s3 + $0x1b0] sm:$0xff] }
 0x7e5   : > { %v13565_v56 = vpop.f32.mrf.mxu2 }
 0x7e7   : > { %v13567_v15 = vpop.f32.mrf.mxu1 }
 0x7ea   : > { %9255 = vmatmul.msk.f32.gmra.mxu1 %vm2459_vm1, %v6455_v26  ;;  %9310 = vmatmul.msk.f32.gmra.mxu2 %vm2459_vm1, %v9697_v54  ;;  %v7221_v26 = vld [vmem:[%s14897_s7 + $0x20] sm:$0xff] }
 0x7eb   : > { %7336 = vmatpush.msra.mxu2 %v7221_v26  ;;  %v15465_v26 = vld [vmem:[#allocation22_spill] sm:$0xff] }
 0x7ed   : > { %v13574_v1 = vpop.f32.mrf.mxu2 }
 0x7ef   : > { %v6317_v8 = vpop.f32.mrf.mxu1 }
 0x7f2   : > { %9272 = vmatmul.msk.f32.vlgmr.msra.gmra.mxu1 %vm2459_vm1, %v15463_v42  ;;  %9311 = vmatmul.msk.f32.gmra.mxu2 %vm2459_vm1, %v9698_v38  ;;  %v9702_v42 = vld [vmem:[%s14893_s3 + $0x1a0] sm:$0xff]  ;;  %v15464_v38 = vld [vmem:[#allocation116_spill] sm:$0xff] }
 0x7f3   : > { %6978 = vmatpush.msra.mxu1 %v9699_v7  ;;  %v7220_v7 = vld [vmem:[%s14897_s7 + $0x18] sm:$0xff] }
 0x7f4   : > { %7337 = vmatpush.msra.mxu2 %v7220_v7  ;;  %v9706_v7 = vld [vmem:[%s14893_s3 + $0x180] sm:$0xff] }
 0x7f5   : > { %v13585_v61 = vpop.f32.mrf.mxu2  ;;  %6979 = vmatpush.msra.mxu1 %v9700_v48  ;;  %v9703_v48 = vld [vmem:[%s14893_s3 + $0x198] sm:$0xff] }
 0x7f7   : > { %v6320_v54 = vpop.f32.mrf.mxu1  ;;  %6980 = vmatpush.msra.mxu1 %v9701_v39 }
 0x7f9   : > { %6981 = vmatpush.msra.mxu1 %v9702_v42  ;;  %v9704_v42 = vld [vmem:[%s14893_s3 + $0x190] sm:$0xff] }
 0x7fa   : > { %9273 = vmatmul.msk.f32.gmra.mxu1 %vm2459_vm1, %v15464_v38  ;;  %9328 = vmatmul.msk.f32.vlgmr.msrb.gmra.mxu2 %vm2459_vm1, %v15465_v26  ;;  %v9705_v26 = vld [vmem:[%s14893_s3 + $0x188] sm:$0xff] }
 0x7fb   : > { %6982 = vmatpush.msra.mxu1 %v9703_v48  ;;  %v15468_v48 = vld [vmem:[#allocation77_spill] sm:$0xff] }
 0x7fd   : > { %v13606_v39 = vpop.f32.mrf.mxu2  ;;  %6983 = vmatpush.msra.mxu1 %v9704_v42  ;;  %v7219_v42 = vld [vmem:[%s14897_s7 + $0x10] sm:$0xff] }
 0x7fe   : > { %15466 = vst [vmem:[#allocation109_spill] sm:$0xff] %v13606_v39  ;;  %7338 = vmatpush.msra.mxu2 %v7219_v42  ;;  %v15474_v42 = vld [vmem:[#allocation68_spill] sm:$0xff] }
 0x7ff   : > { %v6323_v38 = vpop.f32.mrf.mxu1  ;;  %6984 = vmatpush.msra.mxu1 %v9705_v26  ;;  %v15470_v26 = vld [vmem:[#allocation126_spill] sm:$0xff] }
 0x801   : > { %6985 = vmatpush.msra.mxu1 %v9706_v7 }
 0x802   : > { %9274 = vmatmul.msk.f32.gmra.mxu1 %vm2459_vm1, %v15467_v47  ;;  %9329 = vmatmul.msk.f32.gmra.mxu2 %vm2459_vm1, %v15468_v48  ;;  %v7218_v47 = vld [vmem:[%s14897_s7 + $0x8] sm:$0xff] }
 0x803   : > { %7339 = vmatpush.msra.mxu2 %v7218_v47  ;;  %v15476_v47 = vld [vmem:[#allocation130_spill] sm:$0xff] }
 0x805   : > { %v13624_v0 = vpop.f32.mrf.mxu2 }
 0x806   : > { %15469 = vst [vmem:[#allocation110_spill] sm:$0xff] %v13624_v0  ;;  %v15480_v0 = vld [vmem:[#allocation134_spill] sm:$0xff] }
 0x807   : > { %v6326_v25 = vpop.f32.mrf.mxu1 }
 0x80a   : > { %9275 = vmatmul.msk.f32.gmra.mxu1 %vm2459_vm1, %v15470_v26  ;;  %9330 = vmatmul.msk.f32.gmra.mxu2 %vm2459_vm1, %v15471_v60  ;;  %v7217_v60 = vld [vmem:[%s14897_s7] sm:$0xff] }
 0x80b   : > { %7340 = vmatpush.msra.mxu2 %v7217_v60  ;;  %v15481_v60 = vld [vmem:[#allocation131_spill] sm:$0xff] }
 0x80d   : > { %v13633_v7 = vpop.f32.mrf.mxu2 }
 0x80e   : > { %15472 = vst [vmem:[#allocation64_spill] sm:$0xff] %v13633_v7 }
 0x80f   : > { %v13635_v48 = vpop.f32.mrf.mxu1 }
 0x812   : > { %9276 = vmatmul.msk.f32.gmra.mxu1 %vm2459_vm1, %v15473_v32  ;;  %9331 = vmatmul.msk.f32.gmra.mxu2 %vm2459_vm1, %v15474_v42  ;;  %v9383_v32 = vld [vmem:[%s14895_s5 + $0x78] sm:$0xff] }
 0x813   : > { %7611 = vmatpush.msrb.mxu2 %v9383_v32 }
 0x815   : > { %v13641_v36 = vpop.f32.mrf.mxu2 }
 0x816   : > { %15475 = vst [vmem:[#allocation112_spill] sm:$0xff] %v13641_v36  ;;  %v15479_v36 = vld [vmem:[#allocation135_spill] sm:$0xff] }
 0x817   : > { %v13646_v26 = vpop.f32.mrf.mxu1  ;;  %v6228_v7 = vadd.f32 %v15479_v36, %v13457_v50  ;;  %v15486_v36 = vld [vmem:[#allocation53_spill] sm:$0xff] }
 0x81a   : > { %9277 = vmatmul.msk.f32.gmra.mxu1 %vm2459_vm1, %v15476_v47  ;;  %9332 = vmatmul.msk.f32.gmra.mxu2 %vm2459_vm1, %v15477_v59  ;;  %v15482_v47 = vld [vmem:[#allocation94_spill] sm:$0xff] }
 0x81b   : > { %v6292_v59 = vadd.f32 %v15482_v47, %v6228_v7  ;;  %v15488_v47 = vld [vmem:[#allocation33_spill] sm:$0xff] }
 0x81d   : > { %v13652_v2 = vpop.f32.mrf.mxu2 }
 0x81e   : > { %15478 = vst [vmem:[#allocation113_spill] sm:$0xff] %v13652_v2  ;;  %v6341_v2 = vadd.f32 %v6317_v8, %v6292_v59 }
 0x81f   : > { %v13657_v42 = vpop.f32.mrf.mxu1 }
 0x820   : > { %v6390_v32 = vadd.f32 %v13282_v34, %v6341_v2 }
 0x822   : > { %9278 = vmatmul.msk.f32.gmra.mxu1 %vm2459_vm1, %v15480_v0  ;;  %9333 = vmatmul.msk.f32.gmra.mxu2 %vm2459_vm1, %v15481_v60  ;;  %v15487_v0 = vld [vmem:[#allocation80_spill] sm:$0xff]  ;;  %v6439_v8 = vadd.f32 %v15488_v47, %v6390_v32 }
 0x823   : > { %v6293_v50 = vadd.f32 %v15487_v0, %v6231_v33  ;;  %v15492_v33 = vld [vmem:[#allocation28_spill] sm:$0xff] }
 0x825   : > { %v13666_v39 = vpop.f32.mrf.mxu2  ;;  %v6342_v7 = vadd.f32 %v6320_v54, %v6293_v50 }
 0x826   : > { %15483 = vst [vmem:[#allocation67_spill] sm:$0xff] %v13666_v39  ;;  %v15489_v39 = vld [vmem:[#allocation75_spill] sm:$0xff] }
 0x827   : > { %v13668_v31 = vpop.f32.mrf.mxu1  ;;  %v6234_v51 = vadd.f32 %v15489_v39, %v13498_v23  ;;  %v6391_v2 = vadd.f32 %v13328_v6, %v6342_v7  ;;  %v13696_v23 = vld [vmem:[%s14894_s4] ss:$0 sm:$0xff]  ;;  %v15494_v7 = vld [vmem:[#allocation138_spill] sm:$0xff] }
 0x828   : > { %v6237_v47 = vadd.f32 %v15494_v7, %v13515_v20  ;;  %v15498_v20 = vld [vmem:[#allocation52_spill] sm:$0xff] }
 0x82a   : > { %9279 = vmatmul.msk.f32.gmra.mxu1 %vm2459_vm1, %v15485_v22  ;;  %9334 = vmatmul.msk.f32.gmra.mxu2 %vm2459_vm1, %v15486_v36  ;;  %v15490_v22 = vld [vmem:[#allocation98_spill] sm:$0xff]  ;;  %v6294_v36 = vadd.f32 %v15492_v33, %v6234_v51 }
 0x82c   : > { %v6343_v0 = vadd.f32 %v6323_v38, %v6294_v36  ;;  %v15499_v36 = vld [vmem:[#allocation105_spill] sm:$0xff] }
 0x82d   : > { %v13678_v60 = vpop.f32.mrf.mxu2 }
 0x82f   : > { %v6497_v59 = vpop.f32.mrf.mxu1 }
 0x830   : > { %v6521_v5 = vadd.f32 %v6497_v59, %v6439_v8  ;;  %v6392_v8 = vadd.f32 %v13362_v14, %v6343_v0  ;;  %v15495_v59 = vld [vmem:[#allocation66_spill] sm:$0xff]  ;;  %v9382_v0 = vld [vmem:[%s14895_s5 + $0x70] sm:$0xff] }
 0x831   : > { %7612 = vmatpush.msrb.mxu2 %v9382_v0 }
 0x832   : > { %v6603_v34 = vadd.f32 %v13493_v63, %v6521_v5  ;;  %9296 = vmatmul.msk.f32.vlgmr.msrb.gmra.mxu1 %vm2459_vm1, %v15490_v22  ;;  %9335 = vmatmul.msk.f32.gmra.mxu2 %vm2459_vm1, %v15491_v62  ;;  %v15493_v63 = vld [vmem:[#allocation36_spill] sm:$0xff]  ;;  %v15496_v5 = vld [vmem:[#allocation55_spill] sm:$0xff]  ;;  %v6295_v22 = vadd.f32 %v15498_v20, %v6237_v47 }
 0x833   : > { %v6440_v39 = vadd.f32 %v15493_v63, %v6391_v2  ;;  %v13715_v2 = vpop.f32.mrf.mxu3 }
 0x834   : > { %v6684_v54 = vadd.f32 %v13438_v9, %v6603_v34  ;;  %v15497_v34 = vmax.f32 %v15496_v5, 0.0 }
 0x835   : > { %v13691_v32 = vpop.f32.mrf.mxu2 }
 0x836   : > { %v13699_v6 = vadd.f32 %v13696_v23, %v6684_v54  ;;  %v6441_v54 = vadd.f32 %v15499_v36, %v6392_v8  ;;  %v15502_v8 = vld [vmem:[#allocation61_spill] sm:$0xff] }
 0x837   : > { %v6500_v50 = vpop.f32.mrf.mxu1 }
 0x838   : > { %v6522_v51 = vadd.f32 %v6500_v50, %v6440_v39  ;;  %v7201_v9 = vmax.f32 %v13699_v6, 0.0  ;;  %v15500_v39 = vld [vmem:[#allocation100_spill] sm:$0xff] }
 0x839   : > { %v6240_v50 = vadd.f32 %v15500_v39, %v13530_v35  ;;  %v15506_v39 = vld [vmem:[#allocation166_spill] sm:$0xff] }
 0x83a   : > { %v6604_v38 = vadd.f32 %v13513_v19, %v6522_v51  ;;  %9297 = vmatmul.msk.f32.gmra.mxu1 %vm2459_vm1, %v15495_v59  ;;  %9344 = vmatmul.msk.f32.vlgmr.msra.gmra.mxu2 %vm2459_vm1, %v15497_v34  ;;  %7500 = vst.msk [vmem:[#allocation2 + $0xa0] sm:$0xff] %vm2459_vm1, %v7201_v9  ;;  %v6344_v19 = vadd.f32 %v6326_v25, %v6295_v22  ;;  %v15501_v51 = vld [vmem:[#allocation163_spill] sm:$0xff]  ;;  %v15504_v59 = vld [vmem:[#allocation97_spill] sm:$0xff] }
 0x83b   : > { %v6296_v35 = vadd.f32 %v15504_v59, %v6240_v50  ;;  %v13743_v34 = vpop.f32.mrf.mxu3 }
 0x83c   : > { %v6685_v62 = vadd.f32 %v13460_v17, %v6604_v38  ;;  %v6393_v47 = vadd.f32 %v13387_v58, %v6344_v19  ;;  %v15503_v38 = vmax.f32 %v15502_v8, 0.0  ;;  %v15505_v19 = vld [vmem:[#allocation103_spill] sm:$0xff] }
 0x83d   : > { %v13719_v14 = vpop.f32.mrf.mxu2  ;;  %v6243_v36 = vadd.f32 %v15505_v19, %v13539_v21 }
 0x83e   : > { %v13722_v33 = vadd.f32 %v13696_v23, %v6685_v62  ;;  %v6442_v22 = vadd.f32 %v13248_v45, %v6393_v47  ;;  %v15509_v45 = vld [vmem:[#allocation104_spill] sm:$0xff] }
 0x83f   : > { %v6503_v63 = vpop.f32.mrf.mxu1  ;;  %v6297_v21 = vadd.f32 %v15509_v45, %v6243_v36 }
 0x840   : > { %v6523_v7 = vadd.f32 %v6503_v63, %v6441_v54  ;;  %v7202_v17 = vmax.f32 %v13722_v33, 0.0  ;;  %v7559_v33 = vld [vmem:[%s14895_s5 + $0x28] sm:$0xff] }
 0x842   : > { %v6605_v25 = vadd.f32 %v13526_v28, %v6523_v7  ;;  %9298 = vmatmul.msk.f32.gmra.mxu1 %vm2459_vm1, %v15501_v51  ;;  %9345 = vmatmul.msk.f32.gmra.mxu2 %vm2459_vm1, %v15503_v38  ;;  %7501 = vst.msk [vmem:[#allocation2 + $0xb0] sm:$0xff] %vm2459_vm1, %v7202_v17  ;;  %v6345_v28 = vadd.f32 %v13635_v48, %v6296_v35  ;;  %v15507_v48 = vld [vmem:[#allocation57_spill] sm:$0xff] }
 0x843   : > { %v15508_v50 = vmax.f32 %v15507_v48, 0.0  ;;  %v13774_v51 = vpop.f32.mrf.mxu3  ;;  %v6246_v38 = vadd.f32 %v13229_v52, %v13553_v40 }
 0x844   : > { %v6686_v5 = vadd.f32 %v13486_v13, %v6605_v25  ;;  %v6394_v13 = vadd.f32 %v13412_v11, %v6345_v28  ;;  %v6346_v11 = vadd.f32 %v13646_v26, %v6297_v21  ;;  %v9708_v28 = vld [vmem:[#allocation2 + $0xe0] sm:$0xff]  ;;  %v15510_v26 = vld [vmem:[#allocation48_spill] sm:$0xff] }
 0x845   : > { %v13745_v58 = vpop.f32.mrf.mxu2 }
 0x846   : > { %v13749_v20 = vadd.f32 %v13696_v23, %v6686_v5  ;;  %v6443_v25 = vadd.f32 %v13295_v37, %v6394_v13  ;;  %v15512_v37 = vld [vmem:[#allocation30_spill] sm:$0xff] }
 0x847   : > { %v6506_v62 = vpop.f32.mrf.mxu1  ;;  %v6298_v52 = vadd.f32 %v15512_v37, %v6246_v38 }
 0x848   : > { %v6524_v54 = vadd.f32 %v6506_v62, %v6442_v22  ;;  %v7203_v0 = vmax.f32 %v13749_v20, 0.0  ;;  %v15511_v22 = vmax.f32 %v15510_v26, 0.0  ;;  %v7558_v20 = vld [vmem:[%s14895_s5 + $0x20] sm:$0xff] }
 0x84a   : > { %v6606_v63 = vadd.f32 %v13537_v29, %v6524_v54  ;;  %9299 = vmatmul.msk.f32.gmra.mxu1 %vm2459_vm1, %v15506_v39  ;;  %9346 = vmatmul.msk.f32.gmra.mxu2 %vm2459_vm1, %v15508_v50  ;;  %7502 = vst.msk [vmem:[#allocation2 + $0xc0] sm:$0xff] %vm2459_vm1, %v7203_v0  ;;  %v6249_v54 = vadd.f32 %v13250_v18, %v13567_v15  ;;  %v9709_v50 = vld [vmem:[#allocation2 + $0xf0] sm:$0xff]  ;;  %v9381_v18 = vld [vmem:[%s14895_s5 + $0x68] sm:$0xff] }
 0x84b   : > { %v13800_v39 = vpop.f32.mrf.mxu3  ;;  %7613 = vmatpush.msrb.mxu2 %v9381_v18 }
 0x84c   : > { %v6687_v7 = vadd.f32 %v13511_v16, %v6606_v63  ;;  %v6395_v16 = vadd.f32 %v13432_v3, %v6346_v11  ;;  %v6347_v3 = vadd.f32 %v13657_v42, %v6298_v52  ;;  %v15513_v42 = vld [vmem:[#allocation49_spill] sm:$0xff] }
 0x84d   : > { %v13767_v47 = vpop.f32.mrf.mxu2  ;;  %v15514_v45 = vmax.f32 %v15513_v42, 0.0 }
 0x84e   : > { %v13771_v29 = vadd.f32 %v13696_v23, %v6687_v7  ;;  %v6444_v19 = vadd.f32 %v13344_v53, %v6395_v16  ;;  %v15515_v53 = vld [vmem:[#allocation99_spill] sm:$0xff] }
 0x84f   : > { %v6509_v8 = vpop.f32.mrf.mxu1 }
 0x850   : > { %v6525_v59 = vadd.f32 %v6509_v8, %v6443_v25  ;;  %v7204_v35 = vmax.f32 %v13771_v29, 0.0 }
 0x852   : > { %v6607_v5 = vadd.f32 %v13551_v49, %v6525_v59  ;;  %9300 = vmatmul.msk.f32.gmra.mxu1 %vm2459_vm1, %v9708_v28  ;;  %9347 = vmatmul.msk.f32.gmra.mxu2 %vm2459_vm1, %v15511_v22  ;;  %7503 = vst.msk [vmem:[#allocation2 + $0xd0] sm:$0xff] %vm2459_vm1, %v7204_v35 }
 0x854   : > { %v6688_v40 = vadd.f32 %v13528_v12, %v6607_v5  ;;  %v6396_v12 = vadd.f32 %v13452_v4, %v6347_v3  ;;  %v6299_v4 = vadd.f32 %v15515_v53, %v6249_v54  ;;  %v9710_v5 = vld [vmem:[#allocation2 + $0x100] sm:$0xff]  ;;  %v9711_v3 = vld [vmem:[#allocation2 + $0x110] sm:$0xff] }
 0x855   : > { %v13790_v62 = vpop.f32.mrf.mxu2  ;;  %v15523_v53 = vld [vmem:[#allocation65_spill] sm:$0xff] }
 0x856   : > { %v13794_v49 = vadd.f32 %v13696_v23, %v6688_v40  ;;  %v6348_v21 = vadd.f32 %v13668_v31, %v6299_v4  ;;  %v6445_v11 = vadd.f32 %v13381_v30, %v6396_v12  ;;  %v13833_v30 = vpop.f32.mrf.mxu3  ;;  %v15524_v4 = vmax.f32 %v13255_v27, 0.0 }
 0x857   : > { %v6512_v36 = vpop.f32.mrf.mxu1 }
 0x858   : > { %v6526_v13 = vadd.f32 %v6512_v36, %v6444_v19  ;;  %v7205_v63 = vmax.f32 %v13794_v49, 0.0  ;;  %v6397_v59 = vadd.f32 %v13472_v44, %v6348_v21  ;;  %v15518_v19 = vld [vmem:[#allocation63_spill] sm:$0xff]  ;;  %v9499_v49 = vld [vmem:[%s14895_s5 + $0x218] sm:$0xff] }
 0x859   : > { %v15519_v36 = vmax.f32 %v15518_v19, 0.0  ;;  %v15531_v19 = vld [vmem:[#allocation91_spill] sm:$0xff] }
 0x85a   : > { %v6608_v48 = vadd.f32 %v13565_v56, %v6526_v13  ;;  %9301 = vmatmul.msk.f32.gmra.mxu1 %vm2459_vm1, %v9709_v50  ;;  %9348 = vmatmul.msk.f32.gmra.mxu2 %vm2459_vm1, %v15514_v45  ;;  %7504 = vst.msk [vmem:[#allocation2 + $0xe0] sm:$0xff] %vm2459_vm1, %v7205_v63  ;;  %v15521_v50 = vld [vmem:[#allocation70_spill] sm:$0xff] }
 0x85b   : > { %v15522_v42 = vmax.f32 %v15521_v50, 0.0 }
 0x85c   : > { %v6689_v56 = vadd.f32 %v13541_v10, %v6608_v48  ;;  %v15516_v10 = vld [vmem:[#allocation90_spill] sm:$0xff] }
 0x85d   : > { %v13816_v15 = vpop.f32.mrf.mxu2  ;;  %v15517_v28 = vmax.f32 %v15516_v10, 0.0  ;;  %v15520_v48 = vld [vmem:[#allocation46_spill] sm:$0xff] }
 0x85e   : > { %v13820_v7 = vadd.f32 %v13696_v23, %v6689_v56  ;;  %v9380_v56 = vld [vmem:[%s14895_s5 + $0x60] sm:$0xff]  ;;  %v15527_v10 = vld [vmem:[#allocation86_spill] sm:$0xff] }
 0x85f   : > { %v6515_v25 = vpop.f32.mrf.mxu1  ;;  %7614 = vmatpush.msrb.mxu2 %v9380_v56 }
 0x860   : > { %v6527_v8 = vadd.f32 %v6515_v25, %v6445_v11  ;;  %v7206_v38 = vmax.f32 %v13820_v7, 0.0 }
 0x862   : > { %v6609_v16 = vadd.f32 %v13574_v1, %v6527_v8  ;;  %9302 = vmatmul.msk.f32.gmra.mxu1 %vm2459_vm1, %v9710_v5  ;;  %9349 = vmatmul.msk.f32.gmra.mxu2 %vm2459_vm1, %v15517_v28  ;;  %7505 = vst.msk [vmem:[#allocation2 + $0xf0] sm:$0xff] %vm2459_vm1, %v7206_v38  ;;  %v6446_v1 = vadd.f32 %v13410_v46, %v6397_v59  ;;  %v13852_v46 = vpop.f32.mrf.mxu3  ;;  %v15525_v8 = vld [vmem:[#allocation58_spill] sm:$0xff]  ;;  %v15526_v59 = vmax.f32 %v13289_v41, 0.0  ;;  %v15528_v28 = vmax.f32 %v13335_v43, 0.0 }
 0x863   : > { %v7075_v5 = vld [vmem:[#allocation2 + $0x231] sm:$0xff] }
 0x864   : > { %v6690_v31 = vadd.f32 %v13561_v24, %v6609_v16  ;;  %9343 = vmatmul.msk.f32.gmra.mxu3 %vm2459_vm1, %v7075_v5  ;;  %7527 = vst.msk [vmem:[#allocation2 + $0x230] sm:$0xff] %vm2459_vm1, %v15454_v57  ;;  %v15537_v5 = vld [vmem:[#allocation59_spill] sm:$0xff] }
 0x865   : > { %v13836_v26 = vpop.f32.mrf.mxu2  ;;  %7528 = vst.msk [vmem:[#allocation2 + $0x238] sm:$0x1] %vm4253_vm2, %v15454_v57 }
 0x866   : > { %v13839_v44 = vadd.f32 %v13696_v23, %v6690_v31  ;;  %7537 = vst.msk [vmem:[#allocation2 + $0x238] sm:$0x1] %vm4253_vm2, %v15454_v57  ;;  %v15532_v57 = vld [vmem:[#allocation106_spill] sm:$0xff] }
 0x867   : > { %v6518_v22 = vpop.f32.mrf.mxu1 }
 0x868   : > { %v6528_v37 = vadd.f32 %v6518_v22, %v6446_v1  ;;  %v15060_v52 = vmax.f32 %v13839_v44, 0.0  ;;  %v15529_v22 = vld [vmem:[#allocation92_spill] sm:$0xff] }
 0x86a   : > { %v6610_v40 = vadd.f32 %v13585_v61, %v6528_v37  ;;  %9303 = vmatmul.msk.f32.gmra.mxu1 %vm2459_vm1, %v9711_v3  ;;  %9350 = vmatmul.msk.f32.gmra.mxu2 %vm2459_vm1, %v15519_v36  ;;  %7506 = vst.msk [vmem:[#allocation2 + $0x100] sm:$0xff] %vm2459_vm1, %v15060_v52  ;;  %v13872_v45 = vpop.f32.mrf.mxu3  ;;  %v15530_v37 = vmax.f32 %v13366_v55, 0.0  ;;  %v15533_v36 = vmax.f32 %v15532_v57, 0.0 }
 0x86c   : > { %v6691_v24 = vadd.f32 %v13715_v2, %v6610_v40 }
 0x86d   : > { %v13854_v54 = vpop.f32.mrf.mxu2 }
 0x86e   : > { %v13857_v13 = vadd.f32 %v13696_v23, %v6691_v24  ;;  %v9379_v24 = vld [vmem:[%s14895_s5 + $0x58] sm:$0xff] }
 0x86f   : > { %v13859_v61 = vpop.f32.mrf.mxu1  ;;  %7615 = vmatpush.msrb.mxu2 %v9379_v24 }
 0x870   : > { %v15059_v12 = vmax.f32 %v13857_v13, 0.0 }
 0x872   : > { %9320 = vmatmul.msk.f32.vlgmr.msra.gmra.mxu1 %vm2459_vm1, %v15520_v48  ;;  %9351 = vmatmul.msk.f32.gmra.mxu2 %vm2459_vm1, %v15522_v42  ;;  %7507 = vst.msk [vmem:[#allocation2 + $0x110] sm:$0xff] %vm2459_vm1, %v15059_v12  ;;  %v13888_v25 = vpop.f32.mrf.mxu3  ;;  %v15534_v42 = vld [vmem:[#allocation96_spill] sm:$0xff] }
 0x875   : > { %v13870_v2 = vpop.f32.mrf.mxu2 }
 0x877   : > { %v13874_v18 = vpop.f32.mrf.mxu1 }
 0x87a   : > { %9321 = vmatmul.msk.f32.gmra.mxu1 %vm2459_vm1, %v15523_v53  ;;  %9352 = vmatmul.msk.f32.gmra.mxu2 %vm2459_vm1, %v15524_v4  ;;  %v13909_v41 = vpop.f32.mrf.mxu3  ;;  %v15535_v53 = vld [vmem:[#allocation60_spill] sm:$0xff] }
 0x87b   : > { %v15536_v4 = vmax.f32 %v15535_v53, 0.0  ;;  %v13977_v53 = vld [vmem:[%s14898_s8] ss:$0 sm:$0xff] }
 0x87d   : > { %v13884_v21 = vpop.f32.mrf.mxu2 }
 0x87f   : > { %v13886_v11 = vpop.f32.mrf.mxu1 }
 0x882   : > { %9322 = vmatmul.msk.f32.gmra.mxu1 %vm2459_vm1, %v15525_v8  ;;  %9353 = vmatmul.msk.f32.gmra.mxu2 %vm2459_vm1, %v15526_v59  ;;  %v13922_v43 = vpop.f32.mrf.mxu3 }
 0x885   : > { %v13895_v27 = vpop.f32.mrf.mxu2 }
 0x887   : > { %v13897_v16 = vpop.f32.mrf.mxu1 }
 0x88a   : > { %9323 = vmatmul.msk.f32.gmra.mxu1 %vm2459_vm1, %v15527_v10  ;;  %9354 = vmatmul.msk.f32.gmra.mxu2 %vm2459_vm1, %v15528_v28  ;;  %v13938_v48 = vpop.f32.mrf.mxu3  ;;  %v15538_v10 = vld [vmem:[#allocation108_spill] sm:$0xff] }
 0x88b   : > { %v15539_v28 = vmax.f32 %v15538_v10, 0.0 }
 0x88d   : > { %v13913_v31 = vpop.f32.mrf.mxu2 }
 0x88f   : > { %v13915_v1 = vpop.f32.mrf.mxu1 }
 0x892   : > { %9324 = vmatmul.msk.f32.gmra.mxu1 %vm2459_vm1, %v15529_v22  ;;  %9355 = vmatmul.msk.f32.gmra.mxu2 %vm2459_vm1, %v15530_v37  ;;  %v13951_v59 = vpop.f32.mrf.mxu3 }
 0x895   : > { %v13924_v40 = vpop.f32.mrf.mxu2 }
 0x897   : > { %v13926_v3 = vpop.f32.mrf.mxu1 }
 0x89a   : > { %9325 = vmatmul.msk.f32.gmra.mxu1 %vm2459_vm1, %v15531_v19  ;;  %9356 = vmatmul.msk.f32.gmra.mxu2 %vm2459_vm1, %v15533_v36  ;;  %v15540_v19 = vld [vmem:[#allocation62_spill] sm:$0xff]  ;;  %v13965_v36 = vpop.f32.mrf.mxu3 }
 0x89b   : > { %v15541_v57 = vmax.f32 %v15540_v19, 0.0 }
 0x89d   : > { %v13936_v55 = vpop.f32.mrf.mxu2 }
 0x89f   : > { %v13940_v50 = vpop.f32.mrf.mxu1 }
 0x8a2   : > { %9326 = vmatmul.msk.f32.gmra.mxu1 %vm2459_vm1, %v15534_v42  ;;  %9357 = vmatmul.msk.f32.gmra.mxu2 %vm2459_vm1, %v15536_v4  ;;  %v9378_v4 = vld [vmem:[%s14895_s5 + $0x50] sm:$0xff]  ;;  %v13986_v10 = vpop.f32.mrf.mxu3 }
 0x8a3   : > { %7616 = vmatpush.msrb.mxu2 %v9378_v4 }
 0x8a5   : > { %v13947_v56 = vpop.f32.mrf.mxu2 }
 0x8a7   : > { %v13949_v8 = vpop.f32.mrf.mxu1 }
 0x8aa   : > { %9327 = vmatmul.msk.f32.gmra.mxu1 %vm2459_vm1, %v15537_v5  ;;  %9358 = vmatmul.msk.f32.gmra.mxu2 %vm2459_vm1, %v15539_v28  ;;  %v7561_v5 = vld [vmem:[%s14895_s5 + $0x38] sm:$0xff] }
 0x8ab   : > { %7676 = vmatpush.msrb.mxu3 %v7561_v5 }
 0x8ad   : > { %v13958_v22 = vpop.f32.mrf.mxu2 }
 0x8af   : > { %v13960_v37 = vpop.f32.mrf.mxu1 }
 0x8b2   : > { %9359 = vmatmul.msk.f32.gmra.mxu2 %vm2459_vm1, %v15541_v57  ;;  %v7560_v57 = vld [vmem:[%s14895_s5 + $0x30] sm:$0xff] }
 0x8b3   : > { %7677 = vmatpush.msrb.mxu3 %v7560_v57 }
 0x8b5   : > { %v13967_v24 = vpop.f32.mrf.mxu2  ;;  %7678 = vmatpush.msrb.mxu3 %v7559_v33 }
 0x8b7   : > { %v13969_v42 = vpop.f32.mrf.mxu1  ;;  %7679 = vmatpush.msrb.mxu3 %v7558_v20  ;;  %v9501_v20 = vld [vmem:[%s14895_s5 + $0x228] sm:$0xff] }
 0x8ba   : > { %9360 = vmatmul.msk.f32.gmra.mxu2 %vm2459_vm1, %v7201_v9 }
 0x8bd   : > { %v7342_v6 = vpop.f32.mrf.mxu2 }
 0x8be   : > { %v7343_v9 = vadd.f32 %v13977_v53, %v7342_v6  ;;  %v14005_v6 = vpop.f32.mrf.mxu3 }
 0x8bf   : > { %v13994_v28 = vpop.f32.mrf.mxu1 }
 0x8c0   : > { %v7438_v19 = vmax.f32 %v7343_v9, 0.0 }
 0x8c2   : > { %8543 = vst.msk [vmem:[%s13992_s24] sm:$0xff] %vm2459_vm1, %v7438_v19  ;;  %9361 = vmatmul.msk.f32.gmra.mxu2 %vm2459_vm1, %v7202_v17 }
 0x8c5   : > { %v7345_v4 = vpop.f32.mrf.mxu2 }
 0x8c6   : > { %v7346_v5 = vadd.f32 %v13977_v53, %v7345_v4  ;;  %v14020_v52 = vpop.f32.mrf.mxu3 }
 0x8c7   : > { %v14007_v12 = vpop.f32.mrf.mxu1 }
 0x8c8   : > { %v7439_v9 = vmax.f32 %v7346_v5, 0.0  ;;  %v7557_v5 = vld [vmem:[%s14895_s5 + $0x18] sm:$0xff] }
 0x8c9   : > { %7680 = vmatpush.msrb.mxu3 %v7557_v5  ;;  %v7554_v5 = vld [vmem:[%s14895_s5] sm:$0xff] }
 0x8ca   : > { %8544 = vst.msk [vmem:[%s13992_s24 + $0x8] sm:$0xff] %vm2459_vm1, %v7439_v9  ;;  %9362 = vmatmul.msk.f32.gmra.mxu2 %vm2459_vm1, %v7203_v0  ;;  %v9503_v9 = vld [vmem:[%s14895_s5 + $0x238] sm:$0xff] }
 0x8cb   : > { %8298 = vmatpush.msrb.mxu1 %v9503_v9  ;;  %v9500_v9 = vld [vmem:[%s14895_s5 + $0x220] sm:$0xff] }
 0x8cd   : > { %v7348_v17 = vpop.f32.mrf.mxu2 }
 0x8ce   : > { %v7349_v19 = vadd.f32 %v13977_v53, %v7348_v17  ;;  %v9502_v17 = vld [vmem:[%s14895_s5 + $0x230] sm:$0xff] }
 0x8cf   : > { %v14018_v57 = vpop.f32.mrf.mxu1  ;;  %8299 = vmatpush.msrb.mxu1 %v9502_v17 }
 0x8d0   : > { %v7440_v4 = vmax.f32 %v7349_v19, 0.0 }
 0x8d1   : > { %8300 = vmatpush.msrb.mxu1 %v9501_v20 }
 0x8d2   : > { %8545 = vst.msk [vmem:[%s13992_s24 + $0x10] sm:$0xff] %vm2459_vm1, %v7440_v4  ;;  %9363 = vmatmul.msk.f32.gmra.mxu2 %vm2459_vm1, %v7204_v35  ;;  %v7556_v35 = vld [vmem:[%s14895_s5 + $0x10] sm:$0xff]  ;;  %v7555_v4 = vld [vmem:[%s14895_s5 + $0x8] sm:$0xff] }
 0x8d3   : > { %7681 = vmatpush.msrb.mxu3 %v7556_v35  ;;  %8301 = vmatpush.msrb.mxu1 %v9500_v9  ;;  %v9497_v9 = vld [vmem:[%s14895_s5 + $0x208] sm:$0xff] }
 0x8d5   : > { %v7351_v0 = vpop.f32.mrf.mxu2  ;;  %7682 = vmatpush.msrb.mxu3 %v7555_v4  ;;  %8302 = vmatpush.msrb.mxu1 %v9499_v49  ;;  %v15542_v4 = vld [vmem:[#allocation109_spill] sm:$0xff] }
 0x8d6   : > { %v7352_v33 = vadd.f32 %v13977_v53, %v7351_v0  ;;  %v14056_v0 = vpop.f32.mrf.mxu3  ;;  %v6751_v20 = vadd.f32 %v15542_v4, %v13859_v61  ;;  %v9496_v61 = vld [vmem:[%s14895_s5 + $0x200] sm:$0xff]  ;;  %v15543_v4 = vld [vmem:[#allocation110_spill] sm:$0xff] }
 0x8d7   : > { %v14037_v29 = vpop.f32.mrf.mxu1  ;;  %7683 = vmatpush.msrb.mxu3 %v7554_v5 }
 0x8d8   : > { %v7441_v19 = vmax.f32 %v7352_v33, 0.0  ;;  %v7546_v33 = vld [vmem:[#allocation2] sm:$0xff] }
 0x8d9   : > { %9392 = vmatmul.msk.f32.vlgmr.msrb.gmra.mxu3 %vm2459_vm1, %v7546_v33  ;;  %v9377_v33 = vld [vmem:[%s14895_s5 + $0x48] sm:$0xff] }
 0x8da   : > { %8546 = vst.msk [vmem:[%s13992_s24 + $0x18] sm:$0xff] %vm2459_vm1, %v7441_v19  ;;  %9364 = vmatmul.msk.f32.gmra.mxu2 %vm2459_vm1, %v7205_v63  ;;  %v9498_v19 = vld [vmem:[%s14895_s5 + $0x210] sm:$0xff] }
 0x8db   : > { %8303 = vmatpush.msrb.mxu1 %v9498_v19  ;;  %7617 = vmatpush.msrb.mxu2 %v9377_v33 }
 0x8dd   : > { %v7354_v35 = vpop.f32.mrf.mxu2  ;;  %8304 = vmatpush.msrb.mxu1 %v9497_v9 }
 0x8de   : > { %v7355_v63 = vadd.f32 %v13977_v53, %v7354_v35  ;;  %v6815_v35 = vadd.f32 %v13743_v34, %v6751_v20  ;;  %v7117_v49 = vpop.f32.mrf.mxu3  ;;  %v15544_v34 = vmax.f32 %v13839_v44, 0.0 }
 0x8df   : > { %v14069_v17 = vpop.f32.mrf.mxu1  ;;  %8305 = vmatpush.msrb.mxu1 %v9496_v61 }
 0x8e0   : > { %v7442_v5 = vmax.f32 %v7355_v63, 0.0  ;;  %v6864_v7 = vadd.f32 %v13960_v37, %v6815_v35 }
 0x8e2   : > { %8547 = vst.msk [vmem:[%s13992_s24 + $0x20] sm:$0xff] %vm2459_vm1, %v7442_v5  ;;  %9365 = vmatmul.msk.f32.gmra.mxu2 %vm2459_vm1, %v7206_v38  ;;  %v6754_v5 = vadd.f32 %v15543_v4, %v13874_v18  ;;  %v6913_v33 = vadd.f32 %v13719_v14, %v6864_v7 }
 0x8e4   : > { %v6816_v20 = vadd.f32 %v13774_v51, %v6754_v5  ;;  %v15546_v5 = vmax.f32 %v13857_v13, 0.0 }
 0x8e5   : > { %v7357_v63 = vpop.f32.mrf.mxu2 }
 0x8e6   : > { %v7358_v19 = vadd.f32 %v13977_v53, %v7357_v63  ;;  %v6865_v61 = vadd.f32 %v13969_v42, %v6816_v20  ;;  %v6962_v63 = vadd.f32 %v13922_v43, %v6913_v33  ;;  %v7120_v18 = vpop.f32.mrf.mxu3 }
 0x8e7   : > { %v14093_v38 = vpop.f32.mrf.mxu1 }
 0x8e8   : > { %v7443_v9 = vmax.f32 %v7358_v19, 0.0  ;;  %v15545_v19 = vld [vmem:[#allocation64_spill] sm:$0xff]  ;;  %v6914_v44 = vadd.f32 %v13745_v58, %v6865_v61 }
 0x8e9   : > { %v6757_v14 = vadd.f32 %v15545_v19, %v13886_v11 }
 0x8ea   : > { %8548 = vst.msk [vmem:[%s13992_s24 + $0x28] sm:$0xff] %vm2459_vm1, %v7443_v9  ;;  %9366 = vmatmul.msk.f32.gmra.mxu2 %vm2459_vm1, %v15544_v34  ;;  %v6963_v58 = vadd.f32 %v13938_v48, %v6914_v44 }
 0x8eb   : > { %v6817_v42 = vadd.f32 %v13800_v39, %v6757_v14 }
 0x8ed   : > { %v7360_v37 = vpop.f32.mrf.mxu2  ;;  %v6866_v34 = vadd.f32 %v13994_v28, %v6817_v42 }
 0x8ee   : > { %v7361_v35 = vadd.f32 %v13977_v53, %v7360_v37 }
 0x8ef   : > { %v6987_v4 = vpop.f32.mrf.mxu1  ;;  %v6915_v39 = vadd.f32 %v13767_v47, %v6866_v34 }
 0x8f0   : > { %v7444_v7 = vmax.f32 %v7361_v35, 0.0  ;;  %v7011_v9 = vadd.f32 %v6987_v4, %v6962_v63  ;;  %v7123_v4 = vpop.f32.mrf.mxu3 }
 0x8f1   : > { %v6964_v47 = vadd.f32 %v13951_v59, %v6915_v39  ;;  %v9423_v59 = vld [vmem:[%s14895_s5 + $0xf8] sm:$0xff] }
 0x8f2   : > { %8549 = vst.msk [vmem:[%s13992_s24 + $0x30] sm:$0xff] %vm2459_vm1, %v7444_v7  ;;  %v7060_v51 = vadd.f32 %v13884_v21, %v7011_v9  ;;  %9367 = vmatmul.msk.f32.gmra.mxu2 %vm2459_vm1, %v15546_v5  ;;  %v15547_v21 = vld [vmem:[#allocation112_spill] sm:$0xff]  ;;  %7848 = vmatpush.msra.mxu3 %v9423_v59 }
 0x8f3   : > { %v6760_v61 = vadd.f32 %v15547_v21, %v13897_v16 }
 0x8f4   : > { %v7141_v43 = vadd.f32 %v7117_v49, %v7060_v51 }
 0x8f5   : > { %v7363_v33 = vpop.f32.mrf.mxu2  ;;  %v6818_v48 = vadd.f32 %v13833_v30, %v6760_v61  ;;  %v15549_v61 = vld [vmem:[#allocation67_spill] sm:$0xff] }
 0x8f6   : > { %v7177_v11 = vadd.f32 %v13696_v23, %v7141_v43  ;;  %v7364_v20 = vadd.f32 %v13977_v53, %v7363_v33 }
 0x8f7   : > { %v6990_v37 = vpop.f32.mrf.mxu1  ;;  %v6867_v16 = vadd.f32 %v14007_v12, %v6818_v48 }
 0x8f8   : > { %v7209_v13 = vmax.f32 %v7177_v11, 0.0  ;;  %v7445_v35 = vmax.f32 %v7364_v20, 0.0  ;;  %v7012_v63 = vadd.f32 %v6990_v37, %v6963_v58  ;;  %v7126_v33 = vpop.f32.mrf.mxu3 }
 0x8f9   : > { %v6916_v12 = vadd.f32 %v13790_v62, %v6867_v16 }
 0x8fa   : > { %7481 = vst.msk [vmem:[#allocation2 + $0x11] sm:$0xff] %vm2459_vm1, %v7209_v13  ;;  %v7061_v28 = vadd.f32 %v13895_v27, %v7012_v63  ;;  %9368 = vmatmul.msk.f32.gmra.mxu2 %vm2459_vm1, %v7209_v13  ;;  %v15548_v27 = vld [vmem:[#allocation113_spill] sm:$0xff]  ;;  %v6766_v13 = vadd.f32 %v15549_v61, %v13926_v3 }
 0x8fb   : > { %8550 = vst.msk [vmem:[%s13992_s24 + $0x38] sm:$0xff] %vm2459_vm1, %v7445_v35  ;;  %v6763_v44 = vadd.f32 %v15548_v27, %v13915_v1  ;;  %v9376_v1 = vld [vmem:[%s14895_s5 + $0x40] sm:$0xff]  ;;  %v6965_v37 = vadd.f32 %v13965_v36, %v6916_v12  ;;  %v9422_v3 = vld [vmem:[%s14895_s5 + $0xf0] sm:$0xff] }
 0x8fc   : > { %v7142_v49 = vadd.f32 %v7120_v18, %v7061_v28  ;;  %7618 = vmatpush.msrb.mxu2 %v9376_v1  ;;  %7849 = vmatpush.msra.mxu3 %v9422_v3 }
 0x8fd   : > { %v7366_v19 = vpop.f32.mrf.mxu2  ;;  %v6819_v62 = vadd.f32 %v13852_v46, %v6763_v44 }
 0x8fe   : > { %v7178_v14 = vadd.f32 %v13696_v23, %v7142_v49  ;;  %v7367_v7 = vadd.f32 %v13977_v53, %v7366_v19 }
 0x8ff   : > { %v6993_v9 = vpop.f32.mrf.mxu1  ;;  %v6868_v11 = vadd.f32 %v14018_v57, %v6819_v62 }
 0x900   : > { %v7210_v51 = vmax.f32 %v7178_v14, 0.0  ;;  %v7446_v5 = vmax.f32 %v7367_v7, 0.0  ;;  %v7013_v42 = vadd.f32 %v6993_v9, %v6964_v47  ;;  %v7129_v48 = vpop.f32.mrf.mxu3  ;;  %v6769_v47 = vadd.f32 %v13678_v60, %v13940_v50  ;;  %v9420_v60 = vld [vmem:[%s14895_s5 + $0xe0] sm:$0xff] }
 0x901   : > { %v14136_v43 = vld [vmem:[#allocation2 + $0x10] sm:$0xff]  ;;  %v6917_v57 = vadd.f32 %v13816_v15, %v6868_v11  ;;  %v6820_v15 = vadd.f32 %v13872_v45, %v6766_v13 }
 0x902   : > { %v14138_v30 = vld [vmem:[#allocation2 + $0x11] sm:$0xff]  ;;  %7482 = vst.msk [vmem:[#allocation2 + $0x21] sm:$0xff] %vm2459_vm1, %v7210_v51  ;;  %v7062_v18 = vadd.f32 %v13913_v31, %v7013_v42  ;;  %9369 = vmatmul.msk.f32.gmra.mxu2 %vm2459_vm1, %v7210_v51  ;;  %9393 = vmatmul.msk.f32.gmra.mxu3 %vm2459_vm1, %v14136_v43 }
 0x903   : > { %8551 = vst.msk [vmem:[%s13992_s24 + $0x40] sm:$0xff] %vm2459_vm1, %v7446_v5  ;;  %9504 = vmatmul.msk.f32.vlgmr.msrb.gmra.mxu1 %vm2459_vm1, %v14138_v30  ;;  %v6869_v49 = vadd.f32 %v14037_v29, %v6820_v15  ;;  %v6966_v14 = vadd.f32 %v13986_v10, %v6917_v57  ;;  %v9421_v29 = vld [vmem:[%s14895_s5 + $0xe8] sm:$0xff] }
 0x904   : > { %v7143_v31 = vadd.f32 %v7123_v4, %v7062_v18  ;;  %7850 = vmatpush.msra.mxu3 %v9421_v29 }
 0x905   : > { %v7369_v34 = vpop.f32.mrf.mxu2  ;;  %v6918_v5 = vadd.f32 %v13836_v26, %v6869_v49  ;;  %v6821_v26 = vadd.f32 %v13888_v25, %v6769_v47  ;;  %v9418_v25 = vld [vmem:[%s14895_s5 + $0xd0] sm:$0xff] }
 0x906   : > { %v7179_v20 = vadd.f32 %v13696_v23, %v7143_v31  ;;  %v7370_v58 = vadd.f32 %v13977_v53, %v7369_v34  ;;  %7851 = vmatpush.msra.mxu3 %v9420_v60  ;;  %v6772_v31 = vadd.f32 %v13691_v32, %v13949_v8  ;;  %v9416_v32 = vld [vmem:[%s14895_s5 + $0xc0] sm:$0xff]  ;;  %v9407_v8 = vld [vmem:[%s14895_s5 + $0xb8] sm:$0xff] }
 0x907   : > { %v6996_v21 = vpop.f32.mrf.mxu1  ;;  %v6870_v12 = vadd.f32 %v14069_v17, %v6821_v26  ;;  %v6967_v59 = vadd.f32 %v14005_v6, %v6918_v5  ;;  %v9417_v6 = vld [vmem:[%s14895_s5 + $0xc8] sm:$0xff]  ;;  %7758 = vmatpush.msra.mxu2 %v9407_v8  ;;  %v9454_v8 = vld [vmem:[%s14895_s5 + $0x170] sm:$0xff] }
 0x908   : > { %v7211_v35 = vmax.f32 %v7179_v20, 0.0  ;;  %v7447_v63 = vmax.f32 %v7370_v58, 0.0  ;;  %v7014_v39 = vadd.f32 %v6996_v21, %v6965_v37 }
 0x909   : > { %v14163_v46 = vld [vmem:[#allocation2 + $0x20] sm:$0xff]  ;;  %v6919_v37 = vadd.f32 %v13854_v54, %v6870_v12  ;;  %v6822_v54 = vadd.f32 %v13909_v41, %v6772_v31  ;;  %v9403_v31 = vld [vmem:[%s14895_s5 + $0x98] sm:$0xff] }
 0x90a   : > { %v14165_v4 = vld [vmem:[#allocation2 + $0x21] sm:$0xff]  ;;  %7483 = vst.msk [vmem:[#allocation2 + $0x31] sm:$0xff] %vm2459_vm1, %v7211_v35  ;;  %v7063_v28 = vadd.f32 %v13924_v40, %v7014_v39  ;;  %9370 = vmatmul.msk.f32.gmra.mxu2 %vm2459_vm1, %v7211_v35  ;;  %9394 = vmatmul.msk.f32.gmra.mxu3 %vm2459_vm1, %v14163_v46 }
 0x90b   : > { %8552 = vst.msk [vmem:[%s13992_s24 + $0x48] sm:$0xff] %vm2459_vm1, %v7447_v63  ;;  %9505 = vmatmul.msk.f32.gmra.mxu1 %vm2459_vm1, %v14165_v4  ;;  %v6871_v13 = vadd.f32 %v14093_v38, %v6822_v54  ;;  %v6968_v39 = vadd.f32 %v14020_v52, %v6919_v37  ;;  %v9406_v52 = vld [vmem:[%s14895_s5 + $0xb0] sm:$0xff]  ;;  %v14314_v37 = vld [vmem:[#allocation2 + $0xa0] sm:$0xff] }
 0x90c   : > { %v7144_v36 = vadd.f32 %v7126_v33, %v7063_v28  ;;  %v7132_v33 = vpop.f32.mrf.mxu3  ;;  %7759 = vmatpush.msra.mxu2 %v9406_v52  ;;  %v9451_v52 = vld [vmem:[%s14895_s5 + $0x158] sm:$0xff] }
 0x90d   : > { %v7372_v40 = vpop.f32.mrf.mxu2 }
 0x90e   : > { %v7180_v19 = vadd.f32 %v13696_v23, %v7144_v36  ;;  %v7373_v16 = vadd.f32 %v13977_v53, %v7372_v40  ;;  %v6920_v40 = vadd.f32 %v13870_v2, %v6871_v13  ;;  %v14328_v13 = vld [vmem:[#allocation2 + $0xb0] sm:$0xff] }
 0x90f   : > { %v6999_v7 = vpop.f32.mrf.mxu1 }
 0x910   : > { %v7212_v9 = vmax.f32 %v7180_v19, 0.0  ;;  %v7448_v27 = vmax.f32 %v7373_v16, 0.0  ;;  %v7015_v44 = vadd.f32 %v6999_v7, %v6966_v14  ;;  %v6969_v16 = vadd.f32 %v14056_v0, %v6920_v40  ;;  %v9405_v0 = vld [vmem:[%s14895_s5 + $0xa8] sm:$0xff]  ;;  %v9452_v40 = vld [vmem:[%s14895_s5 + $0x160] sm:$0xff] }
 0x911   : > { %v14187_v45 = vld [vmem:[#allocation2 + $0x30] sm:$0xff]  ;;  %7760 = vmatpush.msra.mxu2 %v9405_v0 }
 0x912   : > { %v14189_v51 = vld [vmem:[#allocation2 + $0x31] sm:$0xff]  ;;  %7484 = vst.msk [vmem:[#allocation2 + $0x41] sm:$0xff] %vm2459_vm1, %v7212_v9  ;;  %v7064_v10 = vadd.f32 %v13936_v55, %v7015_v44  ;;  %9371 = vmatmul.msk.f32.gmra.mxu2 %vm2459_vm1, %v7212_v9  ;;  %9395 = vmatmul.msk.f32.gmra.mxu3 %vm2459_vm1, %v14187_v45 }
 0x913   : > { %8553 = vst.msk [vmem:[%s13992_s24 + $0x50] sm:$0xff] %vm2459_vm1, %v7448_v27  ;;  %9506 = vmatmul.msk.f32.gmra.mxu1 %vm2459_vm1, %v14189_v51  ;;  %v9419_v55 = vld [vmem:[%s14895_s5 + $0xd8] sm:$0xff] }
 0x914   : > { %v7145_v50 = vadd.f32 %v7129_v48, %v7064_v10  ;;  %7852 = vmatpush.msra.mxu3 %v9419_v55  ;;  %v7135_v36 = vpop.f32.mrf.mxu3 }
 0x915   : > { %v7375_v42 = vpop.f32.mrf.mxu2 }
 0x916   : > { %v7181_v18 = vadd.f32 %v13696_v23, %v7145_v50  ;;  %v7376_v1 = vadd.f32 %v13977_v53, %v7375_v42  ;;  %7853 = vmatpush.msra.mxu3 %v9418_v25 }
 0x917   : > { %v7002_v62 = vpop.f32.mrf.mxu1 }
 0x918   : > { %v7213_v34 = vmax.f32 %v7181_v18, 0.0  ;;  %v7449_v11 = vmax.f32 %v7376_v1, 0.0  ;;  %v7016_v17 = vadd.f32 %v7002_v62, %v6967_v59  ;;  %7854 = vmatpush.msra.mxu3 %v9417_v6  ;;  %v7562_v59 = vld [vmem:[#allocation2 + $0x90] sm:$0xff]  ;;  %v7799_v62 = vld [vmem:[#allocation2 + $0x120] sm:$0xff] }
 0x919   : > { %v14220_v20 = vld [vmem:[#allocation2 + $0x40] sm:$0xff] }
 0x91a   : > { %v14222_v58 = vld [vmem:[#allocation2 + $0x41] sm:$0xff]  ;;  %7485 = vst.msk [vmem:[#allocation2 + $0x51] sm:$0xff] %vm2459_vm1, %v7213_v34  ;;  %v7065_v21 = vadd.f32 %v13947_v56, %v7016_v17  ;;  %9372 = vmatmul.msk.f32.gmra.mxu2 %vm2459_vm1, %v7213_v34  ;;  %9396 = vmatmul.msk.f32.gmra.mxu3 %vm2459_vm1, %v14220_v20  ;;  %v9455_v34 = vld [vmem:[%s14895_s5 + $0x178] sm:$0xff] }
 0x91b   : > { %8554 = vst.msk [vmem:[%s13992_s24 + $0x58] sm:$0xff] %vm2459_vm1, %v7449_v11  ;;  %9507 = vmatmul.msk.f32.gmra.mxu1 %vm2459_vm1, %v14222_v58  ;;  %7855 = vmatpush.msra.mxu3 %v9416_v32  ;;  %v9402_v32 = vld [vmem:[%s14895_s5 + $0x90] sm:$0xff] }
 0x91c   : > { %v7146_v56 = vadd.f32 %v7132_v33, %v7065_v21  ;;  %v7138_v29 = vpop.f32.mrf.mxu3  ;;  %v7800_v21 = vld [vmem:[#allocation2 + $0x130] sm:$0xff] }
 0x91d   : > { %v7378_v61 = vpop.f32.mrf.mxu2  ;;  %8028 = vmatpush.msrb.mxu3 %v9455_v34  ;;  %v9436_v34 = vld [vmem:[%s14895_s5 + $0x120] sm:$0xff] }
 0x91e   : > { %v7182_v35 = vadd.f32 %v13696_v23, %v7146_v56  ;;  %v7379_v63 = vadd.f32 %v13977_v53, %v7378_v61 }
 0x91f   : > { %v7005_v57 = vpop.f32.mrf.mxu1  ;;  %8029 = vmatpush.msrb.mxu3 %v9454_v8  ;;  %v9435_v8 = vld [vmem:[%s14895_s5 + $0x118] sm:$0xff] }
 0x920   : > { %v7214_v28 = vmax.f32 %v7182_v35, 0.0  ;;  %v7450_v3 = vmax.f32 %v7379_v63, 0.0  ;;  %v7017_v15 = vadd.f32 %v7005_v57, %v6968_v39  ;;  %v7801_v35 = vld [vmem:[#allocation2 + $0x140] sm:$0xff]  ;;  %v9401_v63 = vld [vmem:[%s14895_s5 + $0x88] sm:$0xff] }
 0x921   : > { %v14248_v48 = vld [vmem:[#allocation2 + $0x50] sm:$0xff]  ;;  %v9453_v39 = vld [vmem:[%s14895_s5 + $0x168] sm:$0xff] }
 0x922   : > { %v14250_v41 = vld [vmem:[#allocation2 + $0x51] sm:$0xff]  ;;  %7486 = vst.msk [vmem:[#allocation2 + $0x61] sm:$0xff] %vm2459_vm1, %v7214_v28  ;;  %v7066_v38 = vadd.f32 %v13958_v22, %v7017_v15  ;;  %9373 = vmatmul.msk.f32.gmra.mxu2 %vm2459_vm1, %v7214_v28  ;;  %9397 = vmatmul.msk.f32.gmra.mxu3 %vm2459_vm1, %v14248_v48  ;;  %v14342_v15 = vld [vmem:[#allocation2 + $0xc0] sm:$0xff] }
 0x923   : > { %8555 = vst.msk [vmem:[%s13992_s24 + $0x60] sm:$0xff] %vm2459_vm1, %v7450_v3  ;;  %9508 = vmatmul.msk.f32.gmra.mxu1 %vm2459_vm1, %v14250_v41  ;;  %8030 = vmatpush.msrb.mxu3 %v9453_v39  ;;  %v7980_v39 = vld [vmem:[#allocation2 + $0x131] sm:$0xff] }
 0x924   : > { %v7147_v2 = vadd.f32 %v7135_v36, %v7066_v38  ;;  %v7802_v36 = vld [vmem:[#allocation2 + $0x150] sm:$0xff]  ;;  %v9400_v38 = vld [vmem:[%s14895_s5 + $0x80] sm:$0xff] }
 0x925   : > { %v7381_v49 = vpop.f32.mrf.mxu2  ;;  %8031 = vmatpush.msrb.mxu3 %v9452_v40 }
 0x926   : > { %v7183_v22 = vadd.f32 %v13696_v23, %v7147_v2  ;;  %v7382_v19 = vadd.f32 %v13977_v53, %v7381_v49 }
 0x927   : > { %v7008_v14 = vpop.f32.mrf.mxu1  ;;  %8032 = vmatpush.msrb.mxu3 %v9451_v52  ;;  %v9433_v52 = vld [vmem:[%s14895_s5 + $0x108] sm:$0xff] }
 0x928   : > { %v7215_v7 = vmax.f32 %v7183_v22, 0.0  ;;  %v7451_v47 = vmax.f32 %v7382_v19, 0.0  ;;  %v7018_v9 = vadd.f32 %v7008_v14, %v6969_v16  ;;  %v9450_v22 = vld [vmem:[%s14895_s5 + $0x150] sm:$0xff]  ;;  %v7803_v14 = vld [vmem:[#allocation2 + $0x160] sm:$0xff] }
 0x929   : > { %v14268_v27 = vld [vmem:[#allocation2 + $0x60] sm:$0xff]  ;;  %8033 = vmatpush.msrb.mxu3 %v9450_v22  ;;  %v14362_v16 = vld [vmem:[#allocation2 + $0xd0] sm:$0xff] }
 0x92a   : > { %v14270_v44 = vld [vmem:[#allocation2 + $0x61] sm:$0xff]  ;;  %7487 = vst.msk [vmem:[#allocation2 + $0x71] sm:$0xff] %vm2459_vm1, %v7215_v7  ;;  %v7067_v5 = vadd.f32 %v13967_v24, %v7018_v9  ;;  %9374 = vmatmul.msk.f32.gmra.mxu2 %vm2459_vm1, %v7215_v7  ;;  %9398 = vmatmul.msk.f32.gmra.mxu3 %vm2459_vm1, %v14268_v27  ;;  %v9439_v9 = vld [vmem:[%s14895_s5 + $0x138] sm:$0xff] }
 0x92b   : > { %8556 = vst.msk [vmem:[%s13992_s24 + $0x68] sm:$0xff] %vm2459_vm1, %v7451_v47  ;;  %9509 = vmatmul.msk.f32.gmra.mxu1 %vm2459_vm1, %v14270_v44  ;;  %v9449_v7 = vld [vmem:[%s14895_s5 + $0x148] sm:$0xff]  ;;  %v9448_v47 = vld [vmem:[%s14895_s5 + $0x140] sm:$0xff] }
 0x92c   : > { %v7148_v10 = vadd.f32 %v7138_v29, %v7067_v5  ;;  %8034 = vmatpush.msrb.mxu3 %v9449_v7  ;;  %v7982_v7 = vld [vmem:[#allocation2 + $0x151] sm:$0xff] }
 0x92d   : > { %v7384_v60 = vpop.f32.mrf.mxu2 }
 0x92e   : > { %v7184_v24 = vadd.f32 %v13696_v23, %v7148_v10  ;;  %v7385_v26 = vadd.f32 %v13977_v53, %v7384_v60  ;;  %v9404_v23 = vld [vmem:[%s14895_s5 + $0xa0] sm:$0xff]  ;;  %8035 = vmatpush.msrb.mxu3 %v9448_v47  ;;  %v7804_v60 = vld [vmem:[#allocation2 + $0x170] sm:$0xff] }
 0x92f   : > { %7761 = vmatpush.msra.mxu2 %v9404_v23  ;;  %v14379_v10 = vld [vmem:[#allocation2 + $0xe0] sm:$0xff]  ;;  %v14390_v23 = vld [vmem:[#allocation2 + $0xf0] sm:$0xff] }
 0x930   : > { %v7216_v50 = vmax.f32 %v7184_v24, 0.0  ;;  %v7452_v55 = vmax.f32 %v7385_v26, 0.0  ;;  %v9438_v24 = vld [vmem:[%s14895_s5 + $0x130] sm:$0xff]  ;;  %v9432_v47 = vld [vmem:[%s14895_s5 + $0x100] sm:$0xff] }
 0x931   : > { %v14286_v42 = vld [vmem:[#allocation2 + $0x70] sm:$0xff]  ;;  %7762 = vmatpush.msra.mxu2 %v9403_v31 }
 0x932   : > { %v14288_v12 = vld [vmem:[#allocation2 + $0x71] sm:$0xff]  ;;  %7488 = vst.msk [vmem:[#allocation2 + $0x81] sm:$0xff] %vm2459_vm1, %v7216_v50  ;;  %9375 = vmatmul.msk.f32.gmra.mxu2 %vm2459_vm1, %v7216_v50  ;;  %9399 = vmatmul.msk.f32.gmra.mxu3 %vm2459_vm1, %v14286_v42 }
 0x933   : > { %8557 = vst.msk [vmem:[%s13992_s24 + $0x70] sm:$0xff] %vm2459_vm1, %v7452_v55  ;;  %9510 = vmatmul.msk.f32.gmra.mxu1 %vm2459_vm1, %v14288_v12  ;;  %7763 = vmatpush.msra.mxu2 %v9402_v32  ;;  %v7806_v31 = vld [vmem:[#allocation2 + $0x190] sm:$0xff]  ;;  %v7979_v32 = vld [vmem:[#allocation2 + $0x121] sm:$0xff] }
 0x935   : > { %v7387_v18 = vpop.f32.mrf.mxu2  ;;  %7764 = vmatpush.msra.mxu2 %v9401_v63 }
 0x936   : > { %v7388_v1 = vadd.f32 %v13977_v53, %v7387_v18  ;;  %v7805_v18 = vld [vmem:[#allocation2 + $0x180] sm:$0xff] }
 0x937   : > { %7765 = vmatpush.msra.mxu2 %v9400_v38 }
 0x938   : > { %v7453_v33 = vmax.f32 %v7388_v1, 0.0  ;;  %v9437_v1 = vld [vmem:[%s14895_s5 + $0x128] sm:$0xff] }
 0x939   : > { %v8256_v25 = vld [vmem:[#allocation2 + $0x81] sm:$0xff] }
 0x93a   : > { %8558 = vst.msk [vmem:[%s13992_s24 + $0x78] sm:$0xff] %vm2459_vm1, %v7453_v33  ;;  %9384 = vmatmul.msk.f32.vlgmr.msrb.gmra.mxu2 %vm2459_vm1, %v7562_v59  ;;  %9424 = vmatmul.msk.f32.vlgmr.msra.gmra.mxu3 %vm2459_vm1, %v7799_v62 }
 0x93b   : > { %9511 = vmatmul.msk.f32.gmra.mxu1 %vm2459_vm1, %v8256_v25  ;;  %7938 = vmatpush.msrb.mxu2 %v9439_v9  ;;  %v14401_v25 = vld [vmem:[#allocation2 + $0x100] sm:$0xff]  ;;  %v9467_v9 = vld [vmem:[%s14895_s5 + $0x198] sm:$0xff] }
 0x93d   : > { %v7390_v11 = vpop.f32.mrf.mxu2  ;;  %7939 = vmatpush.msrb.mxu2 %v9438_v24  ;;  %v7983_v24 = vld [vmem:[#allocation2 + $0x161] sm:$0xff] }
 0x93e   : > { %v7391_v17 = vadd.f32 %v13977_v53, %v7390_v11 }
 0x93f   : > { %7940 = vmatpush.msrb.mxu2 %v9437_v1 }
 0x940   : > { %v7454_v6 = vmax.f32 %v7391_v17, 0.0 }
 0x941   : > { %7941 = vmatpush.msrb.mxu2 %v9436_v34 }
 0x942   : > { %8559 = vst.msk [vmem:[%s13992_s24 + $0x80] sm:$0xff] %vm2459_vm1, %v7454_v6  ;;  %9385 = vmatmul.msk.f32.gmra.mxu2 %vm2459_vm1, %v14314_v37  ;;  %9425 = vmatmul.msk.f32.gmra.mxu3 %vm2459_vm1, %v7800_v21  ;;  %v7709_v6 = vld [vmem:[#allocation2 + $0x1] sm:$0xff] }
 0x943   : > { %7942 = vmatpush.msrb.mxu2 %v9435_v8 }
 0x945   : > { %v7393_v54 = vpop.f32.mrf.mxu2 }
 0x946   : > { %v7394_v56 = vadd.f32 %v13977_v53, %v7393_v54  ;;  %v9471_v54 = vld [vmem:[%s14895_s5 + $0x1b8] sm:$0xff] }
 0x947   : > { %9520 = vmatpush.msra.mxu3 %v9471_v54 }
 0x948   : > { %v7455_v61 = vmax.f32 %v7394_v56, 0.0 }
 0x94a   : > { %8560 = vst.msk [vmem:[%s13992_s24 + $0x88] sm:$0xff] %vm2459_vm1, %v7455_v61  ;;  %9386 = vmatmul.msk.f32.gmra.mxu2 %vm2459_vm1, %v14328_v13  ;;  %9426 = vmatmul.msk.f32.gmra.mxu3 %vm2459_vm1, %v7801_v35 }
 0x94d   : > { %v7396_v57 = vpop.f32.mrf.mxu2 }
 0x94e   : > { %v7397_v28 = vadd.f32 %v13977_v53, %v7396_v57  ;;  %v9434_v57 = vld [vmem:[%s14895_s5 + $0x110] sm:$0xff] }
 0x94f   : > { %7943 = vmatpush.msrb.mxu2 %v9434_v57 }
 0x950   : > { %v7456_v3 = vmax.f32 %v7397_v28, 0.0  ;;  %v9470_v28 = vld [vmem:[%s14895_s5 + $0x1b0] sm:$0xff] }
 0x951   : > { %9521 = vmatpush.msra.mxu3 %v9470_v28  ;;  %7944 = vmatpush.msrb.mxu2 %v9433_v52 }
 0x952   : > { %8561 = vst.msk [vmem:[%s13992_s24 + $0x90] sm:$0xff] %vm2459_vm1, %v7456_v3  ;;  %9387 = vmatmul.msk.f32.gmra.mxu2 %vm2459_vm1, %v14342_v15  ;;  %9427 = vmatmul.msk.f32.gmra.mxu3 %vm2459_vm1, %v7802_v36 }
 0x953   : > { %7945 = vmatpush.msrb.mxu2 %v9432_v47  ;;  %v7892_v47 = vld [vmem:[#allocation2 + $0x1e0] sm:$0xff] }
 0x955   : > { %v7399_v2 = vpop.f32.mrf.mxu2 }
 0x956   : > { %v7400_v49 = vadd.f32 %v13977_v53, %v7399_v2  ;;  %v9469_v2 = vld [vmem:[%s14895_s5 + $0x1a8] sm:$0xff] }
 0x957   : > { %9522 = vmatpush.msra.mxu3 %v9469_v2 }
 0x958   : > { %v7457_v19 = vmax.f32 %v7400_v49, 0.0 }
 0x95a   : > { %8562 = vst.msk [vmem:[%s13992_s24 + $0x98] sm:$0xff] %vm2459_vm1, %v7457_v19  ;;  %9388 = vmatmul.msk.f32.gmra.mxu2 %vm2459_vm1, %v14362_v16  ;;  %9428 = vmatmul.msk.f32.gmra.mxu3 %vm2459_vm1, %v7803_v14 }
 0x95c   : > { %v14422_v56 = vpop.f32.mrf.mxu3 }
 0x95d   : > { %v7402_v29 = vpop.f32.mrf.mxu2 }
 0x95e   : > { %v7403_v5 = vadd.f32 %v13977_v53, %v7402_v29 }
 0x960   : > { %v7458_v0 = vmax.f32 %v7403_v5, 0.0 }
 0x962   : > { %8563 = vst.msk [vmem:[%s13992_s24 + $0xa0] sm:$0xff] %vm2459_vm1, %v7458_v0  ;;  %9389 = vmatmul.msk.f32.gmra.mxu2 %vm2459_vm1, %v14379_v10  ;;  %9429 = vmatmul.msk.f32.gmra.mxu3 %vm2459_vm1, %v7804_v60  ;;  %v9466_v0 = vld [vmem:[%s14895_s5 + $0x190] sm:$0xff] }
 0x965   : > { %v7405_v26 = vpop.f32.mrf.mxu2 }
 0x966   : > { %v7406_v50 = vadd.f32 %v13977_v53, %v7405_v26  ;;  %v9465_v26 = vld [vmem:[%s14895_s5 + $0x188] sm:$0xff] }
 0x968   : > { %v7459_v55 = vmax.f32 %v7406_v50, 0.0  ;;  %v9464_v50 = vld [vmem:[%s14895_s5 + $0x180] sm:$0xff] }
 0x96a   : > { %8564 = vst.msk [vmem:[%s13992_s24 + $0xa8] sm:$0xff] %vm2459_vm1, %v7459_v55  ;;  %9390 = vmatmul.msk.f32.gmra.mxu2 %vm2459_vm1, %v14390_v23  ;;  %9430 = vmatmul.msk.f32.gmra.mxu3 %vm2459_vm1, %v7805_v18 }
 0x96d   : > { %v7408_v59 = vpop.f32.mrf.mxu2 }
 0x96e   : > { %v7409_v33 = vadd.f32 %v13977_v53, %v7408_v59 }
 0x970   : > { %v7460_v62 = vmax.f32 %v7409_v33, 0.0  ;;  %v7984_v33 = vld [vmem:[#allocation2 + $0x171] sm:$0xff] }
 0x972   : > { %8565 = vst.msk [vmem:[%s13992_s24 + $0xb0] sm:$0xff] %vm2459_vm1, %v7460_v62  ;;  %9391 = vmatmul.msk.f32.gmra.mxu2 %vm2459_vm1, %v14401_v25  ;;  %9431 = vmatmul.msk.f32.gmra.mxu3 %vm2459_vm1, %v7806_v31 }
 0x975   : > { %v7411_v11 = vpop.f32.mrf.mxu2 }
 0x976   : > { %v7412_v17 = vadd.f32 %v13977_v53, %v7411_v11  ;;  %v7985_v11 = vld [vmem:[#allocation2 + $0x181] sm:$0xff] }
 0x978   : > { %v7461_v21 = vmax.f32 %v7412_v17, 0.0 }
 0x97a   : > { %8566 = vst.msk [vmem:[%s13992_s24 + $0xb8] sm:$0xff] %vm2459_vm1, %v7461_v21  ;;  %9408 = vmatmul.msk.f32.vlgmr.msra.gmra.mxu2 %vm2459_vm1, %v7709_v6  ;;  %9456 = vmatmul.msk.f32.vlgmr.msrb.gmra.mxu3 %vm2459_vm1, %v7979_v32  ;;  %v9486_v32 = vld [vmem:[%s14895_s5 + $0x1f0] sm:$0xff] }
 0x97b   : > { %8118 = vmatpush.msra.mxu2 %v9471_v54  ;;  %v9484_v54 = vld [vmem:[%s14895_s5 + $0x1e0] sm:$0xff] }
 0x97d   : > { %v7414_v61 = vpop.f32.mrf.mxu2  ;;  %8119 = vmatpush.msra.mxu2 %v9470_v28  ;;  %v9482_v28 = vld [vmem:[%s14895_s5 + $0x1d0] sm:$0xff] }
 0x97e   : > { %v7415_v35 = vadd.f32 %v13977_v53, %v7414_v61  ;;  %v7986_v61 = vld [vmem:[#allocation2 + $0x191] sm:$0xff] }
 0x97f   : > { %8120 = vmatpush.msra.mxu2 %v9469_v2  ;;  %v7890_v2 = vld [vmem:[#allocation2 + $0x1c0] sm:$0xff] }
 0x980   : > { %v7462_v63 = vmax.f32 %v7415_v35, 0.0  ;;  %v9483_v35 = vld [vmem:[%s14895_s5 + $0x1d8] sm:$0xff] }
 0x982   : > { %8567 = vst.msk [vmem:[%s13992_s24 + $0xc0] sm:$0xff] %vm2459_vm1, %v7462_v63  ;;  %9409 = vmatmul.msk.f32.gmra.mxu2 %vm2459_vm1, %v14138_v30  ;;  %9457 = vmatmul.msk.f32.gmra.mxu3 %vm2459_vm1, %v7980_v39  ;;  %v7981_v30 = vld [vmem:[#allocation2 + $0x141] sm:$0xff] }
 0x985   : > { %v7417_v3 = vpop.f32.mrf.mxu2  ;;  %v14436_v36 = vpop.f32.mrf.mxu3 }
 0x986   : > { %v7418_v40 = vadd.f32 %v13977_v53, %v7417_v3 }
 0x988   : > { %v7463_v38 = vmax.f32 %v7418_v40, 0.0  ;;  %v9480_v40 = vld [vmem:[%s14895_s5 + $0x1c0] sm:$0xff] }
 0x98a   : > { %8568 = vst.msk [vmem:[%s13992_s24 + $0xc8] sm:$0xff] %vm2459_vm1, %v7463_v38  ;;  %9410 = vmatmul.msk.f32.gmra.mxu2 %vm2459_vm1, %v14165_v4  ;;  %9458 = vmatmul.msk.f32.gmra.mxu3 %vm2459_vm1, %v7981_v30  ;;  %v9468_v4 = vld [vmem:[%s14895_s5 + $0x1a0] sm:$0xff]  ;;  %v7889_v38 = vld [vmem:[#allocation2 + $0x1b0] sm:$0xff] }
 0x98b   : > { %9523 = vmatpush.msra.mxu3 %v9468_v4  ;;  %8121 = vmatpush.msra.mxu2 %v9468_v4 }
 0x98d   : > { %v7420_v49 = vpop.f32.mrf.mxu2  ;;  %v14450_v22 = vpop.f32.mrf.mxu3  ;;  %9524 = vmatpush.msra.mxu3 %v9467_v9  ;;  %8122 = vmatpush.msra.mxu2 %v9467_v9  ;;  %v8076_v9 = vld [vmem:[#allocation2 + $0x80] sm:$0xff] }
 0x98e   : > { %v7421_v19 = vadd.f32 %v13977_v53, %v7420_v49 }
 0x98f   : > { %9525 = vmatpush.msra.mxu3 %v9466_v0  ;;  %8123 = vmatpush.msra.mxu2 %v9466_v0 }
 0x990   : > { %v7464_v14 = vmax.f32 %v7421_v19, 0.0 }
 0x991   : > { %9526 = vmatpush.msra.mxu3 %v9465_v26  ;;  %8124 = vmatpush.msra.mxu2 %v9465_v26  ;;  %v7895_v26 = vld [vmem:[#allocation2 + $0x210] sm:$0xff] }
 0x992   : > { %8569 = vst.msk [vmem:[%s13992_s24 + $0xd0] sm:$0xff] %vm2459_vm1, %v7464_v14  ;;  %9411 = vmatmul.msk.f32.gmra.mxu2 %vm2459_vm1, %v14189_v51  ;;  %9459 = vmatmul.msk.f32.gmra.mxu3 %vm2459_vm1, %v7982_v7  ;;  %v7891_v7 = vld [vmem:[#allocation2 + $0x1d0] sm:$0xff] }
 0x993   : > { %9527 = vmatpush.msra.mxu3 %v9464_v50  ;;  %8125 = vmatpush.msra.mxu2 %v9464_v50  ;;  %v7896_v50 = vld [vmem:[#allocation2 + $0x220] sm:$0xff] }
 0x995   : > { %v7423_v29 = vpop.f32.mrf.mxu2  ;;  %v14467_v51 = vpop.f32.mrf.mxu3 }
 0x996   : > { %v7424_v5 = vadd.f32 %v13977_v53, %v7423_v29 }
 0x998   : > { %v7465_v60 = vmax.f32 %v7424_v5, 0.0  ;;  %v7893_v5 = vld [vmem:[#allocation2 + $0x1f0] sm:$0xff] }
 0x99a   : > { %8570 = vst.msk [vmem:[%s13992_s24 + $0xd8] sm:$0xff] %vm2459_vm1, %v7465_v60  ;;  %9412 = vmatmul.msk.f32.gmra.mxu2 %vm2459_vm1, %v14222_v58  ;;  %9460 = vmatmul.msk.f32.gmra.mxu3 %vm2459_vm1, %v7983_v24 }
 0x99d   : > { %v7426_v55 = vpop.f32.mrf.mxu2  ;;  %v14484_v18 = vpop.f32.mrf.mxu3 }
 0x99e   : > { %v7427_v1 = vadd.f32 %v13977_v53, %v7426_v55 }
 0x9a0   : > { %v7466_v59 = vmax.f32 %v7427_v1, 0.0 }
 0x9a2   : > { %8571 = vst.msk [vmem:[%s13992_s24 + $0xe0] sm:$0xff] %vm2459_vm1, %v7466_v59  ;;  %9413 = vmatmul.msk.f32.gmra.mxu2 %vm2459_vm1, %v14250_v41  ;;  %9461 = vmatmul.msk.f32.gmra.mxu3 %vm2459_vm1, %v7984_v33  ;;  %v9487_v41 = vld [vmem:[%s14895_s5 + $0x1f8] sm:$0xff] }
 0x9a3   : > { %8208 = vmatpush.msrb.mxu3 %v9487_v41  ;;  %v8166_v41 = vld [vmem:[#allocation2 + $0x110] sm:$0xff] }
 0x9a5   : > { %v7429_v58 = vpop.f32.mrf.mxu2  ;;  %v14492_v62 = vpop.f32.mrf.mxu3  ;;  %8209 = vmatpush.msrb.mxu3 %v9486_v32 }
 0x9a6   : > { %v7430_v31 = vadd.f32 %v13977_v53, %v7429_v58 }
 0x9a8   : > { %v7467_v34 = vmax.f32 %v7430_v31, 0.0 }
 0x9aa   : > { %8572 = vst.msk [vmem:[%s13992_s24 + $0xe8] sm:$0xff] %vm2459_vm1, %v7467_v34  ;;  %9414 = vmatmul.msk.f32.gmra.mxu2 %vm2459_vm1, %v14270_v44  ;;  %9462 = vmatmul.msk.f32.gmra.mxu3 %vm2459_vm1, %v7985_v11  ;;  %v9485_v44 = vld [vmem:[%s14895_s5 + $0x1e8] sm:$0xff] }
 0x9ab   : > { %8210 = vmatpush.msrb.mxu3 %v9485_v44 }
 0x9ad   : > { %v7432_v17 = vpop.f32.mrf.mxu2  ;;  %v14503_v6 = vpop.f32.mrf.mxu3  ;;  %8211 = vmatpush.msrb.mxu3 %v9484_v54 }
 0x9ae   : > { %v7433_v21 = vadd.f32 %v13977_v53, %v7432_v17 }
 0x9af   : > { %8212 = vmatpush.msrb.mxu3 %v9483_v35 }
 0x9b0   : > { %v7468_v8 = vmax.f32 %v7433_v21, 0.0 }
 0x9b1   : > { %8213 = vmatpush.msrb.mxu3 %v9482_v28 }
 0x9b2   : > { %8573 = vst.msk [vmem:[%s13992_s24 + $0xf0] sm:$0xff] %vm2459_vm1, %v7468_v8  ;;  %9415 = vmatmul.msk.f32.gmra.mxu2 %vm2459_vm1, %v14288_v12  ;;  %9463 = vmatmul.msk.f32.gmra.mxu3 %vm2459_vm1, %v7986_v61  ;;  %v9481_v12 = vld [vmem:[%s14895_s5 + $0x1c8] sm:$0xff] }
 0x9b3   : > { %8214 = vmatpush.msrb.mxu3 %v9481_v12 }
 0x9b5   : > { %v7435_v63 = vpop.f32.mrf.mxu2  ;;  %v14523_v39 = vpop.f32.mrf.mxu3  ;;  %8215 = vmatpush.msrb.mxu3 %v9480_v40  ;;  %v8384_v40 = vld [vmem:[%s14899_s9 + $0xc8] sm:$0xff] }
 0x9b6   : > { %v7436_v57 = vadd.f32 %v13977_v53, %v7435_v63  ;;  %v8390_v63 = vld [vmem:[%s14899_s9 + $0xf8] sm:$0xff] }
 0x9b8   : > { %v7469_v3 = vmax.f32 %v7436_v57, 0.0 }
 0x9ba   : > { %8574 = vst.msk [vmem:[%s13992_s24 + $0xf8] sm:$0xff] %vm2459_vm1, %v7469_v3  ;;  %9440 = vmatmul.msk.f32.vlgmr.msrb.gmra.mxu2 %vm2459_vm1, %v7889_v38  ;;  %9476 = vmatmul.msk.f32.vlgmr.msra.gmra.mxu3 %vm2459_vm1, %v14248_v48  ;;  %v8386_v3 = vld [vmem:[%s14899_s9 + $0xd8] sm:$0xff] }
 0x9bb   : > { %8438 = vmatpush.msra.mxu3 %v8390_v63  ;;  %v8362_v63 = vld [vmem:[%s14899_s9 + $0x18] sm:$0xff] }
 0x9bd   : > { %v7620_v53 = vpop.f32.mrf.mxu2  ;;  %v7857_v30 = vpop.f32.mrf.mxu3 }
 0x9be   : > { %v7686_v52 = vadd.f32 %v14422_v56, %v7620_v53 }
 0x9c2   : > { %9441 = vmatmul.msk.f32.gmra.mxu2 %vm2459_vm1, %v7890_v2  ;;  %9477 = vmatmul.msk.f32.gmra.mxu3 %vm2459_vm1, %v14268_v27 }
 0x9c5   : > { %v7623_v49 = vpop.f32.mrf.mxu2  ;;  %v7860_v19 = vpop.f32.mrf.mxu3 }
 0x9c6   : > { %v7689_v14 = vadd.f32 %v14436_v36, %v7623_v49 }
 0x9ca   : > { %9442 = vmatmul.msk.f32.gmra.mxu2 %vm2459_vm1, %v7891_v7  ;;  %9478 = vmatmul.msk.f32.gmra.mxu3 %vm2459_vm1, %v14286_v42 }
 0x9cd   : > { %v7626_v48 = vpop.f32.mrf.mxu2  ;;  %v7863_v4 = vpop.f32.mrf.mxu3 }
 0x9ce   : > { %v7692_v56 = vadd.f32 %v14450_v22, %v7626_v48  ;;  %v7894_v22 = vld [vmem:[#allocation2 + $0x200] sm:$0xff]  ;;  %v8389_v48 = vld [vmem:[%s14899_s9 + $0xf0] sm:$0xff] }
 0x9cf   : > { %8397 = vmatpush.msrb.mxu2 %v8389_v48 }
 0x9d2   : > { %9443 = vmatmul.msk.f32.gmra.mxu2 %vm2459_vm1, %v7892_v47  ;;  %9479 = vmatmul.msk.f32.gmra.mxu3 %vm2459_vm1, %v8076_v9  ;;  %v8372_v47 = vld [vmem:[%s14899_s9 + $0x68] sm:$0xff]  ;;  %v8385_v9 = vld [vmem:[%s14899_s9 + $0xd0] sm:$0xff] }
 0x9d5   : > { %v7629_v27 = vpop.f32.mrf.mxu2  ;;  %v7866_v29 = vpop.f32.mrf.mxu3 }
 0x9d6   : > { %v7695_v36 = vadd.f32 %v14467_v51, %v7629_v27 }
 0x9da   : > { %9444 = vmatmul.msk.f32.gmra.mxu2 %vm2459_vm1, %v7893_v5  ;;  %9488 = vmatmul.msk.f32.vlgmr.msrb.gmra.mxu3 %vm2459_vm1, %v14314_v37  ;;  %v8381_v5 = vld [vmem:[%s14899_s9 + $0xb0] sm:$0xff] }
 0x9dd   : > { %v7632_v42 = vpop.f32.mrf.mxu2  ;;  %v14555_v0 = vpop.f32.mrf.mxu3 }
 0x9e2   : > { %9445 = vmatmul.msk.f32.gmra.mxu2 %vm2459_vm1, %v7894_v22  ;;  %9489 = vmatmul.msk.f32.gmra.mxu3 %vm2459_vm1, %v14328_v13  ;;  %v8368_v22 = vld [vmem:[%s14899_s9 + $0x48] sm:$0xff] }
 0x9e5   : > { %v7635_v60 = vpop.f32.mrf.mxu2  ;;  %v14560_v24 = vpop.f32.mrf.mxu3 }
 0x9e6   : > { %v7701_v54 = vadd.f32 %v14492_v62, %v7635_v60  ;;  %v8379_v60 = vld [vmem:[%s14899_s9 + $0xa0] sm:$0xff] }
 0x9ea   : > { %9446 = vmatmul.msk.f32.gmra.mxu2 %vm2459_vm1, %v7895_v26  ;;  %9490 = vmatmul.msk.f32.gmra.mxu3 %vm2459_vm1, %v14342_v15  ;;  %v8377_v26 = vld [vmem:[%s14899_s9 + $0x90] sm:$0xff] }
 0x9ed   : > { %v7638_v51 = vpop.f32.mrf.mxu2  ;;  %v14565_v37 = vpop.f32.mrf.mxu3 }
 0x9ee   : > { %v7704_v57 = vadd.f32 %v14503_v6, %v7638_v51  ;;  %v8382_v6 = vld [vmem:[%s14899_s9 + $0xb8] sm:$0xff] }
 0x9f2   : > { %9447 = vmatmul.msk.f32.gmra.mxu2 %vm2459_vm1, %v7896_v50  ;;  %9491 = vmatmul.msk.f32.gmra.mxu3 %vm2459_vm1, %v14362_v16 }
 0x9f5   : > { %v7641_v55 = vpop.f32.mrf.mxu2  ;;  %v14570_v13 = vpop.f32.mrf.mxu3 }
 0x9f6   : > { %v7707_v38 = vadd.f32 %v14523_v39, %v7641_v55  ;;  %v8378_v39 = vld [vmem:[%s14899_s9 + $0x98] sm:$0xff]  ;;  %v8375_v55 = vld [vmem:[%s14899_s9 + $0x80] sm:$0xff] }
 0x9fa   : > { %9472 = vmatmul.msk.f32.vlgmr.msra.gmra.mxu2 %vm2459_vm1, %v14136_v43  ;;  %9492 = vmatmul.msk.f32.gmra.mxu3 %vm2459_vm1, %v14379_v10 }
 0x9fd   : > { %v7767_v1 = vpop.f32.mrf.mxu2  ;;  %v14576_v15 = vpop.f32.mrf.mxu3 }
 0x9fe   : > { %v7791_v59 = vadd.f32 %v7767_v1, %v7686_v52  ;;  %v8380_v52 = vld [vmem:[%s14899_s9 + $0xa8] sm:$0xff]  ;;  %v8373_v1 = vld [vmem:[%s14899_s9 + $0x70] sm:$0xff] }
 0xa00   : > { %v14578_v33 = vadd.f32 %v7857_v30, %v7791_v59  ;;  %v8366_v59 = vld [vmem:[%s14899_s9 + $0x38] sm:$0xff] }
 0xa02   : > { %9473 = vmatmul.msk.f32.gmra.mxu2 %vm2459_vm1, %v14163_v46  ;;  %9493 = vmatmul.msk.f32.gmra.mxu3 %vm2459_vm1, %v14390_v23 }
 0xa05   : > { %v7770_v16 = vpop.f32.mrf.mxu2  ;;  %v14584_v58 = vpop.f32.mrf.mxu3 }
 0xa06   : > { %v7792_v31 = vadd.f32 %v7770_v16, %v7689_v14  ;;  %v8364_v16 = vld [vmem:[%s14899_s9 + $0x28] sm:$0xff] }
 0xa08   : > { %v14586_v43 = vadd.f32 %v7860_v19, %v7792_v31  ;;  %v8376_v19 = vld [vmem:[%s14899_s9 + $0x88] sm:$0xff]  ;;  %v8371_v31 = vld [vmem:[%s14899_s9 + $0x60] sm:$0xff] }
 0xa0a   : > { %9474 = vmatmul.msk.f32.gmra.mxu2 %vm2459_vm1, %v14187_v45  ;;  %9494 = vmatmul.msk.f32.gmra.mxu3 %vm2459_vm1, %v14401_v25  ;;  %v7698_v25 = vadd.f32 %v14484_v18, %v7632_v42  ;;  %v8388_v18 = vld [vmem:[%s14899_s9 + $0xe8] sm:$0xff]  ;;  %v8370_v42 = vld [vmem:[%s14899_s9 + $0x58] sm:$0xff] }
 0xa0b   : > { %8439 = vmatpush.msra.mxu3 %v8388_v18  ;;  %v8361_v18 = vld [vmem:[%s14899_s9 + $0x10] sm:$0xff] }
 0xa0d   : > { %v7773_v10 = vpop.f32.mrf.mxu2  ;;  %v14592_v34 = vpop.f32.mrf.mxu3  ;;  %8440 = vmatpush.msra.mxu3 %v8386_v3 }
 0xa0e   : > { %v7793_v11 = vadd.f32 %v7773_v10, %v7692_v56  ;;  %v8387_v56 = vld [vmem:[%s14899_s9 + $0xe0] sm:$0xff] }
 0xa0f   : > { %8441 = vmatpush.msra.mxu3 %v8384_v40  ;;  %8398 = vmatpush.msrb.mxu2 %v8387_v56 }
 0xa10   : > { %v14594_v46 = vadd.f32 %v7863_v4, %v7793_v11  ;;  %v8374_v4 = vld [vmem:[%s14899_s9 + $0x78] sm:$0xff]  ;;  %v8369_v11 = vld [vmem:[%s14899_s9 + $0x50] sm:$0xff] }
 0xa11   : > { %8442 = vmatpush.msra.mxu3 %v8382_v6  ;;  %8399 = vmatpush.msrb.mxu2 %v8385_v9 }
 0xa12   : > { %9475 = vmatmul.msk.f32.gmra.mxu2 %vm2459_vm1, %v14220_v20  ;;  %9495 = vmatmul.msk.f32.gmra.mxu3 %vm2459_vm1, %v8166_v41 }
 0xa13   : > { %8443 = vmatpush.msra.mxu3 %v8380_v52 }
 0xa15   : > { %v7776_v23 = vpop.f32.mrf.mxu2  ;;  %v14599_v17 = vpop.f32.mrf.mxu3  ;;  %8444 = vmatpush.msra.mxu3 %v8378_v39 }
 0xa16   : > { %v7794_v21 = vadd.f32 %v7776_v23, %v7695_v36  ;;  %v8383_v36 = vld [vmem:[%s14899_s9 + $0xc0] sm:$0xff] }
 0xa17   : > { %8445 = vmatpush.msra.mxu3 %v8376_v19  ;;  %8400 = vmatpush.msrb.mxu2 %v8383_v36 }
 0xa18   : > { %v14601_v45 = vadd.f32 %v7866_v29, %v7794_v21 }
 0xa19   : > { %8446 = vmatpush.msra.mxu3 %v8374_v4  ;;  %8401 = vmatpush.msrb.mxu2 %v8381_v5 }
 0xa1b   : > { %8447 = vmatpush.msra.mxu3 %v8372_v47  ;;  %8402 = vmatpush.msrb.mxu2 %v8379_v60 }
 0xa1d   : > { %v7779_v32 = vpop.f32.mrf.mxu2  ;;  %v14604_v44 = vpop.f32.mrf.mxu3  ;;  %8448 = vmatpush.msra.mxu3 %v8370_v42  ;;  %8403 = vmatpush.msrb.mxu2 %v8377_v26 }
 0xa1e   : > { %v14606_v8 = vadd.f32 %v7779_v32, %v7698_v25  ;;  %v8367_v32 = vld [vmem:[%s14899_s9 + $0x40] sm:$0xff] }
 0xa1f   : > { %8449 = vmatpush.msra.mxu3 %v8368_v22  ;;  %8404 = vmatpush.msrb.mxu2 %v8375_v55 }
 0xa20   : > { %v7885_v10 = vadd.f32 %v14555_v0, %v14606_v8  ;;  %v8365_v0 = vld [vmem:[%s14899_s9 + $0x30] sm:$0xff] }
 0xa21   : > { %8450 = vmatpush.msra.mxu3 %v8366_v59  ;;  %8405 = vmatpush.msrb.mxu2 %v8373_v1 }
 0xa23   : > { %8451 = vmatpush.msra.mxu3 %v8364_v16  ;;  %8406 = vmatpush.msrb.mxu2 %v8371_v31 }
 0xa25   : > { %v7782_v61 = vpop.f32.mrf.mxu2  ;;  %v14609_v35 = vpop.f32.mrf.mxu3  ;;  %8407 = vmatpush.msrb.mxu2 %v8369_v11  ;;  %8452 = vmatpush.msra.mxu3 %v8362_v63 }
 0xa26   : > { %v14611_v20 = vadd.f32 %v7782_v61, %v7701_v54  ;;  %v8363_v61 = vld [vmem:[%s14899_s9 + $0x20] sm:$0xff] }
 0xa27   : > { %8408 = vmatpush.msrb.mxu2 %v8367_v32 }
 0xa28   : > { %v7886_v8 = vadd.f32 %v14560_v24, %v14611_v20  ;;  %v8360_v24 = vld [vmem:[%s14899_s9 + $0x8] sm:$0xff] }
 0xa29   : > { %8409 = vmatpush.msrb.mxu2 %v8365_v0  ;;  %8453 = vmatpush.msra.mxu3 %v8360_v24 }
 0xa2b   : > { %8410 = vmatpush.msrb.mxu2 %v8363_v61 }
 0xa2d   : > { %v7785_v28 = vpop.f32.mrf.mxu2  ;;  %v14620_v12 = vpop.f32.mrf.mxu3  ;;  %8411 = vmatpush.msrb.mxu2 %v8361_v18 }
 0xa2e   : > { %v14622_v62 = vadd.f32 %v7785_v28, %v7704_v57  ;;  %v8359_v28 = vld [vmem:[%s14899_s9] sm:$0xff] }
 0xa2f   : > { %8412 = vmatpush.msrb.mxu2 %v8359_v28 }
 0xa30   : > { %v7887_v3 = vadd.f32 %v14565_v37, %v14622_v62 }
 0xa35   : > { %v7788_v53 = vpop.f32.mrf.mxu2  ;;  %v14639_v2 = vpop.f32.mrf.mxu3 }
 0xa36   : > { %v14631_v30 = vadd.f32 %v7788_v53, %v7707_v38  ;;  %v8307_v53 = vpop.f32.mrf.mxu1 }
 0xa3d   : > { %v14641_v49 = vpop.f32.mrf.mxu2  ;;  %v14649_v14 = vpop.f32.mrf.mxu3 }
 0xa3e   : > { %v7971_v48 = vadd.f32 %v14641_v49, %v14578_v33  ;;  %v8310_v56 = vpop.f32.mrf.mxu1 }
 0xa40   : > { %v8061_v37 = vadd.f32 %v14576_v15, %v7971_v48 }
 0xa45   : > { %v14651_v7 = vpop.f32.mrf.mxu2  ;;  %v14668_v27 = vpop.f32.mrf.mxu3 }
 0xa46   : > { %v8313_v33 = vpop.f32.mrf.mxu1 }
 0xa4d   : > { %v14670_v29 = vpop.f32.mrf.mxu2  ;;  %v14690_v51 = vpop.f32.mrf.mxu3 }
 0xa4e   : > { %v7973_v60 = vadd.f32 %v14670_v29, %v14594_v46  ;;  %v8316_v1 = vpop.f32.mrf.mxu1 }
 0xa50   : > { %v8063_v26 = vadd.f32 %v14592_v34, %v7973_v60 }
 0xa55   : > { %v14692_v50 = vpop.f32.mrf.mxu2  ;;  %v14714_v21 = vpop.f32.mrf.mxu3 }
 0xa56   : > { %v8319_v0 = vpop.f32.mrf.mxu1 }
 0xa5d   : > { %v7959_v41 = vpop.f32.mrf.mxu2  ;;  %v8217_v57 = vpop.f32.mrf.mxu3 }
 0xa5e   : > { %v7975_v23 = vadd.f32 %v7959_v41, %v7885_v10  ;;  %v8322_v24 = vpop.f32.mrf.mxu1 }
 0xa60   : > { %v14717_v25 = vadd.f32 %v14604_v44, %v7975_v23 }
 0xa65   : > { %v7962_v54 = vpop.f32.mrf.mxu2  ;;  %v8220_v52 = vpop.f32.mrf.mxu3 }
 0xa66   : > { %v7976_v44 = vadd.f32 %v7962_v54, %v7886_v8  ;;  %v8155_v8 = vadd.f32 %v14649_v14, %v14717_v25 }
 0xa68   : > { %v14740_v20 = vadd.f32 %v14609_v35, %v7976_v44  ;;  %v7888_v35 = vadd.f32 %v14570_v13, %v14631_v30  ;;  %v14763_v13 = vld [vmem:[%s14896_s6] ss:$0 sm:$0xff] }
 0xa6d   : > { %v7965_v40 = vpop.f32.mrf.mxu2  ;;  %v8223_v62 = vpop.f32.mrf.mxu3 }
 0xa6e   : > { %v7977_v38 = vadd.f32 %v7965_v40, %v7887_v3 }
 0xa70   : > { %v14748_v6 = vadd.f32 %v14620_v12, %v7977_v38  ;;  %v7972_v12 = vadd.f32 %v14651_v7, %v14586_v43 }
 0xa72   : > { %v8157_v40 = vadd.f32 %v14690_v51, %v14748_v6 }
 0xa75   : > { %v7968_v39 = vpop.f32.mrf.mxu2  ;;  %v8226_v22 = vpop.f32.mrf.mxu3 }
 0xa76   : > { %v7978_v19 = vadd.f32 %v7968_v39, %v7888_v35 }
 0xa78   : > { %v14755_v4 = vadd.f32 %v14639_v2, %v7978_v19  ;;  %v8062_v2 = vadd.f32 %v14584_v58, %v7972_v12  ;;  %v7974_v58 = vadd.f32 %v14692_v50, %v14601_v45 }
 0xa7a   : > { %v8064_v29 = vadd.f32 %v14599_v17, %v7974_v58  ;;  %v8156_v17 = vadd.f32 %v14668_v27, %v14740_v20  ;;  %v8158_v39 = vadd.f32 %v14714_v21, %v14755_v4 }
 0xa7d   : > { %v8127_v47 = vpop.f32.mrf.mxu2  ;;  %v8229_v11 = vpop.f32.mrf.mxu3 }
 0xa7e   : > { %v8151_v9 = vadd.f32 %v8127_v47, %v8061_v37  ;;  %v8245_v45 = vadd.f32 %v8229_v11, %v8155_v8  ;;  %v8391_v47 = vld [vmem:[%s14900_s10] sm:$0x3] }
 0xa7f   : > { %v8393_v21 = vperm.slane %v8391_v47, 0  ;;  %v8394_v4 = vperm.slane %v8391_v47, 1 }
 0xa80   : > { %v8241_v36 = vadd.f32 %v8217_v57, %v8151_v9  ;;  %v8335_v63 = vadd.f32 %v8319_v0, %v8245_v45 }
 0xa82   : > { %v8331_v5 = vadd.f32 %v8307_v53, %v8241_v36  ;;  %v8347_v28 = vadd.f32 %v14763_v13, %v8335_v63 }
 0xa84   : > { %v8343_v30 = vadd.f32 %v14763_v13, %v8331_v5  ;;  %v8355_v3 = vmax.f32 %v8347_v28, 0.0 }
 0xa85   : > { %v8130_v49 = vpop.f32.mrf.mxu2  ;;  %v8232_v61 = vpop.f32.mrf.mxu3 }
 0xa86   : > { %v8351_v15 = vmax.f32 %v8343_v30, 0.0  ;;  %v8152_v42 = vadd.f32 %v8130_v49, %v8062_v2  ;;  %v8246_v57 = vadd.f32 %v8232_v61, %v8156_v17 }
 0xa88   : > { %v8242_v43 = vadd.f32 %v8220_v52, %v8152_v42  ;;  %8413 = vmatmul.f32.vlgmr.msrb.gmra.mxu2 %v8351_v15  ;;  %8454 = vmatmul.f32.vlgmr.msra.gmra.mxu3 %v8351_v15  ;;  %v8336_v25 = vadd.f32 %v8322_v24, %v8246_v57  ;;  %v8325_v52 = vpop.f32.mrf.mxu1 }
 0xa8a   : > { %v8332_v7 = vadd.f32 %v8310_v56, %v8242_v43  ;;  %v8348_v53 = vadd.f32 %v14763_v13, %v8336_v25 }
 0xa8c   : > { %v8344_v55 = vadd.f32 %v14763_v13, %v8332_v7  ;;  %v8356_v27 = vmax.f32 %v8348_v53, 0.0 }
 0xa8d   : > { %v8133_v59 = vpop.f32.mrf.mxu2  ;;  %v8235_v14 = vpop.f32.mrf.mxu3 }
 0xa8e   : > { %v8153_v16 = vadd.f32 %v8133_v59, %v8063_v26  ;;  %v8352_v31 = vmax.f32 %v8344_v55, 0.0  ;;  %v8247_v38 = vadd.f32 %v8235_v14, %v8157_v40 }
 0xa90   : > { %v8243_v10 = vadd.f32 %v8223_v62, %v8153_v16  ;;  %8416 = vmatmul.f32.gmra.mxu2 %v8352_v31  ;;  %8457 = vmatmul.f32.gmra.mxu3 %v8352_v31  ;;  %v8337_v35 = vadd.f32 %v8325_v52, %v8247_v38  ;;  %v8328_v56 = vpop.f32.mrf.mxu1 }
 0xa92   : > { %v8333_v46 = vadd.f32 %v8313_v33, %v8243_v10  ;;  %v8349_v48 = vadd.f32 %v14763_v13, %v8337_v35 }
 0xa94   : > { %v8345_v41 = vadd.f32 %v14763_v13, %v8333_v46  ;;  %v8357_v51 = vmax.f32 %v8349_v48, 0.0 }
 0xa95   : > { %v8136_v23 = vpop.f32.mrf.mxu2  ;;  %v8238_v20 = vpop.f32.mrf.mxu3 }
 0xa96   : > { %v8154_v34 = vadd.f32 %v8136_v23, %v8064_v29  ;;  %v8353_v32 = vmax.f32 %v8345_v41, 0.0  ;;  %v8248_v19 = vadd.f32 %v8238_v20, %v8158_v39 }
 0xa98   : > { %v8244_v54 = vadd.f32 %v8226_v22, %v8154_v34  ;;  %8419 = vmatmul.f32.gmra.mxu2 %v8353_v32  ;;  %8460 = vmatmul.f32.gmra.mxu3 %v8353_v32  ;;  %v8338_v37 = vadd.f32 %v8328_v56, %v8248_v19 }
 0xa9a   : > { %v8334_v50 = vadd.f32 %v8316_v1, %v8244_v54  ;;  %v8350_v6 = vadd.f32 %v14763_v13, %v8338_v37 }
 0xa9c   : > { %v8346_v44 = vadd.f32 %v14763_v13, %v8334_v50  ;;  %v8358_v62 = vmax.f32 %v8350_v6, 0.0 }
 0xa9e   : > { %v8354_v18 = vmax.f32 %v8346_v44, 0.0 }
 0xaa0   : > { %8422 = vmatmul.f32.gmra.mxu2 %v8354_v18  ;;  %8463 = vmatmul.f32.gmra.mxu3 %v8354_v18 }
 0xaa8   : > { %8425 = vmatmul.f32.gmra.mxu2 %v8355_v3  ;;  %8466 = vmatmul.f32.gmra.mxu3 %v8355_v3 }
 0xab0   : > { %8428 = vmatmul.f32.gmra.mxu2 %v8356_v27  ;;  %8469 = vmatmul.f32.gmra.mxu3 %v8356_v27 }
 0xab8   : > { %8431 = vmatmul.f32.gmra.mxu2 %v8357_v51  ;;  %8472 = vmatmul.f32.gmra.mxu3 %v8357_v51 }
 0xac0   : > { %8434 = vmatmul.f32.gmra.mxu2 %v8358_v62  ;;  %8475 = vmatmul.f32.gmra.mxu3 %v8358_v62 }
 0xb0b   : > { %v8414_v9 = vpop.f32.mrf.mxu2  ;;  %v8455_v12 = vpop.f32.mrf.mxu3 }
 0xb0c   : > { %v8415_v36 = vadd.f32 %v8414_v9, %v8393_v21  ;;  %v8456_v5 = vadd.f32 %v8455_v12, %v8394_v4 }
 0xb0e   : > { %v8479_v33 = vmax.f32 %v8415_v36, 0.0  ;;  %v8480_v30 = vmax.f32 %v8456_v5, 0.0 }
 0xb10   : > { %8527 = vrot.lane.b32.xlu2 %v8480_v30, %s9721_s19  ;;  %8503 = vrot.lane.b32.xlu0 %v8479_v33, %s9721_s19 }
 0xb13   : > { %v8417_v13 = vpop.f32.mrf.mxu2  ;;  %v8458_v2 = vpop.f32.mrf.mxu3 }
 0xb14   : > { %v8418_v49 = vadd.f32 %v8417_v13, %v8393_v21  ;;  %v8459_v42 = vadd.f32 %v8458_v2, %v8394_v4 }
 0xb16   : > { %v8481_v15 = vmax.f32 %v8418_v49, 0.0  ;;  %v8482_v7 = vmax.f32 %v8459_v42, 0.0 }
 0xb18   : > { %8505 = vrot.lane.b32.xlu0 %v8481_v15, %s9721_s19 }
 0xb1b   : > { %v8420_v22 = vpop.f32.mrf.mxu2  ;;  %v8461_v60 = vpop.f32.mrf.mxu3 }
 0xb1c   : > { %v8421_v43 = vadd.f32 %v8420_v22, %v8393_v21  ;;  %v8462_v55 = vadd.f32 %v8461_v60, %v8394_v4 }
 0xb1e   : > { %v8483_v26 = vmax.f32 %v8421_v43, 0.0  ;;  %v8484_v31 = vmax.f32 %v8462_v55, 0.0 }
 0xb20   : > { %8507 = vrot.lane.b32.xlu1 %v8483_v26, %s9721_s19  ;;  %8529 = vrot.lane.b32.xlu0 %v8482_v7, %s9721_s19 }
 0xb23   : > { %v8423_v1 = vpop.f32.mrf.mxu2  ;;  %v8464_v59 = vpop.f32.mrf.mxu3 }
 0xb24   : > { %v8465_v16 = vadd.f32 %v8464_v59, %v8394_v4  ;;  %v8424_v10 = vadd.f32 %v8423_v1, %v8393_v21 }
 0xb26   : > { %v8486_v58 = vmax.f32 %v8465_v16, 0.0  ;;  %v8485_v32 = vmax.f32 %v8424_v10, 0.0 }
 0xb28   : > { %8531 = vrot.lane.b32.xlu1 %v8484_v31, %s9721_s19  ;;  %8533 = vrot.lane.b32.xlu2 %v8486_v58, %s9721_s19 }
 0xb2b   : > { %v8426_v11 = vpop.f32.mrf.mxu2  ;;  %v8467_v46 = vpop.f32.mrf.mxu3 }
 0xb2c   : > { %v8427_v29 = vadd.f32 %v8426_v11, %v8393_v21  ;;  %v8468_v41 = vadd.f32 %v8467_v46, %v8394_v4 }
 0xb2e   : > { %v8487_v23 = vmax.f32 %v8427_v29, 0.0  ;;  %v8488_v34 = vmax.f32 %v8468_v41, 0.0 }
 0xb30   : > { %8535 = vrot.lane.b32.xlu0 %v8488_v34, %s9721_s19  ;;  %8511 = vrot.lane.b32.xlu2 %v8487_v23, %s9721_s19 }
 0xb31   : > { %8509 = vrot.lane.b32.xlu1 %v8485_v32, %s9721_s19 }
 0xb33   : > { %v8429_v0 = vpop.f32.mrf.mxu2  ;;  %v8470_v8 = vpop.f32.mrf.mxu3 }
 0xb34   : > { %v8430_v54 = vadd.f32 %v8429_v0, %v8393_v21  ;;  %v8471_v45 = vadd.f32 %v8470_v8, %v8394_v4 }
 0xb36   : > { %v8489_v50 = vmax.f32 %v8430_v54, 0.0  ;;  %v8490_v61 = vmax.f32 %v8471_v45, 0.0 }
 0xb38   : > { %8513 = vrot.lane.b32.xlu2 %v8489_v50, %s9721_s19 }
 0xb39   : > { %8537 = vrot.lane.b32.xlu1 %v8490_v61, %s9721_s19 }
 0xb3b   : > { %v8432_v44 = vpop.f32.mrf.mxu2  ;;  %v8473_v63 = vpop.f32.mrf.mxu3 }
 0xb3c   : > { %v8433_v18 = vadd.f32 %v8432_v44, %v8393_v21  ;;  %v8474_v17 = vadd.f32 %v8473_v63, %v8394_v4 }
 0xb3e   : > { %v8491_v24 = vmax.f32 %v8433_v18, 0.0  ;;  %v8492_v57 = vmax.f32 %v8474_v17, 0.0 }
 0xb40   : > { %8515 = vrot.lane.b32.xlu0 %v8491_v24, %s9721_s19  ;;  %8539 = vrot.lane.b32.xlu2 %v8492_v57, %s9721_s19 }
 0xb43   : > { %v8435_v28 = vpop.f32.mrf.mxu2  ;;  %v8476_v14 = vpop.f32.mrf.mxu3 }
 0xb44   : > { %v8436_v25 = vadd.f32 %v8435_v28, %v8393_v21  ;;  %v8477_v3 = vadd.f32 %v8476_v14, %v8394_v4 }
 0xb46   : > { %v8493_v40 = vmax.f32 %v8436_v25, 0.0  ;;  %v8494_v38 = vmax.f32 %v8477_v3, 0.0 }
 0xb48   : > { %8541 = vrot.lane.b32.xlu0 %v8494_v38, %s9721_s19  ;;  %8517 = vrot.lane.b32.xlu1 %v8493_v40, %s9721_s19 }
 0xb6a   : > { %v8528_v53 = vpop.permute.xlu2 %8527 }
 0xb6b   : > { %8656 = vst.msk [vmem:[%s13992_s24 + $0x80] sm:$0xff] %vm8639_vm10, %v8528_v53  ;;  %8591 = vrot.lane.b32.xlu0 %v8528_v53, %s9721_s19 }
 0xb82   : > { %v8504_v52 = vpop.permute.xlu0 %8503  ;;  %v8534_v35 = vpop.permute.xlu2 %8533 }
 0xb83   : > { %8640 = vst.msk [vmem:[%s13992_s24] sm:$0xff] %vm8639_vm10, %v8504_v52  ;;  %8575 = vrot.lane.b32.xlu1 %v8504_v52, %s9721_s19 }
 0xb84   : > { %8659 = vst.msk [vmem:[%s13992_s24 + $0x98] sm:$0xff] %vm8639_vm10, %v8534_v35 }
 0xb8a   : > { %v8506_v27 = vpop.permute.xlu0 %8505  ;;  %v8512_v20 = vpop.permute.xlu2 %8511 }
 0xb8b   : > { %8641 = vst.msk [vmem:[%s13992_s24 + $0x8] sm:$0xff] %vm8639_vm10, %v8506_v27  ;;  %8577 = vrot.lane.b32.xlu2 %v8506_v27, %s9721_s19 }
 0xb8c   : > { %8644 = vst.msk [vmem:[%s13992_s24 + $0x20] sm:$0xff] %vm8639_vm10, %v8512_v20 }
 0xb92   : > { %v8508_v39 = vpop.permute.xlu1 %8507  ;;  %v8530_v19 = vpop.permute.xlu0 %8529 }
 0xb93   : > { %8642 = vst.msk [vmem:[%s13992_s24 + $0x10] sm:$0xff] %vm8639_vm10, %v8508_v39  ;;  %v8514_v48 = vpop.permute.xlu2 %8513  ;;  %8579 = vrot.lane.b32.xlu0 %v8508_v39, %s9721_s19  ;;  %8593 = vrot.lane.b32.xlu1 %v8530_v19, %s9721_s19 }
 0xb94   : > { %8657 = vst.msk [vmem:[%s13992_s24 + $0x88] sm:$0xff] %vm8639_vm10, %v8530_v19 }
 0xb95   : > { %8645 = vst.msk [vmem:[%s13992_s24 + $0x28] sm:$0xff] %vm8639_vm10, %v8514_v48 }
 0xb9a   : > { %v8532_v56 = vpop.permute.xlu1 %8531 }
 0xb9b   : > { %8658 = vst.msk [vmem:[%s13992_s24 + $0x90] sm:$0xff] %vm8639_vm10, %v8532_v56  ;;  %v8540_v37 = vpop.permute.xlu2 %8539  ;;  %8595 = vrot.lane.b32.xlu2 %v8532_v56, %s9721_s19  ;;  %8597 = vrot.lane.b32.xlu0 %v8534_v35, %s9721_s19 }
 0xb9c   : > { %8662 = vst.msk [vmem:[%s13992_s24 + $0xb0] sm:$0xff] %vm8639_vm10, %v8540_v37 }
 0xba2   : > { %v8536_v51 = vpop.permute.xlu0 %8535 }
 0xba3   : > { %8660 = vst.msk [vmem:[%s13992_s24 + $0xa0] sm:$0xff] %vm8639_vm10, %v8536_v51  ;;  %v8510_v6 = vpop.permute.xlu1 %8509  ;;  %8583 = vrot.lane.b32.xlu2 %v8512_v20, %s9721_s19  ;;  %8585 = vrot.lane.b32.xlu0 %v8514_v48, %s9721_s19 }
 0xba4   : > { %8643 = vst.msk [vmem:[%s13992_s24 + $0x18] sm:$0xff] %vm8639_vm10, %v8510_v6  ;;  %8581 = vrot.lane.b32.xlu1 %v8510_v6, %s9721_s19 }
 0xbab   : > { %v8538_v62 = vpop.permute.xlu1 %8537  ;;  %8603 = vrot.lane.b32.xlu0 %v8540_v37, %s9721_s19 }
 0xbac   : > { %8661 = vst.msk [vmem:[%s13992_s24 + $0xa8] sm:$0xff] %vm8639_vm10, %v8538_v62  ;;  %8599 = vrot.lane.b32.xlu1 %v8536_v51, %s9721_s19 }
 0xbb2   : > { %v8516_v47 = vpop.permute.xlu0 %8515 }
 0xbb3   : > { %8646 = vst.msk [vmem:[%s13992_s24 + $0x30] sm:$0xff] %vm8639_vm10, %v8516_v47 }
 0xbb4   : > { %8587 = vrot.lane.b32.xlu1 %v8516_v47, %s9721_s19 }
 0xbba   : > { %v8542_v21 = vpop.permute.xlu0 %8541  ;;  %v8518_v4 = vpop.permute.xlu1 %8517 }
 0xbbb   : > { %8663 = vst.msk [vmem:[%s13992_s24 + $0xb8] sm:$0xff] %vm8639_vm10, %v8542_v21  ;;  %8589 = vrot.lane.b32.xlu2 %v8518_v4, %s9721_s19 }
 0xbbc   : > { %8647 = vst.msk [vmem:[%s13992_s24 + $0x38] sm:$0xff] %vm8639_vm10, %v8518_v4  ;;  %8605 = vrot.lane.b32.xlu1 %v8542_v21, %s9721_s19 }
 0xbc3   : > { %8601 = vrot.lane.b32.xlu2 %v8538_v62, %s9721_s19 }
 0xbdd   : > { %v8592_v9 = vpop.permute.xlu0 %8591 }
 0xbde   : > { %8664 = vst.msk [vmem:[%s13992_s24 + $0xc0] sm:$0xff] %vm8639_vm10, %v8592_v9 }
 0xbe5   : > { %v8578_v12 = vpop.permute.xlu2 %8577 }
 0xbe6   : > { %8649 = vst.msk [vmem:[%s13992_s24 + $0x48] sm:$0xff] %vm8639_vm10, %v8578_v12 }
 0xbf5   : > { %v8596_v36 = vpop.permute.xlu2 %8595  ;;  %v8576_v5 = vpop.permute.xlu1 %8575 }
 0xbf6   : > { %8666 = vst.msk [vmem:[%s13992_s24 + $0xd0] sm:$0xff] %vm8639_vm10, %v8596_v36 }
 0xbf7   : > { %8648 = vst.msk [vmem:[%s13992_s24 + $0x40] sm:$0xff] %vm8639_vm10, %v8576_v5 }
 0xbfd   : > { %v8584_v33 = vpop.permute.xlu2 %8583 }
 0xbfe   : > { %8652 = vst.msk [vmem:[%s13992_s24 + $0x60] sm:$0xff] %vm8639_vm10, %v8584_v33 }
 0xc05   : > { %v8580_v30 = vpop.permute.xlu0 %8579  ;;  %v8594_v13 = vpop.permute.xlu1 %8593 }
 0xc06   : > { %8650 = vst.msk [vmem:[%s13992_s24 + $0x50] sm:$0xff] %vm8639_vm10, %v8580_v30 }
 0xc07   : > { %8665 = vst.msk [vmem:[%s13992_s24 + $0xc8] sm:$0xff] %vm8639_vm10, %v8594_v13 }
 0xc0d   : > { %v8598_v2 = vpop.permute.xlu0 %8597 }
 0xc0e   : > { %8667 = vst.msk [vmem:[%s13992_s24 + $0xd8] sm:$0xff] %vm8639_vm10, %v8598_v2 }
 0xc15   : > { %v8586_v49 = vpop.permute.xlu0 %8585  ;;  %v8590_v15 = vpop.permute.xlu2 %8589 }
 0xc16   : > { %8653 = vst.msk [vmem:[%s13992_s24 + $0x68] sm:$0xff] %vm8639_vm10, %v8586_v49  ;;  %v8582_v42 = vpop.permute.xlu1 %8581 }
 0xc17   : > { %8655 = vst.msk [vmem:[%s13992_s24 + $0x78] sm:$0xff] %vm8639_vm10, %v8590_v15 }
 0xc18   : > { %8651 = vst.msk [vmem:[%s13992_s24 + $0x58] sm:$0xff] %vm8639_vm10, %v8582_v42 }
 0xc1d   : > { %v8604_v22 = vpop.permute.xlu0 %8603  ;;  %v8602_v60 = vpop.permute.xlu2 %8601 }
 0xc1e   : > { %8670 = vst.msk [vmem:[%s13992_s24 + $0xf0] sm:$0xff] %vm8639_vm10, %v8604_v22  ;;  %v8600_v43 = vpop.permute.xlu1 %8599 }
 0xc1f   : > { %8669 = vst.msk [vmem:[%s13992_s24 + $0xe8] sm:$0xff] %vm8639_vm10, %v8602_v60 }
 0xc20   : > { %8668 = vst.msk [vmem:[%s13992_s24 + $0xe0] sm:$0xff] %vm8639_vm10, %v8600_v43 }
 0xc26   : > { %v8588_v7 = vpop.permute.xlu1 %8587 }
 0xc27   : > { %8654 = vst.msk [vmem:[%s13992_s24 + $0x70] sm:$0xff] %vm8639_vm10, %v8588_v7 }
 0xc2e   : > { %v8606_v26 = vpop.permute.xlu1 %8605 }
 0xc2f   : > { %8671 = vst.msk [vmem:[%s13992_s24 + $0xf8] sm:$0xff] %vm8639_vm10, %v8606_v26 }
 0xc30 PF: > { %s21_s17 = sadd.s32 1, %s9718_s17  }
 0xc31   : > { %p18_p4 = scmp.ge.s32.totalorder %s21_s17, 4  }
 0xc33   :  { %20 = sbr.rel (!%p18_p4) target bundleno = 1 (0x1), region = 119 }

</bundles_post_ra>
